<compile_context>
chip_gen: v7x
topology: tpu7x:2x2x1
jax: 0.10.0
libtpu: 0.0.40
codegen_flags: <defaults>
</compile_context>

<pallas_src>
import functools

import jax
import jax.numpy as jnp
from jax.experimental import pallas as pl
from jax.experimental.pallas import tpu as pltpu


# ----------------------------- Pallas kernel ------------------------------ #
def _fused_mlp_kernel(x_ref, b_ref, *rest, layer_dims, num_relu_layers):
    """Whole actor-critic MLP in one kernel invocation (grid=(1,)).

    Positional refs, in order:
      x_ref   : (B, in_dim) f32 VMEM block
      b_ref   : (1, sum(out_dims)) f32 VMEM block (all biases, lane-aligned)
      rest    : w0_hbm .. wL_hbm   bf16 weights, memory_space=pl.ANY (HBM)
                out_ref            (B, head_width) f32 VMEM block
                w0_vmem .. wL_vmem bf16 VMEM scratch, exact per-layer shapes
                sems               DMA semaphores, one per layer

    Layers 0..L-1 are Linear+ReLU; layer L is the merged (actor|critic|pad)
    head.  Matmuls run on the MXU in bf16 with f32 accumulation; bias add and
    ReLU stay in f32 (v5e-safe: no bf16 VPU ops).
    """
    n = len(layer_dims)
    w_hbm = rest[:n]
    out_ref = rest[n]
    w_vmem = rest[n + 1:n + 1 + n]
    sems = rest[n + 1 + n]

    # Kick off every weight DMA immediately (single-buffered, exactly-shaped
    # destinations).  Compute below waits only for the layer it is about to
    # use, so the MXU overlaps with the remaining in-flight weight traffic.
    copies = []
    for i in range(n):
        cp = pltpu.make_async_copy(w_hbm[i], w_vmem[i], sems.at[i])
        cp.start()
        copies.append(cp)

    h = x_ref[...]                                           # (B, in_dim) f32
    off = 0
    for i, (_, dout) in enumerate(layer_dims):
        copies[i].wait()                                     # weight i landed
        y = jnp.dot(h.astype(jnp.bfloat16), w_vmem[i][...],
                    preferred_element_type=jnp.float32)      # MXU, f32 accum
        y = y + b_ref[:, off:off + dout]                     # f32 bias add
        if i < num_relu_layers:
            y = jnp.maximum(y, 0.0)                          # f32 ReLU
        h = y
        off += dout
    out_ref[...] = h.astype(out_ref.dtype)


def fused_forward_pallas(x, weights, bias_packed, *, vmem_limit_bytes=20 << 20):
    """Single pallas_call for the whole network.

    weights:     list of (in, out) bf16 arrays (last one = merged/padded head)
    bias_packed: (1, sum(out)) f32 array (all biases concatenated, lane-aligned)
    """
    B, in_dim = x.shape
    layer_dims = tuple((int(w.shape[0]), int(w.shape[1])) for w in weights)
    n = len(weights)
    head_width = layer_dims[-1][1]
    num_relu = n - 1

    in_specs = (
        [pl.BlockSpec((B, in_dim), lambda i: (0, 0)),
         pl.BlockSpec(bias_packed.shape, lambda i: (0, 0))]
        + [pl.BlockSpec(memory_space=pl.ANY) for _ in weights]  # raw HBM refs
    )

    scratch_shapes = (
        [pltpu.VMEM(dims, jnp.bfloat16) for dims in layer_dims]  # single-buffer
        + [pltpu.SemaphoreType.DMA((n,))]
    )

    flops = 2 * B * sum(din * dout for din, dout in layer_dims)
    bytes_accessed = int(
        x.size * x.dtype.itemsize
        + bias_packed.size * bias_packed.dtype.itemsize
        + sum(w.size * w.dtype.itemsize for w in weights)
        + B * head_width * 4)

    return pl.pallas_call(
        functools.partial(_fused_mlp_kernel, layer_dims=layer_dims,
                          num_relu_layers=num_relu),
        out_shape=jax.ShapeDtypeStruct((B, head_width), jnp.float32),
        grid_spec=pltpu.PrefetchScalarGridSpec(
            num_scalar_prefetch=0,
            grid=(1,),
            in_specs=in_specs,
            out_specs=pl.BlockSpec((B, head_width), lambda i: (0, 0)),
            scratch_shapes=scratch_shapes,
        ),
        compiler_params=pltpu.CompilerParams(
            dimension_semantics=("arbitrary",),
            vmem_limit_bytes=vmem_limit_bytes,
        ),
        cost_estimate=pl.CostEstimate(
            flops=flops, transcendentals=0, bytes_accessed=bytes_accessed),
    )(x, bias_packed, *weights)


# --------------------------- model construction --------------------------- #
def init_params(key, input_dim, hidden_dims, output_dim):
    """Deterministic fp32 init mirroring nn.Linear's U(-1/sqrt(fan_in), ...)."""
    params = {"layers": [], "actor": None, "critic": None}
    dims = [input_dim] + list(hidden_dims)
    for i in range(len(hidden_dims)):
        key, kw, kb = jax.random.split(key, 3)
        fan_in, fan_out = dims[i], dims[i + 1]
        bound = 1.0 / jnp.sqrt(fan_in)
        w = jax.random.uniform(kw, (fan_in, fan_out), jnp.float32, -bound, bound)
        b = jax.random.uniform(kb, (fan_out,), jnp.float32, -bound, bound)
        params["layers"].append((w, b))
    prev = dims[-1]
    for name, out_d in (("actor", output_dim), ("critic", 1)):
        key, kw, kb = jax.random.split(key, 3)
        bound = 1.0 / jnp.sqrt(prev)
        w = jax.random.uniform(kw, (prev, out_d), jnp.float32, -bound, bound)
        b = jax.random.uniform(kb, (out_d,), jnp.float32, -bound, bound)
        params[name] = (w, b)
    return params


def prepare_inference_params(params, output_dim):
    """Pack fp32 params into kernel layout.

    Returns:
      weights:     list of bf16 (in, out) arrays; last one is the merged
                   actor|critic head zero-padded to a lane-dense 128 columns.
      bias_packed: (1, sum(out)) f32 array of all biases concatenated (each
                   layer's out dim is a multiple of 128 -> lane-aligned slices).
    """
    weights, biases = [], []
    for w, b in params["layers"]:
        weights.append(w.astype(jnp.bfloat16))
        biases.append(b.astype(jnp.float32))

    aw, ab = params["actor"]          # (prev, output_dim), (output_dim,)
    cw, cb = params["critic"]         # (prev, 1), (1,)
    prev = aw.shape[0]
    n_head = output_dim + 1
    n_pad = max(128, ((n_head + 127) // 128) * 128)   # lane-dense head width

    wh = jnp.zeros((prev, n_pad), jnp.float32)
    wh = wh.at[:, :output_dim].set(aw).at[:, output_dim:n_head].set(cw)
    bh = jnp.zeros((n_pad,), jnp.float32)
    bh = bh.at[:output_dim].set(ab).at[output_dim:n_head].set(cb)

    weights.append(wh.astype(jnp.bfloat16))
    biases.append(bh)

    bias_packed = jnp.concatenate(biases).reshape(1, -1).astype(jnp.float32)
    return weights, bias_packed


def large_rl_model_forward(x, weights, bias_packed, output_dim):
    """Pallas implementation of LargeRLModel.forward -> (action_logits, value)."""
    out = fused_forward_pallas(x, weights, bias_packed)
    action_logits = out[:, :output_dim]
    value = out[:, output_dim:output_dim + 1]
    return action_logits, value


# ------------------------------- references -------------------------------- #
def reference_forward_fp32(params, x):
    """Pure-JAX fp32 reference (exact semantics of the PyTorch module)."""
    h = x
    for w, b in params["layers"]:
        h = jnp.maximum(h @ w + b, 0.0)
    aw, ab = params["actor"]
    cw, cb = params["critic"]
    return h @ aw + ab, h @ cw + cb


def reference_forward_bf16(params, x):
    """Pure-JAX reference using the kernel's numeric path (bf16 in, f32 accum)."""
    def lin(h, w, b):
        return jnp.dot(h.astype(jnp.bfloat16), w.astype(jnp.bfloat16),
                       preferred_element_type=jnp.float32) + b
    h = x
    for w, b in params["layers"]:
        h = jnp.maximum(lin(h, w, b), 0.0)
    aw, ab = params["actor"]
    cw, cb = params["critic"]
    return lin(h, aw, ab), lin(h, cw, cb)


# ---------------------------------- main ----------------------------------- #
if __name__ == "__main__":
    INPUT_DIM = 128
    HIDDEN_DIMS = [512, 1024, 2048, 1024, 512]
    OUTPUT_DIM = 64
    BATCH = 8  # multiple of the 8-sublane tile; raise freely to amortize DMA

    key = jax.random.PRNGKey(0)
    key, kp, kx = jax.random.split(key, 3)
    params = init_params(kp, INPUT_DIM, HIDDEN_DIMS, OUTPUT_DIM)
    x = jax.random.normal(kx, (BATCH, INPUT_DIM), jnp.float32)

    weights, bias_packed = prepare_inference_params(params, OUTPUT_DIM)

    fwd = jax.jit(
        lambda xx, ww, bb: large_rl_model_forward(xx, ww, bb, OUTPUT_DIM))
    action_logits, value = fwd(x, weights, bias_packed)
    jax.block_until_ready((action_logits, value))

    assert action_logits.shape == (BATCH, OUTPUT_DIM)
    assert value.shape == (BATCH, 1)

    # Tight check against the same numeric path (bf16 weights, f32 accumulate).
    rl, rv = reference_forward_bf16(params, x)
    assert jnp.allclose(action_logits, rl, atol=1e-2, rtol=1e-2)
    assert jnp.allclose(value, rv, atol=1e-2, rtol=1e-2)

    # Sanity check against the exact fp32 module semantics (bf16 weight quant).
    fl, fv = reference_forward_fp32(params, x)
    assert jnp.allclose(action_logits, fl, atol=2e-2, rtol=2e-2)
    assert jnp.allclose(value, fv, atol=2e-2, rtol=2e-2)

    print("KERNEL_OK")
</pallas_src>

<mosaic_0001>
module attributes {stable_mosaic.version = 11 : i64} {
  func.func @_fused_mlp_kernel(%arg0: i32, %arg1: memref<8x128xf32, #tpu.memory_space<vmem>>, %arg2: memref<1x5248xf32, #tpu.memory_space<vmem>>, %arg3: memref<128x512xbf16, #tpu.memory_space<any>>, %arg4: memref<512x1024xbf16, #tpu.memory_space<any>>, %arg5: memref<1024x2048xbf16, #tpu.memory_space<any>>, %arg6: memref<2048x1024xbf16, #tpu.memory_space<any>>, %arg7: memref<1024x512xbf16, #tpu.memory_space<any>>, %arg8: memref<512x128xbf16, #tpu.memory_space<any>>, %arg9: memref<8x128xf32, #tpu.memory_space<vmem>>, %arg10: memref<128x512xbf16, #tpu.memory_space<vmem>>, %arg11: memref<512x1024xbf16, #tpu.memory_space<vmem>>, %arg12: memref<1024x2048xbf16, #tpu.memory_space<vmem>>, %arg13: memref<2048x1024xbf16, #tpu.memory_space<vmem>>, %arg14: memref<1024x512xbf16, #tpu.memory_space<vmem>>, %arg15: memref<512x128xbf16, #tpu.memory_space<vmem>>, %arg16: memref<6x!tpu.dma_semaphore, #tpu.memory_space<semaphore_mem>>) attributes {dimension_semantics = [#tpu.dimension_semantics<arbitrary>], iteration_bounds = array<i64: 1>, scalar_prefetch = 0 : i64, scratch_operands = 7 : i64, tpu.core_type = #tpu.core_type<tc>, window_params = [{pipeline_mode = #tpu.pipeline_mode<synchronous>, transform_indices = @transform_0, window_bounds = array<i64: 8, 128>}, {pipeline_mode = #tpu.pipeline_mode<synchronous>, transform_indices = @transform_1, window_bounds = array<i64: 1, 5248>}, {}, {}, {}, {}, {}, {}, {pipeline_mode = #tpu.pipeline_mode<synchronous>, transform_indices = @transform_8, window_bounds = array<i64: 8, 128>}]} {
    %c0_i32 = arith.constant 0 : i32
    %0 = tpu.memref_slice %arg16[%c0_i32] : memref<6x!tpu.dma_semaphore, #tpu.memory_space<semaphore_mem>> -> memref<1x!tpu.dma_semaphore, #tpu.memory_space<semaphore_mem>>
    %1 = tpu.memref_squeeze %0 : memref<1x!tpu.dma_semaphore, #tpu.memory_space<semaphore_mem>> -> memref<!tpu.dma_semaphore, #tpu.memory_space<semaphore_mem>>
    tpu.enqueue_dma source(%arg3 : memref<128x512xbf16, #tpu.memory_space<any>>) target(%arg10 : memref<128x512xbf16, #tpu.memory_space<vmem>>) target_semaphore(%1 : memref<!tpu.dma_semaphore, #tpu.memory_space<semaphore_mem>>)
    %c1_i32 = arith.constant 1 : i32
    %2 = tpu.memref_slice %arg16[%c1_i32] : memref<6x!tpu.dma_semaphore, #tpu.memory_space<semaphore_mem>> -> memref<1x!tpu.dma_semaphore, #tpu.memory_space<semaphore_mem>>
    %3 = tpu.memref_squeeze %2 : memref<1x!tpu.dma_semaphore, #tpu.memory_space<semaphore_mem>> -> memref<!tpu.dma_semaphore, #tpu.memory_space<semaphore_mem>>
    tpu.enqueue_dma source(%arg4 : memref<512x1024xbf16, #tpu.memory_space<any>>) target(%arg11 : memref<512x1024xbf16, #tpu.memory_space<vmem>>) target_semaphore(%3 : memref<!tpu.dma_semaphore, #tpu.memory_space<semaphore_mem>>)
    %c2_i32 = arith.constant 2 : i32
    %4 = tpu.memref_slice %arg16[%c2_i32] : memref<6x!tpu.dma_semaphore, #tpu.memory_space<semaphore_mem>> -> memref<1x!tpu.dma_semaphore, #tpu.memory_space<semaphore_mem>>
    %5 = tpu.memref_squeeze %4 : memref<1x!tpu.dma_semaphore, #tpu.memory_space<semaphore_mem>> -> memref<!tpu.dma_semaphore, #tpu.memory_space<semaphore_mem>>
    tpu.enqueue_dma source(%arg5 : memref<1024x2048xbf16, #tpu.memory_space<any>>) target(%arg12 : memref<1024x2048xbf16, #tpu.memory_space<vmem>>) target_semaphore(%5 : memref<!tpu.dma_semaphore, #tpu.memory_space<semaphore_mem>>)
    %c3_i32 = arith.constant 3 : i32
    %6 = tpu.memref_slice %arg16[%c3_i32] : memref<6x!tpu.dma_semaphore, #tpu.memory_space<semaphore_mem>> -> memref<1x!tpu.dma_semaphore, #tpu.memory_space<semaphore_mem>>
    %7 = tpu.memref_squeeze %6 : memref<1x!tpu.dma_semaphore, #tpu.memory_space<semaphore_mem>> -> memref<!tpu.dma_semaphore, #tpu.memory_space<semaphore_mem>>
    tpu.enqueue_dma source(%arg6 : memref<2048x1024xbf16, #tpu.memory_space<any>>) target(%arg13 : memref<2048x1024xbf16, #tpu.memory_space<vmem>>) target_semaphore(%7 : memref<!tpu.dma_semaphore, #tpu.memory_space<semaphore_mem>>)
    %c4_i32 = arith.constant 4 : i32
    %8 = tpu.memref_slice %arg16[%c4_i32] : memref<6x!tpu.dma_semaphore, #tpu.memory_space<semaphore_mem>> -> memref<1x!tpu.dma_semaphore, #tpu.memory_space<semaphore_mem>>
    %9 = tpu.memref_squeeze %8 : memref<1x!tpu.dma_semaphore, #tpu.memory_space<semaphore_mem>> -> memref<!tpu.dma_semaphore, #tpu.memory_space<semaphore_mem>>
    tpu.enqueue_dma source(%arg7 : memref<1024x512xbf16, #tpu.memory_space<any>>) target(%arg14 : memref<1024x512xbf16, #tpu.memory_space<vmem>>) target_semaphore(%9 : memref<!tpu.dma_semaphore, #tpu.memory_space<semaphore_mem>>)
    %c5_i32 = arith.constant 5 : i32
    %10 = tpu.memref_slice %arg16[%c5_i32] : memref<6x!tpu.dma_semaphore, #tpu.memory_space<semaphore_mem>> -> memref<1x!tpu.dma_semaphore, #tpu.memory_space<semaphore_mem>>
    %11 = tpu.memref_squeeze %10 : memref<1x!tpu.dma_semaphore, #tpu.memory_space<semaphore_mem>> -> memref<!tpu.dma_semaphore, #tpu.memory_space<semaphore_mem>>
    tpu.enqueue_dma source(%arg8 : memref<512x128xbf16, #tpu.memory_space<any>>) target(%arg15 : memref<512x128xbf16, #tpu.memory_space<vmem>>) target_semaphore(%11 : memref<!tpu.dma_semaphore, #tpu.memory_space<semaphore_mem>>)
    %c0 = arith.constant 0 : index
    %c0_0 = arith.constant 0 : index
    %12 = vector.load %arg1[%c0, %c0_0] : memref<8x128xf32, #tpu.memory_space<vmem>>, vector<8x128xf32>
    %c0_i32_1 = arith.constant 0 : i32
    %13 = tpu.memref_slice %arg16[%c0_i32_1] : memref<6x!tpu.dma_semaphore, #tpu.memory_space<semaphore_mem>> -> memref<1x!tpu.dma_semaphore, #tpu.memory_space<semaphore_mem>>
    %14 = tpu.memref_squeeze %13 : memref<1x!tpu.dma_semaphore, #tpu.memory_space<semaphore_mem>> -> memref<!tpu.dma_semaphore, #tpu.memory_space<semaphore_mem>>
    tpu.wait_dma2 semaphore(%14 : memref<!tpu.dma_semaphore, #tpu.memory_space<semaphore_mem>>) src(%arg3 : memref<128x512xbf16, #tpu.memory_space<any>>) dst(%arg10 : memref<128x512xbf16, #tpu.memory_space<vmem>>)
    %15 = arith.truncf %12 : vector<8x128xf32> to vector<8x128xbf16>
    %c0_2 = arith.constant 0 : index
    %c0_3 = arith.constant 0 : index
    %16 = vector.load %arg10[%c0_2, %c0_3] : memref<128x512xbf16, #tpu.memory_space<vmem>>, vector<128x512xbf16>
    %cst = arith.constant dense<0.000000e+00> : vector<8x512xf32>
    %17 = tpu.matmul %15, %16, %cst {dimension_numbers = #tpu.dot_dimension_numbers<[1], [0], [0], [1], [0, 0, 1, 1], [], []>} : vector<8x128xbf16>, vector<128x512xbf16>, vector<8x512xf32> -> vector<8x512xf32>
    %c0_4 = arith.constant 0 : index
    %c0_5 = arith.constant 0 : index
    %18 = vector.load %arg2[%c0_4, %c0_5] : memref<1x5248xf32, #tpu.memory_space<vmem>>, vector<1x512xf32>
    %19 = vector.broadcast %18 : vector<1x512xf32> to vector<8x512xf32>
    %20 = arith.addf %17, %19 : vector<8x512xf32>
    %cst_6 = arith.constant 0.000000e+00 : f32
    %21 = vector.broadcast %cst_6 : f32 to vector<8x512xf32>
    %22 = arith.maximumf %20, %21 : vector<8x512xf32>
    %c1_i32_7 = arith.constant 1 : i32
    %23 = tpu.memref_slice %arg16[%c1_i32_7] : memref<6x!tpu.dma_semaphore, #tpu.memory_space<semaphore_mem>> -> memref<1x!tpu.dma_semaphore, #tpu.memory_space<semaphore_mem>>
    %24 = tpu.memref_squeeze %23 : memref<1x!tpu.dma_semaphore, #tpu.memory_space<semaphore_mem>> -> memref<!tpu.dma_semaphore, #tpu.memory_space<semaphore_mem>>
    tpu.wait_dma2 semaphore(%24 : memref<!tpu.dma_semaphore, #tpu.memory_space<semaphore_mem>>) src(%arg4 : memref<512x1024xbf16, #tpu.memory_space<any>>) dst(%arg11 : memref<512x1024xbf16, #tpu.memory_space<vmem>>)
    %25 = arith.truncf %22 : vector<8x512xf32> to vector<8x512xbf16>
    %c0_8 = arith.constant 0 : index
    %c0_9 = arith.constant 0 : index
    %26 = vector.load %arg11[%c0_8, %c0_9] : memref<512x1024xbf16, #tpu.memory_space<vmem>>, vector<512x1024xbf16>
    %cst_10 = arith.constant dense<0.000000e+00> : vector<8x1024xf32>
    %27 = tpu.matmul %25, %26, %cst_10 {dimension_numbers = #tpu.dot_dimension_numbers<[1], [0], [0], [1], [0, 0, 1, 1], [], []>} : vector<8x512xbf16>, vector<512x1024xbf16>, vector<8x1024xf32> -> vector<8x1024xf32>
    %c0_11 = arith.constant 0 : index
    %c512 = arith.constant 512 : index
    %28 = vector.load %arg2[%c0_11, %c512] : memref<1x5248xf32, #tpu.memory_space<vmem>>, vector<1x1024xf32>
    %29 = vector.broadcast %28 : vector<1x1024xf32> to vector<8x1024xf32>
    %30 = arith.addf %27, %29 : vector<8x1024xf32>
    %cst_12 = arith.constant 0.000000e+00 : f32
    %31 = vector.broadcast %cst_12 : f32 to vector<8x1024xf32>
    %32 = arith.maximumf %30, %31 : vector<8x1024xf32>
    %c2_i32_13 = arith.constant 2 : i32
    %33 = tpu.memref_slice %arg16[%c2_i32_13] : memref<6x!tpu.dma_semaphore, #tpu.memory_space<semaphore_mem>> -> memref<1x!tpu.dma_semaphore, #tpu.memory_space<semaphore_mem>>
    %34 = tpu.memref_squeeze %33 : memref<1x!tpu.dma_semaphore, #tpu.memory_space<semaphore_mem>> -> memref<!tpu.dma_semaphore, #tpu.memory_space<semaphore_mem>>
    tpu.wait_dma2 semaphore(%34 : memref<!tpu.dma_semaphore, #tpu.memory_space<semaphore_mem>>) src(%arg5 : memref<1024x2048xbf16, #tpu.memory_space<any>>) dst(%arg12 : memref<1024x2048xbf16, #tpu.memory_space<vmem>>)
    %35 = arith.truncf %32 : vector<8x1024xf32> to vector<8x1024xbf16>
    %c0_14 = arith.constant 0 : index
    %c0_15 = arith.constant 0 : index
    %36 = vector.load %arg12[%c0_14, %c0_15] : memref<1024x2048xbf16, #tpu.memory_space<vmem>>, vector<1024x2048xbf16>
    %cst_16 = arith.constant dense<0.000000e+00> : vector<8x2048xf32>
    %37 = tpu.matmul %35, %36, %cst_16 {dimension_numbers = #tpu.dot_dimension_numbers<[1], [0], [0], [1], [0, 0, 1, 1], [], []>} : vector<8x1024xbf16>, vector<1024x2048xbf16>, vector<8x2048xf32> -> vector<8x2048xf32>
    %c0_17 = arith.constant 0 : index
    %c1536 = arith.constant 1536 : index
    %38 = vector.load %arg2[%c0_17, %c1536] : memref<1x5248xf32, #tpu.memory_space<vmem>>, vector<1x2048xf32>
    %39 = vector.broadcast %38 : vector<1x2048xf32> to vector<8x2048xf32>
    %40 = arith.addf %37, %39 : vector<8x2048xf32>
    %cst_18 = arith.constant 0.000000e+00 : f32
    %41 = vector.broadcast %cst_18 : f32 to vector<8x2048xf32>
    %42 = arith.maximumf %40, %41 : vector<8x2048xf32>
    %c3_i32_19 = arith.constant 3 : i32
    %43 = tpu.memref_slice %arg16[%c3_i32_19] : memref<6x!tpu.dma_semaphore, #tpu.memory_space<semaphore_mem>> -> memref<1x!tpu.dma_semaphore, #tpu.memory_space<semaphore_mem>>
    %44 = tpu.memref_squeeze %43 : memref<1x!tpu.dma_semaphore, #tpu.memory_space<semaphore_mem>> -> memref<!tpu.dma_semaphore, #tpu.memory_space<semaphore_mem>>
    tpu.wait_dma2 semaphore(%44 : memref<!tpu.dma_semaphore, #tpu.memory_space<semaphore_mem>>) src(%arg6 : memref<2048x1024xbf16, #tpu.memory_space<any>>) dst(%arg13 : memref<2048x1024xbf16, #tpu.memory_space<vmem>>)
    %45 = arith.truncf %42 : vector<8x2048xf32> to vector<8x2048xbf16>
    %c0_20 = arith.constant 0 : index
    %c0_21 = arith.constant 0 : index
    %46 = vector.load %arg13[%c0_20, %c0_21] : memref<2048x1024xbf16, #tpu.memory_space<vmem>>, vector<2048x1024xbf16>
    %cst_22 = arith.constant dense<0.000000e+00> : vector<8x1024xf32>
    %47 = tpu.matmul %45, %46, %cst_22 {dimension_numbers = #tpu.dot_dimension_numbers<[1], [0], [0], [1], [0, 0, 1, 1], [], []>} : vector<8x2048xbf16>, vector<2048x1024xbf16>, vector<8x1024xf32> -> vector<8x1024xf32>
    %c0_23 = arith.constant 0 : index
    %c3584 = arith.constant 3584 : index
    %48 = vector.load %arg2[%c0_23, %c3584] : memref<1x5248xf32, #tpu.memory_space<vmem>>, vector<1x1024xf32>
    %49 = vector.broadcast %48 : vector<1x1024xf32> to vector<8x1024xf32>
    %50 = arith.addf %47, %49 : vector<8x1024xf32>
    %cst_24 = arith.constant 0.000000e+00 : f32
    %51 = vector.broadcast %cst_24 : f32 to vector<8x1024xf32>
    %52 = arith.maximumf %50, %51 : vector<8x1024xf32>
    %c4_i32_25 = arith.constant 4 : i32
    %53 = tpu.memref_slice %arg16[%c4_i32_25] : memref<6x!tpu.dma_semaphore, #tpu.memory_space<semaphore_mem>> -> memref<1x!tpu.dma_semaphore, #tpu.memory_space<semaphore_mem>>
    %54 = tpu.memref_squeeze %53 : memref<1x!tpu.dma_semaphore, #tpu.memory_space<semaphore_mem>> -> memref<!tpu.dma_semaphore, #tpu.memory_space<semaphore_mem>>
    tpu.wait_dma2 semaphore(%54 : memref<!tpu.dma_semaphore, #tpu.memory_space<semaphore_mem>>) src(%arg7 : memref<1024x512xbf16, #tpu.memory_space<any>>) dst(%arg14 : memref<1024x512xbf16, #tpu.memory_space<vmem>>)
    %55 = arith.truncf %52 : vector<8x1024xf32> to vector<8x1024xbf16>
    %c0_26 = arith.constant 0 : index
    %c0_27 = arith.constant 0 : index
    %56 = vector.load %arg14[%c0_26, %c0_27] : memref<1024x512xbf16, #tpu.memory_space<vmem>>, vector<1024x512xbf16>
    %cst_28 = arith.constant dense<0.000000e+00> : vector<8x512xf32>
    %57 = tpu.matmul %55, %56, %cst_28 {dimension_numbers = #tpu.dot_dimension_numbers<[1], [0], [0], [1], [0, 0, 1, 1], [], []>} : vector<8x1024xbf16>, vector<1024x512xbf16>, vector<8x512xf32> -> vector<8x512xf32>
    %c0_29 = arith.constant 0 : index
    %c4608 = arith.constant 4608 : index
    %58 = vector.load %arg2[%c0_29, %c4608] : memref<1x5248xf32, #tpu.memory_space<vmem>>, vector<1x512xf32>
    %59 = vector.broadcast %58 : vector<1x512xf32> to vector<8x512xf32>
    %60 = arith.addf %57, %59 : vector<8x512xf32>
    %cst_30 = arith.constant 0.000000e+00 : f32
    %61 = vector.broadcast %cst_30 : f32 to vector<8x512xf32>
    %62 = arith.maximumf %60, %61 : vector<8x512xf32>
    %c5_i32_31 = arith.constant 5 : i32
    %63 = tpu.memref_slice %arg16[%c5_i32_31] : memref<6x!tpu.dma_semaphore, #tpu.memory_space<semaphore_mem>> -> memref<1x!tpu.dma_semaphore, #tpu.memory_space<semaphore_mem>>
    %64 = tpu.memref_squeeze %63 : memref<1x!tpu.dma_semaphore, #tpu.memory_space<semaphore_mem>> -> memref<!tpu.dma_semaphore, #tpu.memory_space<semaphore_mem>>
    tpu.wait_dma2 semaphore(%64 : memref<!tpu.dma_semaphore, #tpu.memory_space<semaphore_mem>>) src(%arg8 : memref<512x128xbf16, #tpu.memory_space<any>>) dst(%arg15 : memref<512x128xbf16, #tpu.memory_space<vmem>>)
    %65 = arith.truncf %62 : vector<8x512xf32> to vector<8x512xbf16>
    %c0_32 = arith.constant 0 : index
    %c0_33 = arith.constant 0 : index
    %66 = vector.load %arg15[%c0_32, %c0_33] : memref<512x128xbf16, #tpu.memory_space<vmem>>, vector<512x128xbf16>
    %cst_34 = arith.constant dense<0.000000e+00> : vector<8x128xf32>
    %67 = tpu.matmul %65, %66, %cst_34 {dimension_numbers = #tpu.dot_dimension_numbers<[1], [0], [0], [1], [0, 0, 1, 1], [], []>} : vector<8x512xbf16>, vector<512x128xbf16>, vector<8x128xf32> -> vector<8x128xf32>
    %c0_35 = arith.constant 0 : index
    %c5120 = arith.constant 5120 : index
    %68 = vector.load %arg2[%c0_35, %c5120] : memref<1x5248xf32, #tpu.memory_space<vmem>>, vector<1x128xf32>
    %69 = vector.broadcast %68 : vector<1x128xf32> to vector<8x128xf32>
    %70 = arith.addf %67, %69 : vector<8x128xf32>
    %c0_36 = arith.constant 0 : index
    %c0_37 = arith.constant 0 : index
    %71 = vector.load %arg9[%c0_36, %c0_37] : memref<8x128xf32, #tpu.memory_space<vmem>>, vector<8x128xf32>
    tpu.vector_store %arg9[%c0_36, %c0_37], %70 {strides = array<i32>} : memref<8x128xf32, #tpu.memory_space<vmem>>, vector<8x128xf32>,
    return
  }
  func.func @transform_0(%arg0: i32) -> (i32, i32) {
    %c0_i32 = arith.constant 0 : i32
    %c0_i32_0 = arith.constant 0 : i32
    %c0_i32_1 = arith.constant 0 : i32
    return %c0_i32, %c0_i32_0 : i32, i32
  }
  func.func @transform_1(%arg0: i32) -> (i32, i32) {
    %c0_i32 = arith.constant 0 : i32
    %c0_i32_0 = arith.constant 0 : i32
    %c0_i32_1 = arith.constant 0 : i32
    return %c0_i32, %c0_i32_0 : i32, i32
  }
  func.func @transform_8(%arg0: i32) -> (i32, i32) {
    %c0_i32 = arith.constant 0 : i32
    %c0_i32_0 = arith.constant 0 : i32
    %c0_i32_1 = arith.constant 0 : i32
    return %c0_i32, %c0_i32_0 : i32, i32
  }
}

</mosaic_0001>

<bundles_post_ra>
// kernel: _lambda_.1
= control target key start
LH: loop header
LB: loop body
LE: loop exit
PB: predicated region body
PF: predicated region fallthrough
CT: control target
= control target key end

     0   :  { %13 = vsyncpa [#allocation10], 0  ;;  %s7797_s0 = inlined_call_operand.hbm [shape: f32[8,128], index: 0, kind: input, shape index: {}]   ;;  %s7798_s1 = inlined_call_operand.hbm [shape: f32[1,5248], index: 1, kind: input, shape index: {}]   ;;  %s7799_s2 = inlined_call_operand.hbm [shape: bf16[128,512], index: 2, kind: input, shape index: {}]   ;;  %s7800_s3 = inlined_call_operand.hbm [shape: bf16[512,1024], index: 3, kind: input, shape index: {}]   ;;  %s7801_s4 = inlined_call_operand.hbm [shape: bf16[1024,2048], index: 4, kind: input, shape index: {}]   ;;  %s7802_s5 = inlined_call_operand.hbm [shape: bf16[2048,1024], index: 5, kind: input, shape index: {}]   ;;  %s7803_s6 = inlined_call_operand.hbm [shape: bf16[1024,512], index: 6, kind: input, shape index: {}]   ;;  %s7804_s7 = inlined_call_operand.hbm [shape: bf16[512,128], index: 7, kind: input, shape index: {}]   ;;  %s7805_s8 = inlined_call_operand.vmem [shape: f32[8,128], index: 8, kind: output, shape index: {}]  }
   0x1   :  { %14 = vsyncpa [#allocation12], 0  ;;  %s7124_s27 = smov [#allocation9]   ;;  %s7125_s29 = smov [#allocation11]  }
   0x2   :  { %s21_s28 = sshll.u32 %s7124_s27, 4  ;;  %s31_s30 = sshll.u32 %s7125_s29, 4  ;;  %s22_s28 = int_to_ptr.vmem [resolvable:$true] %s21_s28  ;;  %s32_s30 = int_to_ptr.vmem [resolvable:$true] %s31_s30 }
   0x3   :  { %s7042_s11 = scalar_lea.hbm %s7797_s0, 128 }
   0x4   :  { %p7043_p0 = scmp.ne.s32.totalorder %s7797_s0, %s7042_s11  ;;  %p7046_p1 = scmp.lt.u32.totalorder %s7042_s11, %s7797_s0 }
   0x6   :  { %p7048_p2 = pnand %p7046_p1, %p7043_p0 }
   0x8   :  { %7051 = shalt.err (!%p7048_p2)
}
   0x9   :  { %s7052_s16 = scalar_lea.vmem %s22_s28, 128  ;;  %p7057_p4 = scmp.lt.s32.totalorder %s22_s28, %s22_s28 }
   0xa   :  { %p7053_p3 = scmp.ne.s32.totalorder %s22_s28, %s7052_s16  ;;  %p7058_p5 = scmp.lt.s32.totalorder %s7052_s16, %s7052_s16 }
   0xc   :  { %p7059_p6 = por %p7058_p5, %p7057_p4 }
   0xe   :  { %p7060_p7 = pnand %p7059_p6, %p7053_p3 }
  0x10   :  { %7063 = shalt.err (!%p7060_p7)
}
  0x11   :  { %24 = dma.hbm_to_vmem [thread:$0]  %s7797_s0, 128, %s22_s28, [#allocation10]  }
  0x12   :  { %s7064_s21 = scalar_lea.hbm %s7798_s1, 656 }
  0x13   :  { %p7065_p8 = scmp.ne.s32.totalorder %s7798_s1, %s7064_s21  ;;  %p7068_p9 = scmp.lt.u32.totalorder %s7064_s21, %s7798_s1 }
  0x15   :  { %p7070_p10 = pnand %p7068_p9, %p7065_p8 }
  0x17   :  { %7073 = shalt.err (!%p7070_p10)
}
  0x18   :  { %s7074_s26 = scalar_lea.vmem %s32_s30, 656  ;;  %s7078_s27 = scalar_lea.vmem %s32_s30, 672 }
  0x19   :  { %p7075_p11 = scmp.ne.s32.totalorder %s32_s30, %s7074_s26  ;;  %p7079_p12 = scmp.lt.s32.totalorder %s32_s30, %s32_s30 }
  0x1a   :  { %p7080_p13 = scmp.lt.s32.totalorder %s7078_s27, %s7074_s26 }
  0x1c   :  { %p7081_p0 = por %p7080_p13, %p7079_p12 }
  0x1e   :  { %p7082_p1 = pnand %p7081_p0, %p7075_p11 }
  0x20   :  { %7085 = shalt.err (!%p7082_p1)
}
  0x21   :  { %34 = dma.hbm_to_vmem [thread:$0]  %s7798_s1, 656, %s32_s30, [#allocation12]  }
  0x22   :  { %7108 = dma.done.wait [#allocation10], 128  }
  0x23   :  { %7109 = vsyncadd [#allocation10], 4294967168 }
  0x24   :  { %7110 = dma.done.wait [#allocation12], 656  }
  0x25   :  { %7111 = vsyncadd [#allocation12], 4294966640  ;;  %s46_s29 = sld [smem:[#allocation0]]   ;;  %s7126_s9 = smov 512  }
  0x26   :  { %58 = sst [smem:[#allocation14]] %s7126_s9  ;;  %s7127_s10 = smov 4  }
  0x27   :  { %60 = sst [smem:[#allocation14 + $0x1]] %s7126_s9  ;;  %s7128_s11 = smov 64  }
  0x28   :  { %62 = sst [smem:[#allocation14 + $0x2]] %s7127_s10  ;;  %s7129_s12 = smov 128  }
  0x29   :  { %64 = sst [smem:[#allocation14 + $0x3]] %s7128_s11  ;;  %s7130_s1 = smov 2  }
  0x2a   :  { %66 = sst [smem:[#allocation14 + $0x4]] %s7129_s12  ;;  %s7131_s13 = smov 256  }
  0x2b   :  { %68 = sst [smem:[#allocation14 + $0x5]] %s7130_s1  ;;  %s6666_s30 = sshll.u32 %s46_s29, 26 }
  0x2c   :  { %70 = sst [smem:[#allocation14 + $0x6]] %s7131_s13  ;;  %s7229_s14 = sadd.s32 134217728, %s6666_s30 }
  0x2d   :  { %72 = sst [smem:[#allocation14 + $0x7]] %s7128_s11  ;;  %s7132_s15 = smov [#allocation2]  }
  0x2e   :  { %74 = sst [smem:[#allocation14 + $0x8]] %s7127_s10  ;;  %s54_s16 = sshll.u32 %s7132_s15, 4  ;;  %s55_s16 = int_to_ptr.vmem [resolvable:$true] %s54_s16 }
  0x2f   :  { %s7133_s17 = smov [#allocation8]   ;;  %s7134_s18 = smov [#allocation13]  }
  0x30   :  { %76 = dma.general %s7799_s2, 4096, %s55_s16, %s7133_s17, %s7134_s18, [#allocation14], %s7229_s14, 0  }
  0x31   :  { %s7135_s21 = smov 1024   ;;  %s7136_s22 = smov 8  }
  0x32   :  { %93 = sst [smem:[#allocation16]] %s7135_s21  ;;  %s7137_s23 = smov [#allocation3]  }
  0x33   :  { %95 = sst [smem:[#allocation16 + $0x1]] %s7135_s21  ;;  %s89_s24 = sshll.u32 %s7137_s23, 4  ;;  %s90_s24 = int_to_ptr.vmem [resolvable:$true] %s89_s24 }
  0x34   :  { %97 = sst [smem:[#allocation16 + $0x2]] %s7136_s22  ;;  %s7138_s2 = smov [#allocation8 + $0x1]  }
  0x35   :  { %99 = sst [smem:[#allocation16 + $0x3]] %s7128_s11  ;;  %s7139_s25 = smov [#allocation15]  }
  0x36   :  { %101 = sst [smem:[#allocation16 + $0x4]] %s7129_s12  ;;  %s7140_s0 = smov 2048  }
  0x37   :  { %103 = sst [smem:[#allocation16 + $0x5]] %s7130_s1  ;;  %s7141_s28 = smov [#allocation4]  }
  0x38   :  { %105 = sst [smem:[#allocation16 + $0x6]] %s7126_s9  ;;  %s124_s29 = sshll.u32 %s7141_s28, 4  ;;  %s125_s29 = int_to_ptr.vmem [resolvable:$true] %s124_s29 }
  0x39   :  { %107 = sst [smem:[#allocation16 + $0x7]] %s7128_s11  ;;  %s7142_s30 = smov 16  }
  0x3a   :  { %109 = sst [smem:[#allocation16 + $0x8]] %s7127_s10  ;;  %s7144_s15 = smov [#allocation17]  }
  0x3b   :  { %111 = dma.general %s7800_s3, 32768, %s90_s24, %s7138_s2, %s7139_s25, [#allocation16], %s7229_s14, 0  }
  0x3c   :  { %128 = sst [smem:[#allocation18]] %s7140_s0  ;;  %s7143_s3 = smov [#allocation8 + $0x2]  }
  0x3d   :  { %130 = sst [smem:[#allocation18 + $0x1]] %s7140_s0  ;;  %s7145_s18 = smov [#allocation5]  }
  0x3e   :  { %132 = sst [smem:[#allocation18 + $0x2]] %s7142_s30  ;;  %s159_s19 = sshll.u32 %s7145_s18, 4  ;;  %s160_s19 = int_to_ptr.vmem [resolvable:$true] %s159_s19 }
  0x3f   :  { %134 = sst [smem:[#allocation18 + $0x3]] %s7128_s11  ;;  %s7147_s20 = smov [#allocation19]  }
  0x40   :  { %136 = sst [smem:[#allocation18 + $0x4]] %s7129_s12  ;;  %s7149_s2 = smov [#allocation7]  }
  0x41   :  { %138 = sst [smem:[#allocation18 + $0x5]] %s7130_s1  ;;  %s225_s25 = sshll.u32 %s7149_s2, 4  ;;  %s226_s25 = int_to_ptr.vmem [resolvable:$true] %s225_s25 }
  0x42   :  { %140 = sst [smem:[#allocation18 + $0x6]] %s7135_s21 }
  0x43   :  { %142 = sst [smem:[#allocation18 + $0x7]] %s7128_s11 }
  0x44   :  { %144 = sst [smem:[#allocation18 + $0x8]] %s7127_s10 }
  0x45   :  { %146 = dma.general %s7801_s4, 131072, %s125_s29, %s7143_s3, %s7144_s15, [#allocation18], %s7229_s14, 0  }
  0x46   :  { %163 = sst [smem:[#allocation20]] %s7135_s21  ;;  %s7146_s4 = smov [#allocation8 + $0x3]  }
  0x47   :  { %165 = sst [smem:[#allocation20 + $0x1]] %s7135_s21 }
  0x48   :  { %167 = sst [smem:[#allocation20 + $0x2]] %s7136_s22  ;;  %s7148_s22 = smov [#allocation6]  }
  0x49   :  { %169 = sst [smem:[#allocation20 + $0x3]] %s7128_s11  ;;  %s194_s24 = sshll.u32 %s7148_s22, 4  ;;  %s195_s24 = int_to_ptr.vmem [resolvable:$true] %s194_s24 }
  0x4a   :  { %171 = sst [smem:[#allocation20 + $0x4]] %s7129_s12 }
  0x4b   :  { %173 = sst [smem:[#allocation20 + $0x5]] %s7130_s1 }
  0x4c   :  { %175 = sst [smem:[#allocation20 + $0x6]] %s7126_s9 }
  0x4d   :  { %177 = sst [smem:[#allocation20 + $0x7]] %s7128_s11 }
  0x4e   :  { %179 = sst [smem:[#allocation20 + $0x8]] %s7127_s10 }
  0x4f   :  { %181 = dma.general %s7802_s5, 131072, %s160_s19, %s7146_s4, %s7147_s20, [#allocation20], %s7229_s14, 0  }
  0x50   :  { %198 = sst [smem:[#allocation22]] %s7126_s9  ;;  %s7150_s5 = smov [#allocation8 + $0x4]  }
  0x51   :  { %200 = sst [smem:[#allocation22 + $0x1]] %s7126_s9  ;;  %s7151_s9 = smov [#allocation21]  }
  0x52   :  { %202 = sst [smem:[#allocation22 + $0x2]] %s7127_s10 }
  0x53   :  { %204 = sst [smem:[#allocation22 + $0x3]] %s7128_s11 }
  0x54   :  { %206 = sst [smem:[#allocation22 + $0x4]] %s7129_s12  ;;  %s7086_s12 = scalar_lea.hbm %s7804_s7, 4096 }
  0x55   :  { %208 = sst [smem:[#allocation22 + $0x5]] %s7130_s1  ;;  %p7087_p2 = scmp.ne.s32.totalorder %s7804_s7, %s7086_s12 }
  0x56   :  { %210 = sst [smem:[#allocation22 + $0x6]] %s7131_s13  ;;  %p7090_p3 = scmp.lt.u32.totalorder %s7086_s12, %s7804_s7 }
  0x57   :  { %212 = sst [smem:[#allocation22 + $0x7]] %s7128_s11 }
  0x58   :  { %214 = sst [smem:[#allocation22 + $0x8]] %s7127_s10  ;;  %p7092_p4 = pnand %p7090_p3, %p7087_p2 }
  0x59   :  { %216 = dma.general %s7803_s6, 32768, %s195_s24, %s7150_s5, %s7151_s9, [#allocation22], %s7229_s14, 0  }
  0x5a   :  { %7095 = shalt.err (!%p7092_p4)  }
  0x5b   :  { %s7096_s10 = scalar_lea.vmem %s226_s25, 4096  ;;  %p7101_p6 = scmp.lt.s32.totalorder %s226_s25, %s226_s25 }
  0x5c   :  { %p7097_p5 = scmp.ne.s32.totalorder %s226_s25, %s7096_s10  ;;  %p7102_p7 = scmp.lt.s32.totalorder %s7096_s10, %s7096_s10 }
  0x5e   :  { %p7103_p8 = por %p7102_p7, %p7101_p6 }
  0x60   :  { %p7104_p9 = pnand %p7103_p8, %p7097_p5 }
  0x62   :  { %7107 = shalt.err (!%p7104_p9)  }
  0x63   :  { %228 = dma.hbm_to_vmem [thread:$0]  %s7804_s7, 4096, %s226_s25, [#allocation8 + $0x5]  ;;  %v7298_v0 = vld [vmem:[#allocation9] sm:$0xff] }
  0x64   :  { %7112 = dma.done.wait [#allocation8], 4096 }
  0x65   :  { %7113 = vsyncadd [#allocation8], 4294963200  ;;  %v7152_v1 = vmov 0   ;;  %v236_v2 = vld [vmem:[#allocation2 + $0x8] sm:$0xff]  ;;  %v238_v3 = vld [vmem:[#allocation2 + $0x18] sm:$0xff]  ;;  %v234_v34 = vpack.c.bf16 %v7298_v0, %v7298_v0  ;;  %v269_v35 = vlaneseq }
  0x66   :  { %321 = vmatprep.mubr.bf16.mxu0 %v7152_v1  ;;  %362 = vmatprep.mubr.bf16.mxu1 %v7152_v1  ;;  %v235_v4 = vld [vmem:[#allocation2] sm:$0xff]  ;;  %v237_v5 = vld [vmem:[#allocation2 + $0x10] sm:$0xff]  ;;  %v240_v6 = vld [vmem:[#allocation2 + $0x28] sm:$0xff] }
  0x67   :  { %289 = vmatprep.subr.bf16.mxu0 %v236_v2  ;;  %330 = vmatprep.subr.bf16.mxu1 %v238_v3  ;;  %v242_v7 = vld [vmem:[#allocation2 + $0x38] sm:$0xff]  ;;  %v239_v8 = vld [vmem:[#allocation2 + $0x20] sm:$0xff]  ;;  %v241_v9 = vld [vmem:[#allocation2 + $0x30] sm:$0xff]  ;;  %v7302_v36 = vshrl.u32 %v269_v35, 7 }
  0x68   :  { %290 = vmatpush1.bf16.msra.mxu0 %v235_v4  ;;  %331 = vmatpush1.bf16.msra.mxu1 %v237_v5  ;;  %v244_v10 = vld [vmem:[#allocation2 + $0x48] sm:$0xff]  ;;  %v246_v11 = vld [vmem:[#allocation2 + $0x58] sm:$0xff]  ;;  %v243_v12 = vld [vmem:[#allocation2 + $0x40] sm:$0xff] }
  0x69   :  { %291 = vmatprep.subr.bf16.mxu0 %v240_v6  ;;  %332 = vmatprep.subr.bf16.mxu1 %v242_v7  ;;  %v245_v13 = vld [vmem:[#allocation2 + $0x50] sm:$0xff]  ;;  %v248_v14 = vld [vmem:[#allocation2 + $0x68] sm:$0xff]  ;;  %v250_v15 = vld [vmem:[#allocation2 + $0x78] sm:$0xff]  ;;  %v7305_v37 = vsub.s32 0, %v7302_v36  ;;  %v7308_v38 = vsub.s32 2, %v7302_v36  ;;  %v7311_v40 = vsub.s32 1, %v7302_v36 }
  0x6a   :  { %v247_v16 = vld [vmem:[#allocation2 + $0x60] sm:$0xff]  ;;  %v249_v17 = vld [vmem:[#allocation2 + $0x70] sm:$0xff]  ;;  %v252_v18 = vld [vmem:[#allocation2 + $0x88] sm:$0xff]  ;;  %v7314_v41 = vsub.s32 3, %v7302_v36 }
  0x6b   :  { %v254_v19 = vld [vmem:[#allocation2 + $0x98] sm:$0xff]  ;;  %v251_v20 = vld [vmem:[#allocation2 + $0x80] sm:$0xff]  ;;  %v253_v21 = vld [vmem:[#allocation2 + $0x90] sm:$0xff] }
  0x6c   :  { %292 = vmatpush1.bf16.msra.mxu0 %v239_v8  ;;  %333 = vmatpush1.bf16.msra.mxu1 %v241_v9  ;;  %v256_v22 = vld [vmem:[#allocation2 + $0xa8] sm:$0xff]  ;;  %v258_v23 = vld [vmem:[#allocation2 + $0xb8] sm:$0xff]  ;;  %v255_v24 = vld [vmem:[#allocation2 + $0xa0] sm:$0xff] }
  0x6d   :  { %293 = vmatprep.subr.bf16.mxu0 %v244_v10  ;;  %334 = vmatprep.subr.bf16.mxu1 %v246_v11  ;;  %v257_v25 = vld [vmem:[#allocation2 + $0xb0] sm:$0xff]  ;;  %v260_v26 = vld [vmem:[#allocation2 + $0xc8] sm:$0xff]  ;;  %v262_v27 = vld [vmem:[#allocation2 + $0xd8] sm:$0xff] }
  0x6e   :  { %v259_v28 = vld [vmem:[#allocation2 + $0xc0] sm:$0xff]  ;;  %v261_v29 = vld [vmem:[#allocation2 + $0xd0] sm:$0xff]  ;;  %v264_v30 = vld [vmem:[#allocation2 + $0xe8] sm:$0xff] }
  0x6f   :  { %v266_v31 = vld [vmem:[#allocation2 + $0xf8] sm:$0xff]  ;;  %v263_v32 = vld [vmem:[#allocation2 + $0xe0] sm:$0xff]  ;;  %v265_v33 = vld [vmem:[#allocation2 + $0xf0] sm:$0xff] }
  0x70   :  { %294 = vmatpush1.bf16.msra.mxu0 %v243_v12  ;;  %335 = vmatpush1.bf16.msra.mxu1 %v245_v13  ;;  %v267_v39 = vld [vmem:[#allocation11] sm:$0xf] }
  0x71   :  { %295 = vmatprep.subr.bf16.mxu0 %v248_v14  ;;  %336 = vmatprep.subr.bf16.mxu1 %v250_v15  ;;  %v272_v42 = vrot.slane %v267_v39, %v7305_v37  ;;  %v280_v43 = vrot.slane %v267_v39, %v7308_v38  ;;  %v276_v44 = vrot.slane %v267_v39, %v7311_v40 }
  0x72   :  { %v284_v45 = vrot.slane %v267_v39, %v7314_v41 }
  0x74   :  { %296 = vmatpush1.bf16.msra.mxu0 %v247_v16  ;;  %337 = vmatpush1.bf16.msra.mxu1 %v249_v17 }
  0x75   :  { %297 = vmatprep.subr.bf16.mxu0 %v252_v18  ;;  %338 = vmatprep.subr.bf16.mxu1 %v254_v19 }
  0x78   :  { %298 = vmatpush1.bf16.msra.mxu0 %v251_v20  ;;  %339 = vmatpush1.bf16.msra.mxu1 %v253_v21 }
  0x79   :  { %299 = vmatprep.subr.bf16.mxu0 %v256_v22  ;;  %340 = vmatprep.subr.bf16.mxu1 %v258_v23 }
  0x7c   :  { %300 = vmatpush1.bf16.msra.mxu0 %v255_v24  ;;  %341 = vmatpush1.bf16.msra.mxu1 %v257_v25 }
  0x7d   :  { %301 = vmatprep.subr.bf16.mxu0 %v260_v26  ;;  %342 = vmatprep.subr.bf16.mxu1 %v262_v27 }
  0x80   :  { %302 = vmatpush1.bf16.msra.mxu0 %v259_v28  ;;  %343 = vmatpush1.bf16.msra.mxu1 %v261_v29 }
  0x81   :  { %303 = vmatprep.subr.bf16.mxu0 %v264_v30  ;;  %344 = vmatprep.subr.bf16.mxu1 %v266_v31 }
  0x84   :  { %304 = vmatpush1.bf16.msra.mxu0 %v263_v32  ;;  %345 = vmatpush1.bf16.msra.mxu1 %v265_v33 }
  0x87   :  { %322 = vmatmul.mubr.bf16.vlgmr.msra.gmra.mrb[0].mxu0 %v234_v34  ;;  %363 = vmatmul.mubr.bf16.vlgmr.msra.gmra.mrb[0].mxu1 %v234_v34 }
 0x15a   :  { %v323_v46 = vpop.f32.mrb[0].mxu0  ;;  %v364_v47 = vpop.f32.mrb[0].mxu1 }
 0x15b   :  { %v7320_v48 = vadd.f32 %v323_v46, %v272_v42  ;;  %v7322_v49 = vadd.f32 %v364_v47, %v280_v43  ;;  %v325_v50 = vpop.f32.mrb[1].mxu0  ;;  %v366_v51 = vpop.f32.mrb[1].mxu1 }
 0x15c   :  { %v326_v52 = vadd.f32 %v325_v50, %v276_v44  ;;  %v7324_v53 = vadd.f32 %v366_v51, %v284_v45  ;;  %v327_v54 = vpop.f32.mrb[2].mxu0  ;;  %v368_v55 = vpop.f32.mrb[2].mxu1 }
 0x15d   :  { %v371_v56 = vmax.f32 %v7320_v48, 0.0  ;;  %v373_v57 = vmax.f32 %v7322_v49, 0.0  ;;  %v328_v58 = vpop.f32.mrb[3].mxu0  ;;  %v369_v59 = vpop.f32.mrb[3].mxu1 }
 0x15e   :  { %v372_v60 = vmax.f32 %v326_v52, 0.0  ;;  %v374_v61 = vmax.f32 %v7324_v53, 0.0 }
 0x15f   :  { %7114 = dma.done.wait [#allocation8 + $0x1], 32768 }
 0x160   :  { %7115 = vsyncadd [#allocation8 + $0x1], 4294934528  ;;  %v7329_v62 = vpack.c.bf16 %v372_v60, %v372_v60  ;;  %v384_v63 = vld [vmem:[#allocation3 + $0x8] sm:$0xff]  ;;  %v386_v0 = vld [vmem:[#allocation3 + $0x18] sm:$0xff] }
 0x161   :  { %v383_v1 = vld [vmem:[#allocation3] sm:$0xff]  ;;  %681 = vmatprep.subr.bf16.mxu0 %v384_v63  ;;  %763 = vmatprep.subr.bf16.mxu1 %v386_v0  ;;  %v385_v2 = vld [vmem:[#allocation3 + $0x10] sm:$0xff]  ;;  %v392_v3 = vld [vmem:[#allocation3 + $0x48] sm:$0xff] }
 0x162   :  { %713 = vmatprep.mubr.bf16.mxu0 %v7329_v62  ;;  %795 = vmatprep.mubr.bf16.mxu1 %v7329_v62  ;;  %v394_v4 = vld [vmem:[#allocation3 + $0x58] sm:$0xff]  ;;  %v391_v5 = vld [vmem:[#allocation3 + $0x40] sm:$0xff]  ;;  %v393_v6 = vld [vmem:[#allocation3 + $0x50] sm:$0xff] }
 0x163   :  { %682 = vmatpush1.bf16.msra.mxu0 %v383_v1  ;;  %764 = vmatpush1.bf16.msra.mxu1 %v385_v2  ;;  %v400_v7 = vld [vmem:[#allocation3 + $0x88] sm:$0xff]  ;;  %v402_v8 = vld [vmem:[#allocation3 + $0x98] sm:$0xff]  ;;  %v399_v9 = vld [vmem:[#allocation3 + $0x80] sm:$0xff] }
 0x164   :  { %683 = vmatprep.subr.bf16.mxu0 %v392_v3  ;;  %765 = vmatprep.subr.bf16.mxu1 %v394_v4  ;;  %v401_v10 = vld [vmem:[#allocation3 + $0x90] sm:$0xff]  ;;  %v408_v11 = vld [vmem:[#allocation3 + $0xc8] sm:$0xff]  ;;  %v410_v12 = vld [vmem:[#allocation3 + $0xd8] sm:$0xff] }
 0x165   :  { %v407_v13 = vld [vmem:[#allocation3 + $0xc0] sm:$0xff]  ;;  %v409_v14 = vld [vmem:[#allocation3 + $0xd0] sm:$0xff]  ;;  %v416_v15 = vld [vmem:[#allocation3 + $0x108] sm:$0xff] }
 0x166   :  { %v418_v16 = vld [vmem:[#allocation3 + $0x118] sm:$0xff]  ;;  %v415_v17 = vld [vmem:[#allocation3 + $0x100] sm:$0xff]  ;;  %v417_v18 = vld [vmem:[#allocation3 + $0x110] sm:$0xff] }
 0x167   :  { %684 = vmatpush1.bf16.msra.mxu0 %v391_v5  ;;  %766 = vmatpush1.bf16.msra.mxu1 %v393_v6  ;;  %v424_v19 = vld [vmem:[#allocation3 + $0x148] sm:$0xff]  ;;  %v426_v20 = vld [vmem:[#allocation3 + $0x158] sm:$0xff]  ;;  %v423_v21 = vld [vmem:[#allocation3 + $0x140] sm:$0xff] }
 0x168   :  { %685 = vmatprep.subr.bf16.mxu0 %v400_v7  ;;  %767 = vmatprep.subr.bf16.mxu1 %v402_v8  ;;  %v425_v22 = vld [vmem:[#allocation3 + $0x150] sm:$0xff]  ;;  %v432_v23 = vld [vmem:[#allocation3 + $0x188] sm:$0xff]  ;;  %v434_v24 = vld [vmem:[#allocation3 + $0x198] sm:$0xff] }
 0x169   :  { %v431_v25 = vld [vmem:[#allocation3 + $0x180] sm:$0xff]  ;;  %v433_v26 = vld [vmem:[#allocation3 + $0x190] sm:$0xff]  ;;  %v440_v27 = vld [vmem:[#allocation3 + $0x1c8] sm:$0xff] }
 0x16a   :  { %v442_v28 = vld [vmem:[#allocation3 + $0x1d8] sm:$0xff]  ;;  %v439_v29 = vld [vmem:[#allocation3 + $0x1c0] sm:$0xff]  ;;  %v441_v30 = vld [vmem:[#allocation3 + $0x1d0] sm:$0xff] }
 0x16b   :  { %686 = vmatpush1.bf16.msra.mxu0 %v399_v9  ;;  %768 = vmatpush1.bf16.msra.mxu1 %v401_v10  ;;  %v448_v31 = vld [vmem:[#allocation3 + $0x208] sm:$0xff]  ;;  %v450_v32 = vld [vmem:[#allocation3 + $0x218] sm:$0xff]  ;;  %v447_v33 = vld [vmem:[#allocation3 + $0x200] sm:$0xff] }
 0x16c   :  { %687 = vmatprep.subr.bf16.mxu0 %v408_v11  ;;  %769 = vmatprep.subr.bf16.mxu1 %v410_v12  ;;  %v449_v34 = vld [vmem:[#allocation3 + $0x210] sm:$0xff]  ;;  %v456_v35 = vld [vmem:[#allocation3 + $0x248] sm:$0xff]  ;;  %v458_v39 = vld [vmem:[#allocation3 + $0x258] sm:$0xff] }
 0x16d   :  { %v455_v42 = vld [vmem:[#allocation3 + $0x240] sm:$0xff]  ;;  %v457_v43 = vld [vmem:[#allocation3 + $0x250] sm:$0xff]  ;;  %v464_v44 = vld [vmem:[#allocation3 + $0x288] sm:$0xff] }
 0x16e   :  { %v466_v45 = vld [vmem:[#allocation3 + $0x298] sm:$0xff]  ;;  %v463_v46 = vld [vmem:[#allocation3 + $0x280] sm:$0xff]  ;;  %v465_v47 = vld [vmem:[#allocation3 + $0x290] sm:$0xff] }
 0x16f   :  { %688 = vmatpush1.bf16.msra.mxu0 %v407_v13  ;;  %770 = vmatpush1.bf16.msra.mxu1 %v409_v14  ;;  %v472_v50 = vld [vmem:[#allocation3 + $0x2c8] sm:$0xff]  ;;  %v474_v51 = vld [vmem:[#allocation3 + $0x2d8] sm:$0xff]  ;;  %v471_v52 = vld [vmem:[#allocation3 + $0x2c0] sm:$0xff]  ;;  %v7336_v13 = vpack.c.bf16 %v371_v56, %v371_v56 }
 0x170   :  { %689 = vmatprep.subr.bf16.mxu0 %v416_v15  ;;  %771 = vmatprep.subr.bf16.mxu1 %v418_v16  ;;  %v473_v54 = vld [vmem:[#allocation3 + $0x2d0] sm:$0xff]  ;;  %v480_v55 = vld [vmem:[#allocation3 + $0x308] sm:$0xff]  ;;  %v482_v58 = vld [vmem:[#allocation3 + $0x318] sm:$0xff] }
 0x171   :  { %v479_v59 = vld [vmem:[#allocation3 + $0x300] sm:$0xff]  ;;  %v481_v60 = vld [vmem:[#allocation3 + $0x310] sm:$0xff]  ;;  %v488_v63 = vld [vmem:[#allocation3 + $0x348] sm:$0xff] }
 0x172   :  { %v490_v0 = vld [vmem:[#allocation3 + $0x358] sm:$0xff]  ;;  %v487_v1 = vld [vmem:[#allocation3 + $0x340] sm:$0xff]  ;;  %v489_v2 = vld [vmem:[#allocation3 + $0x350] sm:$0xff] }
 0x173   :  { %690 = vmatpush1.bf16.msra.mxu0 %v415_v17  ;;  %772 = vmatpush1.bf16.msra.mxu1 %v417_v18  ;;  %v496_v3 = vld [vmem:[#allocation3 + $0x388] sm:$0xff]  ;;  %v498_v4 = vld [vmem:[#allocation3 + $0x398] sm:$0xff]  ;;  %v495_v5 = vld [vmem:[#allocation3 + $0x380] sm:$0xff]  ;;  %v7341_v18 = vpack.c.bf16 %v374_v61, %v374_v61 }
 0x174   :  { %691 = vmatprep.subr.bf16.mxu0 %v424_v19  ;;  %773 = vmatprep.subr.bf16.mxu1 %v426_v20  ;;  %v497_v6 = vld [vmem:[#allocation3 + $0x390] sm:$0xff]  ;;  %v504_v7 = vld [vmem:[#allocation3 + $0x3c8] sm:$0xff]  ;;  %v506_v8 = vld [vmem:[#allocation3 + $0x3d8] sm:$0xff] }
 0x175   :  { %v503_v9 = vld [vmem:[#allocation3 + $0x3c0] sm:$0xff]  ;;  %v505_v10 = vld [vmem:[#allocation3 + $0x3d0] sm:$0xff]  ;;  %v512_v11 = vld [vmem:[#allocation3 + $0x408] sm:$0xff] }
 0x176   :  { %v514_v12 = vld [vmem:[#allocation3 + $0x418] sm:$0xff]  ;;  %v511_v14 = vld [vmem:[#allocation3 + $0x400] sm:$0xff]  ;;  %v513_v15 = vld [vmem:[#allocation3 + $0x410] sm:$0xff] }
 0x177   :  { %692 = vmatpush1.bf16.msra.mxu0 %v423_v21  ;;  %774 = vmatpush1.bf16.msra.mxu1 %v425_v22  ;;  %v520_v16 = vld [vmem:[#allocation3 + $0x448] sm:$0xff]  ;;  %v522_v17 = vld [vmem:[#allocation3 + $0x458] sm:$0xff]  ;;  %v519_v48 = vld [vmem:[#allocation3 + $0x440] sm:$0xff] }
 0x178   :  { %693 = vmatprep.subr.bf16.mxu0 %v432_v23  ;;  %775 = vmatprep.subr.bf16.mxu1 %v434_v24  ;;  %v521_v56 = vld [vmem:[#allocation3 + $0x450] sm:$0xff]  ;;  %v528_v19 = vld [vmem:[#allocation3 + $0x488] sm:$0xff]  ;;  %v530_v20 = vld [vmem:[#allocation3 + $0x498] sm:$0xff] }
 0x179   :  { %v527_v53 = vld [vmem:[#allocation3 + $0x480] sm:$0xff]  ;;  %v529_v61 = vld [vmem:[#allocation3 + $0x490] sm:$0xff]  ;;  %v536_v21 = vld [vmem:[#allocation3 + $0x4c8] sm:$0xff] }
 0x17a   :  { %v538_v22 = vld [vmem:[#allocation3 + $0x4d8] sm:$0xff]  ;;  %v535_v23 = vld [vmem:[#allocation3 + $0x4c0] sm:$0xff]  ;;  %v537_v24 = vld [vmem:[#allocation3 + $0x4d0] sm:$0xff] }
 0x17b   :  { %694 = vmatpush1.bf16.msra.mxu0 %v431_v25  ;;  %776 = vmatpush1.bf16.msra.mxu1 %v433_v26  ;;  %v544_v25 = vld [vmem:[#allocation3 + $0x508] sm:$0xff]  ;;  %v546_v26 = vld [vmem:[#allocation3 + $0x518] sm:$0xff]  ;;  %v395_v49 = vld [vmem:[#allocation3 + $0x60] sm:$0xff] }
 0x17c   :  { %695 = vmatprep.subr.bf16.mxu0 %v440_v27  ;;  %777 = vmatprep.subr.bf16.mxu1 %v442_v28  ;;  %v543_v27 = vld [vmem:[#allocation3 + $0x500] sm:$0xff]  ;;  %v545_v28 = vld [vmem:[#allocation3 + $0x510] sm:$0xff] }
 0x17f   :  { %696 = vmatpush1.bf16.msra.mxu0 %v439_v29  ;;  %778 = vmatpush1.bf16.msra.mxu1 %v441_v30  ;;  %v552_v29 = vld [vmem:[#allocation3 + $0x548] sm:$0xff]  ;;  %v554_v30 = vld [vmem:[#allocation3 + $0x558] sm:$0xff] }
 0x180   :  { %697 = vmatprep.subr.bf16.mxu0 %v448_v31  ;;  %779 = vmatprep.subr.bf16.mxu1 %v450_v32  ;;  %v551_v31 = vld [vmem:[#allocation3 + $0x540] sm:$0xff]  ;;  %v553_v32 = vld [vmem:[#allocation3 + $0x550] sm:$0xff] }
 0x183   :  { %698 = vmatpush1.bf16.msra.mxu0 %v447_v33  ;;  %780 = vmatpush1.bf16.msra.mxu1 %v449_v34  ;;  %v560_v33 = vld [vmem:[#allocation3 + $0x588] sm:$0xff]  ;;  %v562_v34 = vld [vmem:[#allocation3 + $0x598] sm:$0xff] }
 0x184   :  { %699 = vmatprep.subr.bf16.mxu0 %v456_v35  ;;  %781 = vmatprep.subr.bf16.mxu1 %v458_v39  ;;  %v559_v35 = vld [vmem:[#allocation3 + $0x580] sm:$0xff]  ;;  %v561_v39 = vld [vmem:[#allocation3 + $0x590] sm:$0xff] }
 0x187   :  { %700 = vmatpush1.bf16.msra.mxu0 %v455_v42  ;;  %782 = vmatpush1.bf16.msra.mxu1 %v457_v43  ;;  %v568_v42 = vld [vmem:[#allocation3 + $0x5c8] sm:$0xff]  ;;  %v570_v43 = vld [vmem:[#allocation3 + $0x5d8] sm:$0xff] }
 0x188   :  { %701 = vmatprep.subr.bf16.mxu0 %v464_v44  ;;  %783 = vmatprep.subr.bf16.mxu1 %v466_v45  ;;  %v567_v44 = vld [vmem:[#allocation3 + $0x5c0] sm:$0xff]  ;;  %v569_v45 = vld [vmem:[#allocation3 + $0x5d0] sm:$0xff] }
 0x18b   :  { %702 = vmatpush1.bf16.msra.mxu0 %v463_v46  ;;  %784 = vmatpush1.bf16.msra.mxu1 %v465_v47  ;;  %v576_v46 = vld [vmem:[#allocation3 + $0x608] sm:$0xff]  ;;  %v578_v47 = vld [vmem:[#allocation3 + $0x618] sm:$0xff] }
 0x18c   :  { %703 = vmatprep.subr.bf16.mxu0 %v472_v50  ;;  %785 = vmatprep.subr.bf16.mxu1 %v474_v51  ;;  %v575_v50 = vld [vmem:[#allocation3 + $0x600] sm:$0xff]  ;;  %v577_v51 = vld [vmem:[#allocation3 + $0x610] sm:$0xff] }
 0x18f   :  { %704 = vmatpush1.bf16.msra.mxu0 %v471_v52  ;;  %786 = vmatpush1.bf16.msra.mxu1 %v473_v54  ;;  %v584_v52 = vld [vmem:[#allocation3 + $0x648] sm:$0xff]  ;;  %v586_v54 = vld [vmem:[#allocation3 + $0x658] sm:$0xff] }
 0x190   :  { %705 = vmatprep.subr.bf16.mxu0 %v480_v55  ;;  %787 = vmatprep.subr.bf16.mxu1 %v482_v58  ;;  %v583_v55 = vld [vmem:[#allocation3 + $0x640] sm:$0xff]  ;;  %v585_v58 = vld [vmem:[#allocation3 + $0x650] sm:$0xff] }
 0x193   :  { %706 = vmatpush1.bf16.msra.mxu0 %v479_v59  ;;  %788 = vmatpush1.bf16.msra.mxu1 %v481_v60  ;;  %v592_v59 = vld [vmem:[#allocation3 + $0x688] sm:$0xff]  ;;  %v594_v60 = vld [vmem:[#allocation3 + $0x698] sm:$0xff] }
 0x194   :  { %707 = vmatprep.subr.bf16.mxu0 %v488_v63  ;;  %789 = vmatprep.subr.bf16.mxu1 %v490_v0  ;;  %v591_v63 = vld [vmem:[#allocation3 + $0x680] sm:$0xff]  ;;  %v593_v0 = vld [vmem:[#allocation3 + $0x690] sm:$0xff] }
 0x197   :  { %708 = vmatpush1.bf16.msra.mxu0 %v487_v1  ;;  %790 = vmatpush1.bf16.msra.mxu1 %v489_v2  ;;  %v600_v1 = vld [vmem:[#allocation3 + $0x6c8] sm:$0xff]  ;;  %v602_v2 = vld [vmem:[#allocation3 + $0x6d8] sm:$0xff] }
 0x198   :  { %709 = vmatprep.subr.bf16.mxu0 %v496_v3  ;;  %791 = vmatprep.subr.bf16.mxu1 %v498_v4  ;;  %v599_v3 = vld [vmem:[#allocation3 + $0x6c0] sm:$0xff]  ;;  %v601_v4 = vld [vmem:[#allocation3 + $0x6d0] sm:$0xff] }
 0x19b   :  { %710 = vmatpush1.bf16.msra.mxu0 %v495_v5  ;;  %792 = vmatpush1.bf16.msra.mxu1 %v497_v6  ;;  %v608_v5 = vld [vmem:[#allocation3 + $0x708] sm:$0xff]  ;;  %v610_v6 = vld [vmem:[#allocation3 + $0x718] sm:$0xff] }
 0x19c   :  { %711 = vmatprep.subr.bf16.mxu0 %v504_v7  ;;  %793 = vmatprep.subr.bf16.mxu1 %v506_v8  ;;  %v607_v7 = vld [vmem:[#allocation3 + $0x700] sm:$0xff]  ;;  %v609_v8 = vld [vmem:[#allocation3 + $0x710] sm:$0xff] }
 0x19f   :  { %712 = vmatpush1.bf16.msra.mxu0 %v503_v9  ;;  %794 = vmatpush1.bf16.msra.mxu1 %v505_v10  ;;  %v616_v9 = vld [vmem:[#allocation3 + $0x748] sm:$0xff]  ;;  %v618_v10 = vld [vmem:[#allocation3 + $0x758] sm:$0xff] }
 0x1a0   :  { %722 = vmatprep.subr.bf16.mxu0 %v512_v11  ;;  %804 = vmatprep.subr.bf16.mxu1 %v514_v12  ;;  %v615_v11 = vld [vmem:[#allocation3 + $0x740] sm:$0xff]  ;;  %v617_v12 = vld [vmem:[#allocation3 + $0x750] sm:$0xff] }
 0x1a2   :  { %714 = vmatmul.mubr.bf16.vlgmr.msra.gmra.mrb[4].mxu0 %v7336_v13  ;;  %796 = vmatmul.mubr.bf16.vlgmr.msra.gmra.mrb[4].mxu1 %v7336_v13 }
 0x1a3   :  { %723 = vmatpush1.bf16.msra.mxu0 %v511_v14  ;;  %805 = vmatpush1.bf16.msra.mxu1 %v513_v15  ;;  %v624_v14 = vld [vmem:[#allocation3 + $0x788] sm:$0xff]  ;;  %v626_v15 = vld [vmem:[#allocation3 + $0x798] sm:$0xff] }
 0x1a4   :  { %724 = vmatprep.subr.bf16.mxu0 %v520_v16  ;;  %806 = vmatprep.subr.bf16.mxu1 %v522_v17  ;;  %v623_v16 = vld [vmem:[#allocation3 + $0x780] sm:$0xff]  ;;  %v625_v17 = vld [vmem:[#allocation3 + $0x790] sm:$0xff] }
 0x1a5   :  { %754 = vmatprep.mubr.bf16.mxu0 %v7341_v18  ;;  %836 = vmatprep.mubr.bf16.mxu1 %v7341_v18 }
 0x1a7   :  { %725 = vmatpush1.bf16.msra.mxu0 %v519_v48  ;;  %807 = vmatpush1.bf16.msra.mxu1 %v521_v56  ;;  %v632_v48 = vld [vmem:[#allocation3 + $0x7c8] sm:$0xff]  ;;  %v634_v56 = vld [vmem:[#allocation3 + $0x7d8] sm:$0xff] }
 0x1a8   :  { %726 = vmatprep.subr.bf16.mxu0 %v528_v19  ;;  %808 = vmatprep.subr.bf16.mxu1 %v530_v20  ;;  %v631_v19 = vld [vmem:[#allocation3 + $0x7c0] sm:$0xff]  ;;  %v633_v20 = vld [vmem:[#allocation3 + $0x7d0] sm:$0xff] }
 0x1ab   :  { %727 = vmatpush1.bf16.msra.mxu0 %v527_v53  ;;  %809 = vmatpush1.bf16.msra.mxu1 %v529_v61  ;;  %v388_v53 = vld [vmem:[#allocation3 + $0x28] sm:$0xff]  ;;  %v390_v61 = vld [vmem:[#allocation3 + $0x38] sm:$0xff] }
 0x1ac   :  { %728 = vmatprep.subr.bf16.mxu0 %v536_v21  ;;  %810 = vmatprep.subr.bf16.mxu1 %v538_v22  ;;  %v7350_v21 = vpack.c.bf16 %v373_v57, %v373_v57  ;;  %v387_v22 = vld [vmem:[#allocation3 + $0x20] sm:$0xff]  ;;  %v404_v57 = vld [vmem:[#allocation3 + $0xa8] sm:$0xff] }
 0x1af   :  { %729 = vmatpush1.bf16.msra.mxu0 %v535_v23  ;;  %811 = vmatpush1.bf16.msra.mxu1 %v537_v24  ;;  %v389_v23 = vld [vmem:[#allocation3 + $0x30] sm:$0xff]  ;;  %v396_v24 = vld [vmem:[#allocation3 + $0x68] sm:$0xff] }
 0x1b0   :  { %730 = vmatprep.subr.bf16.mxu0 %v544_v25  ;;  %812 = vmatprep.subr.bf16.mxu1 %v546_v26  ;;  %v398_v25 = vld [vmem:[#allocation3 + $0x78] sm:$0xff]  ;;  %v397_v26 = vld [vmem:[#allocation3 + $0x70] sm:$0xff] }
 0x1b3   :  { %731 = vmatpush1.bf16.msra.mxu0 %v543_v27  ;;  %813 = vmatpush1.bf16.msra.mxu1 %v545_v28  ;;  %v406_v27 = vld [vmem:[#allocation3 + $0xb8] sm:$0xff]  ;;  %v403_v28 = vld [vmem:[#allocation3 + $0xa0] sm:$0xff] }
 0x1b4   :  { %732 = vmatprep.subr.bf16.mxu0 %v552_v29  ;;  %814 = vmatprep.subr.bf16.mxu1 %v554_v30  ;;  %v405_v29 = vld [vmem:[#allocation3 + $0xb0] sm:$0xff]  ;;  %v412_v30 = vld [vmem:[#allocation3 + $0xe8] sm:$0xff] }
 0x1b7   :  { %733 = vmatpush1.bf16.msra.mxu0 %v551_v31  ;;  %815 = vmatpush1.bf16.msra.mxu1 %v553_v32  ;;  %v414_v31 = vld [vmem:[#allocation3 + $0xf8] sm:$0xff]  ;;  %v411_v32 = vld [vmem:[#allocation3 + $0xe0] sm:$0xff] }
 0x1b8   :  { %734 = vmatprep.subr.bf16.mxu0 %v560_v33  ;;  %816 = vmatprep.subr.bf16.mxu1 %v562_v34  ;;  %v413_v33 = vld [vmem:[#allocation3 + $0xf0] sm:$0xff]  ;;  %v420_v34 = vld [vmem:[#allocation3 + $0x128] sm:$0xff] }
 0x1bb   :  { %735 = vmatpush1.bf16.msra.mxu0 %v559_v35  ;;  %817 = vmatpush1.bf16.msra.mxu1 %v561_v39  ;;  %v422_v35 = vld [vmem:[#allocation3 + $0x138] sm:$0xff]  ;;  %v421_v39 = vld [vmem:[#allocation3 + $0x130] sm:$0xff] }
 0x1bc   :  { %736 = vmatprep.subr.bf16.mxu0 %v568_v42  ;;  %818 = vmatprep.subr.bf16.mxu1 %v570_v43  ;;  %v428_v42 = vld [vmem:[#allocation3 + $0x168] sm:$0xff]  ;;  %v430_v43 = vld [vmem:[#allocation3 + $0x178] sm:$0xff] }
 0x1bf   :  { %737 = vmatpush1.bf16.msra.mxu0 %v567_v44  ;;  %819 = vmatpush1.bf16.msra.mxu1 %v569_v45  ;;  %v427_v44 = vld [vmem:[#allocation3 + $0x160] sm:$0xff]  ;;  %v429_v45 = vld [vmem:[#allocation3 + $0x170] sm:$0xff] }
 0x1c0   :  { %738 = vmatprep.subr.bf16.mxu0 %v576_v46  ;;  %820 = vmatprep.subr.bf16.mxu1 %v578_v47  ;;  %v436_v46 = vld [vmem:[#allocation3 + $0x1a8] sm:$0xff]  ;;  %v438_v47 = vld [vmem:[#allocation3 + $0x1b8] sm:$0xff] }
 0x1c3   :  { %739 = vmatpush1.bf16.msra.mxu0 %v575_v50  ;;  %821 = vmatpush1.bf16.msra.mxu1 %v577_v51  ;;  %v435_v50 = vld [vmem:[#allocation3 + $0x1a0] sm:$0xff]  ;;  %v437_v51 = vld [vmem:[#allocation3 + $0x1b0] sm:$0xff] }
 0x1c4   :  { %740 = vmatprep.subr.bf16.mxu0 %v584_v52  ;;  %822 = vmatprep.subr.bf16.mxu1 %v586_v54  ;;  %v444_v52 = vld [vmem:[#allocation3 + $0x1e8] sm:$0xff]  ;;  %v446_v54 = vld [vmem:[#allocation3 + $0x1f8] sm:$0xff] }
 0x1c7   :  { %741 = vmatpush1.bf16.msra.mxu0 %v583_v55  ;;  %823 = vmatpush1.bf16.msra.mxu1 %v585_v58  ;;  %v443_v55 = vld [vmem:[#allocation3 + $0x1e0] sm:$0xff]  ;;  %v445_v58 = vld [vmem:[#allocation3 + $0x1f0] sm:$0xff] }
 0x1c8   :  { %742 = vmatprep.subr.bf16.mxu0 %v592_v59  ;;  %824 = vmatprep.subr.bf16.mxu1 %v594_v60  ;;  %v452_v59 = vld [vmem:[#allocation3 + $0x228] sm:$0xff]  ;;  %v454_v60 = vld [vmem:[#allocation3 + $0x238] sm:$0xff] }
 0x1cb   :  { %743 = vmatpush1.bf16.msra.mxu0 %v591_v63  ;;  %825 = vmatpush1.bf16.msra.mxu1 %v593_v0  ;;  %v451_v63 = vld [vmem:[#allocation3 + $0x220] sm:$0xff]  ;;  %v453_v0 = vld [vmem:[#allocation3 + $0x230] sm:$0xff] }
 0x1cc   :  { %744 = vmatprep.subr.bf16.mxu0 %v600_v1  ;;  %826 = vmatprep.subr.bf16.mxu1 %v602_v2  ;;  %v460_v1 = vld [vmem:[#allocation3 + $0x268] sm:$0xff]  ;;  %v462_v2 = vld [vmem:[#allocation3 + $0x278] sm:$0xff] }
 0x1cf   :  { %745 = vmatpush1.bf16.msra.mxu0 %v599_v3  ;;  %827 = vmatpush1.bf16.msra.mxu1 %v601_v4  ;;  %v459_v3 = vld [vmem:[#allocation3 + $0x260] sm:$0xff]  ;;  %v461_v4 = vld [vmem:[#allocation3 + $0x270] sm:$0xff] }
 0x1d0   :  { %746 = vmatprep.subr.bf16.mxu0 %v608_v5  ;;  %828 = vmatprep.subr.bf16.mxu1 %v610_v6  ;;  %v468_v5 = vld [vmem:[#allocation3 + $0x2a8] sm:$0xff]  ;;  %v470_v6 = vld [vmem:[#allocation3 + $0x2b8] sm:$0xff] }
 0x1d3   :  { %747 = vmatpush1.bf16.msra.mxu0 %v607_v7  ;;  %829 = vmatpush1.bf16.msra.mxu1 %v609_v8  ;;  %v467_v7 = vld [vmem:[#allocation3 + $0x2a0] sm:$0xff]  ;;  %v469_v8 = vld [vmem:[#allocation3 + $0x2b0] sm:$0xff] }
 0x1d4   :  { %748 = vmatprep.subr.bf16.mxu0 %v616_v9  ;;  %830 = vmatprep.subr.bf16.mxu1 %v618_v10  ;;  %v476_v9 = vld [vmem:[#allocation3 + $0x2e8] sm:$0xff]  ;;  %v478_v10 = vld [vmem:[#allocation3 + $0x2f8] sm:$0xff] }
 0x1d7   :  { %749 = vmatpush1.bf16.msra.mxu0 %v615_v11  ;;  %831 = vmatpush1.bf16.msra.mxu1 %v617_v12  ;;  %v475_v11 = vld [vmem:[#allocation3 + $0x2e0] sm:$0xff]  ;;  %v477_v12 = vld [vmem:[#allocation3 + $0x2f0] sm:$0xff] }
 0x1d8   :  { %750 = vmatprep.subr.bf16.mxu0 %v624_v14  ;;  %832 = vmatprep.subr.bf16.mxu1 %v626_v15  ;;  %v484_v14 = vld [vmem:[#allocation3 + $0x328] sm:$0xff]  ;;  %v486_v15 = vld [vmem:[#allocation3 + $0x338] sm:$0xff] }
 0x1db   :  { %751 = vmatpush1.bf16.msra.mxu0 %v623_v16  ;;  %833 = vmatpush1.bf16.msra.mxu1 %v625_v17  ;;  %v483_v16 = vld [vmem:[#allocation3 + $0x320] sm:$0xff]  ;;  %v485_v17 = vld [vmem:[#allocation3 + $0x330] sm:$0xff] }
 0x1dc   :  { %752 = vmatprep.subr.bf16.mxu0 %v632_v48  ;;  %834 = vmatprep.subr.bf16.mxu1 %v634_v56  ;;  %v492_v48 = vld [vmem:[#allocation3 + $0x368] sm:$0xff]  ;;  %v494_v56 = vld [vmem:[#allocation3 + $0x378] sm:$0xff] }
 0x1df   :  { %753 = vmatpush1.bf16.msra.mxu0 %v631_v19  ;;  %835 = vmatpush1.bf16.msra.mxu1 %v633_v20  ;;  %v491_v19 = vld [vmem:[#allocation3 + $0x360] sm:$0xff]  ;;  %v493_v20 = vld [vmem:[#allocation3 + $0x370] sm:$0xff] }
 0x1e0   :  { %845 = vmatprep.subr.bf16.mxu0 %v388_v53  ;;  %927 = vmatprep.subr.bf16.mxu1 %v390_v61  ;;  %v500_v53 = vld [vmem:[#allocation3 + $0x3a8] sm:$0xff]  ;;  %v502_v61 = vld [vmem:[#allocation3 + $0x3b8] sm:$0xff] }
 0x1e2   :  { %755 = vmatmul.mubr.bf16.vlgmr.msra.gmra.mrb[4].mxu0 %v7350_v21  ;;  %837 = vmatmul.mubr.bf16.vlgmr.msra.gmra.mrb[4].mxu1 %v7350_v21 }
 0x1e3   :  { %846 = vmatpush1.bf16.msra.mxu0 %v387_v22  ;;  %928 = vmatpush1.bf16.msra.mxu1 %v389_v23  ;;  %v499_v22 = vld [vmem:[#allocation3 + $0x3a0] sm:$0xff]  ;;  %v501_v23 = vld [vmem:[#allocation3 + $0x3b0] sm:$0xff] }
 0x1e4   :  { %847 = vmatprep.subr.bf16.mxu0 %v396_v24  ;;  %929 = vmatprep.subr.bf16.mxu1 %v398_v25  ;;  %v508_v24 = vld [vmem:[#allocation3 + $0x3e8] sm:$0xff]  ;;  %v510_v25 = vld [vmem:[#allocation3 + $0x3f8] sm:$0xff] }
 0x1e5   :  { %877 = vmatprep.mubr.bf16.mxu0 %v7329_v62  ;;  %959 = vmatprep.mubr.bf16.mxu1 %v7329_v62  ;;  %v419_v62 = vld [vmem:[#allocation3 + $0x120] sm:$0xff] }
 0x1e7   :  { %848 = vmatpush1.bf16.msra.mxu0 %v395_v49  ;;  %930 = vmatpush1.bf16.msra.mxu1 %v397_v26  ;;  %v507_v49 = vld [vmem:[#allocation3 + $0x3e0] sm:$0xff]  ;;  %v509_v26 = vld [vmem:[#allocation3 + $0x3f0] sm:$0xff] }
 0x1e8   :  { %849 = vmatprep.subr.bf16.mxu0 %v404_v57  ;;  %931 = vmatprep.subr.bf16.mxu1 %v406_v27  ;;  %v516_v57 = vld [vmem:[#allocation3 + $0x428] sm:$0xff]  ;;  %v518_v27 = vld [vmem:[#allocation3 + $0x438] sm:$0xff] }
 0x1eb   :  { %850 = vmatpush1.bf16.msra.mxu0 %v403_v28  ;;  %932 = vmatpush1.bf16.msra.mxu1 %v405_v29  ;;  %v515_v28 = vld [vmem:[#allocation3 + $0x420] sm:$0xff]  ;;  %v517_v29 = vld [vmem:[#allocation3 + $0x430] sm:$0xff] }
 0x1ec   :  { %851 = vmatprep.subr.bf16.mxu0 %v412_v30  ;;  %933 = vmatprep.subr.bf16.mxu1 %v414_v31  ;;  %v524_v30 = vld [vmem:[#allocation3 + $0x468] sm:$0xff]  ;;  %v526_v31 = vld [vmem:[#allocation3 + $0x478] sm:$0xff] }
 0x1ef   :  { %852 = vmatpush1.bf16.msra.mxu0 %v411_v32  ;;  %934 = vmatpush1.bf16.msra.mxu1 %v413_v33  ;;  %v523_v32 = vld [vmem:[#allocation3 + $0x460] sm:$0xff]  ;;  %v525_v33 = vld [vmem:[#allocation3 + $0x470] sm:$0xff] }
 0x1f0   :  { %853 = vmatprep.subr.bf16.mxu0 %v420_v34  ;;  %935 = vmatprep.subr.bf16.mxu1 %v422_v35  ;;  %v532_v34 = vld [vmem:[#allocation3 + $0x4a8] sm:$0xff]  ;;  %v534_v35 = vld [vmem:[#allocation3 + $0x4b8] sm:$0xff] }
 0x1f3   :  { %854 = vmatpush1.bf16.msra.mxu0 %v419_v62  ;;  %936 = vmatpush1.bf16.msra.mxu1 %v421_v39  ;;  %v531_v62 = vld [vmem:[#allocation3 + $0x4a0] sm:$0xff]  ;;  %v533_v39 = vld [vmem:[#allocation3 + $0x4b0] sm:$0xff] }
 0x1f4   :  { %855 = vmatprep.subr.bf16.mxu0 %v428_v42  ;;  %937 = vmatprep.subr.bf16.mxu1 %v430_v43  ;;  %v540_v42 = vld [vmem:[#allocation3 + $0x4e8] sm:$0xff]  ;;  %v539_v43 = vld [vmem:[#allocation3 + $0x4e0] sm:$0xff] }
 0x1f7   :  { %856 = vmatpush1.bf16.msra.mxu0 %v427_v44  ;;  %938 = vmatpush1.bf16.msra.mxu1 %v429_v45  ;;  %v541_v44 = vld [vmem:[#allocation3 + $0x4f0] sm:$0xff]  ;;  %v548_v45 = vld [vmem:[#allocation3 + $0x528] sm:$0xff] }
 0x1f8   :  { %857 = vmatprep.subr.bf16.mxu0 %v436_v46  ;;  %939 = vmatprep.subr.bf16.mxu1 %v438_v47  ;;  %v550_v46 = vld [vmem:[#allocation3 + $0x538] sm:$0xff]  ;;  %v549_v47 = vld [vmem:[#allocation3 + $0x530] sm:$0xff] }
 0x1fb   :  { %858 = vmatpush1.bf16.msra.mxu0 %v435_v50  ;;  %940 = vmatpush1.bf16.msra.mxu1 %v437_v51  ;;  %v556_v50 = vld [vmem:[#allocation3 + $0x568] sm:$0xff]  ;;  %v558_v51 = vld [vmem:[#allocation3 + $0x578] sm:$0xff] }
 0x1fc   :  { %859 = vmatprep.subr.bf16.mxu0 %v444_v52  ;;  %941 = vmatprep.subr.bf16.mxu1 %v446_v54  ;;  %v555_v52 = vld [vmem:[#allocation3 + $0x560] sm:$0xff]  ;;  %v557_v54 = vld [vmem:[#allocation3 + $0x570] sm:$0xff] }
 0x1ff   :  { %860 = vmatpush1.bf16.msra.mxu0 %v443_v55  ;;  %942 = vmatpush1.bf16.msra.mxu1 %v445_v58  ;;  %v564_v55 = vld [vmem:[#allocation3 + $0x5a8] sm:$0xff]  ;;  %v566_v58 = vld [vmem:[#allocation3 + $0x5b8] sm:$0xff] }
 0x200   :  { %861 = vmatprep.subr.bf16.mxu0 %v452_v59  ;;  %943 = vmatprep.subr.bf16.mxu1 %v454_v60  ;;  %v563_v59 = vld [vmem:[#allocation3 + $0x5a0] sm:$0xff]  ;;  %v565_v60 = vld [vmem:[#allocation3 + $0x5b0] sm:$0xff] }
 0x203   :  { %862 = vmatpush1.bf16.msra.mxu0 %v451_v63  ;;  %944 = vmatpush1.bf16.msra.mxu1 %v453_v0  ;;  %v572_v63 = vld [vmem:[#allocation3 + $0x5e8] sm:$0xff]  ;;  %v574_v0 = vld [vmem:[#allocation3 + $0x5f8] sm:$0xff] }
 0x204   :  { %863 = vmatprep.subr.bf16.mxu0 %v460_v1  ;;  %945 = vmatprep.subr.bf16.mxu1 %v462_v2  ;;  %v571_v1 = vld [vmem:[#allocation3 + $0x5e0] sm:$0xff]  ;;  %v573_v2 = vld [vmem:[#allocation3 + $0x5f0] sm:$0xff] }
 0x207   :  { %864 = vmatpush1.bf16.msra.mxu0 %v459_v3  ;;  %946 = vmatpush1.bf16.msra.mxu1 %v461_v4  ;;  %v580_v3 = vld [vmem:[#allocation3 + $0x628] sm:$0xff]  ;;  %v582_v4 = vld [vmem:[#allocation3 + $0x638] sm:$0xff] }
 0x208   :  { %865 = vmatprep.subr.bf16.mxu0 %v468_v5  ;;  %947 = vmatprep.subr.bf16.mxu1 %v470_v6  ;;  %v579_v5 = vld [vmem:[#allocation3 + $0x620] sm:$0xff]  ;;  %v581_v6 = vld [vmem:[#allocation3 + $0x630] sm:$0xff] }
 0x20b   :  { %866 = vmatpush1.bf16.msra.mxu0 %v467_v7  ;;  %948 = vmatpush1.bf16.msra.mxu1 %v469_v8  ;;  %v588_v7 = vld [vmem:[#allocation3 + $0x668] sm:$0xff]  ;;  %v590_v8 = vld [vmem:[#allocation3 + $0x678] sm:$0xff] }
 0x20c   :  { %867 = vmatprep.subr.bf16.mxu0 %v476_v9  ;;  %949 = vmatprep.subr.bf16.mxu1 %v478_v10  ;;  %v587_v9 = vld [vmem:[#allocation3 + $0x660] sm:$0xff]  ;;  %v589_v10 = vld [vmem:[#allocation3 + $0x670] sm:$0xff] }
 0x20f   :  { %868 = vmatpush1.bf16.msra.mxu0 %v475_v11  ;;  %950 = vmatpush1.bf16.msra.mxu1 %v477_v12  ;;  %v596_v11 = vld [vmem:[#allocation3 + $0x6a8] sm:$0xff]  ;;  %v598_v12 = vld [vmem:[#allocation3 + $0x6b8] sm:$0xff] }
 0x210   :  { %869 = vmatprep.subr.bf16.mxu0 %v484_v14  ;;  %951 = vmatprep.subr.bf16.mxu1 %v486_v15  ;;  %v595_v14 = vld [vmem:[#allocation3 + $0x6a0] sm:$0xff]  ;;  %v597_v15 = vld [vmem:[#allocation3 + $0x6b0] sm:$0xff] }
 0x213   :  { %870 = vmatpush1.bf16.msra.mxu0 %v483_v16  ;;  %952 = vmatpush1.bf16.msra.mxu1 %v485_v17  ;;  %v604_v16 = vld [vmem:[#allocation3 + $0x6e8] sm:$0xff]  ;;  %v606_v17 = vld [vmem:[#allocation3 + $0x6f8] sm:$0xff] }
 0x214   :  { %871 = vmatprep.subr.bf16.mxu0 %v492_v48  ;;  %953 = vmatprep.subr.bf16.mxu1 %v494_v56  ;;  %v603_v48 = vld [vmem:[#allocation3 + $0x6e0] sm:$0xff]  ;;  %v605_v56 = vld [vmem:[#allocation3 + $0x6f0] sm:$0xff] }
 0x217   :  { %872 = vmatpush1.bf16.msra.mxu0 %v491_v19  ;;  %954 = vmatpush1.bf16.msra.mxu1 %v493_v20  ;;  %v612_v19 = vld [vmem:[#allocation3 + $0x728] sm:$0xff]  ;;  %v614_v20 = vld [vmem:[#allocation3 + $0x738] sm:$0xff] }
 0x218   :  { %873 = vmatprep.subr.bf16.mxu0 %v500_v53  ;;  %955 = vmatprep.subr.bf16.mxu1 %v502_v61  ;;  %v611_v53 = vld [vmem:[#allocation3 + $0x720] sm:$0xff]  ;;  %v613_v61 = vld [vmem:[#allocation3 + $0x730] sm:$0xff] }
 0x21b   :  { %874 = vmatpush1.bf16.msra.mxu0 %v499_v22  ;;  %956 = vmatpush1.bf16.msra.mxu1 %v501_v23  ;;  %v620_v22 = vld [vmem:[#allocation3 + $0x768] sm:$0xff]  ;;  %v622_v23 = vld [vmem:[#allocation3 + $0x778] sm:$0xff] }
 0x21c   :  { %875 = vmatprep.subr.bf16.mxu0 %v508_v24  ;;  %957 = vmatprep.subr.bf16.mxu1 %v510_v25  ;;  %v619_v24 = vld [vmem:[#allocation3 + $0x760] sm:$0xff]  ;;  %v621_v25 = vld [vmem:[#allocation3 + $0x770] sm:$0xff] }
 0x21f   :  { %876 = vmatpush1.bf16.msra.mxu0 %v507_v49  ;;  %958 = vmatpush1.bf16.msra.mxu1 %v509_v26  ;;  %v628_v49 = vld [vmem:[#allocation3 + $0x7a8] sm:$0xff]  ;;  %v630_v26 = vld [vmem:[#allocation3 + $0x7b8] sm:$0xff] }
 0x220   :  { %886 = vmatprep.subr.bf16.mxu0 %v516_v57  ;;  %968 = vmatprep.subr.bf16.mxu1 %v518_v27  ;;  %v627_v57 = vld [vmem:[#allocation3 + $0x7a0] sm:$0xff]  ;;  %v629_v27 = vld [vmem:[#allocation3 + $0x7b0] sm:$0xff] }
 0x222   :  { %878 = vmatmul.mubr.bf16.vlgmr.msra.gmra.mrb[8].mxu0 %v7336_v13  ;;  %960 = vmatmul.mubr.bf16.vlgmr.msra.gmra.mrb[8].mxu1 %v7336_v13  ;;  %v542_v13 = vld [vmem:[#allocation3 + $0x4f8] sm:$0xff] }
 0x223   :  { %887 = vmatpush1.bf16.msra.mxu0 %v515_v28  ;;  %969 = vmatpush1.bf16.msra.mxu1 %v517_v29  ;;  %v636_v28 = vld [vmem:[#allocation3 + $0x7e8] sm:$0xff]  ;;  %v638_v29 = vld [vmem:[#allocation3 + $0x7f8] sm:$0xff] }
 0x224   :  { %888 = vmatprep.subr.bf16.mxu0 %v524_v30  ;;  %970 = vmatprep.subr.bf16.mxu1 %v526_v31  ;;  %v635_v30 = vld [vmem:[#allocation3 + $0x7e0] sm:$0xff]  ;;  %v637_v31 = vld [vmem:[#allocation3 + $0x7f0] sm:$0xff] }
 0x225   :  { %918 = vmatprep.mubr.bf16.mxu0 %v7341_v18  ;;  %1000 = vmatprep.mubr.bf16.mxu1 %v7341_v18  ;;  %v547_v18 = vld [vmem:[#allocation3 + $0x520] sm:$0xff] }
 0x227   :  { %889 = vmatpush1.bf16.msra.mxu0 %v523_v32  ;;  %971 = vmatpush1.bf16.msra.mxu1 %v525_v33  ;;  %v639_v32 = vld [vmem:[#allocation11 + $0x4] sm:$0xff] }
 0x228   :  { %890 = vmatprep.subr.bf16.mxu0 %v532_v34  ;;  %972 = vmatprep.subr.bf16.mxu1 %v534_v35  ;;  %v644_v33 = vrot.slane %v639_v32, %v7305_v37  ;;  %v652_v34 = vrot.slane %v639_v32, %v7308_v38  ;;  %v648_v35 = vrot.slane %v639_v32, %v7311_v40 }
 0x22b   :  { %891 = vmatpush1.bf16.msra.mxu0 %v531_v62  ;;  %973 = vmatpush1.bf16.msra.mxu1 %v533_v39  ;;  %v656_v62 = vrot.slane %v639_v32, %v7314_v41 }
 0x22c   :  { %892 = vmatprep.subr.bf16.mxu0 %v540_v42  ;;  %974 = vmatprep.subr.bf16.mxu1 %v542_v13 }
 0x22f   :  { %893 = vmatpush1.bf16.msra.mxu0 %v539_v43  ;;  %975 = vmatpush1.bf16.msra.mxu1 %v541_v44 }
 0x230   :  { %894 = vmatprep.subr.bf16.mxu0 %v548_v45  ;;  %976 = vmatprep.subr.bf16.mxu1 %v550_v46 }
 0x233   :  { %895 = vmatpush1.bf16.msra.mxu0 %v547_v18  ;;  %977 = vmatpush1.bf16.msra.mxu1 %v549_v47 }
 0x234   :  { %896 = vmatprep.subr.bf16.mxu0 %v556_v50  ;;  %978 = vmatprep.subr.bf16.mxu1 %v558_v51 }
 0x237   :  { %897 = vmatpush1.bf16.msra.mxu0 %v555_v52  ;;  %979 = vmatpush1.bf16.msra.mxu1 %v557_v54 }
 0x238   :  { %898 = vmatprep.subr.bf16.mxu0 %v564_v55  ;;  %980 = vmatprep.subr.bf16.mxu1 %v566_v58 }
 0x23b   :  { %899 = vmatpush1.bf16.msra.mxu0 %v563_v59  ;;  %981 = vmatpush1.bf16.msra.mxu1 %v565_v60  ;;  %v7376_v59 = vsub.s32 4, %v7302_v36  ;;  %v7379_v60 = vsub.s32 6, %v7302_v36 }
 0x23c   :  { %900 = vmatprep.subr.bf16.mxu0 %v572_v63  ;;  %982 = vmatprep.subr.bf16.mxu1 %v574_v0  ;;  %v7382_v63 = vsub.s32 5, %v7302_v36  ;;  %v7385_v0 = vsub.s32 7, %v7302_v36 }
 0x23f   :  { %901 = vmatpush1.bf16.msra.mxu0 %v571_v1  ;;  %983 = vmatpush1.bf16.msra.mxu1 %v573_v2  ;;  %v660_v1 = vrot.slane %v639_v32, %v7376_v59  ;;  %v668_v2 = vrot.slane %v639_v32, %v7379_v60 }
 0x240   :  { %902 = vmatprep.subr.bf16.mxu0 %v580_v3  ;;  %984 = vmatprep.subr.bf16.mxu1 %v582_v4  ;;  %v664_v3 = vrot.slane %v639_v32, %v7382_v63  ;;  %v672_v4 = vrot.slane %v639_v32, %v7385_v0 }
 0x243   :  { %903 = vmatpush1.bf16.msra.mxu0 %v579_v5  ;;  %985 = vmatpush1.bf16.msra.mxu1 %v581_v6 }
 0x244   :  { %904 = vmatprep.subr.bf16.mxu0 %v588_v7  ;;  %986 = vmatprep.subr.bf16.mxu1 %v590_v8 }
 0x247   :  { %905 = vmatpush1.bf16.msra.mxu0 %v587_v9  ;;  %987 = vmatpush1.bf16.msra.mxu1 %v589_v10 }
 0x248   :  { %906 = vmatprep.subr.bf16.mxu0 %v596_v11  ;;  %988 = vmatprep.subr.bf16.mxu1 %v598_v12 }
 0x24b   :  { %907 = vmatpush1.bf16.msra.mxu0 %v595_v14  ;;  %989 = vmatpush1.bf16.msra.mxu1 %v597_v15 }
 0x24c   :  { %908 = vmatprep.subr.bf16.mxu0 %v604_v16  ;;  %990 = vmatprep.subr.bf16.mxu1 %v606_v17 }
 0x24f   :  { %909 = vmatpush1.bf16.msra.mxu0 %v603_v48  ;;  %991 = vmatpush1.bf16.msra.mxu1 %v605_v56 }
 0x250   :  { %910 = vmatprep.subr.bf16.mxu0 %v612_v19  ;;  %992 = vmatprep.subr.bf16.mxu1 %v614_v20 }
 0x253   :  { %911 = vmatpush1.bf16.msra.mxu0 %v611_v53  ;;  %993 = vmatpush1.bf16.msra.mxu1 %v613_v61 }
 0x254   :  { %912 = vmatprep.subr.bf16.mxu0 %v620_v22  ;;  %994 = vmatprep.subr.bf16.mxu1 %v622_v23 }
 0x257   :  { %913 = vmatpush1.bf16.msra.mxu0 %v619_v24  ;;  %995 = vmatpush1.bf16.msra.mxu1 %v621_v25 }
 0x258   :  { %914 = vmatprep.subr.bf16.mxu0 %v628_v49  ;;  %996 = vmatprep.subr.bf16.mxu1 %v630_v26 }
 0x25b   :  { %915 = vmatpush1.bf16.msra.mxu0 %v627_v57  ;;  %997 = vmatpush1.bf16.msra.mxu1 %v629_v27 }
 0x25c   :  { %916 = vmatprep.subr.bf16.mxu0 %v636_v28  ;;  %998 = vmatprep.subr.bf16.mxu1 %v638_v29 }
 0x25f   :  { %917 = vmatpush1.bf16.msra.mxu0 %v635_v30  ;;  %999 = vmatpush1.bf16.msra.mxu1 %v637_v31 }
 0x262   :  { %919 = vmatmul.mubr.bf16.vlgmr.msra.gmra.mrb[8].mxu0 %v7350_v21  ;;  %1001 = vmatmul.mubr.bf16.vlgmr.msra.gmra.mrb[8].mxu1 %v7350_v21 }
 0x2b5   :  { %v756_v39 = vpop.f32.mrb[4].mxu0  ;;  %v838_v42 = vpop.f32.mrb[4].mxu1 }
 0x2b6   :  { %v7366_v13 = vadd.f32 %v756_v39, %v644_v33  ;;  %v7368_v43 = vadd.f32 %v838_v42, %v652_v34  ;;  %v758_v44 = vpop.f32.mrb[5].mxu0  ;;  %v840_v45 = vpop.f32.mrb[5].mxu1 }
 0x2b7   :  { %v6728_v46 = vadd.f32 %v758_v44, %v648_v35  ;;  %v7370_v18 = vadd.f32 %v840_v45, %v656_v62  ;;  %v760_v21 = vpop.f32.mrb[6].mxu0  ;;  %v842_v47 = vpop.f32.mrb[6].mxu1 }
 0x2b8   :  { %v1009_v50 = vmax.f32 %v7366_v13, 0.0  ;;  %v1011_v51 = vmax.f32 %v7368_v43, 0.0  ;;  %v761_v52 = vpop.f32.mrb[7].mxu0  ;;  %v843_v54 = vpop.f32.mrb[7].mxu1 }
 0x2b9   :  { %v1010_v55 = vmax.f32 %v6728_v46, 0.0  ;;  %v1012_v58 = vmax.f32 %v7370_v18, 0.0 }
 0x335   :  { %v920_v5 = vpop.f32.mrb[8].mxu0  ;;  %v1002_v6 = vpop.f32.mrb[8].mxu1 }
 0x336   :  { %v7391_v7 = vadd.f32 %v920_v5, %v660_v1  ;;  %v7393_v8 = vadd.f32 %v1002_v6, %v668_v2  ;;  %v922_v9 = vpop.f32.mrb[9].mxu0  ;;  %v1004_v10 = vpop.f32.mrb[9].mxu1 }
 0x337   :  { %v7395_v11 = vadd.f32 %v922_v9, %v664_v3  ;;  %v7397_v36 = vadd.f32 %v1004_v10, %v672_v4  ;;  %v924_v12 = vpop.f32.mrb[10].mxu0  ;;  %v1006_v14 = vpop.f32.mrb[10].mxu1 }
 0x338   :  { %v1013_v15 = vmax.f32 %v7391_v7, 0.0  ;;  %v1015_v16 = vmax.f32 %v7393_v8, 0.0  ;;  %v925_v17 = vpop.f32.mrb[11].mxu0  ;;  %v1007_v48 = vpop.f32.mrb[11].mxu1 }
 0x339   :  { %v1014_v56 = vmax.f32 %v7395_v11, 0.0  ;;  %v1016_v19 = vmax.f32 %v7397_v36, 0.0 }
 0x33a   :  { %7116 = dma.done.wait [#allocation8 + $0x2], 131072 }
 0x33b   :  { %7117 = vsyncadd [#allocation8 + $0x2], 4294836224  ;;  %v7403_v20 = vpack.c.bf16 %v1010_v55, %v1010_v55  ;;  %v1030_v53 = vld [vmem:[#allocation4 + $0x8] sm:$0xff]  ;;  %v1032_v61 = vld [vmem:[#allocation4 + $0x18] sm:$0xff] }
 0x33c   :  { %v1029_v22 = vld [vmem:[#allocation4] sm:$0xff]  ;;  %2137 = vmatprep.subr.bf16.mxu0 %v1030_v53  ;;  %2301 = vmatprep.subr.bf16.mxu1 %v1032_v61  ;;  %v1031_v23 = vld [vmem:[#allocation4 + $0x10] sm:$0xff]  ;;  %v1046_v24 = vld [vmem:[#allocation4 + $0x88] sm:$0xff] }
 0x33d   :  { %2169 = vmatprep.mubr.bf16.mxu0 %v7403_v20  ;;  %2333 = vmatprep.mubr.bf16.mxu1 %v7403_v20  ;;  %v1048_v25 = vld [vmem:[#allocation4 + $0x98] sm:$0xff]  ;;  %v1045_v49 = vld [vmem:[#allocation4 + $0x80] sm:$0xff]  ;;  %v1047_v26 = vld [vmem:[#allocation4 + $0x90] sm:$0xff] }
 0x33e   :  { %2138 = vmatpush1.bf16.msra.mxu0 %v1029_v22  ;;  %2302 = vmatpush1.bf16.msra.mxu1 %v1031_v23  ;;  %v1062_v57 = vld [vmem:[#allocation4 + $0x108] sm:$0xff]  ;;  %v1064_v27 = vld [vmem:[#allocation4 + $0x118] sm:$0xff]  ;;  %v1061_v28 = vld [vmem:[#allocation4 + $0x100] sm:$0xff] }
 0x33f   :  { %2139 = vmatprep.subr.bf16.mxu0 %v1046_v24  ;;  %2303 = vmatprep.subr.bf16.mxu1 %v1048_v25  ;;  %v1063_v29 = vld [vmem:[#allocation4 + $0x110] sm:$0xff]  ;;  %v1078_v30 = vld [vmem:[#allocation4 + $0x188] sm:$0xff]  ;;  %v1080_v31 = vld [vmem:[#allocation4 + $0x198] sm:$0xff] }
 0x340   :  { %v1077_v32 = vld [vmem:[#allocation4 + $0x180] sm:$0xff]  ;;  %v1079_v33 = vld [vmem:[#allocation4 + $0x190] sm:$0xff]  ;;  %v1094_v34 = vld [vmem:[#allocation4 + $0x208] sm:$0xff] }
 0x341   :  { %v1096_v35 = vld [vmem:[#allocation4 + $0x218] sm:$0xff]  ;;  %v1093_v62 = vld [vmem:[#allocation4 + $0x200] sm:$0xff]  ;;  %v1095_v39 = vld [vmem:[#allocation4 + $0x210] sm:$0xff] }
 0x342   :  { %2140 = vmatpush1.bf16.msra.mxu0 %v1045_v49  ;;  %2304 = vmatpush1.bf16.msra.mxu1 %v1047_v26  ;;  %v1110_v42 = vld [vmem:[#allocation4 + $0x288] sm:$0xff]  ;;  %v1112_v44 = vld [vmem:[#allocation4 + $0x298] sm:$0xff]  ;;  %v1109_v45 = vld [vmem:[#allocation4 + $0x280] sm:$0xff] }
 0x343   :  { %2141 = vmatprep.subr.bf16.mxu0 %v1062_v57  ;;  %2305 = vmatprep.subr.bf16.mxu1 %v1064_v27  ;;  %v1111_v46 = vld [vmem:[#allocation4 + $0x290] sm:$0xff]  ;;  %v1126_v21 = vld [vmem:[#allocation4 + $0x308] sm:$0xff]  ;;  %v1128_v47 = vld [vmem:[#allocation4 + $0x318] sm:$0xff] }
 0x344   :  { %v1125_v52 = vld [vmem:[#allocation4 + $0x300] sm:$0xff]  ;;  %v1127_v54 = vld [vmem:[#allocation4 + $0x310] sm:$0xff]  ;;  %v1142_v55 = vld [vmem:[#allocation4 + $0x388] sm:$0xff] }
 0x345   :  { %v1144_v1 = vld [vmem:[#allocation4 + $0x398] sm:$0xff]  ;;  %v1141_v2 = vld [vmem:[#allocation4 + $0x380] sm:$0xff]  ;;  %v1143_v3 = vld [vmem:[#allocation4 + $0x390] sm:$0xff] }
 0x346   :  { %2142 = vmatpush1.bf16.msra.mxu0 %v1061_v28  ;;  %2306 = vmatpush1.bf16.msra.mxu1 %v1063_v29  ;;  %v1158_v4 = vld [vmem:[#allocation4 + $0x408] sm:$0xff]  ;;  %v1160_v5 = vld [vmem:[#allocation4 + $0x418] sm:$0xff]  ;;  %v1157_v6 = vld [vmem:[#allocation4 + $0x400] sm:$0xff] }
 0x347   :  { %2143 = vmatprep.subr.bf16.mxu0 %v1078_v30  ;;  %2307 = vmatprep.subr.bf16.mxu1 %v1080_v31  ;;  %v1159_v9 = vld [vmem:[#allocation4 + $0x410] sm:$0xff]  ;;  %v1174_v10 = vld [vmem:[#allocation4 + $0x488] sm:$0xff]  ;;  %v1176_v12 = vld [vmem:[#allocation4 + $0x498] sm:$0xff] }
 0x348   :  { %v1173_v14 = vld [vmem:[#allocation4 + $0x480] sm:$0xff]  ;;  %v1175_v17 = vld [vmem:[#allocation4 + $0x490] sm:$0xff]  ;;  %v1190_v48 = vld [vmem:[#allocation4 + $0x508] sm:$0xff] }
 0x349   :  { %v1192_v53 = vld [vmem:[#allocation4 + $0x518] sm:$0xff]  ;;  %v1189_v61 = vld [vmem:[#allocation4 + $0x500] sm:$0xff]  ;;  %v1191_v22 = vld [vmem:[#allocation4 + $0x510] sm:$0xff] }
 0x34a   :  { %2144 = vmatpush1.bf16.msra.mxu0 %v1077_v32  ;;  %2308 = vmatpush1.bf16.msra.mxu1 %v1079_v33  ;;  %v1206_v23 = vld [vmem:[#allocation4 + $0x588] sm:$0xff]  ;;  %v1208_v24 = vld [vmem:[#allocation4 + $0x598] sm:$0xff]  ;;  %v1205_v25 = vld [vmem:[#allocation4 + $0x580] sm:$0xff] }
 0x34b   :  { %2145 = vmatprep.subr.bf16.mxu0 %v1094_v34  ;;  %2309 = vmatprep.subr.bf16.mxu1 %v1096_v35  ;;  %v1207_v49 = vld [vmem:[#allocation4 + $0x590] sm:$0xff]  ;;  %v1222_v26 = vld [vmem:[#allocation4 + $0x608] sm:$0xff]  ;;  %v1224_v57 = vld [vmem:[#allocation4 + $0x618] sm:$0xff] }
 0x34c   :  { %v1221_v27 = vld [vmem:[#allocation4 + $0x600] sm:$0xff]  ;;  %v1223_v28 = vld [vmem:[#allocation4 + $0x610] sm:$0xff]  ;;  %v1238_v29 = vld [vmem:[#allocation4 + $0x688] sm:$0xff] }
 0x34d   :  { %v1240_v30 = vld [vmem:[#allocation4 + $0x698] sm:$0xff]  ;;  %v1237_v31 = vld [vmem:[#allocation4 + $0x680] sm:$0xff]  ;;  %v1239_v32 = vld [vmem:[#allocation4 + $0x690] sm:$0xff] }
 0x34e   :  { %2146 = vmatpush1.bf16.msra.mxu0 %v1093_v62  ;;  %2310 = vmatpush1.bf16.msra.mxu1 %v1095_v39  ;;  %v1254_v33 = vld [vmem:[#allocation4 + $0x708] sm:$0xff]  ;;  %v1256_v34 = vld [vmem:[#allocation4 + $0x718] sm:$0xff]  ;;  %v1253_v35 = vld [vmem:[#allocation4 + $0x700] sm:$0xff] }
 0x34f   :  { %2147 = vmatprep.subr.bf16.mxu0 %v1110_v42  ;;  %2311 = vmatprep.subr.bf16.mxu1 %v1112_v44  ;;  %v1255_v62 = vld [vmem:[#allocation4 + $0x710] sm:$0xff]  ;;  %v1270_v39 = vld [vmem:[#allocation4 + $0x788] sm:$0xff]  ;;  %v1272_v42 = vld [vmem:[#allocation4 + $0x798] sm:$0xff] }
 0x350   :  { %v1269_v44 = vld [vmem:[#allocation4 + $0x780] sm:$0xff] }
 0x351   :  { %v1301_v13 = vld [vmem:[#allocation4 + $0x880] sm:$0xff] }
 0x352   :  { %2148 = vmatpush1.bf16.msra.mxu0 %v1109_v45  ;;  %2312 = vmatpush1.bf16.msra.mxu1 %v1111_v46  ;;  %v1271_v45 = vld [vmem:[#allocation4 + $0x790] sm:$0xff]  ;;  %v1286_v46 = vld [vmem:[#allocation4 + $0x808] sm:$0xff]  ;;  %v1317_v18 = vld [vmem:[#allocation4 + $0x900] sm:$0xff] }
 0x353   :  { %2149 = vmatprep.subr.bf16.mxu0 %v1126_v21  ;;  %2313 = vmatprep.subr.bf16.mxu1 %v1128_v47  ;;  %v1288_v21 = vld [vmem:[#allocation4 + $0x818] sm:$0xff]  ;;  %v7410_v47 = vpack.c.bf16 %v1009_v50, %v1009_v50  ;;  %v1303_v50 = vld [vmem:[#allocation4 + $0x890] sm:$0xff]  ;;  %v1557_v43 = vld [vmem:[#allocation4 + $0x1080] sm:$0xff] }
 0x354   :  { %v1573_v11 = vld [vmem:[#allocation4 + $0x1100] sm:$0xff] }
 0x355   :  { %v1813_v7 = vld [vmem:[#allocation4 + $0x1880] sm:$0xff] }
 0x356   :  { %2150 = vmatpush1.bf16.msra.mxu0 %v1125_v52  ;;  %2314 = vmatpush1.bf16.msra.mxu1 %v1127_v54  ;;  %v1285_v52 = vld [vmem:[#allocation4 + $0x800] sm:$0xff]  ;;  %v1287_v54 = vld [vmem:[#allocation4 + $0x810] sm:$0xff] }
 0x357   :  { %2151 = vmatprep.subr.bf16.mxu0 %v1142_v55  ;;  %2315 = vmatprep.subr.bf16.mxu1 %v1144_v1  ;;  %v1302_v55 = vld [vmem:[#allocation4 + $0x888] sm:$0xff]  ;;  %v1304_v1 = vld [vmem:[#allocation4 + $0x898] sm:$0xff]  ;;  %v1829_v36 = vld [vmem:[#allocation4 + $0x1900] sm:$0xff] }
 0x358   :  { %v1049_v8 = vld [vmem:[#allocation4 + $0xa0] sm:$0xff] }
 0x35a   :  { %2152 = vmatpush1.bf16.msra.mxu0 %v1141_v2  ;;  %2316 = vmatpush1.bf16.msra.mxu1 %v1143_v3  ;;  %v7415_v2 = vpack.c.bf16 %v1012_v58, %v1012_v58  ;;  %v1318_v3 = vld [vmem:[#allocation4 + $0x908] sm:$0xff]  ;;  %v1319_v58 = vld [vmem:[#allocation4 + $0x910] sm:$0xff] }
 0x35b   :  { %2153 = vmatprep.subr.bf16.mxu0 %v1158_v4  ;;  %2317 = vmatprep.subr.bf16.mxu1 %v1160_v5  ;;  %v1320_v4 = vld [vmem:[#allocation4 + $0x918] sm:$0xff]  ;;  %v1334_v5 = vld [vmem:[#allocation4 + $0x988] sm:$0xff] }
 0x35e   :  { %2154 = vmatpush1.bf16.msra.mxu0 %v1157_v6  ;;  %2318 = vmatpush1.bf16.msra.mxu1 %v1159_v9  ;;  %v1336_v6 = vld [vmem:[#allocation4 + $0x998] sm:$0xff]  ;;  %v1333_v9 = vld [vmem:[#allocation4 + $0x980] sm:$0xff] }
 0x35f   :  { %2155 = vmatprep.subr.bf16.mxu0 %v1174_v10  ;;  %2319 = vmatprep.subr.bf16.mxu1 %v1176_v12  ;;  %v1335_v10 = vld [vmem:[#allocation4 + $0x990] sm:$0xff]  ;;  %v1350_v12 = vld [vmem:[#allocation4 + $0xa08] sm:$0xff] }
 0x362   :  { %2156 = vmatpush1.bf16.msra.mxu0 %v1173_v14  ;;  %2320 = vmatpush1.bf16.msra.mxu1 %v1175_v17  ;;  %v1352_v14 = vld [vmem:[#allocation4 + $0xa18] sm:$0xff]  ;;  %v1349_v17 = vld [vmem:[#allocation4 + $0xa00] sm:$0xff] }
 0x363   :  { %2157 = vmatprep.subr.bf16.mxu0 %v1190_v48  ;;  %2321 = vmatprep.subr.bf16.mxu1 %v1192_v53  ;;  %v1351_v48 = vld [vmem:[#allocation4 + $0xa10] sm:$0xff]  ;;  %v1366_v53 = vld [vmem:[#allocation4 + $0xa88] sm:$0xff] }
 0x366   :  { %2158 = vmatpush1.bf16.msra.mxu0 %v1189_v61  ;;  %2322 = vmatpush1.bf16.msra.mxu1 %v1191_v22  ;;  %v1368_v61 = vld [vmem:[#allocation4 + $0xa98] sm:$0xff]  ;;  %v1365_v22 = vld [vmem:[#allocation4 + $0xa80] sm:$0xff] }
 0x367   :  { %2159 = vmatprep.subr.bf16.mxu0 %v1206_v23  ;;  %2323 = vmatprep.subr.bf16.mxu1 %v1208_v24  ;;  %v1367_v23 = vld [vmem:[#allocation4 + $0xa90] sm:$0xff]  ;;  %v1382_v24 = vld [vmem:[#allocation4 + $0xb08] sm:$0xff] }
 0x36a   :  { %2160 = vmatpush1.bf16.msra.mxu0 %v1205_v25  ;;  %2324 = vmatpush1.bf16.msra.mxu1 %v1207_v49  ;;  %v1384_v25 = vld [vmem:[#allocation4 + $0xb18] sm:$0xff]  ;;  %v1381_v49 = vld [vmem:[#allocation4 + $0xb00] sm:$0xff] }
 0x36b   :  { %2161 = vmatprep.subr.bf16.mxu0 %v1222_v26  ;;  %2325 = vmatprep.subr.bf16.mxu1 %v1224_v57  ;;  %v1383_v26 = vld [vmem:[#allocation4 + $0xb10] sm:$0xff]  ;;  %v1398_v57 = vld [vmem:[#allocation4 + $0xb88] sm:$0xff] }
 0x36e   :  { %2162 = vmatpush1.bf16.msra.mxu0 %v1221_v27  ;;  %2326 = vmatpush1.bf16.msra.mxu1 %v1223_v28  ;;  %v1400_v27 = vld [vmem:[#allocation4 + $0xb98] sm:$0xff]  ;;  %v1397_v28 = vld [vmem:[#allocation4 + $0xb80] sm:$0xff] }
 0x36f   :  { %2163 = vmatprep.subr.bf16.mxu0 %v1238_v29  ;;  %2327 = vmatprep.subr.bf16.mxu1 %v1240_v30  ;;  %v1399_v29 = vld [vmem:[#allocation4 + $0xb90] sm:$0xff]  ;;  %v1414_v30 = vld [vmem:[#allocation4 + $0xc08] sm:$0xff] }
 0x372   :  { %2164 = vmatpush1.bf16.msra.mxu0 %v1237_v31  ;;  %2328 = vmatpush1.bf16.msra.mxu1 %v1239_v32  ;;  %v1416_v31 = vld [vmem:[#allocation4 + $0xc18] sm:$0xff]  ;;  %v1413_v32 = vld [vmem:[#allocation4 + $0xc00] sm:$0xff] }
 0x373   :  { %2165 = vmatprep.subr.bf16.mxu0 %v1254_v33  ;;  %2329 = vmatprep.subr.bf16.mxu1 %v1256_v34  ;;  %v1415_v33 = vld [vmem:[#allocation4 + $0xc10] sm:$0xff]  ;;  %v1430_v34 = vld [vmem:[#allocation4 + $0xc88] sm:$0xff] }
 0x376   :  { %2166 = vmatpush1.bf16.msra.mxu0 %v1253_v35  ;;  %2330 = vmatpush1.bf16.msra.mxu1 %v1255_v62  ;;  %v1432_v35 = vld [vmem:[#allocation4 + $0xc98] sm:$0xff]  ;;  %v1429_v62 = vld [vmem:[#allocation4 + $0xc80] sm:$0xff] }
 0x377   :  { %2167 = vmatprep.subr.bf16.mxu0 %v1270_v39  ;;  %2331 = vmatprep.subr.bf16.mxu1 %v1272_v42  ;;  %v1431_v39 = vld [vmem:[#allocation4 + $0xc90] sm:$0xff]  ;;  %v1446_v42 = vld [vmem:[#allocation4 + $0xd08] sm:$0xff] }
 0x37a   :  { %2168 = vmatpush1.bf16.msra.mxu0 %v1269_v44  ;;  %2332 = vmatpush1.bf16.msra.mxu1 %v1271_v45  ;;  %v1448_v44 = vld [vmem:[#allocation4 + $0xd18] sm:$0xff]  ;;  %v1445_v45 = vld [vmem:[#allocation4 + $0xd00] sm:$0xff] }
 0x37b   :  { %2178 = vmatprep.subr.bf16.mxu0 %v1286_v46  ;;  %2342 = vmatprep.subr.bf16.mxu1 %v1288_v21  ;;  %v1447_v46 = vld [vmem:[#allocation4 + $0xd10] sm:$0xff]  ;;  %v1462_v21 = vld [vmem:[#allocation4 + $0xd88] sm:$0xff] }
 0x37d   :  { %2170 = vmatmul.mubr.bf16.vlgmr.msra.gmra.mrb[12].mxu0 %v7410_v47  ;;  %2334 = vmatmul.mubr.bf16.vlgmr.msra.gmra.mrb[12].mxu1 %v7410_v47 }
 0x37e   :  { %2179 = vmatpush1.bf16.msra.mxu0 %v1285_v52  ;;  %2343 = vmatpush1.bf16.msra.mxu1 %v1287_v54  ;;  %v1464_v52 = vld [vmem:[#allocation4 + $0xd98] sm:$0xff]  ;;  %v1461_v54 = vld [vmem:[#allocation4 + $0xd80] sm:$0xff] }
 0x37f   :  { %2180 = vmatprep.subr.bf16.mxu0 %v1302_v55  ;;  %2344 = vmatprep.subr.bf16.mxu1 %v1304_v1  ;;  %v1463_v55 = vld [vmem:[#allocation4 + $0xd90] sm:$0xff]  ;;  %v1478_v1 = vld [vmem:[#allocation4 + $0xe08] sm:$0xff] }
 0x380   :  { %2210 = vmatprep.mubr.bf16.mxu0 %v7415_v2  ;;  %2374 = vmatprep.mubr.bf16.mxu1 %v7415_v2 }
 0x382   :  { %2181 = vmatpush1.bf16.msra.mxu0 %v1301_v13  ;;  %2345 = vmatpush1.bf16.msra.mxu1 %v1303_v50  ;;  %v1480_v13 = vld [vmem:[#allocation4 + $0xe18] sm:$0xff]  ;;  %v1477_v50 = vld [vmem:[#allocation4 + $0xe00] sm:$0xff] }
 0x383   :  { %2182 = vmatprep.subr.bf16.mxu0 %v1318_v3  ;;  %2346 = vmatprep.subr.bf16.mxu1 %v1320_v4  ;;  %v1479_v3 = vld [vmem:[#allocation4 + $0xe10] sm:$0xff]  ;;  %v1494_v4 = vld [vmem:[#allocation4 + $0xe88] sm:$0xff] }
 0x386   :  { %2183 = vmatpush1.bf16.msra.mxu0 %v1317_v18  ;;  %2347 = vmatpush1.bf16.msra.mxu1 %v1319_v58  ;;  %v1496_v18 = vld [vmem:[#allocation4 + $0xe98] sm:$0xff]  ;;  %v1493_v58 = vld [vmem:[#allocation4 + $0xe80] sm:$0xff] }
 0x387   :  { %2184 = vmatprep.subr.bf16.mxu0 %v1334_v5  ;;  %2348 = vmatprep.subr.bf16.mxu1 %v1336_v6  ;;  %v1495_v5 = vld [vmem:[#allocation4 + $0xe90] sm:$0xff]  ;;  %v1510_v6 = vld [vmem:[#allocation4 + $0xf08] sm:$0xff] }
 0x38a   :  { %2185 = vmatpush1.bf16.msra.mxu0 %v1333_v9  ;;  %2349 = vmatpush1.bf16.msra.mxu1 %v1335_v10  ;;  %v1512_v9 = vld [vmem:[#allocation4 + $0xf18] sm:$0xff]  ;;  %v1509_v10 = vld [vmem:[#allocation4 + $0xf00] sm:$0xff] }
 0x38b   :  { %2186 = vmatprep.subr.bf16.mxu0 %v1350_v12  ;;  %2350 = vmatprep.subr.bf16.mxu1 %v1352_v14  ;;  %v1511_v12 = vld [vmem:[#allocation4 + $0xf10] sm:$0xff]  ;;  %v1526_v14 = vld [vmem:[#allocation4 + $0xf88] sm:$0xff] }
 0x38e   :  { %2187 = vmatpush1.bf16.msra.mxu0 %v1349_v17  ;;  %2351 = vmatpush1.bf16.msra.mxu1 %v1351_v48  ;;  %v1528_v17 = vld [vmem:[#allocation4 + $0xf98] sm:$0xff]  ;;  %v1525_v48 = vld [vmem:[#allocation4 + $0xf80] sm:$0xff] }
 0x38f   :  { %2188 = vmatprep.subr.bf16.mxu0 %v1366_v53  ;;  %2352 = vmatprep.subr.bf16.mxu1 %v1368_v61  ;;  %v1527_v53 = vld [vmem:[#allocation4 + $0xf90] sm:$0xff]  ;;  %v1542_v61 = vld [vmem:[#allocation4 + $0x1008] sm:$0xff] }
 0x392   :  { %2189 = vmatpush1.bf16.msra.mxu0 %v1365_v22  ;;  %2353 = vmatpush1.bf16.msra.mxu1 %v1367_v23  ;;  %v1544_v22 = vld [vmem:[#allocation4 + $0x1018] sm:$0xff]  ;;  %v7424_v23 = vpack.c.bf16 %v1011_v51, %v1011_v51  ;;  %v1559_v51 = vld [vmem:[#allocation4 + $0x1090] sm:$0xff] }
 0x393   :  { %2190 = vmatprep.subr.bf16.mxu0 %v1382_v24  ;;  %2354 = vmatprep.subr.bf16.mxu1 %v1384_v25  ;;  %v1541_v24 = vld [vmem:[#allocation4 + $0x1000] sm:$0xff]  ;;  %v1543_v25 = vld [vmem:[#allocation4 + $0x1010] sm:$0xff] }
 0x396   :  { %2191 = vmatpush1.bf16.msra.mxu0 %v1381_v49  ;;  %2355 = vmatpush1.bf16.msra.mxu1 %v1383_v26  ;;  %v1558_v49 = vld [vmem:[#allocation4 + $0x1088] sm:$0xff]  ;;  %v1560_v26 = vld [vmem:[#allocation4 + $0x1098] sm:$0xff] }
 0x397   :  { %2192 = vmatprep.subr.bf16.mxu0 %v1398_v57  ;;  %2356 = vmatprep.subr.bf16.mxu1 %v1400_v27  ;;  %v7429_v57 = vpack.c.bf16 %v1014_v56, %v1014_v56  ;;  %v1574_v27 = vld [vmem:[#allocation4 + $0x1108] sm:$0xff]  ;;  %v1575_v56 = vld [vmem:[#allocation4 + $0x1110] sm:$0xff] }
 0x39a   :  { %2193 = vmatpush1.bf16.msra.mxu0 %v1397_v28  ;;  %2357 = vmatpush1.bf16.msra.mxu1 %v1399_v29  ;;  %v1576_v28 = vld [vmem:[#allocation4 + $0x1118] sm:$0xff]  ;;  %v1590_v29 = vld [vmem:[#allocation4 + $0x1188] sm:$0xff] }
 0x39b   :  { %2194 = vmatprep.subr.bf16.mxu0 %v1414_v30  ;;  %2358 = vmatprep.subr.bf16.mxu1 %v1416_v31  ;;  %v1592_v30 = vld [vmem:[#allocation4 + $0x1198] sm:$0xff]  ;;  %v1589_v31 = vld [vmem:[#allocation4 + $0x1180] sm:$0xff] }
 0x39e   :  { %2195 = vmatpush1.bf16.msra.mxu0 %v1413_v32  ;;  %2359 = vmatpush1.bf16.msra.mxu1 %v1415_v33  ;;  %v1591_v32 = vld [vmem:[#allocation4 + $0x1190] sm:$0xff]  ;;  %v1606_v33 = vld [vmem:[#allocation4 + $0x1208] sm:$0xff] }
 0x39f   :  { %2196 = vmatprep.subr.bf16.mxu0 %v1430_v34  ;;  %2360 = vmatprep.subr.bf16.mxu1 %v1432_v35  ;;  %v1608_v34 = vld [vmem:[#allocation4 + $0x1218] sm:$0xff]  ;;  %v1605_v35 = vld [vmem:[#allocation4 + $0x1200] sm:$0xff] }
 0x3a2   :  { %2197 = vmatpush1.bf16.msra.mxu0 %v1429_v62  ;;  %2361 = vmatpush1.bf16.msra.mxu1 %v1431_v39  ;;  %v1607_v62 = vld [vmem:[#allocation4 + $0x1210] sm:$0xff]  ;;  %v1622_v39 = vld [vmem:[#allocation4 + $0x1288] sm:$0xff] }
 0x3a3   :  { %2198 = vmatprep.subr.bf16.mxu0 %v1446_v42  ;;  %2362 = vmatprep.subr.bf16.mxu1 %v1448_v44  ;;  %v1624_v42 = vld [vmem:[#allocation4 + $0x1298] sm:$0xff]  ;;  %v1621_v44 = vld [vmem:[#allocation4 + $0x1280] sm:$0xff] }
 0x3a6   :  { %2199 = vmatpush1.bf16.msra.mxu0 %v1445_v45  ;;  %2363 = vmatpush1.bf16.msra.mxu1 %v1447_v46  ;;  %v1623_v45 = vld [vmem:[#allocation4 + $0x1290] sm:$0xff]  ;;  %v1638_v46 = vld [vmem:[#allocation4 + $0x1308] sm:$0xff] }
 0x3a7   :  { %2200 = vmatprep.subr.bf16.mxu0 %v1462_v21  ;;  %2364 = vmatprep.subr.bf16.mxu1 %v1464_v52  ;;  %v1640_v21 = vld [vmem:[#allocation4 + $0x1318] sm:$0xff]  ;;  %v1637_v52 = vld [vmem:[#allocation4 + $0x1300] sm:$0xff] }
 0x3aa   :  { %2201 = vmatpush1.bf16.msra.mxu0 %v1461_v54  ;;  %2365 = vmatpush1.bf16.msra.mxu1 %v1463_v55  ;;  %v1639_v54 = vld [vmem:[#allocation4 + $0x1310] sm:$0xff]  ;;  %v1654_v55 = vld [vmem:[#allocation4 + $0x1388] sm:$0xff] }
 0x3ab   :  { %2202 = vmatprep.subr.bf16.mxu0 %v1478_v1  ;;  %2366 = vmatprep.subr.bf16.mxu1 %v1480_v13  ;;  %v1656_v1 = vld [vmem:[#allocation4 + $0x1398] sm:$0xff]  ;;  %v1653_v13 = vld [vmem:[#allocation4 + $0x1380] sm:$0xff] }
 0x3ae   :  { %2203 = vmatpush1.bf16.msra.mxu0 %v1477_v50  ;;  %2367 = vmatpush1.bf16.msra.mxu1 %v1479_v3  ;;  %v1655_v50 = vld [vmem:[#allocation4 + $0x1390] sm:$0xff]  ;;  %v1670_v3 = vld [vmem:[#allocation4 + $0x1408] sm:$0xff] }
 0x3af   :  { %2204 = vmatprep.subr.bf16.mxu0 %v1494_v4  ;;  %2368 = vmatprep.subr.bf16.mxu1 %v1496_v18  ;;  %v1672_v4 = vld [vmem:[#allocation4 + $0x1418] sm:$0xff]  ;;  %v1669_v18 = vld [vmem:[#allocation4 + $0x1400] sm:$0xff] }
 0x3b2   :  { %2205 = vmatpush1.bf16.msra.mxu0 %v1493_v58  ;;  %2369 = vmatpush1.bf16.msra.mxu1 %v1495_v5  ;;  %v1671_v58 = vld [vmem:[#allocation4 + $0x1410] sm:$0xff]  ;;  %v1686_v5 = vld [vmem:[#allocation4 + $0x1488] sm:$0xff] }
 0x3b3   :  { %2206 = vmatprep.subr.bf16.mxu0 %v1510_v6  ;;  %2370 = vmatprep.subr.bf16.mxu1 %v1512_v9  ;;  %v1688_v6 = vld [vmem:[#allocation4 + $0x1498] sm:$0xff]  ;;  %v1685_v9 = vld [vmem:[#allocation4 + $0x1480] sm:$0xff] }
 0x3b6   :  { %2207 = vmatpush1.bf16.msra.mxu0 %v1509_v10  ;;  %2371 = vmatpush1.bf16.msra.mxu1 %v1511_v12  ;;  %v1687_v10 = vld [vmem:[#allocation4 + $0x1490] sm:$0xff]  ;;  %v1702_v12 = vld [vmem:[#allocation4 + $0x1508] sm:$0xff] }
 0x3b7   :  { %2208 = vmatprep.subr.bf16.mxu0 %v1526_v14  ;;  %2372 = vmatprep.subr.bf16.mxu1 %v1528_v17  ;;  %v1704_v14 = vld [vmem:[#allocation4 + $0x1518] sm:$0xff]  ;;  %v1701_v17 = vld [vmem:[#allocation4 + $0x1500] sm:$0xff] }
 0x3ba   :  { %2209 = vmatpush1.bf16.msra.mxu0 %v1525_v48  ;;  %2373 = vmatpush1.bf16.msra.mxu1 %v1527_v53  ;;  %v1703_v48 = vld [vmem:[#allocation4 + $0x1510] sm:$0xff]  ;;  %v1718_v53 = vld [vmem:[#allocation4 + $0x1588] sm:$0xff] }
 0x3bb   :  { %2219 = vmatprep.subr.bf16.mxu0 %v1542_v61  ;;  %2383 = vmatprep.subr.bf16.mxu1 %v1544_v22  ;;  %v1720_v61 = vld [vmem:[#allocation4 + $0x1598] sm:$0xff]  ;;  %v1717_v22 = vld [vmem:[#allocation4 + $0x1580] sm:$0xff] }
 0x3bd   :  { %2211 = vmatmul.mubr.bf16.vlgmr.msra.gmra.mrb[12].mxu0 %v7424_v23  ;;  %2375 = vmatmul.mubr.bf16.vlgmr.msra.gmra.mrb[12].mxu1 %v7424_v23 }
 0x3be   :  { %2220 = vmatpush1.bf16.msra.mxu0 %v1541_v24  ;;  %2384 = vmatpush1.bf16.msra.mxu1 %v1543_v25  ;;  %v1719_v24 = vld [vmem:[#allocation4 + $0x1590] sm:$0xff]  ;;  %v1734_v25 = vld [vmem:[#allocation4 + $0x1608] sm:$0xff] }
 0x3bf   :  { %2221 = vmatprep.subr.bf16.mxu0 %v1558_v49  ;;  %2385 = vmatprep.subr.bf16.mxu1 %v1560_v26  ;;  %v1736_v49 = vld [vmem:[#allocation4 + $0x1618] sm:$0xff]  ;;  %v1733_v26 = vld [vmem:[#allocation4 + $0x1600] sm:$0xff] }
 0x3c0   :  { %2251 = vmatprep.mubr.bf16.mxu0 %v7429_v57  ;;  %2415 = vmatprep.mubr.bf16.mxu1 %v7429_v57 }
 0x3c2   :  { %2222 = vmatpush1.bf16.msra.mxu0 %v1557_v43  ;;  %2386 = vmatpush1.bf16.msra.mxu1 %v1559_v51  ;;  %v1735_v43 = vld [vmem:[#allocation4 + $0x1610] sm:$0xff]  ;;  %v1750_v51 = vld [vmem:[#allocation4 + $0x1688] sm:$0xff] }
 0x3c3   :  { %2223 = vmatprep.subr.bf16.mxu0 %v1574_v27  ;;  %2387 = vmatprep.subr.bf16.mxu1 %v1576_v28  ;;  %v1752_v27 = vld [vmem:[#allocation4 + $0x1698] sm:$0xff]  ;;  %v1749_v28 = vld [vmem:[#allocation4 + $0x1680] sm:$0xff] }
 0x3c6   :  { %2224 = vmatpush1.bf16.msra.mxu0 %v1573_v11  ;;  %2388 = vmatpush1.bf16.msra.mxu1 %v1575_v56  ;;  %v1751_v11 = vld [vmem:[#allocation4 + $0x1690] sm:$0xff]  ;;  %v1766_v56 = vld [vmem:[#allocation4 + $0x1708] sm:$0xff] }
 0x3c7   :  { %2225 = vmatprep.subr.bf16.mxu0 %v1590_v29  ;;  %2389 = vmatprep.subr.bf16.mxu1 %v1592_v30  ;;  %v1768_v29 = vld [vmem:[#allocation4 + $0x1718] sm:$0xff]  ;;  %v1765_v30 = vld [vmem:[#allocation4 + $0x1700] sm:$0xff] }
 0x3ca   :  { %2226 = vmatpush1.bf16.msra.mxu0 %v1589_v31  ;;  %2390 = vmatpush1.bf16.msra.mxu1 %v1591_v32  ;;  %v1767_v31 = vld [vmem:[#allocation4 + $0x1710] sm:$0xff]  ;;  %v1782_v32 = vld [vmem:[#allocation4 + $0x1788] sm:$0xff] }
 0x3cb   :  { %2227 = vmatprep.subr.bf16.mxu0 %v1606_v33  ;;  %2391 = vmatprep.subr.bf16.mxu1 %v1608_v34  ;;  %v1784_v33 = vld [vmem:[#allocation4 + $0x1798] sm:$0xff]  ;;  %v1781_v34 = vld [vmem:[#allocation4 + $0x1780] sm:$0xff] }
 0x3ce   :  { %2228 = vmatpush1.bf16.msra.mxu0 %v1605_v35  ;;  %2392 = vmatpush1.bf16.msra.mxu1 %v1607_v62  ;;  %v1783_v35 = vld [vmem:[#allocation4 + $0x1790] sm:$0xff]  ;;  %v1798_v62 = vld [vmem:[#allocation4 + $0x1808] sm:$0xff] }
 0x3cf   :  { %2229 = vmatprep.subr.bf16.mxu0 %v1622_v39  ;;  %2393 = vmatprep.subr.bf16.mxu1 %v1624_v42  ;;  %v1800_v39 = vld [vmem:[#allocation4 + $0x1818] sm:$0xff]  ;;  %v7438_v42 = vpack.c.bf16 %v1013_v15, %v1013_v15  ;;  %v1815_v15 = vld [vmem:[#allocation4 + $0x1890] sm:$0xff] }
 0x3d2   :  { %2230 = vmatpush1.bf16.msra.mxu0 %v1621_v44  ;;  %2394 = vmatpush1.bf16.msra.mxu1 %v1623_v45  ;;  %v1797_v44 = vld [vmem:[#allocation4 + $0x1800] sm:$0xff]  ;;  %v1799_v45 = vld [vmem:[#allocation4 + $0x1810] sm:$0xff] }
 0x3d3   :  { %2231 = vmatprep.subr.bf16.mxu0 %v1638_v46  ;;  %2395 = vmatprep.subr.bf16.mxu1 %v1640_v21  ;;  %v1814_v46 = vld [vmem:[#allocation4 + $0x1888] sm:$0xff]  ;;  %v1816_v21 = vld [vmem:[#allocation4 + $0x1898] sm:$0xff] }
 0x3d6   :  { %2232 = vmatpush1.bf16.msra.mxu0 %v1637_v52  ;;  %2396 = vmatpush1.bf16.msra.mxu1 %v1639_v54  ;;  %v7443_v52 = vpack.c.bf16 %v1016_v19, %v1016_v19  ;;  %v1830_v54 = vld [vmem:[#allocation4 + $0x1908] sm:$0xff]  ;;  %v1831_v19 = vld [vmem:[#allocation4 + $0x1910] sm:$0xff] }
 0x3d7   :  { %2233 = vmatprep.subr.bf16.mxu0 %v1654_v55  ;;  %2397 = vmatprep.subr.bf16.mxu1 %v1656_v1  ;;  %v1832_v55 = vld [vmem:[#allocation4 + $0x1918] sm:$0xff]  ;;  %v1846_v1 = vld [vmem:[#allocation4 + $0x1988] sm:$0xff] }
 0x3da   :  { %2234 = vmatpush1.bf16.msra.mxu0 %v1653_v13  ;;  %2398 = vmatpush1.bf16.msra.mxu1 %v1655_v50  ;;  %v1848_v13 = vld [vmem:[#allocation4 + $0x1998] sm:$0xff]  ;;  %v1845_v50 = vld [vmem:[#allocation4 + $0x1980] sm:$0xff] }
 0x3db   :  { %2235 = vmatprep.subr.bf16.mxu0 %v1670_v3  ;;  %2399 = vmatprep.subr.bf16.mxu1 %v1672_v4  ;;  %v1847_v3 = vld [vmem:[#allocation4 + $0x1990] sm:$0xff]  ;;  %v1862_v4 = vld [vmem:[#allocation4 + $0x1a08] sm:$0xff] }
 0x3de   :  { %2236 = vmatpush1.bf16.msra.mxu0 %v1669_v18  ;;  %2400 = vmatpush1.bf16.msra.mxu1 %v1671_v58  ;;  %v1864_v18 = vld [vmem:[#allocation4 + $0x1a18] sm:$0xff]  ;;  %v1861_v58 = vld [vmem:[#allocation4 + $0x1a00] sm:$0xff] }
 0x3df   :  { %2237 = vmatprep.subr.bf16.mxu0 %v1686_v5  ;;  %2401 = vmatprep.subr.bf16.mxu1 %v1688_v6  ;;  %v1863_v5 = vld [vmem:[#allocation4 + $0x1a10] sm:$0xff]  ;;  %v1878_v6 = vld [vmem:[#allocation4 + $0x1a88] sm:$0xff] }
 0x3e2   :  { %2238 = vmatpush1.bf16.msra.mxu0 %v1685_v9  ;;  %2402 = vmatpush1.bf16.msra.mxu1 %v1687_v10  ;;  %v1880_v9 = vld [vmem:[#allocation4 + $0x1a98] sm:$0xff]  ;;  %v1877_v10 = vld [vmem:[#allocation4 + $0x1a80] sm:$0xff] }
 0x3e3   :  { %2239 = vmatprep.subr.bf16.mxu0 %v1702_v12  ;;  %2403 = vmatprep.subr.bf16.mxu1 %v1704_v14  ;;  %v1879_v12 = vld [vmem:[#allocation4 + $0x1a90] sm:$0xff]  ;;  %v1894_v14 = vld [vmem:[#allocation4 + $0x1b08] sm:$0xff] }
 0x3e6   :  { %2240 = vmatpush1.bf16.msra.mxu0 %v1701_v17  ;;  %2404 = vmatpush1.bf16.msra.mxu1 %v1703_v48  ;;  %v1896_v17 = vld [vmem:[#allocation4 + $0x1b18] sm:$0xff]  ;;  %v1893_v48 = vld [vmem:[#allocation4 + $0x1b00] sm:$0xff] }
 0x3e7   :  { %2241 = vmatprep.subr.bf16.mxu0 %v1718_v53  ;;  %2405 = vmatprep.subr.bf16.mxu1 %v1720_v61  ;;  %v1895_v53 = vld [vmem:[#allocation4 + $0x1b10] sm:$0xff]  ;;  %v1910_v61 = vld [vmem:[#allocation4 + $0x1b88] sm:$0xff] }
 0x3ea   :  { %2242 = vmatpush1.bf16.msra.mxu0 %v1717_v22  ;;  %2406 = vmatpush1.bf16.msra.mxu1 %v1719_v24  ;;  %v1912_v22 = vld [vmem:[#allocation4 + $0x1b98] sm:$0xff]  ;;  %v1909_v24 = vld [vmem:[#allocation4 + $0x1b80] sm:$0xff] }
 0x3eb   :  { %2243 = vmatprep.subr.bf16.mxu0 %v1734_v25  ;;  %2407 = vmatprep.subr.bf16.mxu1 %v1736_v49  ;;  %v1911_v25 = vld [vmem:[#allocation4 + $0x1b90] sm:$0xff]  ;;  %v1926_v49 = vld [vmem:[#allocation4 + $0x1c08] sm:$0xff] }
 0x3ee   :  { %2244 = vmatpush1.bf16.msra.mxu0 %v1733_v26  ;;  %2408 = vmatpush1.bf16.msra.mxu1 %v1735_v43  ;;  %v1928_v26 = vld [vmem:[#allocation4 + $0x1c18] sm:$0xff]  ;;  %v1925_v43 = vld [vmem:[#allocation4 + $0x1c00] sm:$0xff] }
 0x3ef   :  { %2245 = vmatprep.subr.bf16.mxu0 %v1750_v51  ;;  %2409 = vmatprep.subr.bf16.mxu1 %v1752_v27  ;;  %v1927_v51 = vld [vmem:[#allocation4 + $0x1c10] sm:$0xff]  ;;  %v1942_v27 = vld [vmem:[#allocation4 + $0x1c88] sm:$0xff] }
 0x3f2   :  { %2246 = vmatpush1.bf16.msra.mxu0 %v1749_v28  ;;  %2410 = vmatpush1.bf16.msra.mxu1 %v1751_v11  ;;  %v1944_v28 = vld [vmem:[#allocation4 + $0x1c98] sm:$0xff]  ;;  %v1941_v11 = vld [vmem:[#allocation4 + $0x1c80] sm:$0xff] }
 0x3f3   :  { %2247 = vmatprep.subr.bf16.mxu0 %v1766_v56  ;;  %2411 = vmatprep.subr.bf16.mxu1 %v1768_v29  ;;  %v1943_v56 = vld [vmem:[#allocation4 + $0x1c90] sm:$0xff]  ;;  %v1958_v29 = vld [vmem:[#allocation4 + $0x1d08] sm:$0xff] }
 0x3f6   :  { %2248 = vmatpush1.bf16.msra.mxu0 %v1765_v30  ;;  %2412 = vmatpush1.bf16.msra.mxu1 %v1767_v31  ;;  %v1960_v30 = vld [vmem:[#allocation4 + $0x1d18] sm:$0xff]  ;;  %v1957_v31 = vld [vmem:[#allocation4 + $0x1d00] sm:$0xff] }
 0x3f7   :  { %2249 = vmatprep.subr.bf16.mxu0 %v1782_v32  ;;  %2413 = vmatprep.subr.bf16.mxu1 %v1784_v33  ;;  %v1959_v32 = vld [vmem:[#allocation4 + $0x1d10] sm:$0xff]  ;;  %v1974_v33 = vld [vmem:[#allocation4 + $0x1d88] sm:$0xff] }
 0x3fa   :  { %2250 = vmatpush1.bf16.msra.mxu0 %v1781_v34  ;;  %2414 = vmatpush1.bf16.msra.mxu1 %v1783_v35  ;;  %v1976_v34 = vld [vmem:[#allocation4 + $0x1d98] sm:$0xff]  ;;  %v1973_v35 = vld [vmem:[#allocation4 + $0x1d80] sm:$0xff] }
 0x3fb   :  { %2260 = vmatprep.subr.bf16.mxu0 %v1798_v62  ;;  %2424 = vmatprep.subr.bf16.mxu1 %v1800_v39  ;;  %v1975_v62 = vld [vmem:[#allocation4 + $0x1d90] sm:$0xff]  ;;  %v1990_v39 = vld [vmem:[#allocation4 + $0x1e08] sm:$0xff] }
 0x3fd   :  { %2252 = vmatmul.mubr.bf16.vlgmr.msra.gmra.mrb[12].mxu0 %v7438_v42  ;;  %2416 = vmatmul.mubr.bf16.vlgmr.msra.gmra.mrb[12].mxu1 %v7438_v42 }
 0x3fe   :  { %2261 = vmatpush1.bf16.msra.mxu0 %v1797_v44  ;;  %2425 = vmatpush1.bf16.msra.mxu1 %v1799_v45  ;;  %v1992_v44 = vld [vmem:[#allocation4 + $0x1e18] sm:$0xff]  ;;  %v1989_v45 = vld [vmem:[#allocation4 + $0x1e00] sm:$0xff] }
 0x3ff   :  { %2262 = vmatprep.subr.bf16.mxu0 %v1814_v46  ;;  %2426 = vmatprep.subr.bf16.mxu1 %v1816_v21  ;;  %v1991_v46 = vld [vmem:[#allocation4 + $0x1e10] sm:$0xff]  ;;  %v2006_v21 = vld [vmem:[#allocation4 + $0x1e88] sm:$0xff] }
 0x400   :  { %2292 = vmatprep.mubr.bf16.mxu0 %v7443_v52  ;;  %2456 = vmatprep.mubr.bf16.mxu1 %v7443_v52 }
 0x402   :  { %2263 = vmatpush1.bf16.msra.mxu0 %v1813_v7  ;;  %2427 = vmatpush1.bf16.msra.mxu1 %v1815_v15  ;;  %v2008_v7 = vld [vmem:[#allocation4 + $0x1e98] sm:$0xff]  ;;  %v2005_v15 = vld [vmem:[#allocation4 + $0x1e80] sm:$0xff] }
 0x403   :  { %2264 = vmatprep.subr.bf16.mxu0 %v1830_v54  ;;  %2428 = vmatprep.subr.bf16.mxu1 %v1832_v55  ;;  %v2007_v54 = vld [vmem:[#allocation4 + $0x1e90] sm:$0xff]  ;;  %v2022_v55 = vld [vmem:[#allocation4 + $0x1f08] sm:$0xff] }
 0x406   :  { %2265 = vmatpush1.bf16.msra.mxu0 %v1829_v36  ;;  %2429 = vmatpush1.bf16.msra.mxu1 %v1831_v19  ;;  %v2024_v36 = vld [vmem:[#allocation4 + $0x1f18] sm:$0xff]  ;;  %v2021_v19 = vld [vmem:[#allocation4 + $0x1f00] sm:$0xff] }
 0x407   :  { %2266 = vmatprep.subr.bf16.mxu0 %v1846_v1  ;;  %2430 = vmatprep.subr.bf16.mxu1 %v1848_v13  ;;  %v2023_v1 = vld [vmem:[#allocation4 + $0x1f10] sm:$0xff]  ;;  %v2038_v13 = vld [vmem:[#allocation4 + $0x1f88] sm:$0xff] }
 0x40a   :  { %2267 = vmatpush1.bf16.msra.mxu0 %v1845_v50  ;;  %2431 = vmatpush1.bf16.msra.mxu1 %v1847_v3  ;;  %v2040_v50 = vld [vmem:[#allocation4 + $0x1f98] sm:$0xff]  ;;  %v2037_v3 = vld [vmem:[#allocation4 + $0x1f80] sm:$0xff] }
 0x40b   :  { %2268 = vmatprep.subr.bf16.mxu0 %v1862_v4  ;;  %2432 = vmatprep.subr.bf16.mxu1 %v1864_v18  ;;  %v2039_v4 = vld [vmem:[#allocation4 + $0x1f90] sm:$0xff]  ;;  %v1034_v18 = vld [vmem:[#allocation4 + $0x28] sm:$0xff] }
 0x40e   :  { %2269 = vmatpush1.bf16.msra.mxu0 %v1861_v58  ;;  %2433 = vmatpush1.bf16.msra.mxu1 %v1863_v5  ;;  %v1036_v58 = vld [vmem:[#allocation4 + $0x38] sm:$0xff]  ;;  %v7452_v5 = vpack.c.bf16 %v1015_v16, %v1015_v16  ;;  %v1066_v16 = vld [vmem:[#allocation4 + $0x128] sm:$0xff] }
 0x40f   :  { %2270 = vmatprep.subr.bf16.mxu0 %v1878_v6  ;;  %2434 = vmatprep.subr.bf16.mxu1 %v1880_v9  ;;  %v1033_v6 = vld [vmem:[#allocation4 + $0x20] sm:$0xff]  ;;  %v1035_v9 = vld [vmem:[#allocation4 + $0x30] sm:$0xff] }
 0x412   :  { %2271 = vmatpush1.bf16.msra.mxu0 %v1877_v10  ;;  %2435 = vmatpush1.bf16.msra.mxu1 %v1879_v12  ;;  %v1050_v10 = vld [vmem:[#allocation4 + $0xa8] sm:$0xff]  ;;  %v1052_v12 = vld [vmem:[#allocation4 + $0xb8] sm:$0xff] }
 0x413   :  { %2272 = vmatprep.subr.bf16.mxu0 %v1894_v14  ;;  %2436 = vmatprep.subr.bf16.mxu1 %v1896_v17  ;;  %v1051_v14 = vld [vmem:[#allocation4 + $0xb0] sm:$0xff]  ;;  %v1068_v17 = vld [vmem:[#allocation4 + $0x138] sm:$0xff] }
 0x416   :  { %2273 = vmatpush1.bf16.msra.mxu0 %v1893_v48  ;;  %2437 = vmatpush1.bf16.msra.mxu1 %v1895_v53  ;;  %v1065_v48 = vld [vmem:[#allocation4 + $0x120] sm:$0xff]  ;;  %v1067_v53 = vld [vmem:[#allocation4 + $0x130] sm:$0xff] }
 0x417   :  { %2274 = vmatprep.subr.bf16.mxu0 %v1910_v61  ;;  %2438 = vmatprep.subr.bf16.mxu1 %v1912_v22  ;;  %v1082_v61 = vld [vmem:[#allocation4 + $0x1a8] sm:$0xff]  ;;  %v1084_v22 = vld [vmem:[#allocation4 + $0x1b8] sm:$0xff] }
 0x41a   :  { %2275 = vmatpush1.bf16.msra.mxu0 %v1909_v24  ;;  %2439 = vmatpush1.bf16.msra.mxu1 %v1911_v25  ;;  %v1081_v24 = vld [vmem:[#allocation4 + $0x1a0] sm:$0xff]  ;;  %v1083_v25 = vld [vmem:[#allocation4 + $0x1b0] sm:$0xff] }
 0x41b   :  { %2276 = vmatprep.subr.bf16.mxu0 %v1926_v49  ;;  %2440 = vmatprep.subr.bf16.mxu1 %v1928_v26  ;;  %v1098_v49 = vld [vmem:[#allocation4 + $0x228] sm:$0xff]  ;;  %v1100_v26 = vld [vmem:[#allocation4 + $0x238] sm:$0xff] }
 0x41e   :  { %2277 = vmatpush1.bf16.msra.mxu0 %v1925_v43  ;;  %2441 = vmatpush1.bf16.msra.mxu1 %v1927_v51  ;;  %v1097_v43 = vld [vmem:[#allocation4 + $0x220] sm:$0xff]  ;;  %v1099_v51 = vld [vmem:[#allocation4 + $0x230] sm:$0xff] }
 0x41f   :  { %2278 = vmatprep.subr.bf16.mxu0 %v1942_v27  ;;  %2442 = vmatprep.subr.bf16.mxu1 %v1944_v28  ;;  %v1114_v27 = vld [vmem:[#allocation4 + $0x2a8] sm:$0xff]  ;;  %v1116_v28 = vld [vmem:[#allocation4 + $0x2b8] sm:$0xff] }
 0x422   :  { %2279 = vmatpush1.bf16.msra.mxu0 %v1941_v11  ;;  %2443 = vmatpush1.bf16.msra.mxu1 %v1943_v56  ;;  %v1113_v11 = vld [vmem:[#allocation4 + $0x2a0] sm:$0xff]  ;;  %v1115_v56 = vld [vmem:[#allocation4 + $0x2b0] sm:$0xff] }
 0x423   :  { %2280 = vmatprep.subr.bf16.mxu0 %v1958_v29  ;;  %2444 = vmatprep.subr.bf16.mxu1 %v1960_v30  ;;  %v1130_v29 = vld [vmem:[#allocation4 + $0x328] sm:$0xff]  ;;  %v1132_v30 = vld [vmem:[#allocation4 + $0x338] sm:$0xff] }
 0x426   :  { %2281 = vmatpush1.bf16.msra.mxu0 %v1957_v31  ;;  %2445 = vmatpush1.bf16.msra.mxu1 %v1959_v32  ;;  %v1129_v31 = vld [vmem:[#allocation4 + $0x320] sm:$0xff]  ;;  %v1131_v32 = vld [vmem:[#allocation4 + $0x330] sm:$0xff] }
 0x427   :  { %2282 = vmatprep.subr.bf16.mxu0 %v1974_v33  ;;  %2446 = vmatprep.subr.bf16.mxu1 %v1976_v34  ;;  %v1146_v33 = vld [vmem:[#allocation4 + $0x3a8] sm:$0xff]  ;;  %v1148_v34 = vld [vmem:[#allocation4 + $0x3b8] sm:$0xff] }
 0x42a   :  { %2283 = vmatpush1.bf16.msra.mxu0 %v1973_v35  ;;  %2447 = vmatpush1.bf16.msra.mxu1 %v1975_v62  ;;  %v1145_v35 = vld [vmem:[#allocation4 + $0x3a0] sm:$0xff]  ;;  %v1147_v62 = vld [vmem:[#allocation4 + $0x3b0] sm:$0xff] }
 0x42b   :  { %2284 = vmatprep.subr.bf16.mxu0 %v1990_v39  ;;  %2448 = vmatprep.subr.bf16.mxu1 %v1992_v44  ;;  %v1162_v39 = vld [vmem:[#allocation4 + $0x428] sm:$0xff]  ;;  %v1164_v44 = vld [vmem:[#allocation4 + $0x438] sm:$0xff] }
 0x42e   :  { %2285 = vmatpush1.bf16.msra.mxu0 %v1989_v45  ;;  %2449 = vmatpush1.bf16.msra.mxu1 %v1991_v46  ;;  %v1161_v45 = vld [vmem:[#allocation4 + $0x420] sm:$0xff]  ;;  %v1163_v46 = vld [vmem:[#allocation4 + $0x430] sm:$0xff] }
 0x42f   :  { %2286 = vmatprep.subr.bf16.mxu0 %v2006_v21  ;;  %2450 = vmatprep.subr.bf16.mxu1 %v2008_v7  ;;  %v1178_v21 = vld [vmem:[#allocation4 + $0x4a8] sm:$0xff]  ;;  %v1180_v7 = vld [vmem:[#allocation4 + $0x4b8] sm:$0xff] }
 0x432   :  { %2287 = vmatpush1.bf16.msra.mxu0 %v2005_v15  ;;  %2451 = vmatpush1.bf16.msra.mxu1 %v2007_v54  ;;  %v1177_v15 = vld [vmem:[#allocation4 + $0x4a0] sm:$0xff]  ;;  %v1179_v54 = vld [vmem:[#allocation4 + $0x4b0] sm:$0xff] }
 0x433   :  { %2288 = vmatprep.subr.bf16.mxu0 %v2022_v55  ;;  %2452 = vmatprep.subr.bf16.mxu1 %v2024_v36  ;;  %v1194_v55 = vld [vmem:[#allocation4 + $0x528] sm:$0xff]  ;;  %v1196_v36 = vld [vmem:[#allocation4 + $0x538] sm:$0xff] }
 0x436   :  { %2289 = vmatpush1.bf16.msra.mxu0 %v2021_v19  ;;  %2453 = vmatpush1.bf16.msra.mxu1 %v2023_v1  ;;  %v1193_v19 = vld [vmem:[#allocation4 + $0x520] sm:$0xff]  ;;  %v1195_v1 = vld [vmem:[#allocation4 + $0x530] sm:$0xff] }
 0x437   :  { %2290 = vmatprep.subr.bf16.mxu0 %v2038_v13  ;;  %2454 = vmatprep.subr.bf16.mxu1 %v2040_v50  ;;  %v1210_v13 = vld [vmem:[#allocation4 + $0x5a8] sm:$0xff]  ;;  %v1212_v50 = vld [vmem:[#allocation4 + $0x5b8] sm:$0xff] }
 0x43a   :  { %2291 = vmatpush1.bf16.msra.mxu0 %v2037_v3  ;;  %2455 = vmatpush1.bf16.msra.mxu1 %v2039_v4  ;;  %v1209_v3 = vld [vmem:[#allocation4 + $0x5a0] sm:$0xff]  ;;  %v1211_v4 = vld [vmem:[#allocation4 + $0x5b0] sm:$0xff] }
 0x43b   :  { %2465 = vmatprep.subr.bf16.mxu0 %v1034_v18  ;;  %2629 = vmatprep.subr.bf16.mxu1 %v1036_v58  ;;  %v1226_v18 = vld [vmem:[#allocation4 + $0x628] sm:$0xff]  ;;  %v1228_v58 = vld [vmem:[#allocation4 + $0x638] sm:$0xff] }
 0x43d   :  { %2293 = vmatmul.mubr.bf16.vlgmr.msra.gmra.mrb[12].mxu0 %v7452_v5  ;;  %2457 = vmatmul.mubr.bf16.vlgmr.msra.gmra.mrb[12].mxu1 %v7452_v5 }
 0x43e   :  { %2466 = vmatpush1.bf16.msra.mxu0 %v1033_v6  ;;  %2630 = vmatpush1.bf16.msra.mxu1 %v1035_v9  ;;  %v1225_v6 = vld [vmem:[#allocation4 + $0x620] sm:$0xff]  ;;  %v1227_v9 = vld [vmem:[#allocation4 + $0x630] sm:$0xff] }
 0x43f   :  { %2467 = vmatprep.subr.bf16.mxu0 %v1050_v10  ;;  %2631 = vmatprep.subr.bf16.mxu1 %v1052_v12  ;;  %v1242_v10 = vld [vmem:[#allocation4 + $0x6a8] sm:$0xff]  ;;  %v1244_v12 = vld [vmem:[#allocation4 + $0x6b8] sm:$0xff] }
 0x440   :  { %2497 = vmatprep.mubr.bf16.mxu0 %v7403_v20  ;;  %2661 = vmatprep.mubr.bf16.mxu1 %v7403_v20 }
 0x442   :  { %2468 = vmatpush1.bf16.msra.mxu0 %v1049_v8  ;;  %2632 = vmatpush1.bf16.msra.mxu1 %v1051_v14  ;;  %v1241_v8 = vld [vmem:[#allocation4 + $0x6a0] sm:$0xff]  ;;  %v1243_v14 = vld [vmem:[#allocation4 + $0x6b0] sm:$0xff] }
 0x443   :  { %2469 = vmatprep.subr.bf16.mxu0 %v1066_v16  ;;  %2633 = vmatprep.subr.bf16.mxu1 %v1068_v17  ;;  %v1258_v16 = vld [vmem:[#allocation4 + $0x728] sm:$0xff]  ;;  %v1260_v17 = vld [vmem:[#allocation4 + $0x738] sm:$0xff] }
 0x446   :  { %2470 = vmatpush1.bf16.msra.mxu0 %v1065_v48  ;;  %2634 = vmatpush1.bf16.msra.mxu1 %v1067_v53  ;;  %v1257_v48 = vld [vmem:[#allocation4 + $0x720] sm:$0xff]  ;;  %v1259_v53 = vld [vmem:[#allocation4 + $0x730] sm:$0xff] }
 0x447   :  { %2471 = vmatprep.subr.bf16.mxu0 %v1082_v61  ;;  %2635 = vmatprep.subr.bf16.mxu1 %v1084_v22  ;;  %v1274_v61 = vld [vmem:[#allocation4 + $0x7a8] sm:$0xff]  ;;  %v1276_v22 = vld [vmem:[#allocation4 + $0x7b8] sm:$0xff] }
 0x44a   :  { %2472 = vmatpush1.bf16.msra.mxu0 %v1081_v24  ;;  %2636 = vmatpush1.bf16.msra.mxu1 %v1083_v25  ;;  %v1273_v24 = vld [vmem:[#allocation4 + $0x7a0] sm:$0xff]  ;;  %v1275_v25 = vld [vmem:[#allocation4 + $0x7b0] sm:$0xff] }
 0x44b   :  { %2473 = vmatprep.subr.bf16.mxu0 %v1098_v49  ;;  %2637 = vmatprep.subr.bf16.mxu1 %v1100_v26  ;;  %v1290_v49 = vld [vmem:[#allocation4 + $0x828] sm:$0xff]  ;;  %v1292_v26 = vld [vmem:[#allocation4 + $0x838] sm:$0xff] }
 0x44e   :  { %2474 = vmatpush1.bf16.msra.mxu0 %v1097_v43  ;;  %2638 = vmatpush1.bf16.msra.mxu1 %v1099_v51  ;;  %v1289_v43 = vld [vmem:[#allocation4 + $0x820] sm:$0xff]  ;;  %v1291_v51 = vld [vmem:[#allocation4 + $0x830] sm:$0xff] }
 0x44f   :  { %2475 = vmatprep.subr.bf16.mxu0 %v1114_v27  ;;  %2639 = vmatprep.subr.bf16.mxu1 %v1116_v28  ;;  %v1306_v27 = vld [vmem:[#allocation4 + $0x8a8] sm:$0xff]  ;;  %v1308_v28 = vld [vmem:[#allocation4 + $0x8b8] sm:$0xff] }
 0x452   :  { %2476 = vmatpush1.bf16.msra.mxu0 %v1113_v11  ;;  %2640 = vmatpush1.bf16.msra.mxu1 %v1115_v56  ;;  %v1305_v11 = vld [vmem:[#allocation4 + $0x8a0] sm:$0xff]  ;;  %v1307_v56 = vld [vmem:[#allocation4 + $0x8b0] sm:$0xff] }
 0x453   :  { %2477 = vmatprep.subr.bf16.mxu0 %v1130_v29  ;;  %2641 = vmatprep.subr.bf16.mxu1 %v1132_v30  ;;  %v1322_v29 = vld [vmem:[#allocation4 + $0x928] sm:$0xff]  ;;  %v1324_v30 = vld [vmem:[#allocation4 + $0x938] sm:$0xff] }
 0x456   :  { %2478 = vmatpush1.bf16.msra.mxu0 %v1129_v31  ;;  %2642 = vmatpush1.bf16.msra.mxu1 %v1131_v32  ;;  %v1321_v31 = vld [vmem:[#allocation4 + $0x920] sm:$0xff]  ;;  %v1323_v32 = vld [vmem:[#allocation4 + $0x930] sm:$0xff] }
 0x457   :  { %2479 = vmatprep.subr.bf16.mxu0 %v1146_v33  ;;  %2643 = vmatprep.subr.bf16.mxu1 %v1148_v34  ;;  %v1338_v33 = vld [vmem:[#allocation4 + $0x9a8] sm:$0xff]  ;;  %v1340_v34 = vld [vmem:[#allocation4 + $0x9b8] sm:$0xff] }
 0x45a   :  { %2480 = vmatpush1.bf16.msra.mxu0 %v1145_v35  ;;  %2644 = vmatpush1.bf16.msra.mxu1 %v1147_v62  ;;  %v1337_v35 = vld [vmem:[#allocation4 + $0x9a0] sm:$0xff]  ;;  %v1339_v62 = vld [vmem:[#allocation4 + $0x9b0] sm:$0xff] }
 0x45b   :  { %2481 = vmatprep.subr.bf16.mxu0 %v1162_v39  ;;  %2645 = vmatprep.subr.bf16.mxu1 %v1164_v44  ;;  %v1354_v39 = vld [vmem:[#allocation4 + $0xa28] sm:$0xff]  ;;  %v1356_v44 = vld [vmem:[#allocation4 + $0xa38] sm:$0xff] }
 0x45e   :  { %2482 = vmatpush1.bf16.msra.mxu0 %v1161_v45  ;;  %2646 = vmatpush1.bf16.msra.mxu1 %v1163_v46  ;;  %v1353_v45 = vld [vmem:[#allocation4 + $0xa20] sm:$0xff]  ;;  %v1355_v46 = vld [vmem:[#allocation4 + $0xa30] sm:$0xff] }
 0x45f   :  { %2483 = vmatprep.subr.bf16.mxu0 %v1178_v21  ;;  %2647 = vmatprep.subr.bf16.mxu1 %v1180_v7  ;;  %v1370_v21 = vld [vmem:[#allocation4 + $0xaa8] sm:$0xff]  ;;  %v1372_v7 = vld [vmem:[#allocation4 + $0xab8] sm:$0xff] }
 0x462   :  { %2484 = vmatpush1.bf16.msra.mxu0 %v1177_v15  ;;  %2648 = vmatpush1.bf16.msra.mxu1 %v1179_v54  ;;  %v1369_v15 = vld [vmem:[#allocation4 + $0xaa0] sm:$0xff]  ;;  %v1371_v54 = vld [vmem:[#allocation4 + $0xab0] sm:$0xff] }
 0x463   :  { %2485 = vmatprep.subr.bf16.mxu0 %v1194_v55  ;;  %2649 = vmatprep.subr.bf16.mxu1 %v1196_v36  ;;  %v1386_v55 = vld [vmem:[#allocation4 + $0xb28] sm:$0xff]  ;;  %v1388_v36 = vld [vmem:[#allocation4 + $0xb38] sm:$0xff] }
 0x466   :  { %2486 = vmatpush1.bf16.msra.mxu0 %v1193_v19  ;;  %2650 = vmatpush1.bf16.msra.mxu1 %v1195_v1  ;;  %v1385_v19 = vld [vmem:[#allocation4 + $0xb20] sm:$0xff]  ;;  %v1387_v1 = vld [vmem:[#allocation4 + $0xb30] sm:$0xff] }
 0x467   :  { %2487 = vmatprep.subr.bf16.mxu0 %v1210_v13  ;;  %2651 = vmatprep.subr.bf16.mxu1 %v1212_v50  ;;  %v1402_v13 = vld [vmem:[#allocation4 + $0xba8] sm:$0xff]  ;;  %v1404_v50 = vld [vmem:[#allocation4 + $0xbb8] sm:$0xff] }
 0x46a   :  { %2488 = vmatpush1.bf16.msra.mxu0 %v1209_v3  ;;  %2652 = vmatpush1.bf16.msra.mxu1 %v1211_v4  ;;  %v1401_v3 = vld [vmem:[#allocation4 + $0xba0] sm:$0xff]  ;;  %v1403_v4 = vld [vmem:[#allocation4 + $0xbb0] sm:$0xff] }
 0x46b   :  { %2489 = vmatprep.subr.bf16.mxu0 %v1226_v18  ;;  %2653 = vmatprep.subr.bf16.mxu1 %v1228_v58  ;;  %v1418_v18 = vld [vmem:[#allocation4 + $0xc28] sm:$0xff]  ;;  %v1420_v58 = vld [vmem:[#allocation4 + $0xc38] sm:$0xff] }
 0x46e   :  { %2490 = vmatpush1.bf16.msra.mxu0 %v1225_v6  ;;  %2654 = vmatpush1.bf16.msra.mxu1 %v1227_v9  ;;  %v1417_v6 = vld [vmem:[#allocation4 + $0xc20] sm:$0xff]  ;;  %v1419_v9 = vld [vmem:[#allocation4 + $0xc30] sm:$0xff] }
 0x46f   :  { %2491 = vmatprep.subr.bf16.mxu0 %v1242_v10  ;;  %2655 = vmatprep.subr.bf16.mxu1 %v1244_v12  ;;  %v1434_v10 = vld [vmem:[#allocation4 + $0xca8] sm:$0xff]  ;;  %v1436_v12 = vld [vmem:[#allocation4 + $0xcb8] sm:$0xff] }
 0x472   :  { %2492 = vmatpush1.bf16.msra.mxu0 %v1241_v8  ;;  %2656 = vmatpush1.bf16.msra.mxu1 %v1243_v14  ;;  %v1433_v8 = vld [vmem:[#allocation4 + $0xca0] sm:$0xff]  ;;  %v1435_v14 = vld [vmem:[#allocation4 + $0xcb0] sm:$0xff] }
 0x473   :  { %2493 = vmatprep.subr.bf16.mxu0 %v1258_v16  ;;  %2657 = vmatprep.subr.bf16.mxu1 %v1260_v17  ;;  %v1450_v16 = vld [vmem:[#allocation4 + $0xd28] sm:$0xff]  ;;  %v1452_v17 = vld [vmem:[#allocation4 + $0xd38] sm:$0xff] }
 0x476   :  { %2494 = vmatpush1.bf16.msra.mxu0 %v1257_v48  ;;  %2658 = vmatpush1.bf16.msra.mxu1 %v1259_v53  ;;  %v1449_v48 = vld [vmem:[#allocation4 + $0xd20] sm:$0xff]  ;;  %v1451_v53 = vld [vmem:[#allocation4 + $0xd30] sm:$0xff] }
 0x477   :  { %2495 = vmatprep.subr.bf16.mxu0 %v1274_v61  ;;  %2659 = vmatprep.subr.bf16.mxu1 %v1276_v22  ;;  %v1466_v61 = vld [vmem:[#allocation4 + $0xda8] sm:$0xff]  ;;  %v1468_v22 = vld [vmem:[#allocation4 + $0xdb8] sm:$0xff] }
 0x47a   :  { %2496 = vmatpush1.bf16.msra.mxu0 %v1273_v24  ;;  %2660 = vmatpush1.bf16.msra.mxu1 %v1275_v25  ;;  %v1465_v24 = vld [vmem:[#allocation4 + $0xda0] sm:$0xff]  ;;  %v1467_v25 = vld [vmem:[#allocation4 + $0xdb0] sm:$0xff] }
 0x47b   :  { %2506 = vmatprep.subr.bf16.mxu0 %v1290_v49  ;;  %2670 = vmatprep.subr.bf16.mxu1 %v1292_v26  ;;  %v1482_v49 = vld [vmem:[#allocation4 + $0xe28] sm:$0xff]  ;;  %v1484_v26 = vld [vmem:[#allocation4 + $0xe38] sm:$0xff] }
 0x47d   :  { %2498 = vmatmul.mubr.bf16.vlgmr.msra.gmra.mrb[16].mxu0 %v7410_v47  ;;  %2662 = vmatmul.mubr.bf16.vlgmr.msra.gmra.mrb[16].mxu1 %v7410_v47 }
 0x47e   :  { %2507 = vmatpush1.bf16.msra.mxu0 %v1289_v43  ;;  %2671 = vmatpush1.bf16.msra.mxu1 %v1291_v51  ;;  %v1481_v43 = vld [vmem:[#allocation4 + $0xe20] sm:$0xff]  ;;  %v1483_v51 = vld [vmem:[#allocation4 + $0xe30] sm:$0xff] }
 0x47f   :  { %2508 = vmatprep.subr.bf16.mxu0 %v1306_v27  ;;  %2672 = vmatprep.subr.bf16.mxu1 %v1308_v28  ;;  %v1498_v27 = vld [vmem:[#allocation4 + $0xea8] sm:$0xff]  ;;  %v1500_v28 = vld [vmem:[#allocation4 + $0xeb8] sm:$0xff] }
 0x480   :  { %2538 = vmatprep.mubr.bf16.mxu0 %v7415_v2  ;;  %2702 = vmatprep.mubr.bf16.mxu1 %v7415_v2 }
 0x482   :  { %2509 = vmatpush1.bf16.msra.mxu0 %v1305_v11  ;;  %2673 = vmatpush1.bf16.msra.mxu1 %v1307_v56  ;;  %v1497_v11 = vld [vmem:[#allocation4 + $0xea0] sm:$0xff]  ;;  %v1499_v56 = vld [vmem:[#allocation4 + $0xeb0] sm:$0xff] }
 0x483   :  { %2510 = vmatprep.subr.bf16.mxu0 %v1322_v29  ;;  %2674 = vmatprep.subr.bf16.mxu1 %v1324_v30  ;;  %v1514_v29 = vld [vmem:[#allocation4 + $0xf28] sm:$0xff]  ;;  %v1516_v30 = vld [vmem:[#allocation4 + $0xf38] sm:$0xff] }
 0x486   :  { %2511 = vmatpush1.bf16.msra.mxu0 %v1321_v31  ;;  %2675 = vmatpush1.bf16.msra.mxu1 %v1323_v32  ;;  %v1513_v31 = vld [vmem:[#allocation4 + $0xf20] sm:$0xff]  ;;  %v1515_v32 = vld [vmem:[#allocation4 + $0xf30] sm:$0xff] }
 0x487   :  { %2512 = vmatprep.subr.bf16.mxu0 %v1338_v33  ;;  %2676 = vmatprep.subr.bf16.mxu1 %v1340_v34  ;;  %v1530_v33 = vld [vmem:[#allocation4 + $0xfa8] sm:$0xff]  ;;  %v1532_v34 = vld [vmem:[#allocation4 + $0xfb8] sm:$0xff] }
 0x48a   :  { %2513 = vmatpush1.bf16.msra.mxu0 %v1337_v35  ;;  %2677 = vmatpush1.bf16.msra.mxu1 %v1339_v62  ;;  %v1529_v35 = vld [vmem:[#allocation4 + $0xfa0] sm:$0xff]  ;;  %v1531_v62 = vld [vmem:[#allocation4 + $0xfb0] sm:$0xff] }
 0x48b   :  { %2514 = vmatprep.subr.bf16.mxu0 %v1354_v39  ;;  %2678 = vmatprep.subr.bf16.mxu1 %v1356_v44  ;;  %v1546_v39 = vld [vmem:[#allocation4 + $0x1028] sm:$0xff]  ;;  %v1548_v44 = vld [vmem:[#allocation4 + $0x1038] sm:$0xff] }
 0x48e   :  { %2515 = vmatpush1.bf16.msra.mxu0 %v1353_v45  ;;  %2679 = vmatpush1.bf16.msra.mxu1 %v1355_v46  ;;  %v1545_v45 = vld [vmem:[#allocation4 + $0x1020] sm:$0xff]  ;;  %v1547_v46 = vld [vmem:[#allocation4 + $0x1030] sm:$0xff] }
 0x48f   :  { %2516 = vmatprep.subr.bf16.mxu0 %v1370_v21  ;;  %2680 = vmatprep.subr.bf16.mxu1 %v1372_v7  ;;  %v1562_v21 = vld [vmem:[#allocation4 + $0x10a8] sm:$0xff]  ;;  %v1564_v7 = vld [vmem:[#allocation4 + $0x10b8] sm:$0xff] }
 0x492   :  { %2517 = vmatpush1.bf16.msra.mxu0 %v1369_v15  ;;  %2681 = vmatpush1.bf16.msra.mxu1 %v1371_v54  ;;  %v1561_v15 = vld [vmem:[#allocation4 + $0x10a0] sm:$0xff]  ;;  %v1563_v54 = vld [vmem:[#allocation4 + $0x10b0] sm:$0xff] }
 0x493   :  { %2518 = vmatprep.subr.bf16.mxu0 %v1386_v55  ;;  %2682 = vmatprep.subr.bf16.mxu1 %v1388_v36  ;;  %v1578_v55 = vld [vmem:[#allocation4 + $0x1128] sm:$0xff]  ;;  %v1580_v36 = vld [vmem:[#allocation4 + $0x1138] sm:$0xff] }
 0x496   :  { %2519 = vmatpush1.bf16.msra.mxu0 %v1385_v19  ;;  %2683 = vmatpush1.bf16.msra.mxu1 %v1387_v1  ;;  %v1577_v19 = vld [vmem:[#allocation4 + $0x1120] sm:$0xff]  ;;  %v1579_v1 = vld [vmem:[#allocation4 + $0x1130] sm:$0xff] }
 0x497   :  { %2520 = vmatprep.subr.bf16.mxu0 %v1402_v13  ;;  %2684 = vmatprep.subr.bf16.mxu1 %v1404_v50  ;;  %v1594_v13 = vld [vmem:[#allocation4 + $0x11a8] sm:$0xff]  ;;  %v1596_v50 = vld [vmem:[#allocation4 + $0x11b8] sm:$0xff] }
 0x49a   :  { %2521 = vmatpush1.bf16.msra.mxu0 %v1401_v3  ;;  %2685 = vmatpush1.bf16.msra.mxu1 %v1403_v4  ;;  %v1593_v3 = vld [vmem:[#allocation4 + $0x11a0] sm:$0xff]  ;;  %v1595_v4 = vld [vmem:[#allocation4 + $0x11b0] sm:$0xff] }
 0x49b   :  { %2522 = vmatprep.subr.bf16.mxu0 %v1418_v18  ;;  %2686 = vmatprep.subr.bf16.mxu1 %v1420_v58  ;;  %v1610_v18 = vld [vmem:[#allocation4 + $0x1228] sm:$0xff]  ;;  %v1612_v58 = vld [vmem:[#allocation4 + $0x1238] sm:$0xff] }
 0x49e   :  { %2523 = vmatpush1.bf16.msra.mxu0 %v1417_v6  ;;  %2687 = vmatpush1.bf16.msra.mxu1 %v1419_v9  ;;  %v1609_v6 = vld [vmem:[#allocation4 + $0x1220] sm:$0xff]  ;;  %v1611_v9 = vld [vmem:[#allocation4 + $0x1230] sm:$0xff] }
 0x49f   :  { %2524 = vmatprep.subr.bf16.mxu0 %v1434_v10  ;;  %2688 = vmatprep.subr.bf16.mxu1 %v1436_v12  ;;  %v1626_v10 = vld [vmem:[#allocation4 + $0x12a8] sm:$0xff]  ;;  %v1628_v12 = vld [vmem:[#allocation4 + $0x12b8] sm:$0xff] }
 0x4a2   :  { %2525 = vmatpush1.bf16.msra.mxu0 %v1433_v8  ;;  %2689 = vmatpush1.bf16.msra.mxu1 %v1435_v14  ;;  %v1625_v8 = vld [vmem:[#allocation4 + $0x12a0] sm:$0xff]  ;;  %v1627_v14 = vld [vmem:[#allocation4 + $0x12b0] sm:$0xff] }
 0x4a3   :  { %2526 = vmatprep.subr.bf16.mxu0 %v1450_v16  ;;  %2690 = vmatprep.subr.bf16.mxu1 %v1452_v17  ;;  %v1642_v16 = vld [vmem:[#allocation4 + $0x1328] sm:$0xff]  ;;  %v1644_v17 = vld [vmem:[#allocation4 + $0x1338] sm:$0xff] }
 0x4a6   :  { %2527 = vmatpush1.bf16.msra.mxu0 %v1449_v48  ;;  %2691 = vmatpush1.bf16.msra.mxu1 %v1451_v53  ;;  %v1641_v48 = vld [vmem:[#allocation4 + $0x1320] sm:$0xff]  ;;  %v1643_v53 = vld [vmem:[#allocation4 + $0x1330] sm:$0xff] }
 0x4a7   :  { %2528 = vmatprep.subr.bf16.mxu0 %v1466_v61  ;;  %2692 = vmatprep.subr.bf16.mxu1 %v1468_v22  ;;  %v1658_v61 = vld [vmem:[#allocation4 + $0x13a8] sm:$0xff]  ;;  %v1660_v22 = vld [vmem:[#allocation4 + $0x13b8] sm:$0xff] }
 0x4aa   :  { %2529 = vmatpush1.bf16.msra.mxu0 %v1465_v24  ;;  %2693 = vmatpush1.bf16.msra.mxu1 %v1467_v25  ;;  %v1657_v24 = vld [vmem:[#allocation4 + $0x13a0] sm:$0xff]  ;;  %v1659_v25 = vld [vmem:[#allocation4 + $0x13b0] sm:$0xff] }
 0x4ab   :  { %2530 = vmatprep.subr.bf16.mxu0 %v1482_v49  ;;  %2694 = vmatprep.subr.bf16.mxu1 %v1484_v26  ;;  %v1674_v49 = vld [vmem:[#allocation4 + $0x1428] sm:$0xff]  ;;  %v1676_v26 = vld [vmem:[#allocation4 + $0x1438] sm:$0xff] }
 0x4ae   :  { %2531 = vmatpush1.bf16.msra.mxu0 %v1481_v43  ;;  %2695 = vmatpush1.bf16.msra.mxu1 %v1483_v51  ;;  %v1673_v43 = vld [vmem:[#allocation4 + $0x1420] sm:$0xff]  ;;  %v1675_v51 = vld [vmem:[#allocation4 + $0x1430] sm:$0xff] }
 0x4af   :  { %2532 = vmatprep.subr.bf16.mxu0 %v1498_v27  ;;  %2696 = vmatprep.subr.bf16.mxu1 %v1500_v28  ;;  %v1690_v27 = vld [vmem:[#allocation4 + $0x14a8] sm:$0xff]  ;;  %v1692_v28 = vld [vmem:[#allocation4 + $0x14b8] sm:$0xff] }
 0x4b2   :  { %2533 = vmatpush1.bf16.msra.mxu0 %v1497_v11  ;;  %2697 = vmatpush1.bf16.msra.mxu1 %v1499_v56  ;;  %v1689_v11 = vld [vmem:[#allocation4 + $0x14a0] sm:$0xff]  ;;  %v1691_v56 = vld [vmem:[#allocation4 + $0x14b0] sm:$0xff] }
 0x4b3   :  { %2534 = vmatprep.subr.bf16.mxu0 %v1514_v29  ;;  %2698 = vmatprep.subr.bf16.mxu1 %v1516_v30  ;;  %v1706_v29 = vld [vmem:[#allocation4 + $0x1528] sm:$0xff]  ;;  %v1708_v30 = vld [vmem:[#allocation4 + $0x1538] sm:$0xff] }
 0x4b6   :  { %2535 = vmatpush1.bf16.msra.mxu0 %v1513_v31  ;;  %2699 = vmatpush1.bf16.msra.mxu1 %v1515_v32  ;;  %v1705_v31 = vld [vmem:[#allocation4 + $0x1520] sm:$0xff]  ;;  %v1707_v32 = vld [vmem:[#allocation4 + $0x1530] sm:$0xff] }
 0x4b7   :  { %2536 = vmatprep.subr.bf16.mxu0 %v1530_v33  ;;  %2700 = vmatprep.subr.bf16.mxu1 %v1532_v34  ;;  %v1722_v33 = vld [vmem:[#allocation4 + $0x15a8] sm:$0xff]  ;;  %v1724_v34 = vld [vmem:[#allocation4 + $0x15b8] sm:$0xff] }
 0x4ba   :  { %2537 = vmatpush1.bf16.msra.mxu0 %v1529_v35  ;;  %2701 = vmatpush1.bf16.msra.mxu1 %v1531_v62  ;;  %v1721_v35 = vld [vmem:[#allocation4 + $0x15a0] sm:$0xff]  ;;  %v1723_v62 = vld [vmem:[#allocation4 + $0x15b0] sm:$0xff] }
 0x4bb   :  { %2547 = vmatprep.subr.bf16.mxu0 %v1546_v39  ;;  %2711 = vmatprep.subr.bf16.mxu1 %v1548_v44  ;;  %v1738_v39 = vld [vmem:[#allocation4 + $0x1628] sm:$0xff]  ;;  %v1740_v44 = vld [vmem:[#allocation4 + $0x1638] sm:$0xff] }
 0x4bd   :  { %2539 = vmatmul.mubr.bf16.vlgmr.msra.gmra.mrb[16].mxu0 %v7424_v23  ;;  %2703 = vmatmul.mubr.bf16.vlgmr.msra.gmra.mrb[16].mxu1 %v7424_v23 }
 0x4be   :  { %2548 = vmatpush1.bf16.msra.mxu0 %v1545_v45  ;;  %2712 = vmatpush1.bf16.msra.mxu1 %v1547_v46  ;;  %v1737_v45 = vld [vmem:[#allocation4 + $0x1620] sm:$0xff]  ;;  %v1739_v46 = vld [vmem:[#allocation4 + $0x1630] sm:$0xff] }
 0x4bf   :  { %2549 = vmatprep.subr.bf16.mxu0 %v1562_v21  ;;  %2713 = vmatprep.subr.bf16.mxu1 %v1564_v7  ;;  %v1754_v21 = vld [vmem:[#allocation4 + $0x16a8] sm:$0xff]  ;;  %v1756_v7 = vld [vmem:[#allocation4 + $0x16b8] sm:$0xff] }
 0x4c0   :  { %2579 = vmatprep.mubr.bf16.mxu0 %v7429_v57  ;;  %2743 = vmatprep.mubr.bf16.mxu1 %v7429_v57 }
 0x4c2   :  { %2550 = vmatpush1.bf16.msra.mxu0 %v1561_v15  ;;  %2714 = vmatpush1.bf16.msra.mxu1 %v1563_v54  ;;  %v1753_v15 = vld [vmem:[#allocation4 + $0x16a0] sm:$0xff]  ;;  %v1755_v54 = vld [vmem:[#allocation4 + $0x16b0] sm:$0xff] }
 0x4c3   :  { %2551 = vmatprep.subr.bf16.mxu0 %v1578_v55  ;;  %2715 = vmatprep.subr.bf16.mxu1 %v1580_v36  ;;  %v1770_v55 = vld [vmem:[#allocation4 + $0x1728] sm:$0xff]  ;;  %v1772_v36 = vld [vmem:[#allocation4 + $0x1738] sm:$0xff] }
 0x4c6   :  { %2552 = vmatpush1.bf16.msra.mxu0 %v1577_v19  ;;  %2716 = vmatpush1.bf16.msra.mxu1 %v1579_v1  ;;  %v1769_v19 = vld [vmem:[#allocation4 + $0x1720] sm:$0xff]  ;;  %v1771_v1 = vld [vmem:[#allocation4 + $0x1730] sm:$0xff] }
 0x4c7   :  { %2553 = vmatprep.subr.bf16.mxu0 %v1594_v13  ;;  %2717 = vmatprep.subr.bf16.mxu1 %v1596_v50  ;;  %v1786_v13 = vld [vmem:[#allocation4 + $0x17a8] sm:$0xff]  ;;  %v1788_v50 = vld [vmem:[#allocation4 + $0x17b8] sm:$0xff] }
 0x4ca   :  { %2554 = vmatpush1.bf16.msra.mxu0 %v1593_v3  ;;  %2718 = vmatpush1.bf16.msra.mxu1 %v1595_v4  ;;  %v1785_v3 = vld [vmem:[#allocation4 + $0x17a0] sm:$0xff]  ;;  %v1787_v4 = vld [vmem:[#allocation4 + $0x17b0] sm:$0xff] }
 0x4cb   :  { %2555 = vmatprep.subr.bf16.mxu0 %v1610_v18  ;;  %2719 = vmatprep.subr.bf16.mxu1 %v1612_v58  ;;  %v1802_v18 = vld [vmem:[#allocation4 + $0x1828] sm:$0xff]  ;;  %v1804_v58 = vld [vmem:[#allocation4 + $0x1838] sm:$0xff] }
 0x4ce   :  { %2556 = vmatpush1.bf16.msra.mxu0 %v1609_v6  ;;  %2720 = vmatpush1.bf16.msra.mxu1 %v1611_v9  ;;  %v1801_v6 = vld [vmem:[#allocation4 + $0x1820] sm:$0xff]  ;;  %v1803_v9 = vld [vmem:[#allocation4 + $0x1830] sm:$0xff] }
 0x4cf   :  { %2557 = vmatprep.subr.bf16.mxu0 %v1626_v10  ;;  %2721 = vmatprep.subr.bf16.mxu1 %v1628_v12  ;;  %v1818_v10 = vld [vmem:[#allocation4 + $0x18a8] sm:$0xff]  ;;  %v1820_v12 = vld [vmem:[#allocation4 + $0x18b8] sm:$0xff] }
 0x4d2   :  { %2558 = vmatpush1.bf16.msra.mxu0 %v1625_v8  ;;  %2722 = vmatpush1.bf16.msra.mxu1 %v1627_v14  ;;  %v1817_v8 = vld [vmem:[#allocation4 + $0x18a0] sm:$0xff]  ;;  %v1819_v14 = vld [vmem:[#allocation4 + $0x18b0] sm:$0xff] }
 0x4d3   :  { %2559 = vmatprep.subr.bf16.mxu0 %v1642_v16  ;;  %2723 = vmatprep.subr.bf16.mxu1 %v1644_v17  ;;  %v1834_v16 = vld [vmem:[#allocation4 + $0x1928] sm:$0xff]  ;;  %v1836_v17 = vld [vmem:[#allocation4 + $0x1938] sm:$0xff] }
 0x4d6   :  { %2560 = vmatpush1.bf16.msra.mxu0 %v1641_v48  ;;  %2724 = vmatpush1.bf16.msra.mxu1 %v1643_v53  ;;  %v1833_v48 = vld [vmem:[#allocation4 + $0x1920] sm:$0xff]  ;;  %v1835_v53 = vld [vmem:[#allocation4 + $0x1930] sm:$0xff] }
 0x4d7   :  { %2561 = vmatprep.subr.bf16.mxu0 %v1658_v61  ;;  %2725 = vmatprep.subr.bf16.mxu1 %v1660_v22  ;;  %v1850_v61 = vld [vmem:[#allocation4 + $0x19a8] sm:$0xff]  ;;  %v1852_v22 = vld [vmem:[#allocation4 + $0x19b8] sm:$0xff] }
 0x4da   :  { %2562 = vmatpush1.bf16.msra.mxu0 %v1657_v24  ;;  %2726 = vmatpush1.bf16.msra.mxu1 %v1659_v25  ;;  %v1849_v24 = vld [vmem:[#allocation4 + $0x19a0] sm:$0xff]  ;;  %v1851_v25 = vld [vmem:[#allocation4 + $0x19b0] sm:$0xff] }
 0x4db   :  { %2563 = vmatprep.subr.bf16.mxu0 %v1674_v49  ;;  %2727 = vmatprep.subr.bf16.mxu1 %v1676_v26  ;;  %v1866_v49 = vld [vmem:[#allocation4 + $0x1a28] sm:$0xff]  ;;  %v1868_v26 = vld [vmem:[#allocation4 + $0x1a38] sm:$0xff] }
 0x4de   :  { %2564 = vmatpush1.bf16.msra.mxu0 %v1673_v43  ;;  %2728 = vmatpush1.bf16.msra.mxu1 %v1675_v51  ;;  %v2053_v43 = vld [vmem:[#allocation11 + $0xc] sm:$0xff]  ;;  %v1865_v51 = vld [vmem:[#allocation4 + $0x1a20] sm:$0xff] }
 0x4df   :  { %2565 = vmatprep.subr.bf16.mxu0 %v1690_v27  ;;  %2729 = vmatprep.subr.bf16.mxu1 %v1692_v28  ;;  %v1867_v27 = vld [vmem:[#allocation4 + $0x1a30] sm:$0xff]  ;;  %v1882_v28 = vld [vmem:[#allocation4 + $0x1aa8] sm:$0xff] }
 0x4e2   :  { %2566 = vmatpush1.bf16.msra.mxu0 %v1689_v11  ;;  %2730 = vmatpush1.bf16.msra.mxu1 %v1691_v56  ;;  %v1884_v11 = vld [vmem:[#allocation4 + $0x1ab8] sm:$0xff]  ;;  %v2060_v56 = vrot.slane %v2053_v43, %v7305_v37 }
 0x4e3   :  { %2567 = vmatprep.subr.bf16.mxu0 %v1706_v29  ;;  %2731 = vmatprep.subr.bf16.mxu1 %v1708_v30  ;;  %v2068_v29 = vrot.slane %v2053_v43, %v7308_v38  ;;  %v2064_v30 = vrot.slane %v2053_v43, %v7311_v40 }
 0x4e6   :  { %2568 = vmatpush1.bf16.msra.mxu0 %v1705_v31  ;;  %2732 = vmatpush1.bf16.msra.mxu1 %v1707_v32  ;;  %v2072_v31 = vrot.slane %v2053_v43, %v7314_v41  ;;  %v1881_v32 = vld [vmem:[#allocation4 + $0x1aa0] sm:$0xff]  ;;  %v1980_v43 = vld [vmem:[#allocation4 + $0x1db8] sm:$0xff] }
 0x4e7   :  { %2569 = vmatprep.subr.bf16.mxu0 %v1722_v33  ;;  %2733 = vmatprep.subr.bf16.mxu1 %v1724_v34  ;;  %v1883_v33 = vld [vmem:[#allocation4 + $0x1ab0] sm:$0xff] }
 0x4ea   :  { %2570 = vmatpush1.bf16.msra.mxu0 %v1721_v35  ;;  %2734 = vmatpush1.bf16.msra.mxu1 %v1723_v62  ;;  %v1898_v62 = vld [vmem:[#allocation4 + $0x1b28] sm:$0xff] }
 0x4eb   :  { %2571 = vmatprep.subr.bf16.mxu0 %v1738_v39  ;;  %2735 = vmatprep.subr.bf16.mxu1 %v1740_v44  ;;  %v1900_v39 = vld [vmem:[#allocation4 + $0x1b38] sm:$0xff] }
 0x4ee   :  { %2572 = vmatpush1.bf16.msra.mxu0 %v1737_v45  ;;  %2736 = vmatpush1.bf16.msra.mxu1 %v1739_v46 }
 0x4ef   :  { %2573 = vmatprep.subr.bf16.mxu0 %v1754_v21  ;;  %2737 = vmatprep.subr.bf16.mxu1 %v1756_v7 }
 0x4f2   :  { %2574 = vmatpush1.bf16.msra.mxu0 %v1753_v15  ;;  %2738 = vmatpush1.bf16.msra.mxu1 %v1755_v54 }
 0x4f3   :  { %2575 = vmatprep.subr.bf16.mxu0 %v1770_v55  ;;  %2739 = vmatprep.subr.bf16.mxu1 %v1772_v36 }
 0x4f6   :  { %2576 = vmatpush1.bf16.msra.mxu0 %v1769_v19  ;;  %2740 = vmatpush1.bf16.msra.mxu1 %v1771_v1 }
 0x4f7   :  { %2577 = vmatprep.subr.bf16.mxu0 %v1786_v13  ;;  %2741 = vmatprep.subr.bf16.mxu1 %v1788_v50  ;;  %v1897_v50 = vld [vmem:[#allocation4 + $0x1b20] sm:$0xff] }
 0x4fa   :  { %2578 = vmatpush1.bf16.msra.mxu0 %v1785_v3  ;;  %2742 = vmatpush1.bf16.msra.mxu1 %v1787_v4  ;;  %v1899_v3 = vld [vmem:[#allocation4 + $0x1b30] sm:$0xff] }
 0x4fb   :  { %2588 = vmatprep.subr.bf16.mxu0 %v1802_v18  ;;  %2752 = vmatprep.subr.bf16.mxu1 %v1804_v58  ;;  %v1914_v58 = vld [vmem:[#allocation4 + $0x1ba8] sm:$0xff] }
 0x4fd   :  { %2580 = vmatmul.mubr.bf16.vlgmr.msra.gmra.mrb[16].mxu0 %v7438_v42  ;;  %2744 = vmatmul.mubr.bf16.vlgmr.msra.gmra.mrb[16].mxu1 %v7438_v42 }
 0x4fe   :  { %2589 = vmatpush1.bf16.msra.mxu0 %v1801_v6  ;;  %2753 = vmatpush1.bf16.msra.mxu1 %v1803_v9  ;;  %v1916_v6 = vld [vmem:[#allocation4 + $0x1bb8] sm:$0xff]  ;;  %v1913_v9 = vld [vmem:[#allocation4 + $0x1ba0] sm:$0xff] }
 0x4ff   :  { %2590 = vmatprep.subr.bf16.mxu0 %v1818_v10  ;;  %2754 = vmatprep.subr.bf16.mxu1 %v1820_v12  ;;  %v1915_v10 = vld [vmem:[#allocation4 + $0x1bb0] sm:$0xff]  ;;  %v1930_v12 = vld [vmem:[#allocation4 + $0x1c28] sm:$0xff] }
 0x500   :  { %2620 = vmatprep.mubr.bf16.mxu0 %v7443_v52  ;;  %2784 = vmatprep.mubr.bf16.mxu1 %v7443_v52 }
 0x502   :  { %2591 = vmatpush1.bf16.msra.mxu0 %v1817_v8  ;;  %2755 = vmatpush1.bf16.msra.mxu1 %v1819_v14  ;;  %v1932_v8 = vld [vmem:[#allocation4 + $0x1c38] sm:$0xff]  ;;  %v1929_v14 = vld [vmem:[#allocation4 + $0x1c20] sm:$0xff] }
 0x503   :  { %2592 = vmatprep.subr.bf16.mxu0 %v1834_v16  ;;  %2756 = vmatprep.subr.bf16.mxu1 %v1836_v17  ;;  %v1931_v16 = vld [vmem:[#allocation4 + $0x1c30] sm:$0xff]  ;;  %v1946_v17 = vld [vmem:[#allocation4 + $0x1ca8] sm:$0xff] }
 0x506   :  { %2593 = vmatpush1.bf16.msra.mxu0 %v1833_v48  ;;  %2757 = vmatpush1.bf16.msra.mxu1 %v1835_v53  ;;  %v1948_v48 = vld [vmem:[#allocation4 + $0x1cb8] sm:$0xff]  ;;  %v1945_v53 = vld [vmem:[#allocation4 + $0x1ca0] sm:$0xff] }
 0x507   :  { %2594 = vmatprep.subr.bf16.mxu0 %v1850_v61  ;;  %2758 = vmatprep.subr.bf16.mxu1 %v1852_v22  ;;  %v1947_v61 = vld [vmem:[#allocation4 + $0x1cb0] sm:$0xff]  ;;  %v1962_v22 = vld [vmem:[#allocation4 + $0x1d28] sm:$0xff] }
 0x50a   :  { %2595 = vmatpush1.bf16.msra.mxu0 %v1849_v24  ;;  %2759 = vmatpush1.bf16.msra.mxu1 %v1851_v25  ;;  %v1964_v24 = vld [vmem:[#allocation4 + $0x1d38] sm:$0xff]  ;;  %v1961_v25 = vld [vmem:[#allocation4 + $0x1d20] sm:$0xff] }
 0x50b   :  { %2596 = vmatprep.subr.bf16.mxu0 %v1866_v49  ;;  %2760 = vmatprep.subr.bf16.mxu1 %v1868_v26  ;;  %v1963_v49 = vld [vmem:[#allocation4 + $0x1d30] sm:$0xff]  ;;  %v1978_v26 = vld [vmem:[#allocation4 + $0x1da8] sm:$0xff] }
 0x50e   :  { %2597 = vmatpush1.bf16.msra.mxu0 %v1865_v51  ;;  %2761 = vmatpush1.bf16.msra.mxu1 %v1867_v27  ;;  %v1977_v51 = vld [vmem:[#allocation4 + $0x1da0] sm:$0xff]  ;;  %v1979_v27 = vld [vmem:[#allocation4 + $0x1db0] sm:$0xff] }
 0x50f   :  { %2598 = vmatprep.subr.bf16.mxu0 %v1882_v28  ;;  %2762 = vmatprep.subr.bf16.mxu1 %v1884_v11  ;;  %v1994_v28 = vld [vmem:[#allocation4 + $0x1e28] sm:$0xff]  ;;  %v1996_v11 = vld [vmem:[#allocation4 + $0x1e38] sm:$0xff] }
 0x510   :  { %v2294_v34 = vpop.f32.mrb[12].mxu0  ;;  %v2458_v35 = vpop.f32.mrb[12].mxu1 }
 0x511   :  { %v7474_v44 = vadd.f32 %v2294_v34, %v2060_v56  ;;  %v7476_v45 = vadd.f32 %v2458_v35, %v2068_v29  ;;  %v2296_v46 = vpop.f32.mrb[13].mxu0  ;;  %v2460_v21 = vpop.f32.mrb[13].mxu1  ;;  %v1993_v56 = vld [vmem:[#allocation4 + $0x1e20] sm:$0xff]  ;;  %v1995_v29 = vld [vmem:[#allocation4 + $0x1e30] sm:$0xff]  ;;  %v2026_v34 = vld [vmem:[#allocation4 + $0x1f28] sm:$0xff] }
 0x512   :  { %v7478_v7 = vadd.f32 %v2296_v46, %v2064_v30  ;;  %v7480_v15 = vadd.f32 %v2460_v21, %v2072_v31  ;;  %v2298_v54 = vpop.f32.mrb[14].mxu0  ;;  %v2462_v55 = vpop.f32.mrb[14].mxu1  ;;  %2599 = vmatpush1.bf16.msra.mxu0 %v1881_v32  ;;  %2763 = vmatpush1.bf16.msra.mxu1 %v1883_v33  ;;  %v2010_v30 = vld [vmem:[#allocation4 + $0x1ea8] sm:$0xff]  ;;  %v2012_v31 = vld [vmem:[#allocation4 + $0x1eb8] sm:$0xff]  ;;  %v2009_v32 = vld [vmem:[#allocation4 + $0x1ea0] sm:$0xff] }
 0x513   :  { %v3449_v36 = vmax.f32 %v7474_v44, 0.0  ;;  %v3451_v19 = vmax.f32 %v7476_v45, 0.0  ;;  %v2299_v1 = vpop.f32.mrb[15].mxu0  ;;  %v2463_v13 = vpop.f32.mrb[15].mxu1  ;;  %2600 = vmatprep.subr.bf16.mxu0 %v1898_v62  ;;  %2764 = vmatprep.subr.bf16.mxu1 %v1900_v39  ;;  %v2011_v33 = vld [vmem:[#allocation4 + $0x1eb0] sm:$0xff]  ;;  %v2028_v35 = vld [vmem:[#allocation4 + $0x1f38] sm:$0xff] }
 0x514   :  { %v3450_v4 = vmax.f32 %v7478_v7, 0.0  ;;  %v3452_v18 = vmax.f32 %v7480_v15, 0.0  ;;  %v2025_v62 = vld [vmem:[#allocation4 + $0x1f20] sm:$0xff]  ;;  %v2027_v39 = vld [vmem:[#allocation4 + $0x1f30] sm:$0xff]  ;;  %v2042_v46 = vld [vmem:[#allocation4 + $0x1fa8] sm:$0xff] }
 0x515   :  { %v2044_v21 = vld [vmem:[#allocation4 + $0x1fb8] sm:$0xff]  ;;  %v2041_v54 = vld [vmem:[#allocation4 + $0x1fa0] sm:$0xff]  ;;  %v2043_v55 = vld [vmem:[#allocation4 + $0x1fb0] sm:$0xff] }
 0x516   :  { %2601 = vmatpush1.bf16.msra.mxu0 %v1897_v50  ;;  %2765 = vmatpush1.bf16.msra.mxu1 %v1899_v3  ;;  %v1038_v1 = vld [vmem:[#allocation4 + $0x48] sm:$0xff]  ;;  %v1040_v13 = vld [vmem:[#allocation4 + $0x58] sm:$0xff]  ;;  %v1037_v50 = vld [vmem:[#allocation4 + $0x40] sm:$0xff] }
 0x517   :  { %2602 = vmatprep.subr.bf16.mxu0 %v1914_v58  ;;  %2766 = vmatprep.subr.bf16.mxu1 %v1916_v6  ;;  %v1039_v3 = vld [vmem:[#allocation4 + $0x50] sm:$0xff]  ;;  %v1054_v58 = vld [vmem:[#allocation4 + $0xc8] sm:$0xff]  ;;  %v1056_v6 = vld [vmem:[#allocation4 + $0xd8] sm:$0xff] }
 0x51a   :  { %2603 = vmatpush1.bf16.msra.mxu0 %v1913_v9  ;;  %2767 = vmatpush1.bf16.msra.mxu1 %v1915_v10  ;;  %v1053_v9 = vld [vmem:[#allocation4 + $0xc0] sm:$0xff]  ;;  %v1055_v10 = vld [vmem:[#allocation4 + $0xd0] sm:$0xff] }
 0x51b   :  { %2604 = vmatprep.subr.bf16.mxu0 %v1930_v12  ;;  %2768 = vmatprep.subr.bf16.mxu1 %v1932_v8  ;;  %v1070_v12 = vld [vmem:[#allocation4 + $0x148] sm:$0xff]  ;;  %v1072_v8 = vld [vmem:[#allocation4 + $0x158] sm:$0xff] }
 0x51e   :  { %2605 = vmatpush1.bf16.msra.mxu0 %v1929_v14  ;;  %2769 = vmatpush1.bf16.msra.mxu1 %v1931_v16  ;;  %v1069_v14 = vld [vmem:[#allocation4 + $0x140] sm:$0xff]  ;;  %v1071_v16 = vld [vmem:[#allocation4 + $0x150] sm:$0xff] }
 0x51f   :  { %2606 = vmatprep.subr.bf16.mxu0 %v1946_v17  ;;  %2770 = vmatprep.subr.bf16.mxu1 %v1948_v48  ;;  %v1086_v17 = vld [vmem:[#allocation4 + $0x1c8] sm:$0xff]  ;;  %v1088_v48 = vld [vmem:[#allocation4 + $0x1d8] sm:$0xff] }
 0x522   :  { %2607 = vmatpush1.bf16.msra.mxu0 %v1945_v53  ;;  %2771 = vmatpush1.bf16.msra.mxu1 %v1947_v61  ;;  %v1085_v53 = vld [vmem:[#allocation4 + $0x1c0] sm:$0xff]  ;;  %v1087_v61 = vld [vmem:[#allocation4 + $0x1d0] sm:$0xff] }
 0x523   :  { %2608 = vmatprep.subr.bf16.mxu0 %v1962_v22  ;;  %2772 = vmatprep.subr.bf16.mxu1 %v1964_v24  ;;  %v1102_v22 = vld [vmem:[#allocation4 + $0x248] sm:$0xff]  ;;  %v1104_v24 = vld [vmem:[#allocation4 + $0x258] sm:$0xff] }
 0x526   :  { %2609 = vmatpush1.bf16.msra.mxu0 %v1961_v25  ;;  %2773 = vmatpush1.bf16.msra.mxu1 %v1963_v49  ;;  %v1101_v25 = vld [vmem:[#allocation4 + $0x240] sm:$0xff]  ;;  %v1103_v49 = vld [vmem:[#allocation4 + $0x250] sm:$0xff] }
 0x527   :  { %2610 = vmatprep.subr.bf16.mxu0 %v1978_v26  ;;  %2774 = vmatprep.subr.bf16.mxu1 %v1980_v43  ;;  %v1118_v26 = vld [vmem:[#allocation4 + $0x2c8] sm:$0xff]  ;;  %v1120_v43 = vld [vmem:[#allocation4 + $0x2d8] sm:$0xff] }
 0x52a   :  { %2611 = vmatpush1.bf16.msra.mxu0 %v1977_v51  ;;  %2775 = vmatpush1.bf16.msra.mxu1 %v1979_v27  ;;  %v1117_v51 = vld [vmem:[#allocation4 + $0x2c0] sm:$0xff]  ;;  %v1119_v27 = vld [vmem:[#allocation4 + $0x2d0] sm:$0xff] }
 0x52b   :  { %2612 = vmatprep.subr.bf16.mxu0 %v1994_v28  ;;  %2776 = vmatprep.subr.bf16.mxu1 %v1996_v11  ;;  %v1134_v28 = vld [vmem:[#allocation4 + $0x348] sm:$0xff]  ;;  %v1136_v11 = vld [vmem:[#allocation4 + $0x358] sm:$0xff] }
 0x52e   :  { %2613 = vmatpush1.bf16.msra.mxu0 %v1993_v56  ;;  %2777 = vmatpush1.bf16.msra.mxu1 %v1995_v29  ;;  %v1133_v56 = vld [vmem:[#allocation4 + $0x340] sm:$0xff]  ;;  %v1135_v29 = vld [vmem:[#allocation4 + $0x350] sm:$0xff] }
 0x52f   :  { %2614 = vmatprep.subr.bf16.mxu0 %v2010_v30  ;;  %2778 = vmatprep.subr.bf16.mxu1 %v2012_v31  ;;  %v1150_v30 = vld [vmem:[#allocation4 + $0x3c8] sm:$0xff]  ;;  %v1152_v31 = vld [vmem:[#allocation4 + $0x3d8] sm:$0xff] }
 0x532   :  { %2615 = vmatpush1.bf16.msra.mxu0 %v2009_v32  ;;  %2779 = vmatpush1.bf16.msra.mxu1 %v2011_v33  ;;  %v1149_v32 = vld [vmem:[#allocation4 + $0x3c0] sm:$0xff]  ;;  %v1151_v33 = vld [vmem:[#allocation4 + $0x3d0] sm:$0xff] }
 0x533   :  { %2616 = vmatprep.subr.bf16.mxu0 %v2026_v34  ;;  %2780 = vmatprep.subr.bf16.mxu1 %v2028_v35  ;;  %v1166_v34 = vld [vmem:[#allocation4 + $0x448] sm:$0xff]  ;;  %v1168_v35 = vld [vmem:[#allocation4 + $0x458] sm:$0xff] }
 0x536   :  { %2617 = vmatpush1.bf16.msra.mxu0 %v2025_v62  ;;  %2781 = vmatpush1.bf16.msra.mxu1 %v2027_v39  ;;  %v1165_v62 = vld [vmem:[#allocation4 + $0x440] sm:$0xff]  ;;  %v1167_v39 = vld [vmem:[#allocation4 + $0x450] sm:$0xff] }
 0x537   :  { %2618 = vmatprep.subr.bf16.mxu0 %v2042_v46  ;;  %2782 = vmatprep.subr.bf16.mxu1 %v2044_v21  ;;  %v1182_v46 = vld [vmem:[#allocation4 + $0x4c8] sm:$0xff]  ;;  %v1184_v21 = vld [vmem:[#allocation4 + $0x4d8] sm:$0xff] }
 0x53a   :  { %2619 = vmatpush1.bf16.msra.mxu0 %v2041_v54  ;;  %2783 = vmatpush1.bf16.msra.mxu1 %v2043_v55  ;;  %v1181_v54 = vld [vmem:[#allocation4 + $0x4c0] sm:$0xff]  ;;  %v1183_v55 = vld [vmem:[#allocation4 + $0x4d0] sm:$0xff] }
 0x53b   :  { %2793 = vmatprep.subr.bf16.mxu0 %v1038_v1  ;;  %2957 = vmatprep.subr.bf16.mxu1 %v1040_v13  ;;  %v1198_v1 = vld [vmem:[#allocation4 + $0x548] sm:$0xff]  ;;  %v1200_v13 = vld [vmem:[#allocation4 + $0x558] sm:$0xff] }
 0x53d   :  { %2621 = vmatmul.mubr.bf16.vlgmr.msra.gmra.mrb[16].mxu0 %v7452_v5  ;;  %2785 = vmatmul.mubr.bf16.vlgmr.msra.gmra.mrb[16].mxu1 %v7452_v5 }
 0x53e   :  { %2794 = vmatpush1.bf16.msra.mxu0 %v1037_v50  ;;  %2958 = vmatpush1.bf16.msra.mxu1 %v1039_v3  ;;  %v1197_v50 = vld [vmem:[#allocation4 + $0x540] sm:$0xff]  ;;  %v1199_v3 = vld [vmem:[#allocation4 + $0x550] sm:$0xff] }
 0x53f   :  { %2795 = vmatprep.subr.bf16.mxu0 %v1054_v58  ;;  %2959 = vmatprep.subr.bf16.mxu1 %v1056_v6  ;;  %v1214_v58 = vld [vmem:[#allocation4 + $0x5c8] sm:$0xff]  ;;  %v1216_v6 = vld [vmem:[#allocation4 + $0x5d8] sm:$0xff] }
 0x540   :  { %2825 = vmatprep.mubr.bf16.mxu0 %v7403_v20  ;;  %2989 = vmatprep.mubr.bf16.mxu1 %v7403_v20 }
 0x542   :  { %2796 = vmatpush1.bf16.msra.mxu0 %v1053_v9  ;;  %2960 = vmatpush1.bf16.msra.mxu1 %v1055_v10  ;;  %v1213_v9 = vld [vmem:[#allocation4 + $0x5c0] sm:$0xff]  ;;  %v1215_v10 = vld [vmem:[#allocation4 + $0x5d0] sm:$0xff] }
 0x543   :  { %2797 = vmatprep.subr.bf16.mxu0 %v1070_v12  ;;  %2961 = vmatprep.subr.bf16.mxu1 %v1072_v8  ;;  %v1230_v12 = vld [vmem:[#allocation4 + $0x648] sm:$0xff]  ;;  %v1232_v8 = vld [vmem:[#allocation4 + $0x658] sm:$0xff] }
 0x546   :  { %2798 = vmatpush1.bf16.msra.mxu0 %v1069_v14  ;;  %2962 = vmatpush1.bf16.msra.mxu1 %v1071_v16  ;;  %v1229_v14 = vld [vmem:[#allocation4 + $0x640] sm:$0xff]  ;;  %v1231_v16 = vld [vmem:[#allocation4 + $0x650] sm:$0xff] }
 0x547   :  { %2799 = vmatprep.subr.bf16.mxu0 %v1086_v17  ;;  %2963 = vmatprep.subr.bf16.mxu1 %v1088_v48  ;;  %v1246_v17 = vld [vmem:[#allocation4 + $0x6c8] sm:$0xff]  ;;  %v1248_v48 = vld [vmem:[#allocation4 + $0x6d8] sm:$0xff] }
 0x54a   :  { %2800 = vmatpush1.bf16.msra.mxu0 %v1085_v53  ;;  %2964 = vmatpush1.bf16.msra.mxu1 %v1087_v61  ;;  %v1245_v53 = vld [vmem:[#allocation4 + $0x6c0] sm:$0xff]  ;;  %v1247_v61 = vld [vmem:[#allocation4 + $0x6d0] sm:$0xff] }
 0x54b   :  { %2801 = vmatprep.subr.bf16.mxu0 %v1102_v22  ;;  %2965 = vmatprep.subr.bf16.mxu1 %v1104_v24  ;;  %v1262_v22 = vld [vmem:[#allocation4 + $0x748] sm:$0xff]  ;;  %v1264_v24 = vld [vmem:[#allocation4 + $0x758] sm:$0xff] }
 0x54e   :  { %2802 = vmatpush1.bf16.msra.mxu0 %v1101_v25  ;;  %2966 = vmatpush1.bf16.msra.mxu1 %v1103_v49  ;;  %v1261_v25 = vld [vmem:[#allocation4 + $0x740] sm:$0xff]  ;;  %v1263_v49 = vld [vmem:[#allocation4 + $0x750] sm:$0xff] }
 0x54f   :  { %2803 = vmatprep.subr.bf16.mxu0 %v1118_v26  ;;  %2967 = vmatprep.subr.bf16.mxu1 %v1120_v43  ;;  %v1278_v26 = vld [vmem:[#allocation4 + $0x7c8] sm:$0xff]  ;;  %v1280_v43 = vld [vmem:[#allocation4 + $0x7d8] sm:$0xff] }
 0x552   :  { %2804 = vmatpush1.bf16.msra.mxu0 %v1117_v51  ;;  %2968 = vmatpush1.bf16.msra.mxu1 %v1119_v27  ;;  %v1277_v51 = vld [vmem:[#allocation4 + $0x7c0] sm:$0xff]  ;;  %v1279_v27 = vld [vmem:[#allocation4 + $0x7d0] sm:$0xff] }
 0x553   :  { %2805 = vmatprep.subr.bf16.mxu0 %v1134_v28  ;;  %2969 = vmatprep.subr.bf16.mxu1 %v1136_v11  ;;  %v1294_v28 = vld [vmem:[#allocation4 + $0x848] sm:$0xff]  ;;  %v1296_v11 = vld [vmem:[#allocation4 + $0x858] sm:$0xff] }
 0x556   :  { %2806 = vmatpush1.bf16.msra.mxu0 %v1133_v56  ;;  %2970 = vmatpush1.bf16.msra.mxu1 %v1135_v29  ;;  %v1293_v56 = vld [vmem:[#allocation4 + $0x840] sm:$0xff]  ;;  %v1295_v29 = vld [vmem:[#allocation4 + $0x850] sm:$0xff] }
 0x557   :  { %2807 = vmatprep.subr.bf16.mxu0 %v1150_v30  ;;  %2971 = vmatprep.subr.bf16.mxu1 %v1152_v31  ;;  %v1310_v30 = vld [vmem:[#allocation4 + $0x8c8] sm:$0xff]  ;;  %v1312_v31 = vld [vmem:[#allocation4 + $0x8d8] sm:$0xff] }
 0x55a   :  { %2808 = vmatpush1.bf16.msra.mxu0 %v1149_v32  ;;  %2972 = vmatpush1.bf16.msra.mxu1 %v1151_v33  ;;  %v1309_v32 = vld [vmem:[#allocation4 + $0x8c0] sm:$0xff]  ;;  %v1311_v33 = vld [vmem:[#allocation4 + $0x8d0] sm:$0xff] }
 0x55b   :  { %2809 = vmatprep.subr.bf16.mxu0 %v1166_v34  ;;  %2973 = vmatprep.subr.bf16.mxu1 %v1168_v35  ;;  %v1326_v34 = vld [vmem:[#allocation4 + $0x948] sm:$0xff]  ;;  %v1328_v35 = vld [vmem:[#allocation4 + $0x958] sm:$0xff] }
 0x55e   :  { %2810 = vmatpush1.bf16.msra.mxu0 %v1165_v62  ;;  %2974 = vmatpush1.bf16.msra.mxu1 %v1167_v39  ;;  %v1325_v62 = vld [vmem:[#allocation4 + $0x940] sm:$0xff]  ;;  %v1327_v39 = vld [vmem:[#allocation4 + $0x950] sm:$0xff] }
 0x55f   :  { %2811 = vmatprep.subr.bf16.mxu0 %v1182_v46  ;;  %2975 = vmatprep.subr.bf16.mxu1 %v1184_v21  ;;  %v1342_v46 = vld [vmem:[#allocation4 + $0x9c8] sm:$0xff]  ;;  %v1344_v21 = vld [vmem:[#allocation4 + $0x9d8] sm:$0xff] }
 0x562   :  { %2812 = vmatpush1.bf16.msra.mxu0 %v1181_v54  ;;  %2976 = vmatpush1.bf16.msra.mxu1 %v1183_v55  ;;  %v1341_v54 = vld [vmem:[#allocation4 + $0x9c0] sm:$0xff]  ;;  %v1343_v55 = vld [vmem:[#allocation4 + $0x9d0] sm:$0xff] }
 0x563   :  { %2813 = vmatprep.subr.bf16.mxu0 %v1198_v1  ;;  %2977 = vmatprep.subr.bf16.mxu1 %v1200_v13  ;;  %v1358_v1 = vld [vmem:[#allocation4 + $0xa48] sm:$0xff]  ;;  %v1360_v13 = vld [vmem:[#allocation4 + $0xa58] sm:$0xff] }
 0x566   :  { %2814 = vmatpush1.bf16.msra.mxu0 %v1197_v50  ;;  %2978 = vmatpush1.bf16.msra.mxu1 %v1199_v3  ;;  %v1357_v50 = vld [vmem:[#allocation4 + $0xa40] sm:$0xff]  ;;  %v1359_v3 = vld [vmem:[#allocation4 + $0xa50] sm:$0xff] }
 0x567   :  { %2815 = vmatprep.subr.bf16.mxu0 %v1214_v58  ;;  %2979 = vmatprep.subr.bf16.mxu1 %v1216_v6  ;;  %v1374_v58 = vld [vmem:[#allocation4 + $0xac8] sm:$0xff]  ;;  %v1376_v6 = vld [vmem:[#allocation4 + $0xad8] sm:$0xff] }
 0x56a   :  { %2816 = vmatpush1.bf16.msra.mxu0 %v1213_v9  ;;  %2980 = vmatpush1.bf16.msra.mxu1 %v1215_v10  ;;  %v1373_v9 = vld [vmem:[#allocation4 + $0xac0] sm:$0xff]  ;;  %v1375_v10 = vld [vmem:[#allocation4 + $0xad0] sm:$0xff] }
 0x56b   :  { %2817 = vmatprep.subr.bf16.mxu0 %v1230_v12  ;;  %2981 = vmatprep.subr.bf16.mxu1 %v1232_v8  ;;  %v1390_v12 = vld [vmem:[#allocation4 + $0xb48] sm:$0xff]  ;;  %v1392_v8 = vld [vmem:[#allocation4 + $0xb58] sm:$0xff] }
 0x56e   :  { %2818 = vmatpush1.bf16.msra.mxu0 %v1229_v14  ;;  %2982 = vmatpush1.bf16.msra.mxu1 %v1231_v16  ;;  %v1389_v14 = vld [vmem:[#allocation4 + $0xb40] sm:$0xff]  ;;  %v1391_v16 = vld [vmem:[#allocation4 + $0xb50] sm:$0xff] }
 0x56f   :  { %2819 = vmatprep.subr.bf16.mxu0 %v1246_v17  ;;  %2983 = vmatprep.subr.bf16.mxu1 %v1248_v48  ;;  %v1406_v17 = vld [vmem:[#allocation4 + $0xbc8] sm:$0xff]  ;;  %v1408_v48 = vld [vmem:[#allocation4 + $0xbd8] sm:$0xff] }
 0x572   :  { %2820 = vmatpush1.bf16.msra.mxu0 %v1245_v53  ;;  %2984 = vmatpush1.bf16.msra.mxu1 %v1247_v61  ;;  %v1405_v53 = vld [vmem:[#allocation4 + $0xbc0] sm:$0xff]  ;;  %v1407_v61 = vld [vmem:[#allocation4 + $0xbd0] sm:$0xff] }
 0x573   :  { %2821 = vmatprep.subr.bf16.mxu0 %v1262_v22  ;;  %2985 = vmatprep.subr.bf16.mxu1 %v1264_v24  ;;  %v1422_v22 = vld [vmem:[#allocation4 + $0xc48] sm:$0xff]  ;;  %v1424_v24 = vld [vmem:[#allocation4 + $0xc58] sm:$0xff] }
 0x576   :  { %2822 = vmatpush1.bf16.msra.mxu0 %v1261_v25  ;;  %2986 = vmatpush1.bf16.msra.mxu1 %v1263_v49  ;;  %v1421_v25 = vld [vmem:[#allocation4 + $0xc40] sm:$0xff]  ;;  %v1423_v49 = vld [vmem:[#allocation4 + $0xc50] sm:$0xff] }
 0x577   :  { %2823 = vmatprep.subr.bf16.mxu0 %v1278_v26  ;;  %2987 = vmatprep.subr.bf16.mxu1 %v1280_v43  ;;  %v1438_v26 = vld [vmem:[#allocation4 + $0xcc8] sm:$0xff]  ;;  %v1440_v43 = vld [vmem:[#allocation4 + $0xcd8] sm:$0xff] }
 0x57a   :  { %2824 = vmatpush1.bf16.msra.mxu0 %v1277_v51  ;;  %2988 = vmatpush1.bf16.msra.mxu1 %v1279_v27  ;;  %v1437_v51 = vld [vmem:[#allocation4 + $0xcc0] sm:$0xff]  ;;  %v1439_v27 = vld [vmem:[#allocation4 + $0xcd0] sm:$0xff] }
 0x57b   :  { %2834 = vmatprep.subr.bf16.mxu0 %v1294_v28  ;;  %2998 = vmatprep.subr.bf16.mxu1 %v1296_v11  ;;  %v1454_v28 = vld [vmem:[#allocation4 + $0xd48] sm:$0xff]  ;;  %v1456_v11 = vld [vmem:[#allocation4 + $0xd58] sm:$0xff] }
 0x57d   :  { %2826 = vmatmul.mubr.bf16.vlgmr.msra.gmra.mrb[20].mxu0 %v7410_v47  ;;  %2990 = vmatmul.mubr.bf16.vlgmr.msra.gmra.mrb[20].mxu1 %v7410_v47 }
 0x57e   :  { %2835 = vmatpush1.bf16.msra.mxu0 %v1293_v56  ;;  %2999 = vmatpush1.bf16.msra.mxu1 %v1295_v29  ;;  %v1453_v56 = vld [vmem:[#allocation4 + $0xd40] sm:$0xff]  ;;  %v1455_v29 = vld [vmem:[#allocation4 + $0xd50] sm:$0xff] }
 0x57f   :  { %2836 = vmatprep.subr.bf16.mxu0 %v1310_v30  ;;  %3000 = vmatprep.subr.bf16.mxu1 %v1312_v31  ;;  %v1470_v30 = vld [vmem:[#allocation4 + $0xdc8] sm:$0xff]  ;;  %v1472_v31 = vld [vmem:[#allocation4 + $0xdd8] sm:$0xff] }
 0x580   :  { %2866 = vmatprep.mubr.bf16.mxu0 %v7415_v2  ;;  %3030 = vmatprep.mubr.bf16.mxu1 %v7415_v2 }
 0x582   :  { %2837 = vmatpush1.bf16.msra.mxu0 %v1309_v32  ;;  %3001 = vmatpush1.bf16.msra.mxu1 %v1311_v33  ;;  %v1469_v32 = vld [vmem:[#allocation4 + $0xdc0] sm:$0xff]  ;;  %v1471_v33 = vld [vmem:[#allocation4 + $0xdd0] sm:$0xff] }
 0x583   :  { %2838 = vmatprep.subr.bf16.mxu0 %v1326_v34  ;;  %3002 = vmatprep.subr.bf16.mxu1 %v1328_v35  ;;  %v1486_v34 = vld [vmem:[#allocation4 + $0xe48] sm:$0xff]  ;;  %v1488_v35 = vld [vmem:[#allocation4 + $0xe58] sm:$0xff] }
 0x586   :  { %2839 = vmatpush1.bf16.msra.mxu0 %v1325_v62  ;;  %3003 = vmatpush1.bf16.msra.mxu1 %v1327_v39  ;;  %v1485_v62 = vld [vmem:[#allocation4 + $0xe40] sm:$0xff]  ;;  %v1487_v39 = vld [vmem:[#allocation4 + $0xe50] sm:$0xff] }
 0x587   :  { %2840 = vmatprep.subr.bf16.mxu0 %v1342_v46  ;;  %3004 = vmatprep.subr.bf16.mxu1 %v1344_v21  ;;  %v1502_v46 = vld [vmem:[#allocation4 + $0xec8] sm:$0xff]  ;;  %v1504_v21 = vld [vmem:[#allocation4 + $0xed8] sm:$0xff] }
 0x58a   :  { %2841 = vmatpush1.bf16.msra.mxu0 %v1341_v54  ;;  %3005 = vmatpush1.bf16.msra.mxu1 %v1343_v55  ;;  %v1501_v54 = vld [vmem:[#allocation4 + $0xec0] sm:$0xff]  ;;  %v1503_v55 = vld [vmem:[#allocation4 + $0xed0] sm:$0xff] }
 0x58b   :  { %2842 = vmatprep.subr.bf16.mxu0 %v1358_v1  ;;  %3006 = vmatprep.subr.bf16.mxu1 %v1360_v13  ;;  %v1518_v1 = vld [vmem:[#allocation4 + $0xf48] sm:$0xff]  ;;  %v1520_v13 = vld [vmem:[#allocation4 + $0xf58] sm:$0xff] }
 0x58e   :  { %2843 = vmatpush1.bf16.msra.mxu0 %v1357_v50  ;;  %3007 = vmatpush1.bf16.msra.mxu1 %v1359_v3  ;;  %v1517_v50 = vld [vmem:[#allocation4 + $0xf40] sm:$0xff]  ;;  %v1519_v3 = vld [vmem:[#allocation4 + $0xf50] sm:$0xff] }
 0x58f   :  { %2844 = vmatprep.subr.bf16.mxu0 %v1374_v58  ;;  %3008 = vmatprep.subr.bf16.mxu1 %v1376_v6  ;;  %v1534_v58 = vld [vmem:[#allocation4 + $0xfc8] sm:$0xff]  ;;  %v1536_v6 = vld [vmem:[#allocation4 + $0xfd8] sm:$0xff] }
 0x592   :  { %2845 = vmatpush1.bf16.msra.mxu0 %v1373_v9  ;;  %3009 = vmatpush1.bf16.msra.mxu1 %v1375_v10  ;;  %v1533_v9 = vld [vmem:[#allocation4 + $0xfc0] sm:$0xff]  ;;  %v1535_v10 = vld [vmem:[#allocation4 + $0xfd0] sm:$0xff] }
 0x593   :  { %2846 = vmatprep.subr.bf16.mxu0 %v1390_v12  ;;  %3010 = vmatprep.subr.bf16.mxu1 %v1392_v8  ;;  %v1550_v12 = vld [vmem:[#allocation4 + $0x1048] sm:$0xff]  ;;  %v1552_v8 = vld [vmem:[#allocation4 + $0x1058] sm:$0xff] }
 0x596   :  { %2847 = vmatpush1.bf16.msra.mxu0 %v1389_v14  ;;  %3011 = vmatpush1.bf16.msra.mxu1 %v1391_v16  ;;  %v1549_v14 = vld [vmem:[#allocation4 + $0x1040] sm:$0xff]  ;;  %v1551_v16 = vld [vmem:[#allocation4 + $0x1050] sm:$0xff] }
 0x597   :  { %2848 = vmatprep.subr.bf16.mxu0 %v1406_v17  ;;  %3012 = vmatprep.subr.bf16.mxu1 %v1408_v48  ;;  %v1566_v17 = vld [vmem:[#allocation4 + $0x10c8] sm:$0xff]  ;;  %v1568_v48 = vld [vmem:[#allocation4 + $0x10d8] sm:$0xff] }
 0x59a   :  { %2849 = vmatpush1.bf16.msra.mxu0 %v1405_v53  ;;  %3013 = vmatpush1.bf16.msra.mxu1 %v1407_v61  ;;  %v1565_v53 = vld [vmem:[#allocation4 + $0x10c0] sm:$0xff]  ;;  %v1567_v61 = vld [vmem:[#allocation4 + $0x10d0] sm:$0xff] }
 0x59b   :  { %2850 = vmatprep.subr.bf16.mxu0 %v1422_v22  ;;  %3014 = vmatprep.subr.bf16.mxu1 %v1424_v24  ;;  %v1582_v22 = vld [vmem:[#allocation4 + $0x1148] sm:$0xff]  ;;  %v1584_v24 = vld [vmem:[#allocation4 + $0x1158] sm:$0xff] }
 0x59e   :  { %2851 = vmatpush1.bf16.msra.mxu0 %v1421_v25  ;;  %3015 = vmatpush1.bf16.msra.mxu1 %v1423_v49  ;;  %v1581_v25 = vld [vmem:[#allocation4 + $0x1140] sm:$0xff]  ;;  %v1583_v49 = vld [vmem:[#allocation4 + $0x1150] sm:$0xff] }
 0x59f   :  { %2852 = vmatprep.subr.bf16.mxu0 %v1438_v26  ;;  %3016 = vmatprep.subr.bf16.mxu1 %v1440_v43  ;;  %v1598_v26 = vld [vmem:[#allocation4 + $0x11c8] sm:$0xff]  ;;  %v1600_v43 = vld [vmem:[#allocation4 + $0x11d8] sm:$0xff] }
 0x5a2   :  { %2853 = vmatpush1.bf16.msra.mxu0 %v1437_v51  ;;  %3017 = vmatpush1.bf16.msra.mxu1 %v1439_v27  ;;  %v1597_v51 = vld [vmem:[#allocation4 + $0x11c0] sm:$0xff]  ;;  %v1599_v27 = vld [vmem:[#allocation4 + $0x11d0] sm:$0xff] }
 0x5a3   :  { %2854 = vmatprep.subr.bf16.mxu0 %v1454_v28  ;;  %3018 = vmatprep.subr.bf16.mxu1 %v1456_v11  ;;  %v1614_v28 = vld [vmem:[#allocation4 + $0x1248] sm:$0xff]  ;;  %v1616_v11 = vld [vmem:[#allocation4 + $0x1258] sm:$0xff] }
 0x5a6   :  { %2855 = vmatpush1.bf16.msra.mxu0 %v1453_v56  ;;  %3019 = vmatpush1.bf16.msra.mxu1 %v1455_v29  ;;  %v1613_v56 = vld [vmem:[#allocation4 + $0x1240] sm:$0xff]  ;;  %v1615_v29 = vld [vmem:[#allocation4 + $0x1250] sm:$0xff] }
 0x5a7   :  { %2856 = vmatprep.subr.bf16.mxu0 %v1470_v30  ;;  %3020 = vmatprep.subr.bf16.mxu1 %v1472_v31  ;;  %v1630_v30 = vld [vmem:[#allocation4 + $0x12c8] sm:$0xff]  ;;  %v1632_v31 = vld [vmem:[#allocation4 + $0x12d8] sm:$0xff] }
 0x5aa   :  { %2857 = vmatpush1.bf16.msra.mxu0 %v1469_v32  ;;  %3021 = vmatpush1.bf16.msra.mxu1 %v1471_v33  ;;  %v1629_v32 = vld [vmem:[#allocation4 + $0x12c0] sm:$0xff]  ;;  %v1631_v33 = vld [vmem:[#allocation4 + $0x12d0] sm:$0xff] }
 0x5ab   :  { %2858 = vmatprep.subr.bf16.mxu0 %v1486_v34  ;;  %3022 = vmatprep.subr.bf16.mxu1 %v1488_v35  ;;  %v1646_v34 = vld [vmem:[#allocation4 + $0x1348] sm:$0xff]  ;;  %v1648_v35 = vld [vmem:[#allocation4 + $0x1358] sm:$0xff] }
 0x5ae   :  { %2859 = vmatpush1.bf16.msra.mxu0 %v1485_v62  ;;  %3023 = vmatpush1.bf16.msra.mxu1 %v1487_v39  ;;  %v1645_v62 = vld [vmem:[#allocation4 + $0x1340] sm:$0xff]  ;;  %v1647_v39 = vld [vmem:[#allocation4 + $0x1350] sm:$0xff] }
 0x5af   :  { %2860 = vmatprep.subr.bf16.mxu0 %v1502_v46  ;;  %3024 = vmatprep.subr.bf16.mxu1 %v1504_v21  ;;  %v1662_v46 = vld [vmem:[#allocation4 + $0x13c8] sm:$0xff]  ;;  %v1664_v21 = vld [vmem:[#allocation4 + $0x13d8] sm:$0xff] }
 0x5b2   :  { %2861 = vmatpush1.bf16.msra.mxu0 %v1501_v54  ;;  %3025 = vmatpush1.bf16.msra.mxu1 %v1503_v55  ;;  %v1661_v54 = vld [vmem:[#allocation4 + $0x13c0] sm:$0xff]  ;;  %v1663_v55 = vld [vmem:[#allocation4 + $0x13d0] sm:$0xff] }
 0x5b3   :  { %2862 = vmatprep.subr.bf16.mxu0 %v1518_v1  ;;  %3026 = vmatprep.subr.bf16.mxu1 %v1520_v13  ;;  %v1678_v1 = vld [vmem:[#allocation4 + $0x1448] sm:$0xff]  ;;  %v1680_v13 = vld [vmem:[#allocation4 + $0x1458] sm:$0xff] }
 0x5b6   :  { %2863 = vmatpush1.bf16.msra.mxu0 %v1517_v50  ;;  %3027 = vmatpush1.bf16.msra.mxu1 %v1519_v3  ;;  %v1677_v50 = vld [vmem:[#allocation4 + $0x1440] sm:$0xff]  ;;  %v1679_v3 = vld [vmem:[#allocation4 + $0x1450] sm:$0xff] }
 0x5b7   :  { %2864 = vmatprep.subr.bf16.mxu0 %v1534_v58  ;;  %3028 = vmatprep.subr.bf16.mxu1 %v1536_v6  ;;  %v1694_v58 = vld [vmem:[#allocation4 + $0x14c8] sm:$0xff]  ;;  %v1696_v6 = vld [vmem:[#allocation4 + $0x14d8] sm:$0xff] }
 0x5ba   :  { %2865 = vmatpush1.bf16.msra.mxu0 %v1533_v9  ;;  %3029 = vmatpush1.bf16.msra.mxu1 %v1535_v10  ;;  %v1693_v9 = vld [vmem:[#allocation4 + $0x14c0] sm:$0xff]  ;;  %v1695_v10 = vld [vmem:[#allocation4 + $0x14d0] sm:$0xff] }
 0x5bb   :  { %2875 = vmatprep.subr.bf16.mxu0 %v1550_v12  ;;  %3039 = vmatprep.subr.bf16.mxu1 %v1552_v8  ;;  %v1710_v12 = vld [vmem:[#allocation4 + $0x1548] sm:$0xff]  ;;  %v1712_v8 = vld [vmem:[#allocation4 + $0x1558] sm:$0xff] }
 0x5bd   :  { %2867 = vmatmul.mubr.bf16.vlgmr.msra.gmra.mrb[20].mxu0 %v7424_v23  ;;  %3031 = vmatmul.mubr.bf16.vlgmr.msra.gmra.mrb[20].mxu1 %v7424_v23 }
 0x5be   :  { %2876 = vmatpush1.bf16.msra.mxu0 %v1549_v14  ;;  %3040 = vmatpush1.bf16.msra.mxu1 %v1551_v16  ;;  %v1709_v14 = vld [vmem:[#allocation4 + $0x1540] sm:$0xff]  ;;  %v1711_v16 = vld [vmem:[#allocation4 + $0x1550] sm:$0xff] }
 0x5bf   :  { %2877 = vmatprep.subr.bf16.mxu0 %v1566_v17  ;;  %3041 = vmatprep.subr.bf16.mxu1 %v1568_v48  ;;  %v1726_v17 = vld [vmem:[#allocation4 + $0x15c8] sm:$0xff]  ;;  %v1728_v48 = vld [vmem:[#allocation4 + $0x15d8] sm:$0xff] }
 0x5c0   :  { %2907 = vmatprep.mubr.bf16.mxu0 %v7429_v57  ;;  %3071 = vmatprep.mubr.bf16.mxu1 %v7429_v57 }
 0x5c2   :  { %2878 = vmatpush1.bf16.msra.mxu0 %v1565_v53  ;;  %3042 = vmatpush1.bf16.msra.mxu1 %v1567_v61  ;;  %v1725_v53 = vld [vmem:[#allocation4 + $0x15c0] sm:$0xff]  ;;  %v1727_v61 = vld [vmem:[#allocation4 + $0x15d0] sm:$0xff] }
 0x5c3   :  { %2879 = vmatprep.subr.bf16.mxu0 %v1582_v22  ;;  %3043 = vmatprep.subr.bf16.mxu1 %v1584_v24  ;;  %v1742_v22 = vld [vmem:[#allocation4 + $0x1648] sm:$0xff]  ;;  %v1744_v24 = vld [vmem:[#allocation4 + $0x1658] sm:$0xff] }
 0x5c6   :  { %2880 = vmatpush1.bf16.msra.mxu0 %v1581_v25  ;;  %3044 = vmatpush1.bf16.msra.mxu1 %v1583_v49  ;;  %v1741_v25 = vld [vmem:[#allocation4 + $0x1640] sm:$0xff]  ;;  %v1743_v49 = vld [vmem:[#allocation4 + $0x1650] sm:$0xff] }
 0x5c7   :  { %2881 = vmatprep.subr.bf16.mxu0 %v1598_v26  ;;  %3045 = vmatprep.subr.bf16.mxu1 %v1600_v43  ;;  %v1758_v26 = vld [vmem:[#allocation4 + $0x16c8] sm:$0xff]  ;;  %v1760_v43 = vld [vmem:[#allocation4 + $0x16d8] sm:$0xff] }
 0x5ca   :  { %2882 = vmatpush1.bf16.msra.mxu0 %v1597_v51  ;;  %3046 = vmatpush1.bf16.msra.mxu1 %v1599_v27  ;;  %v1757_v51 = vld [vmem:[#allocation4 + $0x16c0] sm:$0xff]  ;;  %v1759_v27 = vld [vmem:[#allocation4 + $0x16d0] sm:$0xff] }
 0x5cb   :  { %2883 = vmatprep.subr.bf16.mxu0 %v1614_v28  ;;  %3047 = vmatprep.subr.bf16.mxu1 %v1616_v11  ;;  %v1774_v28 = vld [vmem:[#allocation4 + $0x1748] sm:$0xff]  ;;  %v1776_v11 = vld [vmem:[#allocation4 + $0x1758] sm:$0xff] }
 0x5ce   :  { %2884 = vmatpush1.bf16.msra.mxu0 %v1613_v56  ;;  %3048 = vmatpush1.bf16.msra.mxu1 %v1615_v29  ;;  %v1773_v56 = vld [vmem:[#allocation4 + $0x1740] sm:$0xff]  ;;  %v1775_v29 = vld [vmem:[#allocation4 + $0x1750] sm:$0xff] }
 0x5cf   :  { %2885 = vmatprep.subr.bf16.mxu0 %v1630_v30  ;;  %3049 = vmatprep.subr.bf16.mxu1 %v1632_v31  ;;  %v1790_v30 = vld [vmem:[#allocation4 + $0x17c8] sm:$0xff]  ;;  %v1792_v31 = vld [vmem:[#allocation4 + $0x17d8] sm:$0xff] }
 0x5d2   :  { %2886 = vmatpush1.bf16.msra.mxu0 %v1629_v32  ;;  %3050 = vmatpush1.bf16.msra.mxu1 %v1631_v33  ;;  %v1789_v32 = vld [vmem:[#allocation4 + $0x17c0] sm:$0xff]  ;;  %v1791_v33 = vld [vmem:[#allocation4 + $0x17d0] sm:$0xff] }
 0x5d3   :  { %2887 = vmatprep.subr.bf16.mxu0 %v1646_v34  ;;  %3051 = vmatprep.subr.bf16.mxu1 %v1648_v35  ;;  %v1806_v34 = vld [vmem:[#allocation4 + $0x1848] sm:$0xff]  ;;  %v1808_v35 = vld [vmem:[#allocation4 + $0x1858] sm:$0xff] }
 0x5d6   :  { %2888 = vmatpush1.bf16.msra.mxu0 %v1645_v62  ;;  %3052 = vmatpush1.bf16.msra.mxu1 %v1647_v39  ;;  %v1805_v62 = vld [vmem:[#allocation4 + $0x1840] sm:$0xff]  ;;  %v1807_v39 = vld [vmem:[#allocation4 + $0x1850] sm:$0xff] }
 0x5d7   :  { %2889 = vmatprep.subr.bf16.mxu0 %v1662_v46  ;;  %3053 = vmatprep.subr.bf16.mxu1 %v1664_v21  ;;  %v1822_v46 = vld [vmem:[#allocation4 + $0x18c8] sm:$0xff]  ;;  %v1824_v21 = vld [vmem:[#allocation4 + $0x18d8] sm:$0xff] }
 0x5da   :  { %2890 = vmatpush1.bf16.msra.mxu0 %v1661_v54  ;;  %3054 = vmatpush1.bf16.msra.mxu1 %v1663_v55  ;;  %v1821_v54 = vld [vmem:[#allocation4 + $0x18c0] sm:$0xff]  ;;  %v1823_v55 = vld [vmem:[#allocation4 + $0x18d0] sm:$0xff] }
 0x5db   :  { %2891 = vmatprep.subr.bf16.mxu0 %v1678_v1  ;;  %3055 = vmatprep.subr.bf16.mxu1 %v1680_v13  ;;  %v1838_v1 = vld [vmem:[#allocation4 + $0x1948] sm:$0xff]  ;;  %v1840_v13 = vld [vmem:[#allocation4 + $0x1958] sm:$0xff] }
 0x5de   :  { %2892 = vmatpush1.bf16.msra.mxu0 %v1677_v50  ;;  %3056 = vmatpush1.bf16.msra.mxu1 %v1679_v3  ;;  %v1837_v50 = vld [vmem:[#allocation4 + $0x1940] sm:$0xff]  ;;  %v1839_v3 = vld [vmem:[#allocation4 + $0x1950] sm:$0xff] }
 0x5df   :  { %2893 = vmatprep.subr.bf16.mxu0 %v1694_v58  ;;  %3057 = vmatprep.subr.bf16.mxu1 %v1696_v6  ;;  %v1854_v58 = vld [vmem:[#allocation4 + $0x19c8] sm:$0xff]  ;;  %v1856_v6 = vld [vmem:[#allocation4 + $0x19d8] sm:$0xff] }
 0x5e2   :  { %2894 = vmatpush1.bf16.msra.mxu0 %v1693_v9  ;;  %3058 = vmatpush1.bf16.msra.mxu1 %v1695_v10  ;;  %v1853_v9 = vld [vmem:[#allocation4 + $0x19c0] sm:$0xff]  ;;  %v1855_v10 = vld [vmem:[#allocation4 + $0x19d0] sm:$0xff] }
 0x5e3   :  { %2895 = vmatprep.subr.bf16.mxu0 %v1710_v12  ;;  %3059 = vmatprep.subr.bf16.mxu1 %v1712_v8  ;;  %v1870_v12 = vld [vmem:[#allocation4 + $0x1a48] sm:$0xff]  ;;  %v1872_v8 = vld [vmem:[#allocation4 + $0x1a58] sm:$0xff] }
 0x5e6   :  { %2896 = vmatpush1.bf16.msra.mxu0 %v1709_v14  ;;  %3060 = vmatpush1.bf16.msra.mxu1 %v1711_v16  ;;  %v1869_v14 = vld [vmem:[#allocation4 + $0x1a40] sm:$0xff]  ;;  %v1871_v16 = vld [vmem:[#allocation4 + $0x1a50] sm:$0xff] }
 0x5e7   :  { %2897 = vmatprep.subr.bf16.mxu0 %v1726_v17  ;;  %3061 = vmatprep.subr.bf16.mxu1 %v1728_v48  ;;  %v1886_v17 = vld [vmem:[#allocation4 + $0x1ac8] sm:$0xff]  ;;  %v1888_v48 = vld [vmem:[#allocation4 + $0x1ad8] sm:$0xff] }
 0x5ea   :  { %2898 = vmatpush1.bf16.msra.mxu0 %v1725_v53  ;;  %3062 = vmatpush1.bf16.msra.mxu1 %v1727_v61  ;;  %v7040_v53 = vld [vmem:[#allocation11 + $0xc] sm:$0xff] }
 0x5eb   :  { %2899 = vmatprep.subr.bf16.mxu0 %v1742_v22  ;;  %3063 = vmatprep.subr.bf16.mxu1 %v1744_v24  ;;  %v2076_v61 = vrot.slane %v7040_v53, %v7376_v59  ;;  %v2084_v22 = vrot.slane %v7040_v53, %v7379_v60  ;;  %v2080_v24 = vrot.slane %v7040_v53, %v7382_v63 }
 0x5ee   :  { %2900 = vmatpush1.bf16.msra.mxu0 %v1741_v25  ;;  %3064 = vmatpush1.bf16.msra.mxu1 %v1743_v49  ;;  %v2088_v25 = vrot.slane %v7040_v53, %v7385_v0  ;;  %v1885_v49 = vld [vmem:[#allocation4 + $0x1ac0] sm:$0xff]  ;;  %v1968_v53 = vld [vmem:[#allocation4 + $0x1d58] sm:$0xff] }
 0x5ef   :  { %2901 = vmatprep.subr.bf16.mxu0 %v1758_v26  ;;  %3065 = vmatprep.subr.bf16.mxu1 %v1760_v43  ;;  %v1887_v26 = vld [vmem:[#allocation4 + $0x1ad0] sm:$0xff] }
 0x5f2   :  { %2902 = vmatpush1.bf16.msra.mxu0 %v1757_v51  ;;  %3066 = vmatpush1.bf16.msra.mxu1 %v1759_v27  ;;  %v1902_v27 = vld [vmem:[#allocation4 + $0x1b48] sm:$0xff] }
 0x5f3   :  { %2903 = vmatprep.subr.bf16.mxu0 %v1774_v28  ;;  %3067 = vmatprep.subr.bf16.mxu1 %v1776_v11  ;;  %v1904_v28 = vld [vmem:[#allocation4 + $0x1b58] sm:$0xff] }
 0x5f6   :  { %2904 = vmatpush1.bf16.msra.mxu0 %v1773_v56  ;;  %3068 = vmatpush1.bf16.msra.mxu1 %v1775_v29 }
 0x5f7   :  { %2905 = vmatprep.subr.bf16.mxu0 %v1790_v30  ;;  %3069 = vmatprep.subr.bf16.mxu1 %v1792_v31 }
 0x5fa   :  { %2906 = vmatpush1.bf16.msra.mxu0 %v1789_v32  ;;  %3070 = vmatpush1.bf16.msra.mxu1 %v1791_v33 }
 0x5fb   :  { %2916 = vmatprep.subr.bf16.mxu0 %v1806_v34  ;;  %3080 = vmatprep.subr.bf16.mxu1 %v1808_v35 }
 0x5fd   :  { %2908 = vmatmul.mubr.bf16.vlgmr.msra.gmra.mrb[20].mxu0 %v7438_v42  ;;  %3072 = vmatmul.mubr.bf16.vlgmr.msra.gmra.mrb[20].mxu1 %v7438_v42 }
 0x5fe   :  { %2917 = vmatpush1.bf16.msra.mxu0 %v1805_v62  ;;  %3081 = vmatpush1.bf16.msra.mxu1 %v1807_v39 }
 0x5ff   :  { %2918 = vmatprep.subr.bf16.mxu0 %v1822_v46  ;;  %3082 = vmatprep.subr.bf16.mxu1 %v1824_v21  ;;  %v1901_v21 = vld [vmem:[#allocation4 + $0x1b40] sm:$0xff] }
 0x600   :  { %2948 = vmatprep.mubr.bf16.mxu0 %v7443_v52  ;;  %3112 = vmatprep.mubr.bf16.mxu1 %v7443_v52 }
 0x602   :  { %2919 = vmatpush1.bf16.msra.mxu0 %v1821_v54  ;;  %3083 = vmatpush1.bf16.msra.mxu1 %v1823_v55  ;;  %v1903_v54 = vld [vmem:[#allocation4 + $0x1b50] sm:$0xff] }
 0x603   :  { %2920 = vmatprep.subr.bf16.mxu0 %v1838_v1  ;;  %3084 = vmatprep.subr.bf16.mxu1 %v1840_v13  ;;  %v1918_v13 = vld [vmem:[#allocation4 + $0x1bc8] sm:$0xff] }
 0x606   :  { %2921 = vmatpush1.bf16.msra.mxu0 %v1837_v50  ;;  %3085 = vmatpush1.bf16.msra.mxu1 %v1839_v3  ;;  %v1920_v50 = vld [vmem:[#allocation4 + $0x1bd8] sm:$0xff]  ;;  %v1917_v3 = vld [vmem:[#allocation4 + $0x1bc0] sm:$0xff] }
 0x607   :  { %2922 = vmatprep.subr.bf16.mxu0 %v1854_v58  ;;  %3086 = vmatprep.subr.bf16.mxu1 %v1856_v6  ;;  %v1919_v58 = vld [vmem:[#allocation4 + $0x1bd0] sm:$0xff]  ;;  %v1934_v6 = vld [vmem:[#allocation4 + $0x1c48] sm:$0xff] }
 0x60a   :  { %2923 = vmatpush1.bf16.msra.mxu0 %v1853_v9  ;;  %3087 = vmatpush1.bf16.msra.mxu1 %v1855_v10  ;;  %v1936_v9 = vld [vmem:[#allocation4 + $0x1c58] sm:$0xff]  ;;  %v1933_v10 = vld [vmem:[#allocation4 + $0x1c40] sm:$0xff] }
 0x60b   :  { %2924 = vmatprep.subr.bf16.mxu0 %v1870_v12  ;;  %3088 = vmatprep.subr.bf16.mxu1 %v1872_v8  ;;  %v1935_v12 = vld [vmem:[#allocation4 + $0x1c50] sm:$0xff]  ;;  %v1950_v8 = vld [vmem:[#allocation4 + $0x1cc8] sm:$0xff] }
 0x60e   :  { %2925 = vmatpush1.bf16.msra.mxu0 %v1869_v14  ;;  %3089 = vmatpush1.bf16.msra.mxu1 %v1871_v16  ;;  %v1952_v14 = vld [vmem:[#allocation4 + $0x1cd8] sm:$0xff]  ;;  %v1949_v16 = vld [vmem:[#allocation4 + $0x1cc0] sm:$0xff] }
 0x60f   :  { %2926 = vmatprep.subr.bf16.mxu0 %v1886_v17  ;;  %3090 = vmatprep.subr.bf16.mxu1 %v1888_v48  ;;  %v1951_v17 = vld [vmem:[#allocation4 + $0x1cd0] sm:$0xff]  ;;  %v1966_v48 = vld [vmem:[#allocation4 + $0x1d48] sm:$0xff] }
 0x610   :  { %v2622_v43 = vpop.f32.mrb[16].mxu0  ;;  %v2786_v51 = vpop.f32.mrb[16].mxu1 }
 0x611   :  { %v7506_v11 = vadd.f32 %v2622_v43, %v2076_v61  ;;  %v7508_v56 = vadd.f32 %v2786_v51, %v2084_v22  ;;  %v2624_v29 = vpop.f32.mrb[17].mxu0  ;;  %v2788_v30 = vpop.f32.mrb[17].mxu1  ;;  %v1965_v61 = vld [vmem:[#allocation4 + $0x1d40] sm:$0xff]  ;;  %v1967_v22 = vld [vmem:[#allocation4 + $0x1d50] sm:$0xff]  ;;  %v1998_v43 = vld [vmem:[#allocation4 + $0x1e48] sm:$0xff] }
 0x612   :  { %v7510_v31 = vadd.f32 %v2624_v29, %v2080_v24  ;;  %v7512_v32 = vadd.f32 %v2788_v30, %v2088_v25  ;;  %v2626_v33 = vpop.f32.mrb[18].mxu0  ;;  %v2790_v34 = vpop.f32.mrb[18].mxu1  ;;  %2927 = vmatpush1.bf16.msra.mxu0 %v1885_v49  ;;  %3091 = vmatpush1.bf16.msra.mxu1 %v1887_v26  ;;  %v1982_v24 = vld [vmem:[#allocation4 + $0x1dc8] sm:$0xff]  ;;  %v1984_v25 = vld [vmem:[#allocation4 + $0x1dd8] sm:$0xff]  ;;  %v1981_v49 = vld [vmem:[#allocation4 + $0x1dc0] sm:$0xff] }
 0x613   :  { %v3453_v35 = vmax.f32 %v7506_v11, 0.0  ;;  %v3455_v62 = vmax.f32 %v7508_v56, 0.0  ;;  %v2627_v39 = vpop.f32.mrb[19].mxu0  ;;  %v2791_v46 = vpop.f32.mrb[19].mxu1  ;;  %2928 = vmatprep.subr.bf16.mxu0 %v1902_v27  ;;  %3092 = vmatprep.subr.bf16.mxu1 %v1904_v28  ;;  %v1983_v26 = vld [vmem:[#allocation4 + $0x1dd0] sm:$0xff]  ;;  %v2000_v51 = vld [vmem:[#allocation4 + $0x1e58] sm:$0xff] }
 0x614   :  { %v3454_v55 = vmax.f32 %v7510_v31, 0.0  ;;  %v3456_v1 = vmax.f32 %v7512_v32, 0.0  ;;  %v1997_v27 = vld [vmem:[#allocation4 + $0x1e40] sm:$0xff]  ;;  %v1999_v28 = vld [vmem:[#allocation4 + $0x1e50] sm:$0xff]  ;;  %v2014_v29 = vld [vmem:[#allocation4 + $0x1ec8] sm:$0xff] }
 0x615   :  { %v2016_v30 = vld [vmem:[#allocation4 + $0x1ed8] sm:$0xff]  ;;  %v2013_v33 = vld [vmem:[#allocation4 + $0x1ec0] sm:$0xff]  ;;  %v2015_v34 = vld [vmem:[#allocation4 + $0x1ed0] sm:$0xff] }
 0x616   :  { %2929 = vmatpush1.bf16.msra.mxu0 %v1901_v21  ;;  %3093 = vmatpush1.bf16.msra.mxu1 %v1903_v54  ;;  %v2030_v39 = vld [vmem:[#allocation4 + $0x1f48] sm:$0xff]  ;;  %v2032_v46 = vld [vmem:[#allocation4 + $0x1f58] sm:$0xff]  ;;  %v2029_v21 = vld [vmem:[#allocation4 + $0x1f40] sm:$0xff] }
 0x617   :  { %2930 = vmatprep.subr.bf16.mxu0 %v1918_v13  ;;  %3094 = vmatprep.subr.bf16.mxu1 %v1920_v50  ;;  %v2031_v54 = vld [vmem:[#allocation4 + $0x1f50] sm:$0xff]  ;;  %v2046_v13 = vld [vmem:[#allocation4 + $0x1fc8] sm:$0xff]  ;;  %v2048_v50 = vld [vmem:[#allocation4 + $0x1fd8] sm:$0xff] }
 0x61a   :  { %2931 = vmatpush1.bf16.msra.mxu0 %v1917_v3  ;;  %3095 = vmatpush1.bf16.msra.mxu1 %v1919_v58  ;;  %v2045_v3 = vld [vmem:[#allocation4 + $0x1fc0] sm:$0xff]  ;;  %v2047_v58 = vld [vmem:[#allocation4 + $0x1fd0] sm:$0xff] }
 0x61b   :  { %2932 = vmatprep.subr.bf16.mxu0 %v1934_v6  ;;  %3096 = vmatprep.subr.bf16.mxu1 %v1936_v9  ;;  %v1042_v6 = vld [vmem:[#allocation4 + $0x68] sm:$0xff]  ;;  %v1044_v9 = vld [vmem:[#allocation4 + $0x78] sm:$0xff] }
 0x61e   :  { %2933 = vmatpush1.bf16.msra.mxu0 %v1933_v10  ;;  %3097 = vmatpush1.bf16.msra.mxu1 %v1935_v12  ;;  %v1041_v10 = vld [vmem:[#allocation4 + $0x60] sm:$0xff]  ;;  %v1043_v12 = vld [vmem:[#allocation4 + $0x70] sm:$0xff] }
 0x61f   :  { %2934 = vmatprep.subr.bf16.mxu0 %v1950_v8  ;;  %3098 = vmatprep.subr.bf16.mxu1 %v1952_v14  ;;  %v1058_v8 = vld [vmem:[#allocation4 + $0xe8] sm:$0xff]  ;;  %v1060_v14 = vld [vmem:[#allocation4 + $0xf8] sm:$0xff] }
 0x622   :  { %2935 = vmatpush1.bf16.msra.mxu0 %v1949_v16  ;;  %3099 = vmatpush1.bf16.msra.mxu1 %v1951_v17  ;;  %v1057_v16 = vld [vmem:[#allocation4 + $0xe0] sm:$0xff]  ;;  %v1059_v17 = vld [vmem:[#allocation4 + $0xf0] sm:$0xff] }
 0x623   :  { %2936 = vmatprep.subr.bf16.mxu0 %v1966_v48  ;;  %3100 = vmatprep.subr.bf16.mxu1 %v1968_v53  ;;  %v1074_v48 = vld [vmem:[#allocation4 + $0x168] sm:$0xff]  ;;  %v1076_v53 = vld [vmem:[#allocation4 + $0x178] sm:$0xff] }
 0x626   :  { %2937 = vmatpush1.bf16.msra.mxu0 %v1965_v61  ;;  %3101 = vmatpush1.bf16.msra.mxu1 %v1967_v22  ;;  %v1073_v61 = vld [vmem:[#allocation4 + $0x160] sm:$0xff]  ;;  %v1075_v22 = vld [vmem:[#allocation4 + $0x170] sm:$0xff] }
 0x627   :  { %2938 = vmatprep.subr.bf16.mxu0 %v1982_v24  ;;  %3102 = vmatprep.subr.bf16.mxu1 %v1984_v25  ;;  %v1090_v24 = vld [vmem:[#allocation4 + $0x1e8] sm:$0xff]  ;;  %v1092_v25 = vld [vmem:[#allocation4 + $0x1f8] sm:$0xff] }
 0x62a   :  { %2939 = vmatpush1.bf16.msra.mxu0 %v1981_v49  ;;  %3103 = vmatpush1.bf16.msra.mxu1 %v1983_v26  ;;  %v1089_v49 = vld [vmem:[#allocation4 + $0x1e0] sm:$0xff]  ;;  %v1091_v26 = vld [vmem:[#allocation4 + $0x1f0] sm:$0xff] }
 0x62b   :  { %2940 = vmatprep.subr.bf16.mxu0 %v1998_v43  ;;  %3104 = vmatprep.subr.bf16.mxu1 %v2000_v51  ;;  %v1106_v43 = vld [vmem:[#allocation4 + $0x268] sm:$0xff]  ;;  %v1108_v51 = vld [vmem:[#allocation4 + $0x278] sm:$0xff] }
 0x62e   :  { %2941 = vmatpush1.bf16.msra.mxu0 %v1997_v27  ;;  %3105 = vmatpush1.bf16.msra.mxu1 %v1999_v28  ;;  %v1107_v27 = vld [vmem:[#allocation4 + $0x270] sm:$0xff]  ;;  %v1122_v28 = vld [vmem:[#allocation4 + $0x2e8] sm:$0xff] }
 0x62f   :  { %2942 = vmatprep.subr.bf16.mxu0 %v2014_v29  ;;  %3106 = vmatprep.subr.bf16.mxu1 %v2016_v30  ;;  %v1124_v29 = vld [vmem:[#allocation4 + $0x2f8] sm:$0xff]  ;;  %v1121_v30 = vld [vmem:[#allocation4 + $0x2e0] sm:$0xff] }
 0x632   :  { %2943 = vmatpush1.bf16.msra.mxu0 %v2013_v33  ;;  %3107 = vmatpush1.bf16.msra.mxu1 %v2015_v34  ;;  %v1123_v33 = vld [vmem:[#allocation4 + $0x2f0] sm:$0xff]  ;;  %v1138_v34 = vld [vmem:[#allocation4 + $0x368] sm:$0xff] }
 0x633   :  { %2944 = vmatprep.subr.bf16.mxu0 %v2030_v39  ;;  %3108 = vmatprep.subr.bf16.mxu1 %v2032_v46  ;;  %v1140_v39 = vld [vmem:[#allocation4 + $0x378] sm:$0xff]  ;;  %v1137_v46 = vld [vmem:[#allocation4 + $0x360] sm:$0xff] }
 0x636   :  { %2945 = vmatpush1.bf16.msra.mxu0 %v2029_v21  ;;  %3109 = vmatpush1.bf16.msra.mxu1 %v2031_v54  ;;  %v1139_v21 = vld [vmem:[#allocation4 + $0x370] sm:$0xff]  ;;  %v1154_v54 = vld [vmem:[#allocation4 + $0x3e8] sm:$0xff] }
 0x637   :  { %2946 = vmatprep.subr.bf16.mxu0 %v2046_v13  ;;  %3110 = vmatprep.subr.bf16.mxu1 %v2048_v50  ;;  %v1156_v13 = vld [vmem:[#allocation4 + $0x3f8] sm:$0xff]  ;;  %v1153_v50 = vld [vmem:[#allocation4 + $0x3e0] sm:$0xff] }
 0x63a   :  { %2947 = vmatpush1.bf16.msra.mxu0 %v2045_v3  ;;  %3111 = vmatpush1.bf16.msra.mxu1 %v2047_v58  ;;  %v1155_v3 = vld [vmem:[#allocation4 + $0x3f0] sm:$0xff]  ;;  %v1170_v58 = vld [vmem:[#allocation4 + $0x468] sm:$0xff] }
 0x63b   :  { %3121 = vmatprep.subr.bf16.mxu0 %v1042_v6  ;;  %3285 = vmatprep.subr.bf16.mxu1 %v1044_v9  ;;  %v1172_v6 = vld [vmem:[#allocation4 + $0x478] sm:$0xff]  ;;  %v1169_v9 = vld [vmem:[#allocation4 + $0x460] sm:$0xff] }
 0x63d   :  { %2949 = vmatmul.mubr.bf16.vlgmr.msra.gmra.mrb[20].mxu0 %v7452_v5  ;;  %3113 = vmatmul.mubr.bf16.vlgmr.msra.gmra.mrb[20].mxu1 %v7452_v5 }
 0x63e   :  { %3122 = vmatpush1.bf16.msra.mxu0 %v1041_v10  ;;  %3286 = vmatpush1.bf16.msra.mxu1 %v1043_v12  ;;  %v1171_v10 = vld [vmem:[#allocation4 + $0x470] sm:$0xff]  ;;  %v1186_v12 = vld [vmem:[#allocation4 + $0x4e8] sm:$0xff] }
 0x63f   :  { %3123 = vmatprep.subr.bf16.mxu0 %v1058_v8  ;;  %3287 = vmatprep.subr.bf16.mxu1 %v1060_v14  ;;  %v1188_v8 = vld [vmem:[#allocation4 + $0x4f8] sm:$0xff]  ;;  %v1185_v14 = vld [vmem:[#allocation4 + $0x4e0] sm:$0xff] }
 0x640   :  { %3153 = vmatprep.mubr.bf16.mxu0 %v7403_v20  ;;  %3317 = vmatprep.mubr.bf16.mxu1 %v7403_v20  ;;  %v1105_v20 = vld [vmem:[#allocation4 + $0x260] sm:$0xff] }
 0x642   :  { %3124 = vmatpush1.bf16.msra.mxu0 %v1057_v16  ;;  %3288 = vmatpush1.bf16.msra.mxu1 %v1059_v17  ;;  %v1187_v16 = vld [vmem:[#allocation4 + $0x4f0] sm:$0xff]  ;;  %v1202_v17 = vld [vmem:[#allocation4 + $0x568] sm:$0xff] }
 0x643   :  { %3125 = vmatprep.subr.bf16.mxu0 %v1074_v48  ;;  %3289 = vmatprep.subr.bf16.mxu1 %v1076_v53  ;;  %v1204_v48 = vld [vmem:[#allocation4 + $0x578] sm:$0xff]  ;;  %v1201_v53 = vld [vmem:[#allocation4 + $0x560] sm:$0xff] }
 0x646   :  { %3126 = vmatpush1.bf16.msra.mxu0 %v1073_v61  ;;  %3290 = vmatpush1.bf16.msra.mxu1 %v1075_v22  ;;  %v1203_v61 = vld [vmem:[#allocation4 + $0x570] sm:$0xff]  ;;  %v1218_v22 = vld [vmem:[#allocation4 + $0x5e8] sm:$0xff] }
 0x647   :  { %3127 = vmatprep.subr.bf16.mxu0 %v1090_v24  ;;  %3291 = vmatprep.subr.bf16.mxu1 %v1092_v25  ;;  %v1220_v24 = vld [vmem:[#allocation4 + $0x5f8] sm:$0xff]  ;;  %v1217_v25 = vld [vmem:[#allocation4 + $0x5e0] sm:$0xff] }
 0x64a   :  { %3128 = vmatpush1.bf16.msra.mxu0 %v1089_v49  ;;  %3292 = vmatpush1.bf16.msra.mxu1 %v1091_v26  ;;  %v1219_v49 = vld [vmem:[#allocation4 + $0x5f0] sm:$0xff]  ;;  %v1234_v26 = vld [vmem:[#allocation4 + $0x668] sm:$0xff] }
 0x64b   :  { %3129 = vmatprep.subr.bf16.mxu0 %v1106_v43  ;;  %3293 = vmatprep.subr.bf16.mxu1 %v1108_v51  ;;  %v1236_v43 = vld [vmem:[#allocation4 + $0x678] sm:$0xff]  ;;  %v1233_v51 = vld [vmem:[#allocation4 + $0x660] sm:$0xff] }
 0x64e   :  { %3130 = vmatpush1.bf16.msra.mxu0 %v1105_v20  ;;  %3294 = vmatpush1.bf16.msra.mxu1 %v1107_v27  ;;  %v1235_v20 = vld [vmem:[#allocation4 + $0x670] sm:$0xff]  ;;  %v1250_v27 = vld [vmem:[#allocation4 + $0x6e8] sm:$0xff] }
 0x64f   :  { %3131 = vmatprep.subr.bf16.mxu0 %v1122_v28  ;;  %3295 = vmatprep.subr.bf16.mxu1 %v1124_v29  ;;  %v1252_v28 = vld [vmem:[#allocation4 + $0x6f8] sm:$0xff]  ;;  %v1249_v29 = vld [vmem:[#allocation4 + $0x6e0] sm:$0xff] }
 0x652   :  { %3132 = vmatpush1.bf16.msra.mxu0 %v1121_v30  ;;  %3296 = vmatpush1.bf16.msra.mxu1 %v1123_v33  ;;  %v1251_v30 = vld [vmem:[#allocation4 + $0x6f0] sm:$0xff]  ;;  %v1266_v33 = vld [vmem:[#allocation4 + $0x768] sm:$0xff] }
 0x653   :  { %3133 = vmatprep.subr.bf16.mxu0 %v1138_v34  ;;  %3297 = vmatprep.subr.bf16.mxu1 %v1140_v39  ;;  %v1268_v34 = vld [vmem:[#allocation4 + $0x778] sm:$0xff]  ;;  %v1265_v39 = vld [vmem:[#allocation4 + $0x760] sm:$0xff] }
 0x656   :  { %3134 = vmatpush1.bf16.msra.mxu0 %v1137_v46  ;;  %3298 = vmatpush1.bf16.msra.mxu1 %v1139_v21  ;;  %v1267_v46 = vld [vmem:[#allocation4 + $0x770] sm:$0xff]  ;;  %v1282_v21 = vld [vmem:[#allocation4 + $0x7e8] sm:$0xff] }
 0x657   :  { %3135 = vmatprep.subr.bf16.mxu0 %v1154_v54  ;;  %3299 = vmatprep.subr.bf16.mxu1 %v1156_v13  ;;  %v1284_v54 = vld [vmem:[#allocation4 + $0x7f8] sm:$0xff]  ;;  %v1281_v13 = vld [vmem:[#allocation4 + $0x7e0] sm:$0xff] }
 0x65a   :  { %3136 = vmatpush1.bf16.msra.mxu0 %v1153_v50  ;;  %3300 = vmatpush1.bf16.msra.mxu1 %v1155_v3  ;;  %v1283_v50 = vld [vmem:[#allocation4 + $0x7f0] sm:$0xff]  ;;  %v1298_v3 = vld [vmem:[#allocation4 + $0x868] sm:$0xff] }
 0x65b   :  { %3137 = vmatprep.subr.bf16.mxu0 %v1170_v58  ;;  %3301 = vmatprep.subr.bf16.mxu1 %v1172_v6  ;;  %v1300_v58 = vld [vmem:[#allocation4 + $0x878] sm:$0xff]  ;;  %v1297_v6 = vld [vmem:[#allocation4 + $0x860] sm:$0xff] }
 0x65e   :  { %3138 = vmatpush1.bf16.msra.mxu0 %v1169_v9  ;;  %3302 = vmatpush1.bf16.msra.mxu1 %v1171_v10  ;;  %v1299_v9 = vld [vmem:[#allocation4 + $0x870] sm:$0xff]  ;;  %v1314_v10 = vld [vmem:[#allocation4 + $0x8e8] sm:$0xff] }
 0x65f   :  { %3139 = vmatprep.subr.bf16.mxu0 %v1186_v12  ;;  %3303 = vmatprep.subr.bf16.mxu1 %v1188_v8  ;;  %v1316_v12 = vld [vmem:[#allocation4 + $0x8f8] sm:$0xff]  ;;  %v1313_v8 = vld [vmem:[#allocation4 + $0x8e0] sm:$0xff] }
 0x662   :  { %3140 = vmatpush1.bf16.msra.mxu0 %v1185_v14  ;;  %3304 = vmatpush1.bf16.msra.mxu1 %v1187_v16  ;;  %v1315_v14 = vld [vmem:[#allocation4 + $0x8f0] sm:$0xff]  ;;  %v1330_v16 = vld [vmem:[#allocation4 + $0x968] sm:$0xff] }
 0x663   :  { %3141 = vmatprep.subr.bf16.mxu0 %v1202_v17  ;;  %3305 = vmatprep.subr.bf16.mxu1 %v1204_v48  ;;  %v1332_v17 = vld [vmem:[#allocation4 + $0x978] sm:$0xff]  ;;  %v1329_v48 = vld [vmem:[#allocation4 + $0x960] sm:$0xff] }
 0x666   :  { %3142 = vmatpush1.bf16.msra.mxu0 %v1201_v53  ;;  %3306 = vmatpush1.bf16.msra.mxu1 %v1203_v61  ;;  %v1331_v53 = vld [vmem:[#allocation4 + $0x970] sm:$0xff]  ;;  %v1346_v61 = vld [vmem:[#allocation4 + $0x9e8] sm:$0xff] }
 0x667   :  { %3143 = vmatprep.subr.bf16.mxu0 %v1218_v22  ;;  %3307 = vmatprep.subr.bf16.mxu1 %v1220_v24  ;;  %v1345_v22 = vld [vmem:[#allocation4 + $0x9e0] sm:$0xff]  ;;  %v1347_v24 = vld [vmem:[#allocation4 + $0x9f0] sm:$0xff] }
 0x66a   :  { %3144 = vmatpush1.bf16.msra.mxu0 %v1217_v25  ;;  %3308 = vmatpush1.bf16.msra.mxu1 %v1219_v49  ;;  %v1362_v25 = vld [vmem:[#allocation4 + $0xa68] sm:$0xff]  ;;  %v1364_v49 = vld [vmem:[#allocation4 + $0xa78] sm:$0xff] }
 0x66b   :  { %3145 = vmatprep.subr.bf16.mxu0 %v1234_v26  ;;  %3309 = vmatprep.subr.bf16.mxu1 %v1236_v43  ;;  %v1363_v26 = vld [vmem:[#allocation4 + $0xa70] sm:$0xff]  ;;  %v1378_v43 = vld [vmem:[#allocation4 + $0xae8] sm:$0xff] }
 0x66e   :  { %3146 = vmatpush1.bf16.msra.mxu0 %v1233_v51  ;;  %3310 = vmatpush1.bf16.msra.mxu1 %v1235_v20  ;;  %v1380_v51 = vld [vmem:[#allocation4 + $0xaf8] sm:$0xff]  ;;  %v1377_v20 = vld [vmem:[#allocation4 + $0xae0] sm:$0xff] }
 0x66f   :  { %3147 = vmatprep.subr.bf16.mxu0 %v1250_v27  ;;  %3311 = vmatprep.subr.bf16.mxu1 %v1252_v28  ;;  %v1379_v27 = vld [vmem:[#allocation4 + $0xaf0] sm:$0xff]  ;;  %v1394_v28 = vld [vmem:[#allocation4 + $0xb68] sm:$0xff] }
 0x672   :  { %3148 = vmatpush1.bf16.msra.mxu0 %v1249_v29  ;;  %3312 = vmatpush1.bf16.msra.mxu1 %v1251_v30  ;;  %v1396_v29 = vld [vmem:[#allocation4 + $0xb78] sm:$0xff]  ;;  %v1393_v30 = vld [vmem:[#allocation4 + $0xb60] sm:$0xff] }
 0x673   :  { %3149 = vmatprep.subr.bf16.mxu0 %v1266_v33  ;;  %3313 = vmatprep.subr.bf16.mxu1 %v1268_v34  ;;  %v1395_v33 = vld [vmem:[#allocation4 + $0xb70] sm:$0xff]  ;;  %v1410_v34 = vld [vmem:[#allocation4 + $0xbe8] sm:$0xff] }
 0x676   :  { %3150 = vmatpush1.bf16.msra.mxu0 %v1265_v39  ;;  %3314 = vmatpush1.bf16.msra.mxu1 %v1267_v46  ;;  %v1412_v39 = vld [vmem:[#allocation4 + $0xbf8] sm:$0xff]  ;;  %v1409_v46 = vld [vmem:[#allocation4 + $0xbe0] sm:$0xff] }
 0x677   :  { %3151 = vmatprep.subr.bf16.mxu0 %v1282_v21  ;;  %3315 = vmatprep.subr.bf16.mxu1 %v1284_v54  ;;  %v1411_v21 = vld [vmem:[#allocation4 + $0xbf0] sm:$0xff]  ;;  %v1426_v54 = vld [vmem:[#allocation4 + $0xc68] sm:$0xff] }
 0x67a   :  { %3152 = vmatpush1.bf16.msra.mxu0 %v1281_v13  ;;  %3316 = vmatpush1.bf16.msra.mxu1 %v1283_v50  ;;  %v1428_v13 = vld [vmem:[#allocation4 + $0xc78] sm:$0xff]  ;;  %v1425_v50 = vld [vmem:[#allocation4 + $0xc60] sm:$0xff] }
 0x67b   :  { %3162 = vmatprep.subr.bf16.mxu0 %v1298_v3  ;;  %3326 = vmatprep.subr.bf16.mxu1 %v1300_v58  ;;  %v1427_v3 = vld [vmem:[#allocation4 + $0xc70] sm:$0xff]  ;;  %v1442_v58 = vld [vmem:[#allocation4 + $0xce8] sm:$0xff] }
 0x67d   :  { %3154 = vmatmul.mubr.bf16.vlgmr.msra.gmra.mrb[24].mxu0 %v7410_v47  ;;  %3318 = vmatmul.mubr.bf16.vlgmr.msra.gmra.mrb[24].mxu1 %v7410_v47  ;;  %v1348_v47 = vld [vmem:[#allocation4 + $0x9f8] sm:$0xff] }
 0x67e   :  { %3163 = vmatpush1.bf16.msra.mxu0 %v1297_v6  ;;  %3327 = vmatpush1.bf16.msra.mxu1 %v1299_v9  ;;  %v1444_v6 = vld [vmem:[#allocation4 + $0xcf8] sm:$0xff]  ;;  %v1441_v9 = vld [vmem:[#allocation4 + $0xce0] sm:$0xff] }
 0x67f   :  { %3164 = vmatprep.subr.bf16.mxu0 %v1314_v10  ;;  %3328 = vmatprep.subr.bf16.mxu1 %v1316_v12  ;;  %v1443_v10 = vld [vmem:[#allocation4 + $0xcf0] sm:$0xff]  ;;  %v1458_v12 = vld [vmem:[#allocation4 + $0xd68] sm:$0xff] }
 0x680   :  { %3194 = vmatprep.mubr.bf16.mxu0 %v7415_v2  ;;  %3358 = vmatprep.mubr.bf16.mxu1 %v7415_v2  ;;  %v1361_v2 = vld [vmem:[#allocation4 + $0xa60] sm:$0xff] }
 0x682   :  { %3165 = vmatpush1.bf16.msra.mxu0 %v1313_v8  ;;  %3329 = vmatpush1.bf16.msra.mxu1 %v1315_v14  ;;  %v1460_v8 = vld [vmem:[#allocation4 + $0xd78] sm:$0xff]  ;;  %v1457_v14 = vld [vmem:[#allocation4 + $0xd60] sm:$0xff] }
 0x683   :  { %3166 = vmatprep.subr.bf16.mxu0 %v1330_v16  ;;  %3330 = vmatprep.subr.bf16.mxu1 %v1332_v17  ;;  %v1459_v16 = vld [vmem:[#allocation4 + $0xd70] sm:$0xff]  ;;  %v1474_v17 = vld [vmem:[#allocation4 + $0xde8] sm:$0xff] }
 0x686   :  { %3167 = vmatpush1.bf16.msra.mxu0 %v1329_v48  ;;  %3331 = vmatpush1.bf16.msra.mxu1 %v1331_v53  ;;  %v1476_v48 = vld [vmem:[#allocation4 + $0xdf8] sm:$0xff]  ;;  %v1473_v53 = vld [vmem:[#allocation4 + $0xde0] sm:$0xff] }
 0x687   :  { %3168 = vmatprep.subr.bf16.mxu0 %v1346_v61  ;;  %3332 = vmatprep.subr.bf16.mxu1 %v1348_v47  ;;  %v1475_v61 = vld [vmem:[#allocation4 + $0xdf0] sm:$0xff]  ;;  %v1490_v47 = vld [vmem:[#allocation4 + $0xe68] sm:$0xff] }
 0x68a   :  { %3169 = vmatpush1.bf16.msra.mxu0 %v1345_v22  ;;  %3333 = vmatpush1.bf16.msra.mxu1 %v1347_v24  ;;  %v1492_v22 = vld [vmem:[#allocation4 + $0xe78] sm:$0xff]  ;;  %v1489_v24 = vld [vmem:[#allocation4 + $0xe60] sm:$0xff] }
 0x68b   :  { %3170 = vmatprep.subr.bf16.mxu0 %v1362_v25  ;;  %3334 = vmatprep.subr.bf16.mxu1 %v1364_v49  ;;  %v1491_v25 = vld [vmem:[#allocation4 + $0xe70] sm:$0xff]  ;;  %v1506_v49 = vld [vmem:[#allocation4 + $0xee8] sm:$0xff] }
 0x68e   :  { %3171 = vmatpush1.bf16.msra.mxu0 %v1361_v2  ;;  %3335 = vmatpush1.bf16.msra.mxu1 %v1363_v26  ;;  %v1508_v2 = vld [vmem:[#allocation4 + $0xef8] sm:$0xff]  ;;  %v1505_v26 = vld [vmem:[#allocation4 + $0xee0] sm:$0xff] }
 0x68f   :  { %3172 = vmatprep.subr.bf16.mxu0 %v1378_v43  ;;  %3336 = vmatprep.subr.bf16.mxu1 %v1380_v51  ;;  %v1507_v43 = vld [vmem:[#allocation4 + $0xef0] sm:$0xff]  ;;  %v1522_v51 = vld [vmem:[#allocation4 + $0xf68] sm:$0xff] }
 0x692   :  { %3173 = vmatpush1.bf16.msra.mxu0 %v1377_v20  ;;  %3337 = vmatpush1.bf16.msra.mxu1 %v1379_v27  ;;  %v1524_v20 = vld [vmem:[#allocation4 + $0xf78] sm:$0xff]  ;;  %v1521_v27 = vld [vmem:[#allocation4 + $0xf60] sm:$0xff] }
 0x693   :  { %3174 = vmatprep.subr.bf16.mxu0 %v1394_v28  ;;  %3338 = vmatprep.subr.bf16.mxu1 %v1396_v29  ;;  %v1523_v28 = vld [vmem:[#allocation4 + $0xf70] sm:$0xff]  ;;  %v1538_v29 = vld [vmem:[#allocation4 + $0xfe8] sm:$0xff] }
 0x696   :  { %3175 = vmatpush1.bf16.msra.mxu0 %v1393_v30  ;;  %3339 = vmatpush1.bf16.msra.mxu1 %v1395_v33  ;;  %v1540_v30 = vld [vmem:[#allocation4 + $0xff8] sm:$0xff]  ;;  %v1537_v33 = vld [vmem:[#allocation4 + $0xfe0] sm:$0xff] }
 0x697   :  { %3176 = vmatprep.subr.bf16.mxu0 %v1410_v34  ;;  %3340 = vmatprep.subr.bf16.mxu1 %v1412_v39  ;;  %v1539_v34 = vld [vmem:[#allocation4 + $0xff0] sm:$0xff]  ;;  %v1554_v39 = vld [vmem:[#allocation4 + $0x1068] sm:$0xff] }
 0x69a   :  { %3177 = vmatpush1.bf16.msra.mxu0 %v1409_v46  ;;  %3341 = vmatpush1.bf16.msra.mxu1 %v1411_v21  ;;  %v1556_v46 = vld [vmem:[#allocation4 + $0x1078] sm:$0xff]  ;;  %v1553_v21 = vld [vmem:[#allocation4 + $0x1060] sm:$0xff] }
 0x69b   :  { %3178 = vmatprep.subr.bf16.mxu0 %v1426_v54  ;;  %3342 = vmatprep.subr.bf16.mxu1 %v1428_v13  ;;  %v1555_v54 = vld [vmem:[#allocation4 + $0x1070] sm:$0xff]  ;;  %v1570_v13 = vld [vmem:[#allocation4 + $0x10e8] sm:$0xff] }
 0x69e   :  { %3179 = vmatpush1.bf16.msra.mxu0 %v1425_v50  ;;  %3343 = vmatpush1.bf16.msra.mxu1 %v1427_v3  ;;  %v1572_v50 = vld [vmem:[#allocation4 + $0x10f8] sm:$0xff]  ;;  %v1569_v3 = vld [vmem:[#allocation4 + $0x10e0] sm:$0xff] }
 0x69f   :  { %3180 = vmatprep.subr.bf16.mxu0 %v1442_v58  ;;  %3344 = vmatprep.subr.bf16.mxu1 %v1444_v6  ;;  %v1571_v58 = vld [vmem:[#allocation4 + $0x10f0] sm:$0xff]  ;;  %v1586_v6 = vld [vmem:[#allocation4 + $0x1168] sm:$0xff] }
 0x6a2   :  { %3181 = vmatpush1.bf16.msra.mxu0 %v1441_v9  ;;  %3345 = vmatpush1.bf16.msra.mxu1 %v1443_v10  ;;  %v1588_v9 = vld [vmem:[#allocation4 + $0x1178] sm:$0xff]  ;;  %v1585_v10 = vld [vmem:[#allocation4 + $0x1160] sm:$0xff] }
 0x6a3   :  { %3182 = vmatprep.subr.bf16.mxu0 %v1458_v12  ;;  %3346 = vmatprep.subr.bf16.mxu1 %v1460_v8  ;;  %v1587_v12 = vld [vmem:[#allocation4 + $0x1170] sm:$0xff]  ;;  %v1602_v8 = vld [vmem:[#allocation4 + $0x11e8] sm:$0xff] }
 0x6a6   :  { %3183 = vmatpush1.bf16.msra.mxu0 %v1457_v14  ;;  %3347 = vmatpush1.bf16.msra.mxu1 %v1459_v16  ;;  %v1601_v14 = vld [vmem:[#allocation4 + $0x11e0] sm:$0xff]  ;;  %v1603_v16 = vld [vmem:[#allocation4 + $0x11f0] sm:$0xff] }
 0x6a7   :  { %3184 = vmatprep.subr.bf16.mxu0 %v1474_v17  ;;  %3348 = vmatprep.subr.bf16.mxu1 %v1476_v48  ;;  %v1618_v17 = vld [vmem:[#allocation4 + $0x1268] sm:$0xff]  ;;  %v1620_v48 = vld [vmem:[#allocation4 + $0x1278] sm:$0xff] }
 0x6aa   :  { %3185 = vmatpush1.bf16.msra.mxu0 %v1473_v53  ;;  %3349 = vmatpush1.bf16.msra.mxu1 %v1475_v61  ;;  %v1619_v53 = vld [vmem:[#allocation4 + $0x1270] sm:$0xff]  ;;  %v1634_v61 = vld [vmem:[#allocation4 + $0x12e8] sm:$0xff] }
 0x6ab   :  { %3186 = vmatprep.subr.bf16.mxu0 %v1490_v47  ;;  %3350 = vmatprep.subr.bf16.mxu1 %v1492_v22  ;;  %v1636_v47 = vld [vmem:[#allocation4 + $0x12f8] sm:$0xff]  ;;  %v1633_v22 = vld [vmem:[#allocation4 + $0x12e0] sm:$0xff] }
 0x6ae   :  { %3187 = vmatpush1.bf16.msra.mxu0 %v1489_v24  ;;  %3351 = vmatpush1.bf16.msra.mxu1 %v1491_v25  ;;  %v1635_v24 = vld [vmem:[#allocation4 + $0x12f0] sm:$0xff]  ;;  %v1650_v25 = vld [vmem:[#allocation4 + $0x1368] sm:$0xff] }
 0x6af   :  { %3188 = vmatprep.subr.bf16.mxu0 %v1506_v49  ;;  %3352 = vmatprep.subr.bf16.mxu1 %v1508_v2  ;;  %v1652_v49 = vld [vmem:[#allocation4 + $0x1378] sm:$0xff]  ;;  %v1649_v2 = vld [vmem:[#allocation4 + $0x1360] sm:$0xff] }
 0x6b2   :  { %3189 = vmatpush1.bf16.msra.mxu0 %v1505_v26  ;;  %3353 = vmatpush1.bf16.msra.mxu1 %v1507_v43  ;;  %v1651_v26 = vld [vmem:[#allocation4 + $0x1370] sm:$0xff]  ;;  %v1666_v43 = vld [vmem:[#allocation4 + $0x13e8] sm:$0xff] }
 0x6b3   :  { %3190 = vmatprep.subr.bf16.mxu0 %v1522_v51  ;;  %3354 = vmatprep.subr.bf16.mxu1 %v1524_v20  ;;  %v1668_v51 = vld [vmem:[#allocation4 + $0x13f8] sm:$0xff]  ;;  %v1665_v20 = vld [vmem:[#allocation4 + $0x13e0] sm:$0xff] }
 0x6b6   :  { %3191 = vmatpush1.bf16.msra.mxu0 %v1521_v27  ;;  %3355 = vmatpush1.bf16.msra.mxu1 %v1523_v28  ;;  %v1667_v27 = vld [vmem:[#allocation4 + $0x13f0] sm:$0xff]  ;;  %v1682_v28 = vld [vmem:[#allocation4 + $0x1468] sm:$0xff] }
 0x6b7   :  { %3192 = vmatprep.subr.bf16.mxu0 %v1538_v29  ;;  %3356 = vmatprep.subr.bf16.mxu1 %v1540_v30  ;;  %v1684_v29 = vld [vmem:[#allocation4 + $0x1478] sm:$0xff]  ;;  %v1681_v30 = vld [vmem:[#allocation4 + $0x1460] sm:$0xff] }
 0x6ba   :  { %3193 = vmatpush1.bf16.msra.mxu0 %v1537_v33  ;;  %3357 = vmatpush1.bf16.msra.mxu1 %v1539_v34  ;;  %v1683_v33 = vld [vmem:[#allocation4 + $0x1470] sm:$0xff]  ;;  %v1698_v34 = vld [vmem:[#allocation4 + $0x14e8] sm:$0xff] }
 0x6bb   :  { %3203 = vmatprep.subr.bf16.mxu0 %v1554_v39  ;;  %3367 = vmatprep.subr.bf16.mxu1 %v1556_v46  ;;  %v1700_v39 = vld [vmem:[#allocation4 + $0x14f8] sm:$0xff]  ;;  %v1697_v46 = vld [vmem:[#allocation4 + $0x14e0] sm:$0xff] }
 0x6bd   :  { %3195 = vmatmul.mubr.bf16.vlgmr.msra.gmra.mrb[24].mxu0 %v7424_v23  ;;  %3359 = vmatmul.mubr.bf16.vlgmr.msra.gmra.mrb[24].mxu1 %v7424_v23  ;;  %v1604_v23 = vld [vmem:[#allocation4 + $0x11f8] sm:$0xff] }
 0x6be   :  { %3204 = vmatpush1.bf16.msra.mxu0 %v1553_v21  ;;  %3368 = vmatpush1.bf16.msra.mxu1 %v1555_v54  ;;  %v1699_v21 = vld [vmem:[#allocation4 + $0x14f0] sm:$0xff]  ;;  %v1714_v54 = vld [vmem:[#allocation4 + $0x1568] sm:$0xff] }
 0x6bf   :  { %3205 = vmatprep.subr.bf16.mxu0 %v1570_v13  ;;  %3369 = vmatprep.subr.bf16.mxu1 %v1572_v50  ;;  %v1716_v13 = vld [vmem:[#allocation4 + $0x1578] sm:$0xff]  ;;  %v1713_v50 = vld [vmem:[#allocation4 + $0x1560] sm:$0xff] }
 0x6c0   :  { %3235 = vmatprep.mubr.bf16.mxu0 %v7429_v57  ;;  %3399 = vmatprep.mubr.bf16.mxu1 %v7429_v57  ;;  %v1617_v57 = vld [vmem:[#allocation4 + $0x1260] sm:$0xff] }
 0x6c2   :  { %3206 = vmatpush1.bf16.msra.mxu0 %v1569_v3  ;;  %3370 = vmatpush1.bf16.msra.mxu1 %v1571_v58  ;;  %v1715_v3 = vld [vmem:[#allocation4 + $0x1570] sm:$0xff]  ;;  %v1730_v58 = vld [vmem:[#allocation4 + $0x15e8] sm:$0xff] }
 0x6c3   :  { %3207 = vmatprep.subr.bf16.mxu0 %v1586_v6  ;;  %3371 = vmatprep.subr.bf16.mxu1 %v1588_v9  ;;  %v1732_v6 = vld [vmem:[#allocation4 + $0x15f8] sm:$0xff]  ;;  %v1729_v9 = vld [vmem:[#allocation4 + $0x15e0] sm:$0xff] }
 0x6c6   :  { %3208 = vmatpush1.bf16.msra.mxu0 %v1585_v10  ;;  %3372 = vmatpush1.bf16.msra.mxu1 %v1587_v12  ;;  %v1731_v10 = vld [vmem:[#allocation4 + $0x15f0] sm:$0xff]  ;;  %v1746_v12 = vld [vmem:[#allocation4 + $0x1668] sm:$0xff] }
 0x6c7   :  { %3209 = vmatprep.subr.bf16.mxu0 %v1602_v8  ;;  %3373 = vmatprep.subr.bf16.mxu1 %v1604_v23  ;;  %v1748_v8 = vld [vmem:[#allocation4 + $0x1678] sm:$0xff]  ;;  %v1745_v23 = vld [vmem:[#allocation4 + $0x1660] sm:$0xff] }
 0x6ca   :  { %3210 = vmatpush1.bf16.msra.mxu0 %v1601_v14  ;;  %3374 = vmatpush1.bf16.msra.mxu1 %v1603_v16  ;;  %v1747_v14 = vld [vmem:[#allocation4 + $0x1670] sm:$0xff]  ;;  %v1762_v16 = vld [vmem:[#allocation4 + $0x16e8] sm:$0xff] }
 0x6cb   :  { %3211 = vmatprep.subr.bf16.mxu0 %v1618_v17  ;;  %3375 = vmatprep.subr.bf16.mxu1 %v1620_v48  ;;  %v1764_v17 = vld [vmem:[#allocation4 + $0x16f8] sm:$0xff]  ;;  %v1761_v48 = vld [vmem:[#allocation4 + $0x16e0] sm:$0xff] }
 0x6ce   :  { %3212 = vmatpush1.bf16.msra.mxu0 %v1617_v57  ;;  %3376 = vmatpush1.bf16.msra.mxu1 %v1619_v53  ;;  %v1763_v57 = vld [vmem:[#allocation4 + $0x16f0] sm:$0xff]  ;;  %v1778_v53 = vld [vmem:[#allocation4 + $0x1768] sm:$0xff] }
 0x6cf   :  { %3213 = vmatprep.subr.bf16.mxu0 %v1634_v61  ;;  %3377 = vmatprep.subr.bf16.mxu1 %v1636_v47  ;;  %v1780_v61 = vld [vmem:[#allocation4 + $0x1778] sm:$0xff]  ;;  %v1777_v47 = vld [vmem:[#allocation4 + $0x1760] sm:$0xff] }
 0x6d2   :  { %3214 = vmatpush1.bf16.msra.mxu0 %v1633_v22  ;;  %3378 = vmatpush1.bf16.msra.mxu1 %v1635_v24  ;;  %v1779_v22 = vld [vmem:[#allocation4 + $0x1770] sm:$0xff]  ;;  %v1794_v24 = vld [vmem:[#allocation4 + $0x17e8] sm:$0xff] }
 0x6d3   :  { %3215 = vmatprep.subr.bf16.mxu0 %v1650_v25  ;;  %3379 = vmatprep.subr.bf16.mxu1 %v1652_v49  ;;  %v1796_v25 = vld [vmem:[#allocation4 + $0x17f8] sm:$0xff]  ;;  %v1793_v49 = vld [vmem:[#allocation4 + $0x17e0] sm:$0xff] }
 0x6d6   :  { %3216 = vmatpush1.bf16.msra.mxu0 %v1649_v2  ;;  %3380 = vmatpush1.bf16.msra.mxu1 %v1651_v26  ;;  %v1795_v2 = vld [vmem:[#allocation4 + $0x17f0] sm:$0xff]  ;;  %v1810_v26 = vld [vmem:[#allocation4 + $0x1868] sm:$0xff] }
 0x6d7   :  { %3217 = vmatprep.subr.bf16.mxu0 %v1666_v43  ;;  %3381 = vmatprep.subr.bf16.mxu1 %v1668_v51  ;;  %v1812_v43 = vld [vmem:[#allocation4 + $0x1878] sm:$0xff]  ;;  %v1809_v51 = vld [vmem:[#allocation4 + $0x1860] sm:$0xff] }
 0x6da   :  { %3218 = vmatpush1.bf16.msra.mxu0 %v1665_v20  ;;  %3382 = vmatpush1.bf16.msra.mxu1 %v1667_v27  ;;  %v1811_v20 = vld [vmem:[#allocation4 + $0x1870] sm:$0xff]  ;;  %v1826_v27 = vld [vmem:[#allocation4 + $0x18e8] sm:$0xff] }
 0x6db   :  { %3219 = vmatprep.subr.bf16.mxu0 %v1682_v28  ;;  %3383 = vmatprep.subr.bf16.mxu1 %v1684_v29  ;;  %v1828_v28 = vld [vmem:[#allocation4 + $0x18f8] sm:$0xff]  ;;  %v1825_v29 = vld [vmem:[#allocation4 + $0x18e0] sm:$0xff] }
 0x6de   :  { %3220 = vmatpush1.bf16.msra.mxu0 %v1681_v30  ;;  %3384 = vmatpush1.bf16.msra.mxu1 %v1683_v33  ;;  %v1827_v30 = vld [vmem:[#allocation4 + $0x18f0] sm:$0xff]  ;;  %v1842_v33 = vld [vmem:[#allocation4 + $0x1968] sm:$0xff] }
 0x6df   :  { %3221 = vmatprep.subr.bf16.mxu0 %v1698_v34  ;;  %3385 = vmatprep.subr.bf16.mxu1 %v1700_v39  ;;  %v1844_v34 = vld [vmem:[#allocation4 + $0x1978] sm:$0xff]  ;;  %v1841_v39 = vld [vmem:[#allocation4 + $0x1960] sm:$0xff] }
 0x6e2   :  { %3222 = vmatpush1.bf16.msra.mxu0 %v1697_v46  ;;  %3386 = vmatpush1.bf16.msra.mxu1 %v1699_v21  ;;  %v1843_v46 = vld [vmem:[#allocation4 + $0x1970] sm:$0xff]  ;;  %v1858_v21 = vld [vmem:[#allocation4 + $0x19e8] sm:$0xff] }
 0x6e3   :  { %3223 = vmatprep.subr.bf16.mxu0 %v1714_v54  ;;  %3387 = vmatprep.subr.bf16.mxu1 %v1716_v13  ;;  %v1857_v54 = vld [vmem:[#allocation4 + $0x19e0] sm:$0xff]  ;;  %v1859_v13 = vld [vmem:[#allocation4 + $0x19f0] sm:$0xff] }
 0x6e6   :  { %3224 = vmatpush1.bf16.msra.mxu0 %v1713_v50  ;;  %3388 = vmatpush1.bf16.msra.mxu1 %v1715_v3  ;;  %v1874_v50 = vld [vmem:[#allocation4 + $0x1a68] sm:$0xff]  ;;  %v1876_v3 = vld [vmem:[#allocation4 + $0x1a78] sm:$0xff] }
 0x6e7   :  { %3225 = vmatprep.subr.bf16.mxu0 %v1730_v58  ;;  %3389 = vmatprep.subr.bf16.mxu1 %v1732_v6  ;;  %v7534_v58 = vld [vmem:[#allocation11 + $0x14] sm:$0xff]  ;;  %v1875_v6 = vld [vmem:[#allocation4 + $0x1a70] sm:$0xff] }
 0x6ea   :  { %3226 = vmatpush1.bf16.msra.mxu0 %v1729_v9  ;;  %3390 = vmatpush1.bf16.msra.mxu1 %v1731_v10  ;;  %v1890_v9 = vld [vmem:[#allocation4 + $0x1ae8] sm:$0xff]  ;;  %v1892_v10 = vld [vmem:[#allocation4 + $0x1af8] sm:$0xff] }
 0x6eb   :  { %3227 = vmatprep.subr.bf16.mxu0 %v1746_v12  ;;  %3391 = vmatprep.subr.bf16.mxu1 %v1748_v8  ;;  %v2092_v12 = vrot.slane %v7534_v58, %v7305_v37  ;;  %v2100_v8 = vrot.slane %v7534_v58, %v7308_v38 }
 0x6ee   :  { %3228 = vmatpush1.bf16.msra.mxu0 %v1745_v23  ;;  %3392 = vmatpush1.bf16.msra.mxu1 %v1747_v14  ;;  %v2096_v23 = vrot.slane %v7534_v58, %v7311_v40  ;;  %v2104_v14 = vrot.slane %v7534_v58, %v7314_v41 }
 0x6ef   :  { %3229 = vmatprep.subr.bf16.mxu0 %v1762_v16  ;;  %3393 = vmatprep.subr.bf16.mxu1 %v1764_v17  ;;  %v1889_v16 = vld [vmem:[#allocation4 + $0x1ae0] sm:$0xff]  ;;  %v1891_v17 = vld [vmem:[#allocation4 + $0x1af0] sm:$0xff] }
 0x6f2   :  { %3230 = vmatpush1.bf16.msra.mxu0 %v1761_v48  ;;  %3394 = vmatpush1.bf16.msra.mxu1 %v1763_v57 }
 0x6f3   :  { %3231 = vmatprep.subr.bf16.mxu0 %v1778_v53  ;;  %3395 = vmatprep.subr.bf16.mxu1 %v1780_v61  ;;  %v1906_v53 = vld [vmem:[#allocation4 + $0x1b68] sm:$0xff]  ;;  %v1908_v61 = vld [vmem:[#allocation4 + $0x1b78] sm:$0xff] }
 0x6f6   :  { %3232 = vmatpush1.bf16.msra.mxu0 %v1777_v47  ;;  %3396 = vmatpush1.bf16.msra.mxu1 %v1779_v22 }
 0x6f7   :  { %3233 = vmatprep.subr.bf16.mxu0 %v1794_v24  ;;  %3397 = vmatprep.subr.bf16.mxu1 %v1796_v25 }
 0x6fa   :  { %3234 = vmatpush1.bf16.msra.mxu0 %v1793_v49  ;;  %3398 = vmatpush1.bf16.msra.mxu1 %v1795_v2 }
 0x6fb   :  { %3244 = vmatprep.subr.bf16.mxu0 %v1810_v26  ;;  %3408 = vmatprep.subr.bf16.mxu1 %v1812_v43 }
 0x6fd   :  { %3236 = vmatmul.mubr.bf16.vlgmr.msra.gmra.mrb[24].mxu0 %v7438_v42  ;;  %3400 = vmatmul.mubr.bf16.vlgmr.msra.gmra.mrb[24].mxu1 %v7438_v42  ;;  %v1860_v42 = vld [vmem:[#allocation4 + $0x19f8] sm:$0xff] }
 0x6fe   :  { %3245 = vmatpush1.bf16.msra.mxu0 %v1809_v51  ;;  %3409 = vmatpush1.bf16.msra.mxu1 %v1811_v20 }
 0x6ff   :  { %3246 = vmatprep.subr.bf16.mxu0 %v1826_v27  ;;  %3410 = vmatprep.subr.bf16.mxu1 %v1828_v28 }
 0x700   :  { %3276 = vmatprep.mubr.bf16.mxu0 %v7443_v52  ;;  %3440 = vmatprep.mubr.bf16.mxu1 %v7443_v52  ;;  %v1873_v52 = vld [vmem:[#allocation4 + $0x1a60] sm:$0xff] }
 0x702   :  { %3247 = vmatpush1.bf16.msra.mxu0 %v1825_v29  ;;  %3411 = vmatpush1.bf16.msra.mxu1 %v1827_v30  ;;  %v1905_v29 = vld [vmem:[#allocation4 + $0x1b60] sm:$0xff]  ;;  %v1907_v30 = vld [vmem:[#allocation4 + $0x1b70] sm:$0xff] }
 0x703   :  { %3248 = vmatprep.subr.bf16.mxu0 %v1842_v33  ;;  %3412 = vmatprep.subr.bf16.mxu1 %v1844_v34 }
 0x706   :  { %3249 = vmatpush1.bf16.msra.mxu0 %v1841_v39  ;;  %3413 = vmatpush1.bf16.msra.mxu1 %v1843_v46  ;;  %v1922_v39 = vld [vmem:[#allocation4 + $0x1be8] sm:$0xff]  ;;  %v1924_v46 = vld [vmem:[#allocation4 + $0x1bf8] sm:$0xff] }
 0x707   :  { %3250 = vmatprep.subr.bf16.mxu0 %v1858_v21  ;;  %3414 = vmatprep.subr.bf16.mxu1 %v1860_v42  ;;  %v1921_v21 = vld [vmem:[#allocation4 + $0x1be0] sm:$0xff]  ;;  %v1923_v42 = vld [vmem:[#allocation4 + $0x1bf0] sm:$0xff] }
 0x70a   :  { %3251 = vmatpush1.bf16.msra.mxu0 %v1857_v54  ;;  %3415 = vmatpush1.bf16.msra.mxu1 %v1859_v13  ;;  %v1938_v54 = vld [vmem:[#allocation4 + $0x1c68] sm:$0xff]  ;;  %v1940_v13 = vld [vmem:[#allocation4 + $0x1c78] sm:$0xff] }
 0x70b   :  { %3252 = vmatprep.subr.bf16.mxu0 %v1874_v50  ;;  %3416 = vmatprep.subr.bf16.mxu1 %v1876_v3  ;;  %v1937_v50 = vld [vmem:[#allocation4 + $0x1c60] sm:$0xff]  ;;  %v1939_v3 = vld [vmem:[#allocation4 + $0x1c70] sm:$0xff] }
 0x70e   :  { %3253 = vmatpush1.bf16.msra.mxu0 %v1873_v52  ;;  %3417 = vmatpush1.bf16.msra.mxu1 %v1875_v6  ;;  %v1954_v52 = vld [vmem:[#allocation4 + $0x1ce8] sm:$0xff]  ;;  %v1956_v6 = vld [vmem:[#allocation4 + $0x1cf8] sm:$0xff] }
 0x70f   :  { %3254 = vmatprep.subr.bf16.mxu0 %v1890_v9  ;;  %3418 = vmatprep.subr.bf16.mxu1 %v1892_v10  ;;  %v1953_v9 = vld [vmem:[#allocation4 + $0x1ce0] sm:$0xff]  ;;  %v1955_v10 = vld [vmem:[#allocation4 + $0x1cf0] sm:$0xff] }
 0x710   :  { %v2950_v48 = vpop.f32.mrb[20].mxu0  ;;  %v3114_v57 = vpop.f32.mrb[20].mxu1 }
 0x711   :  { %v7544_v47 = vadd.f32 %v2950_v48, %v2092_v12  ;;  %v7546_v22 = vadd.f32 %v3114_v57, %v2100_v8  ;;  %v2952_v24 = vpop.f32.mrb[21].mxu0  ;;  %v3116_v25 = vpop.f32.mrb[21].mxu1  ;;  %v1970_v12 = vld [vmem:[#allocation4 + $0x1d68] sm:$0xff]  ;;  %v1972_v8 = vld [vmem:[#allocation4 + $0x1d78] sm:$0xff]  ;;  %v1985_v48 = vld [vmem:[#allocation4 + $0x1de0] sm:$0xff] }
 0x712   :  { %v7548_v49 = vadd.f32 %v2952_v24, %v2096_v23  ;;  %v7550_v2 = vadd.f32 %v3116_v25, %v2104_v14  ;;  %v2954_v26 = vpop.f32.mrb[22].mxu0  ;;  %v3118_v43 = vpop.f32.mrb[22].mxu1  ;;  %3255 = vmatpush1.bf16.msra.mxu0 %v1889_v16  ;;  %3419 = vmatpush1.bf16.msra.mxu1 %v1891_v17  ;;  %v1969_v23 = vld [vmem:[#allocation4 + $0x1d60] sm:$0xff]  ;;  %v1971_v14 = vld [vmem:[#allocation4 + $0x1d70] sm:$0xff]  ;;  %v1986_v16 = vld [vmem:[#allocation4 + $0x1de8] sm:$0xff] }
 0x713   :  { %v3457_v51 = vmax.f32 %v7544_v47, 0.0  ;;  %v3459_v20 = vmax.f32 %v7546_v22, 0.0  ;;  %v2955_v27 = vpop.f32.mrb[23].mxu0  ;;  %v3119_v28 = vpop.f32.mrb[23].mxu1  ;;  %3256 = vmatprep.subr.bf16.mxu0 %v1906_v53  ;;  %3420 = vmatprep.subr.bf16.mxu1 %v1908_v61  ;;  %v1988_v17 = vld [vmem:[#allocation4 + $0x1df8] sm:$0xff]  ;;  %v1987_v57 = vld [vmem:[#allocation4 + $0x1df0] sm:$0xff] }
 0x714   :  { %v3458_v33 = vmax.f32 %v7548_v49, 0.0  ;;  %v3460_v34 = vmax.f32 %v7550_v2, 0.0  ;;  %v2002_v53 = vld [vmem:[#allocation4 + $0x1e68] sm:$0xff]  ;;  %v2004_v61 = vld [vmem:[#allocation4 + $0x1e78] sm:$0xff]  ;;  %v2001_v24 = vld [vmem:[#allocation4 + $0x1e60] sm:$0xff] }
 0x715   :  { %v2003_v25 = vld [vmem:[#allocation4 + $0x1e70] sm:$0xff]  ;;  %v2018_v26 = vld [vmem:[#allocation4 + $0x1ee8] sm:$0xff]  ;;  %v2020_v43 = vld [vmem:[#allocation4 + $0x1ef8] sm:$0xff] }
 0x716   :  { %3257 = vmatpush1.bf16.msra.mxu0 %v1905_v29  ;;  %3421 = vmatpush1.bf16.msra.mxu1 %v1907_v30  ;;  %v2017_v27 = vld [vmem:[#allocation4 + $0x1ee0] sm:$0xff]  ;;  %v2019_v28 = vld [vmem:[#allocation4 + $0x1ef0] sm:$0xff]  ;;  %v2034_v29 = vld [vmem:[#allocation4 + $0x1f68] sm:$0xff] }
 0x717   :  { %3258 = vmatprep.subr.bf16.mxu0 %v1922_v39  ;;  %3422 = vmatprep.subr.bf16.mxu1 %v1924_v46  ;;  %v2036_v30 = vld [vmem:[#allocation4 + $0x1f78] sm:$0xff]  ;;  %v2033_v39 = vld [vmem:[#allocation4 + $0x1f60] sm:$0xff]  ;;  %v2035_v46 = vld [vmem:[#allocation4 + $0x1f70] sm:$0xff] }
 0x71a   :  { %3259 = vmatpush1.bf16.msra.mxu0 %v1921_v21  ;;  %3423 = vmatpush1.bf16.msra.mxu1 %v1923_v42  ;;  %v2050_v21 = vld [vmem:[#allocation4 + $0x1fe8] sm:$0xff]  ;;  %v2052_v42 = vld [vmem:[#allocation4 + $0x1ff8] sm:$0xff] }
 0x71b   :  { %3260 = vmatprep.subr.bf16.mxu0 %v1938_v54  ;;  %3424 = vmatprep.subr.bf16.mxu1 %v1940_v13  ;;  %v2049_v54 = vld [vmem:[#allocation4 + $0x1fe0] sm:$0xff]  ;;  %v2051_v13 = vld [vmem:[#allocation4 + $0x1ff0] sm:$0xff] }
 0x71e   :  { %3261 = vmatpush1.bf16.msra.mxu0 %v1937_v50  ;;  %3425 = vmatpush1.bf16.msra.mxu1 %v1939_v3  ;;  %v2108_v50 = vrot.slane %v7534_v58, %v7376_v59  ;;  %v2116_v3 = vrot.slane %v7534_v58, %v7379_v60 }
 0x71f   :  { %3262 = vmatprep.subr.bf16.mxu0 %v1954_v52  ;;  %3426 = vmatprep.subr.bf16.mxu1 %v1956_v6  ;;  %v2112_v52 = vrot.slane %v7534_v58, %v7382_v63  ;;  %v2120_v6 = vrot.slane %v7534_v58, %v7385_v0 }
 0x722   :  { %3263 = vmatpush1.bf16.msra.mxu0 %v1953_v9  ;;  %3427 = vmatpush1.bf16.msra.mxu1 %v1955_v10 }
 0x723   :  { %3264 = vmatprep.subr.bf16.mxu0 %v1970_v12  ;;  %3428 = vmatprep.subr.bf16.mxu1 %v1972_v8 }
 0x726   :  { %3265 = vmatpush1.bf16.msra.mxu0 %v1969_v23  ;;  %3429 = vmatpush1.bf16.msra.mxu1 %v1971_v14 }
 0x727   :  { %3266 = vmatprep.subr.bf16.mxu0 %v1986_v16  ;;  %3430 = vmatprep.subr.bf16.mxu1 %v1988_v17 }
 0x72a   :  { %3267 = vmatpush1.bf16.msra.mxu0 %v1985_v48  ;;  %3431 = vmatpush1.bf16.msra.mxu1 %v1987_v57 }
 0x72b   :  { %3268 = vmatprep.subr.bf16.mxu0 %v2002_v53  ;;  %3432 = vmatprep.subr.bf16.mxu1 %v2004_v61 }
 0x72e   :  { %3269 = vmatpush1.bf16.msra.mxu0 %v2001_v24  ;;  %3433 = vmatpush1.bf16.msra.mxu1 %v2003_v25 }
 0x72f   :  { %3270 = vmatprep.subr.bf16.mxu0 %v2018_v26  ;;  %3434 = vmatprep.subr.bf16.mxu1 %v2020_v43 }
 0x732   :  { %3271 = vmatpush1.bf16.msra.mxu0 %v2017_v27  ;;  %3435 = vmatpush1.bf16.msra.mxu1 %v2019_v28 }
 0x733   :  { %3272 = vmatprep.subr.bf16.mxu0 %v2034_v29  ;;  %3436 = vmatprep.subr.bf16.mxu1 %v2036_v30 }
 0x736   :  { %3273 = vmatpush1.bf16.msra.mxu0 %v2033_v39  ;;  %3437 = vmatpush1.bf16.msra.mxu1 %v2035_v46 }
 0x737   :  { %3274 = vmatprep.subr.bf16.mxu0 %v2050_v21  ;;  %3438 = vmatprep.subr.bf16.mxu1 %v2052_v42 }
 0x73a   :  { %3275 = vmatpush1.bf16.msra.mxu0 %v2049_v54  ;;  %3439 = vmatpush1.bf16.msra.mxu1 %v2051_v13 }
 0x73d   :  { %3277 = vmatmul.mubr.bf16.vlgmr.msra.gmra.mrb[24].mxu0 %v7452_v5  ;;  %3441 = vmatmul.mubr.bf16.vlgmr.msra.gmra.mrb[24].mxu1 %v7452_v5 }
 0x810   :  { %v3278_v9 = vpop.f32.mrb[24].mxu0  ;;  %v3442_v10 = vpop.f32.mrb[24].mxu1 }
 0x811   :  { %v7566_v12 = vadd.f32 %v3278_v9, %v2108_v50  ;;  %v7568_v8 = vadd.f32 %v3442_v10, %v2116_v3  ;;  %v3280_v23 = vpop.f32.mrb[25].mxu0  ;;  %v3444_v5 = vpop.f32.mrb[25].mxu1 }
 0x812   :  { %v7570_v14 = vadd.f32 %v3280_v23, %v2112_v52  ;;  %v7572_v16 = vadd.f32 %v3444_v5, %v2120_v6  ;;  %v3282_v17 = vpop.f32.mrb[26].mxu0  ;;  %v3446_v48 = vpop.f32.mrb[26].mxu1 }
 0x813   :  { %v3461_v57 = vmax.f32 %v7566_v12, 0.0  ;;  %v3463_v53 = vmax.f32 %v7568_v8, 0.0  ;;  %v3283_v61 = vpop.f32.mrb[27].mxu0  ;;  %v3447_v58 = vpop.f32.mrb[27].mxu1 }
 0x814   :  { %v3462_v24 = vmax.f32 %v7570_v14, 0.0  ;;  %v3464_v25 = vmax.f32 %v7572_v16, 0.0 }
 0x815   :  { %7118 = dma.done.wait [#allocation8 + $0x3], 131072 }
 0x816   :  { %7119 = vsyncadd [#allocation8 + $0x3], 4294836224  ;;  %v7581_v26 = vpack.c.bf16 %v3450_v4, %v3450_v4  ;;  %v3486_v43 = vld [vmem:[#allocation5 + $0x8] sm:$0xff]  ;;  %v3488_v27 = vld [vmem:[#allocation5 + $0x18] sm:$0xff] }
 0x817   :  { %v3485_v28 = vld [vmem:[#allocation5] sm:$0xff]  ;;  %4551 = vmatprep.subr.bf16.mxu0 %v3486_v43  ;;  %4879 = vmatprep.subr.bf16.mxu1 %v3488_v27  ;;  %v3487_v29 = vld [vmem:[#allocation5 + $0x10] sm:$0xff]  ;;  %v3494_v30 = vld [vmem:[#allocation5 + $0x48] sm:$0xff] }
 0x818   :  { %4583 = vmatprep.mubr.bf16.mxu0 %v7581_v26  ;;  %4911 = vmatprep.mubr.bf16.mxu1 %v7581_v26  ;;  %v3496_v39 = vld [vmem:[#allocation5 + $0x58] sm:$0xff]  ;;  %v3493_v7 = vld [vmem:[#allocation5 + $0x40] sm:$0xff]  ;;  %v3495_v46 = vld [vmem:[#allocation5 + $0x50] sm:$0xff] }
 0x819   :  { %4552 = vmatpush1.bf16.msra.mxu0 %v3485_v28  ;;  %4880 = vmatpush1.bf16.msra.mxu1 %v3487_v29  ;;  %v3502_v4 = vld [vmem:[#allocation5 + $0x88] sm:$0xff]  ;;  %v3504_v21 = vld [vmem:[#allocation5 + $0x98] sm:$0xff]  ;;  %v3501_v42 = vld [vmem:[#allocation5 + $0x80] sm:$0xff] }
 0x81a   :  { %4553 = vmatprep.subr.bf16.mxu0 %v3494_v30  ;;  %4881 = vmatprep.subr.bf16.mxu1 %v3496_v39  ;;  %v3503_v54 = vld [vmem:[#allocation5 + $0x90] sm:$0xff]  ;;  %v3510_v13 = vld [vmem:[#allocation5 + $0xc8] sm:$0xff]  ;;  %v3512_v50 = vld [vmem:[#allocation5 + $0xd8] sm:$0xff] }
 0x81b   :  { %v3509_v3 = vld [vmem:[#allocation5 + $0xc0] sm:$0xff]  ;;  %v3511_v52 = vld [vmem:[#allocation5 + $0xd0] sm:$0xff]  ;;  %v3518_v6 = vld [vmem:[#allocation5 + $0x108] sm:$0xff] }
 0x81c   :  { %v3520_v9 = vld [vmem:[#allocation5 + $0x118] sm:$0xff]  ;;  %v3517_v10 = vld [vmem:[#allocation5 + $0x100] sm:$0xff]  ;;  %v3519_v23 = vld [vmem:[#allocation5 + $0x110] sm:$0xff] }
 0x81d   :  { %4554 = vmatpush1.bf16.msra.mxu0 %v3493_v7  ;;  %4882 = vmatpush1.bf16.msra.mxu1 %v3495_v46  ;;  %v3526_v5 = vld [vmem:[#allocation5 + $0x148] sm:$0xff]  ;;  %v3528_v17 = vld [vmem:[#allocation5 + $0x158] sm:$0xff]  ;;  %v3525_v48 = vld [vmem:[#allocation5 + $0x140] sm:$0xff] }
 0x81e   :  { %4555 = vmatprep.subr.bf16.mxu0 %v3502_v4  ;;  %4883 = vmatprep.subr.bf16.mxu1 %v3504_v21  ;;  %v3527_v61 = vld [vmem:[#allocation5 + $0x150] sm:$0xff]  ;;  %v3534_v58 = vld [vmem:[#allocation5 + $0x188] sm:$0xff]  ;;  %v3536_v43 = vld [vmem:[#allocation5 + $0x198] sm:$0xff] }
 0x81f   :  { %v3533_v27 = vld [vmem:[#allocation5 + $0x180] sm:$0xff]  ;;  %v3535_v28 = vld [vmem:[#allocation5 + $0x190] sm:$0xff]  ;;  %v3542_v29 = vld [vmem:[#allocation5 + $0x1c8] sm:$0xff] }
 0x820   :  { %v3544_v30 = vld [vmem:[#allocation5 + $0x1d8] sm:$0xff]  ;;  %v3541_v39 = vld [vmem:[#allocation5 + $0x1c0] sm:$0xff]  ;;  %v3543_v7 = vld [vmem:[#allocation5 + $0x1d0] sm:$0xff] }
 0x821   :  { %4556 = vmatpush1.bf16.msra.mxu0 %v3501_v42  ;;  %4884 = vmatpush1.bf16.msra.mxu1 %v3503_v54  ;;  %v3550_v46 = vld [vmem:[#allocation5 + $0x208] sm:$0xff]  ;;  %v3552_v4 = vld [vmem:[#allocation5 + $0x218] sm:$0xff]  ;;  %v3549_v21 = vld [vmem:[#allocation5 + $0x200] sm:$0xff] }
 0x822   :  { %4557 = vmatprep.subr.bf16.mxu0 %v3510_v13  ;;  %4885 = vmatprep.subr.bf16.mxu1 %v3512_v50  ;;  %v3551_v42 = vld [vmem:[#allocation5 + $0x210] sm:$0xff]  ;;  %v3558_v54 = vld [vmem:[#allocation5 + $0x248] sm:$0xff]  ;;  %v3560_v13 = vld [vmem:[#allocation5 + $0x258] sm:$0xff] }
 0x823   :  { %v3557_v50 = vld [vmem:[#allocation5 + $0x240] sm:$0xff] }
 0x824   :  { %v3621_v44 = vld [vmem:[#allocation5 + $0x440] sm:$0xff] }
 0x825   :  { %4558 = vmatpush1.bf16.msra.mxu0 %v3509_v3  ;;  %4886 = vmatpush1.bf16.msra.mxu1 %v3511_v52  ;;  %v3559_v3 = vld [vmem:[#allocation5 + $0x250] sm:$0xff]  ;;  %v3566_v52 = vld [vmem:[#allocation5 + $0x288] sm:$0xff]  ;;  %v3629_v15 = vld [vmem:[#allocation5 + $0x480] sm:$0xff] }
 0x826   :  { %4559 = vmatprep.subr.bf16.mxu0 %v3518_v6  ;;  %4887 = vmatprep.subr.bf16.mxu1 %v3520_v9  ;;  %v3568_v6 = vld [vmem:[#allocation5 + $0x298] sm:$0xff]  ;;  %v3565_v9 = vld [vmem:[#allocation5 + $0x280] sm:$0xff] }
 0x827   :  { %v3749_v45 = vld [vmem:[#allocation5 + $0x840] sm:$0xff] }
 0x828   :  { %v3757_v31 = vld [vmem:[#allocation5 + $0x880] sm:$0xff] }
 0x829   :  { %4560 = vmatpush1.bf16.msra.mxu0 %v3517_v10  ;;  %4888 = vmatpush1.bf16.msra.mxu1 %v3519_v23  ;;  %v3567_v10 = vld [vmem:[#allocation5 + $0x290] sm:$0xff]  ;;  %v3574_v23 = vld [vmem:[#allocation5 + $0x2c8] sm:$0xff]  ;;  %v3877_v11 = vld [vmem:[#allocation5 + $0xc40] sm:$0xff] }
 0x82a   :  { %4561 = vmatprep.subr.bf16.mxu0 %v3526_v5  ;;  %4889 = vmatprep.subr.bf16.mxu1 %v3528_v17  ;;  %v3576_v5 = vld [vmem:[#allocation5 + $0x2d8] sm:$0xff]  ;;  %v3573_v17 = vld [vmem:[#allocation5 + $0x2c0] sm:$0xff] }
 0x82b   :  { %v3885_v32 = vld [vmem:[#allocation5 + $0xc80] sm:$0xff] }
 0x82c   :  { %v4005_v56 = vld [vmem:[#allocation5 + $0x1040] sm:$0xff] }
 0x82d   :  { %4562 = vmatpush1.bf16.msra.mxu0 %v3525_v48  ;;  %4890 = vmatpush1.bf16.msra.mxu1 %v3527_v61  ;;  %v3575_v48 = vld [vmem:[#allocation5 + $0x2d0] sm:$0xff]  ;;  %v3582_v61 = vld [vmem:[#allocation5 + $0x308] sm:$0xff]  ;;  %v4013_v49 = vld [vmem:[#allocation5 + $0x1080] sm:$0xff] }
 0x82e   :  { %4563 = vmatprep.subr.bf16.mxu0 %v3534_v58  ;;  %4891 = vmatprep.subr.bf16.mxu1 %v3536_v43  ;;  %v3584_v58 = vld [vmem:[#allocation5 + $0x318] sm:$0xff]  ;;  %v3581_v43 = vld [vmem:[#allocation5 + $0x300] sm:$0xff] }
 0x82f   :  { %v4133_v47 = vld [vmem:[#allocation5 + $0x1440] sm:$0xff] }
 0x830   :  { %v4141_v2 = vld [vmem:[#allocation5 + $0x1480] sm:$0xff] }
 0x831   :  { %4564 = vmatpush1.bf16.msra.mxu0 %v3533_v27  ;;  %4892 = vmatpush1.bf16.msra.mxu1 %v3535_v28  ;;  %v3583_v27 = vld [vmem:[#allocation5 + $0x310] sm:$0xff]  ;;  %v3590_v28 = vld [vmem:[#allocation5 + $0x348] sm:$0xff]  ;;  %v4261_v22 = vld [vmem:[#allocation5 + $0x1840] sm:$0xff] }
 0x832   :  { %4565 = vmatprep.subr.bf16.mxu0 %v3542_v29  ;;  %4893 = vmatprep.subr.bf16.mxu1 %v3544_v30  ;;  %v3592_v29 = vld [vmem:[#allocation5 + $0x358] sm:$0xff]  ;;  %v3589_v30 = vld [vmem:[#allocation5 + $0x340] sm:$0xff] }
 0x833   :  { %v4269_v14 = vld [vmem:[#allocation5 + $0x1880] sm:$0xff] }
 0x834   :  { %v4389_v12 = vld [vmem:[#allocation5 + $0x1c40] sm:$0xff] }
 0x835   :  { %4566 = vmatpush1.bf16.msra.mxu0 %v3541_v39  ;;  %4894 = vmatpush1.bf16.msra.mxu1 %v3543_v7  ;;  %v3591_v39 = vld [vmem:[#allocation5 + $0x350] sm:$0xff]  ;;  %v3598_v7 = vld [vmem:[#allocation5 + $0x388] sm:$0xff]  ;;  %v4397_v16 = vld [vmem:[#allocation5 + $0x1c80] sm:$0xff] }
 0x836   :  { %4567 = vmatprep.subr.bf16.mxu0 %v3550_v46  ;;  %4895 = vmatprep.subr.bf16.mxu1 %v3552_v4  ;;  %v3600_v46 = vld [vmem:[#allocation5 + $0x398] sm:$0xff]  ;;  %v3597_v4 = vld [vmem:[#allocation5 + $0x380] sm:$0xff] }
 0x837   :  { %v3497_v8 = vld [vmem:[#allocation5 + $0x60] sm:$0xff] }
 0x839   :  { %4568 = vmatpush1.bf16.msra.mxu0 %v3549_v21  ;;  %4896 = vmatpush1.bf16.msra.mxu1 %v3551_v42  ;;  %v3599_v21 = vld [vmem:[#allocation5 + $0x390] sm:$0xff]  ;;  %v3606_v42 = vld [vmem:[#allocation5 + $0x3c8] sm:$0xff] }
 0x83a   :  { %4569 = vmatprep.subr.bf16.mxu0 %v3558_v54  ;;  %4897 = vmatprep.subr.bf16.mxu1 %v3560_v13  ;;  %v3608_v54 = vld [vmem:[#allocation5 + $0x3d8] sm:$0xff]  ;;  %v3605_v13 = vld [vmem:[#allocation5 + $0x3c0] sm:$0xff] }
 0x83d   :  { %4570 = vmatpush1.bf16.msra.mxu0 %v3557_v50  ;;  %4898 = vmatpush1.bf16.msra.mxu1 %v3559_v3  ;;  %v3607_v50 = vld [vmem:[#allocation5 + $0x3d0] sm:$0xff]  ;;  %v3614_v3 = vld [vmem:[#allocation5 + $0x408] sm:$0xff] }
 0x83e   :  { %4571 = vmatprep.subr.bf16.mxu0 %v3566_v52  ;;  %4899 = vmatprep.subr.bf16.mxu1 %v3568_v6  ;;  %v3616_v52 = vld [vmem:[#allocation5 + $0x418] sm:$0xff]  ;;  %v7588_v6 = vpack.c.bf16 %v3449_v36, %v3449_v36  ;;  %v3623_v36 = vld [vmem:[#allocation5 + $0x450] sm:$0xff] }
 0x841   :  { %4572 = vmatpush1.bf16.msra.mxu0 %v3565_v9  ;;  %4900 = vmatpush1.bf16.msra.mxu1 %v3567_v10  ;;  %v3613_v9 = vld [vmem:[#allocation5 + $0x400] sm:$0xff]  ;;  %v3615_v10 = vld [vmem:[#allocation5 + $0x410] sm:$0xff] }
 0x842   :  { %4573 = vmatprep.subr.bf16.mxu0 %v3574_v23  ;;  %4901 = vmatprep.subr.bf16.mxu1 %v3576_v5  ;;  %v3622_v23 = vld [vmem:[#allocation5 + $0x448] sm:$0xff]  ;;  %v3624_v5 = vld [vmem:[#allocation5 + $0x458] sm:$0xff] }
 0x845   :  { %4574 = vmatpush1.bf16.msra.mxu0 %v3573_v17  ;;  %4902 = vmatpush1.bf16.msra.mxu1 %v3575_v48  ;;  %v7593_v17 = vpack.c.bf16 %v3452_v18, %v3452_v18  ;;  %v3630_v48 = vld [vmem:[#allocation5 + $0x488] sm:$0xff]  ;;  %v3631_v18 = vld [vmem:[#allocation5 + $0x490] sm:$0xff] }
 0x846   :  { %4575 = vmatprep.subr.bf16.mxu0 %v3582_v61  ;;  %4903 = vmatprep.subr.bf16.mxu1 %v3584_v58  ;;  %v3632_v61 = vld [vmem:[#allocation5 + $0x498] sm:$0xff]  ;;  %v3638_v58 = vld [vmem:[#allocation5 + $0x4c8] sm:$0xff] }
 0x849   :  { %4576 = vmatpush1.bf16.msra.mxu0 %v3581_v43  ;;  %4904 = vmatpush1.bf16.msra.mxu1 %v3583_v27  ;;  %v3640_v43 = vld [vmem:[#allocation5 + $0x4d8] sm:$0xff]  ;;  %v3637_v27 = vld [vmem:[#allocation5 + $0x4c0] sm:$0xff] }
 0x84a   :  { %4577 = vmatprep.subr.bf16.mxu0 %v3590_v28  ;;  %4905 = vmatprep.subr.bf16.mxu1 %v3592_v29  ;;  %v3639_v28 = vld [vmem:[#allocation5 + $0x4d0] sm:$0xff]  ;;  %v3646_v29 = vld [vmem:[#allocation5 + $0x508] sm:$0xff] }
 0x84d   :  { %4578 = vmatpush1.bf16.msra.mxu0 %v3589_v30  ;;  %4906 = vmatpush1.bf16.msra.mxu1 %v3591_v39  ;;  %v3648_v30 = vld [vmem:[#allocation5 + $0x518] sm:$0xff]  ;;  %v3645_v39 = vld [vmem:[#allocation5 + $0x500] sm:$0xff] }
 0x84e   :  { %4579 = vmatprep.subr.bf16.mxu0 %v3598_v7  ;;  %4907 = vmatprep.subr.bf16.mxu1 %v3600_v46  ;;  %v3647_v7 = vld [vmem:[#allocation5 + $0x510] sm:$0xff]  ;;  %v3654_v46 = vld [vmem:[#allocation5 + $0x548] sm:$0xff] }
 0x851   :  { %4580 = vmatpush1.bf16.msra.mxu0 %v3597_v4  ;;  %4908 = vmatpush1.bf16.msra.mxu1 %v3599_v21  ;;  %v3656_v4 = vld [vmem:[#allocation5 + $0x558] sm:$0xff]  ;;  %v3653_v21 = vld [vmem:[#allocation5 + $0x540] sm:$0xff] }
 0x852   :  { %4581 = vmatprep.subr.bf16.mxu0 %v3606_v42  ;;  %4909 = vmatprep.subr.bf16.mxu1 %v3608_v54  ;;  %v3655_v42 = vld [vmem:[#allocation5 + $0x550] sm:$0xff]  ;;  %v3662_v54 = vld [vmem:[#allocation5 + $0x588] sm:$0xff] }
 0x855   :  { %4582 = vmatpush1.bf16.msra.mxu0 %v3605_v13  ;;  %4910 = vmatpush1.bf16.msra.mxu1 %v3607_v50  ;;  %v3664_v13 = vld [vmem:[#allocation5 + $0x598] sm:$0xff]  ;;  %v3661_v50 = vld [vmem:[#allocation5 + $0x580] sm:$0xff] }
 0x856   :  { %4592 = vmatprep.subr.bf16.mxu0 %v3614_v3  ;;  %4920 = vmatprep.subr.bf16.mxu1 %v3616_v52  ;;  %v3663_v3 = vld [vmem:[#allocation5 + $0x590] sm:$0xff]  ;;  %v3670_v52 = vld [vmem:[#allocation5 + $0x5c8] sm:$0xff] }
 0x858   :  { %4584 = vmatmul.mubr.bf16.vlgmr.msra.gmra.mrb[28].mxu0 %v7588_v6  ;;  %4912 = vmatmul.mubr.bf16.vlgmr.msra.gmra.mrb[28].mxu1 %v7588_v6 }
 0x859   :  { %4593 = vmatpush1.bf16.msra.mxu0 %v3613_v9  ;;  %4921 = vmatpush1.bf16.msra.mxu1 %v3615_v10  ;;  %v3672_v9 = vld [vmem:[#allocation5 + $0x5d8] sm:$0xff]  ;;  %v3669_v10 = vld [vmem:[#allocation5 + $0x5c0] sm:$0xff] }
 0x85a   :  { %4594 = vmatprep.subr.bf16.mxu0 %v3622_v23  ;;  %4922 = vmatprep.subr.bf16.mxu1 %v3624_v5  ;;  %v3671_v23 = vld [vmem:[#allocation5 + $0x5d0] sm:$0xff]  ;;  %v3678_v5 = vld [vmem:[#allocation5 + $0x608] sm:$0xff] }
 0x85b   :  { %4624 = vmatprep.mubr.bf16.mxu0 %v7593_v17  ;;  %4952 = vmatprep.mubr.bf16.mxu1 %v7593_v17 }
 0x85d   :  { %4595 = vmatpush1.bf16.msra.mxu0 %v3621_v44  ;;  %4923 = vmatpush1.bf16.msra.mxu1 %v3623_v36  ;;  %v3680_v44 = vld [vmem:[#allocation5 + $0x618] sm:$0xff]  ;;  %v3677_v36 = vld [vmem:[#allocation5 + $0x600] sm:$0xff] }
 0x85e   :  { %4596 = vmatprep.subr.bf16.mxu0 %v3630_v48  ;;  %4924 = vmatprep.subr.bf16.mxu1 %v3632_v61  ;;  %v3679_v48 = vld [vmem:[#allocation5 + $0x610] sm:$0xff]  ;;  %v3686_v61 = vld [vmem:[#allocation5 + $0x648] sm:$0xff] }
 0x861   :  { %4597 = vmatpush1.bf16.msra.mxu0 %v3629_v15  ;;  %4925 = vmatpush1.bf16.msra.mxu1 %v3631_v18  ;;  %v3688_v15 = vld [vmem:[#allocation5 + $0x658] sm:$0xff]  ;;  %v3685_v18 = vld [vmem:[#allocation5 + $0x640] sm:$0xff] }
 0x862   :  { %4598 = vmatprep.subr.bf16.mxu0 %v3638_v58  ;;  %4926 = vmatprep.subr.bf16.mxu1 %v3640_v43  ;;  %v3687_v58 = vld [vmem:[#allocation5 + $0x650] sm:$0xff]  ;;  %v3694_v43 = vld [vmem:[#allocation5 + $0x688] sm:$0xff] }
 0x865   :  { %4599 = vmatpush1.bf16.msra.mxu0 %v3637_v27  ;;  %4927 = vmatpush1.bf16.msra.mxu1 %v3639_v28  ;;  %v3696_v27 = vld [vmem:[#allocation5 + $0x698] sm:$0xff]  ;;  %v3693_v28 = vld [vmem:[#allocation5 + $0x680] sm:$0xff] }
 0x866   :  { %4600 = vmatprep.subr.bf16.mxu0 %v3646_v29  ;;  %4928 = vmatprep.subr.bf16.mxu1 %v3648_v30  ;;  %v3695_v29 = vld [vmem:[#allocation5 + $0x690] sm:$0xff]  ;;  %v3702_v30 = vld [vmem:[#allocation5 + $0x6c8] sm:$0xff] }
 0x869   :  { %4601 = vmatpush1.bf16.msra.mxu0 %v3645_v39  ;;  %4929 = vmatpush1.bf16.msra.mxu1 %v3647_v7  ;;  %v3704_v39 = vld [vmem:[#allocation5 + $0x6d8] sm:$0xff]  ;;  %v3701_v7 = vld [vmem:[#allocation5 + $0x6c0] sm:$0xff] }
 0x86a   :  { %4602 = vmatprep.subr.bf16.mxu0 %v3654_v46  ;;  %4930 = vmatprep.subr.bf16.mxu1 %v3656_v4  ;;  %v3703_v46 = vld [vmem:[#allocation5 + $0x6d0] sm:$0xff]  ;;  %v3710_v4 = vld [vmem:[#allocation5 + $0x708] sm:$0xff] }
 0x86d   :  { %4603 = vmatpush1.bf16.msra.mxu0 %v3653_v21  ;;  %4931 = vmatpush1.bf16.msra.mxu1 %v3655_v42  ;;  %v3712_v21 = vld [vmem:[#allocation5 + $0x718] sm:$0xff]  ;;  %v3709_v42 = vld [vmem:[#allocation5 + $0x700] sm:$0xff] }
 0x86e   :  { %4604 = vmatprep.subr.bf16.mxu0 %v3662_v54  ;;  %4932 = vmatprep.subr.bf16.mxu1 %v3664_v13  ;;  %v3711_v54 = vld [vmem:[#allocation5 + $0x710] sm:$0xff]  ;;  %v3718_v13 = vld [vmem:[#allocation5 + $0x748] sm:$0xff] }
 0x871   :  { %4605 = vmatpush1.bf16.msra.mxu0 %v3661_v50  ;;  %4933 = vmatpush1.bf16.msra.mxu1 %v3663_v3  ;;  %v3720_v50 = vld [vmem:[#allocation5 + $0x758] sm:$0xff]  ;;  %v3717_v3 = vld [vmem:[#allocation5 + $0x740] sm:$0xff] }
 0x872   :  { %4606 = vmatprep.subr.bf16.mxu0 %v3670_v52  ;;  %4934 = vmatprep.subr.bf16.mxu1 %v3672_v9  ;;  %v3719_v52 = vld [vmem:[#allocation5 + $0x750] sm:$0xff]  ;;  %v3726_v9 = vld [vmem:[#allocation5 + $0x788] sm:$0xff] }
 0x875   :  { %4607 = vmatpush1.bf16.msra.mxu0 %v3669_v10  ;;  %4935 = vmatpush1.bf16.msra.mxu1 %v3671_v23  ;;  %v3728_v10 = vld [vmem:[#allocation5 + $0x798] sm:$0xff]  ;;  %v3725_v23 = vld [vmem:[#allocation5 + $0x780] sm:$0xff] }
 0x876   :  { %4608 = vmatprep.subr.bf16.mxu0 %v3678_v5  ;;  %4936 = vmatprep.subr.bf16.mxu1 %v3680_v44  ;;  %v3727_v5 = vld [vmem:[#allocation5 + $0x790] sm:$0xff]  ;;  %v3734_v44 = vld [vmem:[#allocation5 + $0x7c8] sm:$0xff] }
 0x879   :  { %4609 = vmatpush1.bf16.msra.mxu0 %v3677_v36  ;;  %4937 = vmatpush1.bf16.msra.mxu1 %v3679_v48  ;;  %v3736_v36 = vld [vmem:[#allocation5 + $0x7d8] sm:$0xff]  ;;  %v3733_v48 = vld [vmem:[#allocation5 + $0x7c0] sm:$0xff] }
 0x87a   :  { %4610 = vmatprep.subr.bf16.mxu0 %v3686_v61  ;;  %4938 = vmatprep.subr.bf16.mxu1 %v3688_v15  ;;  %v3735_v61 = vld [vmem:[#allocation5 + $0x7d0] sm:$0xff]  ;;  %v3742_v15 = vld [vmem:[#allocation5 + $0x808] sm:$0xff] }
 0x87d   :  { %4611 = vmatpush1.bf16.msra.mxu0 %v3685_v18  ;;  %4939 = vmatpush1.bf16.msra.mxu1 %v3687_v58  ;;  %v3744_v18 = vld [vmem:[#allocation5 + $0x818] sm:$0xff]  ;;  %v7602_v58 = vpack.c.bf16 %v3451_v19, %v3451_v19  ;;  %v3751_v19 = vld [vmem:[#allocation5 + $0x850] sm:$0xff] }
 0x87e   :  { %4612 = vmatprep.subr.bf16.mxu0 %v3694_v43  ;;  %4940 = vmatprep.subr.bf16.mxu1 %v3696_v27  ;;  %v3741_v43 = vld [vmem:[#allocation5 + $0x800] sm:$0xff]  ;;  %v3743_v27 = vld [vmem:[#allocation5 + $0x810] sm:$0xff] }
 0x881   :  { %4613 = vmatpush1.bf16.msra.mxu0 %v3693_v28  ;;  %4941 = vmatpush1.bf16.msra.mxu1 %v3695_v29  ;;  %v3750_v28 = vld [vmem:[#allocation5 + $0x848] sm:$0xff]  ;;  %v3752_v29 = vld [vmem:[#allocation5 + $0x858] sm:$0xff] }
 0x882   :  { %4614 = vmatprep.subr.bf16.mxu0 %v3702_v30  ;;  %4942 = vmatprep.subr.bf16.mxu1 %v3704_v39  ;;  %v7607_v30 = vpack.c.bf16 %v3454_v55, %v3454_v55  ;;  %v3758_v39 = vld [vmem:[#allocation5 + $0x888] sm:$0xff]  ;;  %v3759_v55 = vld [vmem:[#allocation5 + $0x890] sm:$0xff] }
 0x885   :  { %4615 = vmatpush1.bf16.msra.mxu0 %v3701_v7  ;;  %4943 = vmatpush1.bf16.msra.mxu1 %v3703_v46  ;;  %v3760_v7 = vld [vmem:[#allocation5 + $0x898] sm:$0xff]  ;;  %v3766_v46 = vld [vmem:[#allocation5 + $0x8c8] sm:$0xff] }
 0x886   :  { %4616 = vmatprep.subr.bf16.mxu0 %v3710_v4  ;;  %4944 = vmatprep.subr.bf16.mxu1 %v3712_v21  ;;  %v3768_v4 = vld [vmem:[#allocation5 + $0x8d8] sm:$0xff]  ;;  %v3765_v21 = vld [vmem:[#allocation5 + $0x8c0] sm:$0xff] }
 0x889   :  { %4617 = vmatpush1.bf16.msra.mxu0 %v3709_v42  ;;  %4945 = vmatpush1.bf16.msra.mxu1 %v3711_v54  ;;  %v3767_v42 = vld [vmem:[#allocation5 + $0x8d0] sm:$0xff]  ;;  %v3774_v54 = vld [vmem:[#allocation5 + $0x908] sm:$0xff] }
 0x88a   :  { %4618 = vmatprep.subr.bf16.mxu0 %v3718_v13  ;;  %4946 = vmatprep.subr.bf16.mxu1 %v3720_v50  ;;  %v3776_v13 = vld [vmem:[#allocation5 + $0x918] sm:$0xff]  ;;  %v3773_v50 = vld [vmem:[#allocation5 + $0x900] sm:$0xff] }
 0x88d   :  { %4619 = vmatpush1.bf16.msra.mxu0 %v3717_v3  ;;  %4947 = vmatpush1.bf16.msra.mxu1 %v3719_v52  ;;  %v3775_v3 = vld [vmem:[#allocation5 + $0x910] sm:$0xff]  ;;  %v3782_v52 = vld [vmem:[#allocation5 + $0x948] sm:$0xff] }
 0x88e   :  { %4620 = vmatprep.subr.bf16.mxu0 %v3726_v9  ;;  %4948 = vmatprep.subr.bf16.mxu1 %v3728_v10  ;;  %v3784_v9 = vld [vmem:[#allocation5 + $0x958] sm:$0xff]  ;;  %v3781_v10 = vld [vmem:[#allocation5 + $0x940] sm:$0xff] }
 0x891   :  { %4621 = vmatpush1.bf16.msra.mxu0 %v3725_v23  ;;  %4949 = vmatpush1.bf16.msra.mxu1 %v3727_v5  ;;  %v3783_v23 = vld [vmem:[#allocation5 + $0x950] sm:$0xff]  ;;  %v3790_v5 = vld [vmem:[#allocation5 + $0x988] sm:$0xff] }
 0x892   :  { %4622 = vmatprep.subr.bf16.mxu0 %v3734_v44  ;;  %4950 = vmatprep.subr.bf16.mxu1 %v3736_v36  ;;  %v3792_v44 = vld [vmem:[#allocation5 + $0x998] sm:$0xff]  ;;  %v3789_v36 = vld [vmem:[#allocation5 + $0x980] sm:$0xff] }
 0x895   :  { %4623 = vmatpush1.bf16.msra.mxu0 %v3733_v48  ;;  %4951 = vmatpush1.bf16.msra.mxu1 %v3735_v61  ;;  %v3791_v48 = vld [vmem:[#allocation5 + $0x990] sm:$0xff]  ;;  %v3798_v61 = vld [vmem:[#allocation5 + $0x9c8] sm:$0xff] }
 0x896   :  { %4633 = vmatprep.subr.bf16.mxu0 %v3742_v15  ;;  %4961 = vmatprep.subr.bf16.mxu1 %v3744_v18  ;;  %v3800_v15 = vld [vmem:[#allocation5 + $0x9d8] sm:$0xff]  ;;  %v3797_v18 = vld [vmem:[#allocation5 + $0x9c0] sm:$0xff] }
 0x898   :  { %4625 = vmatmul.mubr.bf16.vlgmr.msra.gmra.mrb[28].mxu0 %v7602_v58  ;;  %4953 = vmatmul.mubr.bf16.vlgmr.msra.gmra.mrb[28].mxu1 %v7602_v58 }
 0x899   :  { %4634 = vmatpush1.bf16.msra.mxu0 %v3741_v43  ;;  %4962 = vmatpush1.bf16.msra.mxu1 %v3743_v27  ;;  %v3799_v43 = vld [vmem:[#allocation5 + $0x9d0] sm:$0xff]  ;;  %v3806_v27 = vld [vmem:[#allocation5 + $0xa08] sm:$0xff] }
 0x89a   :  { %4635 = vmatprep.subr.bf16.mxu0 %v3750_v28  ;;  %4963 = vmatprep.subr.bf16.mxu1 %v3752_v29  ;;  %v3808_v28 = vld [vmem:[#allocation5 + $0xa18] sm:$0xff]  ;;  %v3805_v29 = vld [vmem:[#allocation5 + $0xa00] sm:$0xff] }
 0x89b   :  { %4665 = vmatprep.mubr.bf16.mxu0 %v7607_v30  ;;  %4993 = vmatprep.mubr.bf16.mxu1 %v7607_v30 }
 0x89d   :  { %4636 = vmatpush1.bf16.msra.mxu0 %v3749_v45  ;;  %4964 = vmatpush1.bf16.msra.mxu1 %v3751_v19  ;;  %v3807_v45 = vld [vmem:[#allocation5 + $0xa10] sm:$0xff]  ;;  %v3814_v19 = vld [vmem:[#allocation5 + $0xa48] sm:$0xff] }
 0x89e   :  { %4637 = vmatprep.subr.bf16.mxu0 %v3758_v39  ;;  %4965 = vmatprep.subr.bf16.mxu1 %v3760_v7  ;;  %v3816_v39 = vld [vmem:[#allocation5 + $0xa58] sm:$0xff]  ;;  %v3813_v7 = vld [vmem:[#allocation5 + $0xa40] sm:$0xff] }
 0x8a1   :  { %4638 = vmatpush1.bf16.msra.mxu0 %v3757_v31  ;;  %4966 = vmatpush1.bf16.msra.mxu1 %v3759_v55  ;;  %v3815_v31 = vld [vmem:[#allocation5 + $0xa50] sm:$0xff]  ;;  %v3822_v55 = vld [vmem:[#allocation5 + $0xa88] sm:$0xff] }
 0x8a2   :  { %4639 = vmatprep.subr.bf16.mxu0 %v3766_v46  ;;  %4967 = vmatprep.subr.bf16.mxu1 %v3768_v4  ;;  %v3824_v46 = vld [vmem:[#allocation5 + $0xa98] sm:$0xff]  ;;  %v3821_v4 = vld [vmem:[#allocation5 + $0xa80] sm:$0xff] }
 0x8a5   :  { %4640 = vmatpush1.bf16.msra.mxu0 %v3765_v21  ;;  %4968 = vmatpush1.bf16.msra.mxu1 %v3767_v42  ;;  %v3823_v21 = vld [vmem:[#allocation5 + $0xa90] sm:$0xff]  ;;  %v3830_v42 = vld [vmem:[#allocation5 + $0xac8] sm:$0xff] }
 0x8a6   :  { %4641 = vmatprep.subr.bf16.mxu0 %v3774_v54  ;;  %4969 = vmatprep.subr.bf16.mxu1 %v3776_v13  ;;  %v3832_v54 = vld [vmem:[#allocation5 + $0xad8] sm:$0xff]  ;;  %v3829_v13 = vld [vmem:[#allocation5 + $0xac0] sm:$0xff] }
 0x8a9   :  { %4642 = vmatpush1.bf16.msra.mxu0 %v3773_v50  ;;  %4970 = vmatpush1.bf16.msra.mxu1 %v3775_v3  ;;  %v3831_v50 = vld [vmem:[#allocation5 + $0xad0] sm:$0xff]  ;;  %v3838_v3 = vld [vmem:[#allocation5 + $0xb08] sm:$0xff] }
 0x8aa   :  { %4643 = vmatprep.subr.bf16.mxu0 %v3782_v52  ;;  %4971 = vmatprep.subr.bf16.mxu1 %v3784_v9  ;;  %v3840_v52 = vld [vmem:[#allocation5 + $0xb18] sm:$0xff]  ;;  %v3837_v9 = vld [vmem:[#allocation5 + $0xb00] sm:$0xff] }
 0x8ad   :  { %4644 = vmatpush1.bf16.msra.mxu0 %v3781_v10  ;;  %4972 = vmatpush1.bf16.msra.mxu1 %v3783_v23  ;;  %v3839_v10 = vld [vmem:[#allocation5 + $0xb10] sm:$0xff]  ;;  %v3846_v23 = vld [vmem:[#allocation5 + $0xb48] sm:$0xff] }
 0x8ae   :  { %4645 = vmatprep.subr.bf16.mxu0 %v3790_v5  ;;  %4973 = vmatprep.subr.bf16.mxu1 %v3792_v44  ;;  %v3848_v5 = vld [vmem:[#allocation5 + $0xb58] sm:$0xff]  ;;  %v3845_v44 = vld [vmem:[#allocation5 + $0xb40] sm:$0xff] }
 0x8b1   :  { %4646 = vmatpush1.bf16.msra.mxu0 %v3789_v36  ;;  %4974 = vmatpush1.bf16.msra.mxu1 %v3791_v48  ;;  %v3847_v36 = vld [vmem:[#allocation5 + $0xb50] sm:$0xff]  ;;  %v3854_v48 = vld [vmem:[#allocation5 + $0xb88] sm:$0xff] }
 0x8b2   :  { %4647 = vmatprep.subr.bf16.mxu0 %v3798_v61  ;;  %4975 = vmatprep.subr.bf16.mxu1 %v3800_v15  ;;  %v3856_v61 = vld [vmem:[#allocation5 + $0xb98] sm:$0xff]  ;;  %v3853_v15 = vld [vmem:[#allocation5 + $0xb80] sm:$0xff] }
 0x8b5   :  { %4648 = vmatpush1.bf16.msra.mxu0 %v3797_v18  ;;  %4976 = vmatpush1.bf16.msra.mxu1 %v3799_v43  ;;  %v3855_v18 = vld [vmem:[#allocation5 + $0xb90] sm:$0xff]  ;;  %v3862_v43 = vld [vmem:[#allocation5 + $0xbc8] sm:$0xff] }
 0x8b6   :  { %4649 = vmatprep.subr.bf16.mxu0 %v3806_v27  ;;  %4977 = vmatprep.subr.bf16.mxu1 %v3808_v28  ;;  %v3864_v27 = vld [vmem:[#allocation5 + $0xbd8] sm:$0xff]  ;;  %v3861_v28 = vld [vmem:[#allocation5 + $0xbc0] sm:$0xff] }
 0x8b9   :  { %4650 = vmatpush1.bf16.msra.mxu0 %v3805_v29  ;;  %4978 = vmatpush1.bf16.msra.mxu1 %v3807_v45  ;;  %v3863_v29 = vld [vmem:[#allocation5 + $0xbd0] sm:$0xff]  ;;  %v3870_v45 = vld [vmem:[#allocation5 + $0xc08] sm:$0xff] }
 0x8ba   :  { %4651 = vmatprep.subr.bf16.mxu0 %v3814_v19  ;;  %4979 = vmatprep.subr.bf16.mxu1 %v3816_v39  ;;  %v3872_v19 = vld [vmem:[#allocation5 + $0xc18] sm:$0xff]  ;;  %v7616_v39 = vpack.c.bf16 %v3453_v35, %v3453_v35  ;;  %v3879_v35 = vld [vmem:[#allocation5 + $0xc50] sm:$0xff] }
 0x8bd   :  { %4652 = vmatpush1.bf16.msra.mxu0 %v3813_v7  ;;  %4980 = vmatpush1.bf16.msra.mxu1 %v3815_v31  ;;  %v3869_v7 = vld [vmem:[#allocation5 + $0xc00] sm:$0xff]  ;;  %v3871_v31 = vld [vmem:[#allocation5 + $0xc10] sm:$0xff] }
 0x8be   :  { %4653 = vmatprep.subr.bf16.mxu0 %v3822_v55  ;;  %4981 = vmatprep.subr.bf16.mxu1 %v3824_v46  ;;  %v3878_v55 = vld [vmem:[#allocation5 + $0xc48] sm:$0xff]  ;;  %v3880_v46 = vld [vmem:[#allocation5 + $0xc58] sm:$0xff] }
 0x8c1   :  { %4654 = vmatpush1.bf16.msra.mxu0 %v3821_v4  ;;  %4982 = vmatpush1.bf16.msra.mxu1 %v3823_v21  ;;  %v7621_v4 = vpack.c.bf16 %v3456_v1, %v3456_v1  ;;  %v3886_v21 = vld [vmem:[#allocation5 + $0xc88] sm:$0xff]  ;;  %v3887_v1 = vld [vmem:[#allocation5 + $0xc90] sm:$0xff] }
 0x8c2   :  { %4655 = vmatprep.subr.bf16.mxu0 %v3830_v42  ;;  %4983 = vmatprep.subr.bf16.mxu1 %v3832_v54  ;;  %v3888_v42 = vld [vmem:[#allocation5 + $0xc98] sm:$0xff]  ;;  %v3894_v54 = vld [vmem:[#allocation5 + $0xcc8] sm:$0xff] }
 0x8c5   :  { %4656 = vmatpush1.bf16.msra.mxu0 %v3829_v13  ;;  %4984 = vmatpush1.bf16.msra.mxu1 %v3831_v50  ;;  %v3896_v13 = vld [vmem:[#allocation5 + $0xcd8] sm:$0xff]  ;;  %v3893_v50 = vld [vmem:[#allocation5 + $0xcc0] sm:$0xff] }
 0x8c6   :  { %4657 = vmatprep.subr.bf16.mxu0 %v3838_v3  ;;  %4985 = vmatprep.subr.bf16.mxu1 %v3840_v52  ;;  %v3895_v3 = vld [vmem:[#allocation5 + $0xcd0] sm:$0xff]  ;;  %v3902_v52 = vld [vmem:[#allocation5 + $0xd08] sm:$0xff] }
 0x8c9   :  { %4658 = vmatpush1.bf16.msra.mxu0 %v3837_v9  ;;  %4986 = vmatpush1.bf16.msra.mxu1 %v3839_v10  ;;  %v3904_v9 = vld [vmem:[#allocation5 + $0xd18] sm:$0xff]  ;;  %v3901_v10 = vld [vmem:[#allocation5 + $0xd00] sm:$0xff] }
 0x8ca   :  { %4659 = vmatprep.subr.bf16.mxu0 %v3846_v23  ;;  %4987 = vmatprep.subr.bf16.mxu1 %v3848_v5  ;;  %v3903_v23 = vld [vmem:[#allocation5 + $0xd10] sm:$0xff]  ;;  %v3910_v5 = vld [vmem:[#allocation5 + $0xd48] sm:$0xff] }
 0x8cd   :  { %4660 = vmatpush1.bf16.msra.mxu0 %v3845_v44  ;;  %4988 = vmatpush1.bf16.msra.mxu1 %v3847_v36  ;;  %v3912_v44 = vld [vmem:[#allocation5 + $0xd58] sm:$0xff]  ;;  %v3909_v36 = vld [vmem:[#allocation5 + $0xd40] sm:$0xff] }
 0x8ce   :  { %4661 = vmatprep.subr.bf16.mxu0 %v3854_v48  ;;  %4989 = vmatprep.subr.bf16.mxu1 %v3856_v61  ;;  %v3911_v48 = vld [vmem:[#allocation5 + $0xd50] sm:$0xff]  ;;  %v3918_v61 = vld [vmem:[#allocation5 + $0xd88] sm:$0xff] }
 0x8d1   :  { %4662 = vmatpush1.bf16.msra.mxu0 %v3853_v15  ;;  %4990 = vmatpush1.bf16.msra.mxu1 %v3855_v18  ;;  %v3920_v15 = vld [vmem:[#allocation5 + $0xd98] sm:$0xff]  ;;  %v3917_v18 = vld [vmem:[#allocation5 + $0xd80] sm:$0xff] }
 0x8d2   :  { %4663 = vmatprep.subr.bf16.mxu0 %v3862_v43  ;;  %4991 = vmatprep.subr.bf16.mxu1 %v3864_v27  ;;  %v3919_v43 = vld [vmem:[#allocation5 + $0xd90] sm:$0xff]  ;;  %v3926_v27 = vld [vmem:[#allocation5 + $0xdc8] sm:$0xff] }
 0x8d5   :  { %4664 = vmatpush1.bf16.msra.mxu0 %v3861_v28  ;;  %4992 = vmatpush1.bf16.msra.mxu1 %v3863_v29  ;;  %v3928_v28 = vld [vmem:[#allocation5 + $0xdd8] sm:$0xff]  ;;  %v3925_v29 = vld [vmem:[#allocation5 + $0xdc0] sm:$0xff] }
 0x8d6   :  { %4674 = vmatprep.subr.bf16.mxu0 %v3870_v45  ;;  %5002 = vmatprep.subr.bf16.mxu1 %v3872_v19  ;;  %v3927_v45 = vld [vmem:[#allocation5 + $0xdd0] sm:$0xff]  ;;  %v3934_v19 = vld [vmem:[#allocation5 + $0xe08] sm:$0xff] }
 0x8d8   :  { %4666 = vmatmul.mubr.bf16.vlgmr.msra.gmra.mrb[28].mxu0 %v7616_v39  ;;  %4994 = vmatmul.mubr.bf16.vlgmr.msra.gmra.mrb[28].mxu1 %v7616_v39 }
 0x8d9   :  { %4675 = vmatpush1.bf16.msra.mxu0 %v3869_v7  ;;  %5003 = vmatpush1.bf16.msra.mxu1 %v3871_v31  ;;  %v3936_v7 = vld [vmem:[#allocation5 + $0xe18] sm:$0xff]  ;;  %v3933_v31 = vld [vmem:[#allocation5 + $0xe00] sm:$0xff] }
 0x8da   :  { %4676 = vmatprep.subr.bf16.mxu0 %v3878_v55  ;;  %5004 = vmatprep.subr.bf16.mxu1 %v3880_v46  ;;  %v3935_v55 = vld [vmem:[#allocation5 + $0xe10] sm:$0xff]  ;;  %v3942_v46 = vld [vmem:[#allocation5 + $0xe48] sm:$0xff] }
 0x8db   :  { %4706 = vmatprep.mubr.bf16.mxu0 %v7621_v4  ;;  %5034 = vmatprep.mubr.bf16.mxu1 %v7621_v4 }
 0x8dd   :  { %4677 = vmatpush1.bf16.msra.mxu0 %v3877_v11  ;;  %5005 = vmatpush1.bf16.msra.mxu1 %v3879_v35  ;;  %v3944_v11 = vld [vmem:[#allocation5 + $0xe58] sm:$0xff]  ;;  %v3941_v35 = vld [vmem:[#allocation5 + $0xe40] sm:$0xff] }
 0x8de   :  { %4678 = vmatprep.subr.bf16.mxu0 %v3886_v21  ;;  %5006 = vmatprep.subr.bf16.mxu1 %v3888_v42  ;;  %v3943_v21 = vld [vmem:[#allocation5 + $0xe50] sm:$0xff]  ;;  %v3950_v42 = vld [vmem:[#allocation5 + $0xe88] sm:$0xff] }
 0x8e1   :  { %4679 = vmatpush1.bf16.msra.mxu0 %v3885_v32  ;;  %5007 = vmatpush1.bf16.msra.mxu1 %v3887_v1  ;;  %v3952_v32 = vld [vmem:[#allocation5 + $0xe98] sm:$0xff]  ;;  %v3949_v1 = vld [vmem:[#allocation5 + $0xe80] sm:$0xff] }
 0x8e2   :  { %4680 = vmatprep.subr.bf16.mxu0 %v3894_v54  ;;  %5008 = vmatprep.subr.bf16.mxu1 %v3896_v13  ;;  %v3951_v54 = vld [vmem:[#allocation5 + $0xe90] sm:$0xff]  ;;  %v3958_v13 = vld [vmem:[#allocation5 + $0xec8] sm:$0xff] }
 0x8e5   :  { %4681 = vmatpush1.bf16.msra.mxu0 %v3893_v50  ;;  %5009 = vmatpush1.bf16.msra.mxu1 %v3895_v3  ;;  %v3960_v50 = vld [vmem:[#allocation5 + $0xed8] sm:$0xff]  ;;  %v3957_v3 = vld [vmem:[#allocation5 + $0xec0] sm:$0xff] }
 0x8e6   :  { %4682 = vmatprep.subr.bf16.mxu0 %v3902_v52  ;;  %5010 = vmatprep.subr.bf16.mxu1 %v3904_v9  ;;  %v3959_v52 = vld [vmem:[#allocation5 + $0xed0] sm:$0xff]  ;;  %v3966_v9 = vld [vmem:[#allocation5 + $0xf08] sm:$0xff] }
 0x8e9   :  { %4683 = vmatpush1.bf16.msra.mxu0 %v3901_v10  ;;  %5011 = vmatpush1.bf16.msra.mxu1 %v3903_v23  ;;  %v3968_v10 = vld [vmem:[#allocation5 + $0xf18] sm:$0xff]  ;;  %v3965_v23 = vld [vmem:[#allocation5 + $0xf00] sm:$0xff] }
 0x8ea   :  { %4684 = vmatprep.subr.bf16.mxu0 %v3910_v5  ;;  %5012 = vmatprep.subr.bf16.mxu1 %v3912_v44  ;;  %v3967_v5 = vld [vmem:[#allocation5 + $0xf10] sm:$0xff]  ;;  %v3974_v44 = vld [vmem:[#allocation5 + $0xf48] sm:$0xff] }
 0x8ed   :  { %4685 = vmatpush1.bf16.msra.mxu0 %v3909_v36  ;;  %5013 = vmatpush1.bf16.msra.mxu1 %v3911_v48  ;;  %v3976_v36 = vld [vmem:[#allocation5 + $0xf58] sm:$0xff]  ;;  %v3973_v48 = vld [vmem:[#allocation5 + $0xf40] sm:$0xff] }
 0x8ee   :  { %4686 = vmatprep.subr.bf16.mxu0 %v3918_v61  ;;  %5014 = vmatprep.subr.bf16.mxu1 %v3920_v15  ;;  %v3975_v61 = vld [vmem:[#allocation5 + $0xf50] sm:$0xff]  ;;  %v3982_v15 = vld [vmem:[#allocation5 + $0xf88] sm:$0xff] }
 0x8f1   :  { %4687 = vmatpush1.bf16.msra.mxu0 %v3917_v18  ;;  %5015 = vmatpush1.bf16.msra.mxu1 %v3919_v43  ;;  %v3984_v18 = vld [vmem:[#allocation5 + $0xf98] sm:$0xff]  ;;  %v3981_v43 = vld [vmem:[#allocation5 + $0xf80] sm:$0xff] }
 0x8f2   :  { %4688 = vmatprep.subr.bf16.mxu0 %v3926_v27  ;;  %5016 = vmatprep.subr.bf16.mxu1 %v3928_v28  ;;  %v3983_v27 = vld [vmem:[#allocation5 + $0xf90] sm:$0xff]  ;;  %v3990_v28 = vld [vmem:[#allocation5 + $0xfc8] sm:$0xff] }
 0x8f5   :  { %4689 = vmatpush1.bf16.msra.mxu0 %v3925_v29  ;;  %5017 = vmatpush1.bf16.msra.mxu1 %v3927_v45  ;;  %v3992_v29 = vld [vmem:[#allocation5 + $0xfd8] sm:$0xff]  ;;  %v3989_v45 = vld [vmem:[#allocation5 + $0xfc0] sm:$0xff] }
 0x8f6   :  { %4690 = vmatprep.subr.bf16.mxu0 %v3934_v19  ;;  %5018 = vmatprep.subr.bf16.mxu1 %v3936_v7  ;;  %v3991_v19 = vld [vmem:[#allocation5 + $0xfd0] sm:$0xff]  ;;  %v3998_v7 = vld [vmem:[#allocation5 + $0x1008] sm:$0xff] }
 0x8f9   :  { %4691 = vmatpush1.bf16.msra.mxu0 %v3933_v31  ;;  %5019 = vmatpush1.bf16.msra.mxu1 %v3935_v55  ;;  %v4000_v31 = vld [vmem:[#allocation5 + $0x1018] sm:$0xff]  ;;  %v7630_v55 = vpack.c.bf16 %v3455_v62, %v3455_v62  ;;  %v4007_v62 = vld [vmem:[#allocation5 + $0x1050] sm:$0xff] }
 0x8fa   :  { %4692 = vmatprep.subr.bf16.mxu0 %v3942_v46  ;;  %5020 = vmatprep.subr.bf16.mxu1 %v3944_v11  ;;  %v3997_v46 = vld [vmem:[#allocation5 + $0x1000] sm:$0xff]  ;;  %v3999_v11 = vld [vmem:[#allocation5 + $0x1010] sm:$0xff] }
 0x8fd   :  { %4693 = vmatpush1.bf16.msra.mxu0 %v3941_v35  ;;  %5021 = vmatpush1.bf16.msra.mxu1 %v3943_v21  ;;  %v4006_v35 = vld [vmem:[#allocation5 + $0x1048] sm:$0xff]  ;;  %v4008_v21 = vld [vmem:[#allocation5 + $0x1058] sm:$0xff] }
 0x8fe   :  { %4694 = vmatprep.subr.bf16.mxu0 %v3950_v42  ;;  %5022 = vmatprep.subr.bf16.mxu1 %v3952_v32  ;;  %v7635_v42 = vpack.c.bf16 %v3458_v33, %v3458_v33  ;;  %v4014_v32 = vld [vmem:[#allocation5 + $0x1088] sm:$0xff]  ;;  %v4015_v33 = vld [vmem:[#allocation5 + $0x1090] sm:$0xff] }
 0x901   :  { %4695 = vmatpush1.bf16.msra.mxu0 %v3949_v1  ;;  %5023 = vmatpush1.bf16.msra.mxu1 %v3951_v54  ;;  %v4016_v1 = vld [vmem:[#allocation5 + $0x1098] sm:$0xff]  ;;  %v4022_v54 = vld [vmem:[#allocation5 + $0x10c8] sm:$0xff] }
 0x902   :  { %4696 = vmatprep.subr.bf16.mxu0 %v3958_v13  ;;  %5024 = vmatprep.subr.bf16.mxu1 %v3960_v50  ;;  %v4024_v13 = vld [vmem:[#allocation5 + $0x10d8] sm:$0xff]  ;;  %v4021_v50 = vld [vmem:[#allocation5 + $0x10c0] sm:$0xff] }
 0x905   :  { %4697 = vmatpush1.bf16.msra.mxu0 %v3957_v3  ;;  %5025 = vmatpush1.bf16.msra.mxu1 %v3959_v52  ;;  %v4023_v3 = vld [vmem:[#allocation5 + $0x10d0] sm:$0xff]  ;;  %v4030_v52 = vld [vmem:[#allocation5 + $0x1108] sm:$0xff] }
 0x906   :  { %4698 = vmatprep.subr.bf16.mxu0 %v3966_v9  ;;  %5026 = vmatprep.subr.bf16.mxu1 %v3968_v10  ;;  %v4032_v9 = vld [vmem:[#allocation5 + $0x1118] sm:$0xff]  ;;  %v4029_v10 = vld [vmem:[#allocation5 + $0x1100] sm:$0xff] }
 0x909   :  { %4699 = vmatpush1.bf16.msra.mxu0 %v3965_v23  ;;  %5027 = vmatpush1.bf16.msra.mxu1 %v3967_v5  ;;  %v4031_v23 = vld [vmem:[#allocation5 + $0x1110] sm:$0xff]  ;;  %v4038_v5 = vld [vmem:[#allocation5 + $0x1148] sm:$0xff] }
 0x90a   :  { %4700 = vmatprep.subr.bf16.mxu0 %v3974_v44  ;;  %5028 = vmatprep.subr.bf16.mxu1 %v3976_v36  ;;  %v4040_v44 = vld [vmem:[#allocation5 + $0x1158] sm:$0xff]  ;;  %v4037_v36 = vld [vmem:[#allocation5 + $0x1140] sm:$0xff] }
 0x90d   :  { %4701 = vmatpush1.bf16.msra.mxu0 %v3973_v48  ;;  %5029 = vmatpush1.bf16.msra.mxu1 %v3975_v61  ;;  %v4039_v48 = vld [vmem:[#allocation5 + $0x1150] sm:$0xff]  ;;  %v4046_v61 = vld [vmem:[#allocation5 + $0x1188] sm:$0xff] }
 0x90e   :  { %4702 = vmatprep.subr.bf16.mxu0 %v3982_v15  ;;  %5030 = vmatprep.subr.bf16.mxu1 %v3984_v18  ;;  %v4048_v15 = vld [vmem:[#allocation5 + $0x1198] sm:$0xff]  ;;  %v4045_v18 = vld [vmem:[#allocation5 + $0x1180] sm:$0xff] }
 0x911   :  { %4703 = vmatpush1.bf16.msra.mxu0 %v3981_v43  ;;  %5031 = vmatpush1.bf16.msra.mxu1 %v3983_v27  ;;  %v4047_v43 = vld [vmem:[#allocation5 + $0x1190] sm:$0xff]  ;;  %v4054_v27 = vld [vmem:[#allocation5 + $0x11c8] sm:$0xff] }
 0x912   :  { %4704 = vmatprep.subr.bf16.mxu0 %v3990_v28  ;;  %5032 = vmatprep.subr.bf16.mxu1 %v3992_v29  ;;  %v4056_v28 = vld [vmem:[#allocation5 + $0x11d8] sm:$0xff]  ;;  %v4053_v29 = vld [vmem:[#allocation5 + $0x11c0] sm:$0xff] }
 0x915   :  { %4705 = vmatpush1.bf16.msra.mxu0 %v3989_v45  ;;  %5033 = vmatpush1.bf16.msra.mxu1 %v3991_v19  ;;  %v4055_v45 = vld [vmem:[#allocation5 + $0x11d0] sm:$0xff]  ;;  %v4062_v19 = vld [vmem:[#allocation5 + $0x1208] sm:$0xff] }
 0x916   :  { %4715 = vmatprep.subr.bf16.mxu0 %v3998_v7  ;;  %5043 = vmatprep.subr.bf16.mxu1 %v4000_v31  ;;  %v4064_v7 = vld [vmem:[#allocation5 + $0x1218] sm:$0xff]  ;;  %v4061_v31 = vld [vmem:[#allocation5 + $0x1200] sm:$0xff] }
 0x918   :  { %4707 = vmatmul.mubr.bf16.vlgmr.msra.gmra.mrb[28].mxu0 %v7630_v55  ;;  %5035 = vmatmul.mubr.bf16.vlgmr.msra.gmra.mrb[28].mxu1 %v7630_v55 }
 0x919   :  { %4716 = vmatpush1.bf16.msra.mxu0 %v3997_v46  ;;  %5044 = vmatpush1.bf16.msra.mxu1 %v3999_v11  ;;  %v4063_v46 = vld [vmem:[#allocation5 + $0x1210] sm:$0xff]  ;;  %v4070_v11 = vld [vmem:[#allocation5 + $0x1248] sm:$0xff] }
 0x91a   :  { %4717 = vmatprep.subr.bf16.mxu0 %v4006_v35  ;;  %5045 = vmatprep.subr.bf16.mxu1 %v4008_v21  ;;  %v4072_v35 = vld [vmem:[#allocation5 + $0x1258] sm:$0xff]  ;;  %v4069_v21 = vld [vmem:[#allocation5 + $0x1240] sm:$0xff] }
 0x91b   :  { %4747 = vmatprep.mubr.bf16.mxu0 %v7635_v42  ;;  %5075 = vmatprep.mubr.bf16.mxu1 %v7635_v42 }
 0x91d   :  { %4718 = vmatpush1.bf16.msra.mxu0 %v4005_v56  ;;  %5046 = vmatpush1.bf16.msra.mxu1 %v4007_v62  ;;  %v4071_v56 = vld [vmem:[#allocation5 + $0x1250] sm:$0xff]  ;;  %v4078_v62 = vld [vmem:[#allocation5 + $0x1288] sm:$0xff] }
 0x91e   :  { %4719 = vmatprep.subr.bf16.mxu0 %v4014_v32  ;;  %5047 = vmatprep.subr.bf16.mxu1 %v4016_v1  ;;  %v4080_v32 = vld [vmem:[#allocation5 + $0x1298] sm:$0xff]  ;;  %v4077_v1 = vld [vmem:[#allocation5 + $0x1280] sm:$0xff] }
 0x921   :  { %4720 = vmatpush1.bf16.msra.mxu0 %v4013_v49  ;;  %5048 = vmatpush1.bf16.msra.mxu1 %v4015_v33  ;;  %v4079_v49 = vld [vmem:[#allocation5 + $0x1290] sm:$0xff]  ;;  %v4086_v33 = vld [vmem:[#allocation5 + $0x12c8] sm:$0xff] }
 0x922   :  { %4721 = vmatprep.subr.bf16.mxu0 %v4022_v54  ;;  %5049 = vmatprep.subr.bf16.mxu1 %v4024_v13  ;;  %v4088_v54 = vld [vmem:[#allocation5 + $0x12d8] sm:$0xff]  ;;  %v4085_v13 = vld [vmem:[#allocation5 + $0x12c0] sm:$0xff] }
 0x925   :  { %4722 = vmatpush1.bf16.msra.mxu0 %v4021_v50  ;;  %5050 = vmatpush1.bf16.msra.mxu1 %v4023_v3  ;;  %v4087_v50 = vld [vmem:[#allocation5 + $0x12d0] sm:$0xff]  ;;  %v4094_v3 = vld [vmem:[#allocation5 + $0x1308] sm:$0xff] }
 0x926   :  { %4723 = vmatprep.subr.bf16.mxu0 %v4030_v52  ;;  %5051 = vmatprep.subr.bf16.mxu1 %v4032_v9  ;;  %v4096_v52 = vld [vmem:[#allocation5 + $0x1318] sm:$0xff]  ;;  %v4093_v9 = vld [vmem:[#allocation5 + $0x1300] sm:$0xff] }
 0x929   :  { %4724 = vmatpush1.bf16.msra.mxu0 %v4029_v10  ;;  %5052 = vmatpush1.bf16.msra.mxu1 %v4031_v23  ;;  %v4095_v10 = vld [vmem:[#allocation5 + $0x1310] sm:$0xff]  ;;  %v4102_v23 = vld [vmem:[#allocation5 + $0x1348] sm:$0xff] }
 0x92a   :  { %4725 = vmatprep.subr.bf16.mxu0 %v4038_v5  ;;  %5053 = vmatprep.subr.bf16.mxu1 %v4040_v44  ;;  %v4104_v5 = vld [vmem:[#allocation5 + $0x1358] sm:$0xff]  ;;  %v4101_v44 = vld [vmem:[#allocation5 + $0x1340] sm:$0xff] }
 0x92d   :  { %4726 = vmatpush1.bf16.msra.mxu0 %v4037_v36  ;;  %5054 = vmatpush1.bf16.msra.mxu1 %v4039_v48  ;;  %v4103_v36 = vld [vmem:[#allocation5 + $0x1350] sm:$0xff]  ;;  %v4110_v48 = vld [vmem:[#allocation5 + $0x1388] sm:$0xff] }
 0x92e   :  { %4727 = vmatprep.subr.bf16.mxu0 %v4046_v61  ;;  %5055 = vmatprep.subr.bf16.mxu1 %v4048_v15  ;;  %v4112_v61 = vld [vmem:[#allocation5 + $0x1398] sm:$0xff]  ;;  %v4109_v15 = vld [vmem:[#allocation5 + $0x1380] sm:$0xff] }
 0x931   :  { %4728 = vmatpush1.bf16.msra.mxu0 %v4045_v18  ;;  %5056 = vmatpush1.bf16.msra.mxu1 %v4047_v43  ;;  %v4111_v18 = vld [vmem:[#allocation5 + $0x1390] sm:$0xff]  ;;  %v4118_v43 = vld [vmem:[#allocation5 + $0x13c8] sm:$0xff] }
 0x932   :  { %4729 = vmatprep.subr.bf16.mxu0 %v4054_v27  ;;  %5057 = vmatprep.subr.bf16.mxu1 %v4056_v28  ;;  %v4120_v27 = vld [vmem:[#allocation5 + $0x13d8] sm:$0xff]  ;;  %v4117_v28 = vld [vmem:[#allocation5 + $0x13c0] sm:$0xff] }
 0x935   :  { %4730 = vmatpush1.bf16.msra.mxu0 %v4053_v29  ;;  %5058 = vmatpush1.bf16.msra.mxu1 %v4055_v45  ;;  %v4119_v29 = vld [vmem:[#allocation5 + $0x13d0] sm:$0xff]  ;;  %v4126_v45 = vld [vmem:[#allocation5 + $0x1408] sm:$0xff] }
 0x936   :  { %4731 = vmatprep.subr.bf16.mxu0 %v4062_v19  ;;  %5059 = vmatprep.subr.bf16.mxu1 %v4064_v7  ;;  %v4128_v19 = vld [vmem:[#allocation5 + $0x1418] sm:$0xff]  ;;  %v7644_v7 = vpack.c.bf16 %v3457_v51, %v3457_v51  ;;  %v4135_v51 = vld [vmem:[#allocation5 + $0x1450] sm:$0xff] }
 0x939   :  { %4732 = vmatpush1.bf16.msra.mxu0 %v4061_v31  ;;  %5060 = vmatpush1.bf16.msra.mxu1 %v4063_v46  ;;  %v4125_v31 = vld [vmem:[#allocation5 + $0x1400] sm:$0xff]  ;;  %v4127_v46 = vld [vmem:[#allocation5 + $0x1410] sm:$0xff] }
 0x93a   :  { %4733 = vmatprep.subr.bf16.mxu0 %v4070_v11  ;;  %5061 = vmatprep.subr.bf16.mxu1 %v4072_v35  ;;  %v4134_v11 = vld [vmem:[#allocation5 + $0x1448] sm:$0xff]  ;;  %v4136_v35 = vld [vmem:[#allocation5 + $0x1458] sm:$0xff] }
 0x93d   :  { %4734 = vmatpush1.bf16.msra.mxu0 %v4069_v21  ;;  %5062 = vmatpush1.bf16.msra.mxu1 %v4071_v56  ;;  %v7649_v21 = vpack.c.bf16 %v3460_v34, %v3460_v34  ;;  %v4142_v56 = vld [vmem:[#allocation5 + $0x1488] sm:$0xff]  ;;  %v4143_v34 = vld [vmem:[#allocation5 + $0x1490] sm:$0xff] }
 0x93e   :  { %4735 = vmatprep.subr.bf16.mxu0 %v4078_v62  ;;  %5063 = vmatprep.subr.bf16.mxu1 %v4080_v32  ;;  %v4144_v62 = vld [vmem:[#allocation5 + $0x1498] sm:$0xff]  ;;  %v4150_v32 = vld [vmem:[#allocation5 + $0x14c8] sm:$0xff] }
 0x941   :  { %4736 = vmatpush1.bf16.msra.mxu0 %v4077_v1  ;;  %5064 = vmatpush1.bf16.msra.mxu1 %v4079_v49  ;;  %v4152_v1 = vld [vmem:[#allocation5 + $0x14d8] sm:$0xff]  ;;  %v4149_v49 = vld [vmem:[#allocation5 + $0x14c0] sm:$0xff] }
 0x942   :  { %4737 = vmatprep.subr.bf16.mxu0 %v4086_v33  ;;  %5065 = vmatprep.subr.bf16.mxu1 %v4088_v54  ;;  %v4151_v33 = vld [vmem:[#allocation5 + $0x14d0] sm:$0xff]  ;;  %v4158_v54 = vld [vmem:[#allocation5 + $0x1508] sm:$0xff] }
 0x945   :  { %4738 = vmatpush1.bf16.msra.mxu0 %v4085_v13  ;;  %5066 = vmatpush1.bf16.msra.mxu1 %v4087_v50  ;;  %v4160_v13 = vld [vmem:[#allocation5 + $0x1518] sm:$0xff]  ;;  %v4157_v50 = vld [vmem:[#allocation5 + $0x1500] sm:$0xff] }
 0x946   :  { %4739 = vmatprep.subr.bf16.mxu0 %v4094_v3  ;;  %5067 = vmatprep.subr.bf16.mxu1 %v4096_v52  ;;  %v4159_v3 = vld [vmem:[#allocation5 + $0x1510] sm:$0xff]  ;;  %v4166_v52 = vld [vmem:[#allocation5 + $0x1548] sm:$0xff] }
 0x949   :  { %4740 = vmatpush1.bf16.msra.mxu0 %v4093_v9  ;;  %5068 = vmatpush1.bf16.msra.mxu1 %v4095_v10  ;;  %v4168_v9 = vld [vmem:[#allocation5 + $0x1558] sm:$0xff]  ;;  %v4165_v10 = vld [vmem:[#allocation5 + $0x1540] sm:$0xff] }
 0x94a   :  { %4741 = vmatprep.subr.bf16.mxu0 %v4102_v23  ;;  %5069 = vmatprep.subr.bf16.mxu1 %v4104_v5  ;;  %v4167_v23 = vld [vmem:[#allocation5 + $0x1550] sm:$0xff]  ;;  %v4174_v5 = vld [vmem:[#allocation5 + $0x1588] sm:$0xff] }
 0x94d   :  { %4742 = vmatpush1.bf16.msra.mxu0 %v4101_v44  ;;  %5070 = vmatpush1.bf16.msra.mxu1 %v4103_v36  ;;  %v4176_v44 = vld [vmem:[#allocation5 + $0x1598] sm:$0xff]  ;;  %v4173_v36 = vld [vmem:[#allocation5 + $0x1580] sm:$0xff] }
 0x94e   :  { %4743 = vmatprep.subr.bf16.mxu0 %v4110_v48  ;;  %5071 = vmatprep.subr.bf16.mxu1 %v4112_v61  ;;  %v4175_v48 = vld [vmem:[#allocation5 + $0x1590] sm:$0xff]  ;;  %v4182_v61 = vld [vmem:[#allocation5 + $0x15c8] sm:$0xff] }
 0x951   :  { %4744 = vmatpush1.bf16.msra.mxu0 %v4109_v15  ;;  %5072 = vmatpush1.bf16.msra.mxu1 %v4111_v18  ;;  %v4184_v15 = vld [vmem:[#allocation5 + $0x15d8] sm:$0xff]  ;;  %v4181_v18 = vld [vmem:[#allocation5 + $0x15c0] sm:$0xff] }
 0x952   :  { %4745 = vmatprep.subr.bf16.mxu0 %v4118_v43  ;;  %5073 = vmatprep.subr.bf16.mxu1 %v4120_v27  ;;  %v4183_v43 = vld [vmem:[#allocation5 + $0x15d0] sm:$0xff]  ;;  %v4190_v27 = vld [vmem:[#allocation5 + $0x1608] sm:$0xff] }
 0x955   :  { %4746 = vmatpush1.bf16.msra.mxu0 %v4117_v28  ;;  %5074 = vmatpush1.bf16.msra.mxu1 %v4119_v29  ;;  %v4192_v28 = vld [vmem:[#allocation5 + $0x1618] sm:$0xff]  ;;  %v4189_v29 = vld [vmem:[#allocation5 + $0x1600] sm:$0xff] }
 0x956   :  { %4756 = vmatprep.subr.bf16.mxu0 %v4126_v45  ;;  %5084 = vmatprep.subr.bf16.mxu1 %v4128_v19  ;;  %v4191_v45 = vld [vmem:[#allocation5 + $0x1610] sm:$0xff]  ;;  %v4198_v19 = vld [vmem:[#allocation5 + $0x1648] sm:$0xff] }
 0x958   :  { %4748 = vmatmul.mubr.bf16.vlgmr.msra.gmra.mrb[28].mxu0 %v7644_v7  ;;  %5076 = vmatmul.mubr.bf16.vlgmr.msra.gmra.mrb[28].mxu1 %v7644_v7 }
 0x959   :  { %4757 = vmatpush1.bf16.msra.mxu0 %v4125_v31  ;;  %5085 = vmatpush1.bf16.msra.mxu1 %v4127_v46  ;;  %v4200_v31 = vld [vmem:[#allocation5 + $0x1658] sm:$0xff]  ;;  %v4197_v46 = vld [vmem:[#allocation5 + $0x1640] sm:$0xff] }
 0x95a   :  { %4758 = vmatprep.subr.bf16.mxu0 %v4134_v11  ;;  %5086 = vmatprep.subr.bf16.mxu1 %v4136_v35  ;;  %v4199_v11 = vld [vmem:[#allocation5 + $0x1650] sm:$0xff]  ;;  %v4206_v35 = vld [vmem:[#allocation5 + $0x1688] sm:$0xff] }
 0x95b   :  { %4788 = vmatprep.mubr.bf16.mxu0 %v7649_v21  ;;  %5116 = vmatprep.mubr.bf16.mxu1 %v7649_v21 }
 0x95d   :  { %4759 = vmatpush1.bf16.msra.mxu0 %v4133_v47  ;;  %5087 = vmatpush1.bf16.msra.mxu1 %v4135_v51  ;;  %v4208_v47 = vld [vmem:[#allocation5 + $0x1698] sm:$0xff]  ;;  %v4205_v51 = vld [vmem:[#allocation5 + $0x1680] sm:$0xff] }
 0x95e   :  { %4760 = vmatprep.subr.bf16.mxu0 %v4142_v56  ;;  %5088 = vmatprep.subr.bf16.mxu1 %v4144_v62  ;;  %v4207_v56 = vld [vmem:[#allocation5 + $0x1690] sm:$0xff]  ;;  %v4214_v62 = vld [vmem:[#allocation5 + $0x16c8] sm:$0xff] }
 0x961   :  { %4761 = vmatpush1.bf16.msra.mxu0 %v4141_v2  ;;  %5089 = vmatpush1.bf16.msra.mxu1 %v4143_v34  ;;  %v4216_v2 = vld [vmem:[#allocation5 + $0x16d8] sm:$0xff]  ;;  %v4213_v34 = vld [vmem:[#allocation5 + $0x16c0] sm:$0xff] }
 0x962   :  { %4762 = vmatprep.subr.bf16.mxu0 %v4150_v32  ;;  %5090 = vmatprep.subr.bf16.mxu1 %v4152_v1  ;;  %v4215_v32 = vld [vmem:[#allocation5 + $0x16d0] sm:$0xff]  ;;  %v4222_v1 = vld [vmem:[#allocation5 + $0x1708] sm:$0xff] }
 0x965   :  { %4763 = vmatpush1.bf16.msra.mxu0 %v4149_v49  ;;  %5091 = vmatpush1.bf16.msra.mxu1 %v4151_v33  ;;  %v4224_v49 = vld [vmem:[#allocation5 + $0x1718] sm:$0xff]  ;;  %v4221_v33 = vld [vmem:[#allocation5 + $0x1700] sm:$0xff] }
 0x966   :  { %4764 = vmatprep.subr.bf16.mxu0 %v4158_v54  ;;  %5092 = vmatprep.subr.bf16.mxu1 %v4160_v13  ;;  %v4223_v54 = vld [vmem:[#allocation5 + $0x1710] sm:$0xff]  ;;  %v4230_v13 = vld [vmem:[#allocation5 + $0x1748] sm:$0xff] }
 0x969   :  { %4765 = vmatpush1.bf16.msra.mxu0 %v4157_v50  ;;  %5093 = vmatpush1.bf16.msra.mxu1 %v4159_v3  ;;  %v4232_v50 = vld [vmem:[#allocation5 + $0x1758] sm:$0xff]  ;;  %v4229_v3 = vld [vmem:[#allocation5 + $0x1740] sm:$0xff] }
 0x96a   :  { %4766 = vmatprep.subr.bf16.mxu0 %v4166_v52  ;;  %5094 = vmatprep.subr.bf16.mxu1 %v4168_v9  ;;  %v4231_v52 = vld [vmem:[#allocation5 + $0x1750] sm:$0xff]  ;;  %v4238_v9 = vld [vmem:[#allocation5 + $0x1788] sm:$0xff] }
 0x96d   :  { %4767 = vmatpush1.bf16.msra.mxu0 %v4165_v10  ;;  %5095 = vmatpush1.bf16.msra.mxu1 %v4167_v23  ;;  %v4240_v10 = vld [vmem:[#allocation5 + $0x1798] sm:$0xff]  ;;  %v4237_v23 = vld [vmem:[#allocation5 + $0x1780] sm:$0xff] }
 0x96e   :  { %4768 = vmatprep.subr.bf16.mxu0 %v4174_v5  ;;  %5096 = vmatprep.subr.bf16.mxu1 %v4176_v44  ;;  %v4239_v5 = vld [vmem:[#allocation5 + $0x1790] sm:$0xff]  ;;  %v4246_v44 = vld [vmem:[#allocation5 + $0x17c8] sm:$0xff] }
 0x971   :  { %4769 = vmatpush1.bf16.msra.mxu0 %v4173_v36  ;;  %5097 = vmatpush1.bf16.msra.mxu1 %v4175_v48  ;;  %v4248_v36 = vld [vmem:[#allocation5 + $0x17d8] sm:$0xff]  ;;  %v4245_v48 = vld [vmem:[#allocation5 + $0x17c0] sm:$0xff] }
 0x972   :  { %4770 = vmatprep.subr.bf16.mxu0 %v4182_v61  ;;  %5098 = vmatprep.subr.bf16.mxu1 %v4184_v15  ;;  %v4247_v61 = vld [vmem:[#allocation5 + $0x17d0] sm:$0xff]  ;;  %v4254_v15 = vld [vmem:[#allocation5 + $0x1808] sm:$0xff] }
 0x975   :  { %4771 = vmatpush1.bf16.msra.mxu0 %v4181_v18  ;;  %5099 = vmatpush1.bf16.msra.mxu1 %v4183_v43  ;;  %v4256_v18 = vld [vmem:[#allocation5 + $0x1818] sm:$0xff]  ;;  %v7658_v43 = vpack.c.bf16 %v3459_v20, %v3459_v20  ;;  %v4263_v20 = vld [vmem:[#allocation5 + $0x1850] sm:$0xff] }
 0x976   :  { %4772 = vmatprep.subr.bf16.mxu0 %v4190_v27  ;;  %5100 = vmatprep.subr.bf16.mxu1 %v4192_v28  ;;  %v4253_v27 = vld [vmem:[#allocation5 + $0x1800] sm:$0xff]  ;;  %v4255_v28 = vld [vmem:[#allocation5 + $0x1810] sm:$0xff] }
 0x979   :  { %4773 = vmatpush1.bf16.msra.mxu0 %v4189_v29  ;;  %5101 = vmatpush1.bf16.msra.mxu1 %v4191_v45  ;;  %v4262_v29 = vld [vmem:[#allocation5 + $0x1848] sm:$0xff]  ;;  %v4264_v45 = vld [vmem:[#allocation5 + $0x1858] sm:$0xff] }
 0x97a   :  { %4774 = vmatprep.subr.bf16.mxu0 %v4198_v19  ;;  %5102 = vmatprep.subr.bf16.mxu1 %v4200_v31  ;;  %v7663_v19 = vpack.c.bf16 %v3462_v24, %v3462_v24  ;;  %v4270_v31 = vld [vmem:[#allocation5 + $0x1888] sm:$0xff]  ;;  %v4271_v24 = vld [vmem:[#allocation5 + $0x1890] sm:$0xff] }
 0x97d   :  { %4775 = vmatpush1.bf16.msra.mxu0 %v4197_v46  ;;  %5103 = vmatpush1.bf16.msra.mxu1 %v4199_v11  ;;  %v4272_v46 = vld [vmem:[#allocation5 + $0x1898] sm:$0xff]  ;;  %v4278_v11 = vld [vmem:[#allocation5 + $0x18c8] sm:$0xff] }
 0x97e   :  { %4776 = vmatprep.subr.bf16.mxu0 %v4206_v35  ;;  %5104 = vmatprep.subr.bf16.mxu1 %v4208_v47  ;;  %v4280_v35 = vld [vmem:[#allocation5 + $0x18d8] sm:$0xff]  ;;  %v4277_v47 = vld [vmem:[#allocation5 + $0x18c0] sm:$0xff] }
 0x981   :  { %4777 = vmatpush1.bf16.msra.mxu0 %v4205_v51  ;;  %5105 = vmatpush1.bf16.msra.mxu1 %v4207_v56  ;;  %v4279_v51 = vld [vmem:[#allocation5 + $0x18d0] sm:$0xff]  ;;  %v4286_v56 = vld [vmem:[#allocation5 + $0x1908] sm:$0xff] }
 0x982   :  { %4778 = vmatprep.subr.bf16.mxu0 %v4214_v62  ;;  %5106 = vmatprep.subr.bf16.mxu1 %v4216_v2  ;;  %v4288_v62 = vld [vmem:[#allocation5 + $0x1918] sm:$0xff]  ;;  %v4285_v2 = vld [vmem:[#allocation5 + $0x1900] sm:$0xff] }
 0x985   :  { %4779 = vmatpush1.bf16.msra.mxu0 %v4213_v34  ;;  %5107 = vmatpush1.bf16.msra.mxu1 %v4215_v32  ;;  %v4287_v34 = vld [vmem:[#allocation5 + $0x1910] sm:$0xff]  ;;  %v4294_v32 = vld [vmem:[#allocation5 + $0x1948] sm:$0xff] }
 0x986   :  { %4780 = vmatprep.subr.bf16.mxu0 %v4222_v1  ;;  %5108 = vmatprep.subr.bf16.mxu1 %v4224_v49  ;;  %v4296_v1 = vld [vmem:[#allocation5 + $0x1958] sm:$0xff]  ;;  %v4293_v49 = vld [vmem:[#allocation5 + $0x1940] sm:$0xff] }
 0x989   :  { %4781 = vmatpush1.bf16.msra.mxu0 %v4221_v33  ;;  %5109 = vmatpush1.bf16.msra.mxu1 %v4223_v54  ;;  %v4295_v33 = vld [vmem:[#allocation5 + $0x1950] sm:$0xff]  ;;  %v4302_v54 = vld [vmem:[#allocation5 + $0x1988] sm:$0xff] }
 0x98a   :  { %4782 = vmatprep.subr.bf16.mxu0 %v4230_v13  ;;  %5110 = vmatprep.subr.bf16.mxu1 %v4232_v50  ;;  %v4304_v13 = vld [vmem:[#allocation5 + $0x1998] sm:$0xff]  ;;  %v4301_v50 = vld [vmem:[#allocation5 + $0x1980] sm:$0xff] }
 0x98d   :  { %4783 = vmatpush1.bf16.msra.mxu0 %v4229_v3  ;;  %5111 = vmatpush1.bf16.msra.mxu1 %v4231_v52  ;;  %v4303_v3 = vld [vmem:[#allocation5 + $0x1990] sm:$0xff]  ;;  %v4310_v52 = vld [vmem:[#allocation5 + $0x19c8] sm:$0xff] }
 0x98e   :  { %4784 = vmatprep.subr.bf16.mxu0 %v4238_v9  ;;  %5112 = vmatprep.subr.bf16.mxu1 %v4240_v10  ;;  %v4312_v9 = vld [vmem:[#allocation5 + $0x19d8] sm:$0xff]  ;;  %v4309_v10 = vld [vmem:[#allocation5 + $0x19c0] sm:$0xff] }
 0x991   :  { %4785 = vmatpush1.bf16.msra.mxu0 %v4237_v23  ;;  %5113 = vmatpush1.bf16.msra.mxu1 %v4239_v5  ;;  %v4311_v23 = vld [vmem:[#allocation5 + $0x19d0] sm:$0xff]  ;;  %v4318_v5 = vld [vmem:[#allocation5 + $0x1a08] sm:$0xff] }
 0x992   :  { %4786 = vmatprep.subr.bf16.mxu0 %v4246_v44  ;;  %5114 = vmatprep.subr.bf16.mxu1 %v4248_v36  ;;  %v4320_v44 = vld [vmem:[#allocation5 + $0x1a18] sm:$0xff]  ;;  %v4317_v36 = vld [vmem:[#allocation5 + $0x1a00] sm:$0xff] }
 0x995   :  { %4787 = vmatpush1.bf16.msra.mxu0 %v4245_v48  ;;  %5115 = vmatpush1.bf16.msra.mxu1 %v4247_v61  ;;  %v4319_v48 = vld [vmem:[#allocation5 + $0x1a10] sm:$0xff]  ;;  %v4326_v61 = vld [vmem:[#allocation5 + $0x1a48] sm:$0xff] }
 0x996   :  { %4797 = vmatprep.subr.bf16.mxu0 %v4254_v15  ;;  %5125 = vmatprep.subr.bf16.mxu1 %v4256_v18  ;;  %v4328_v15 = vld [vmem:[#allocation5 + $0x1a58] sm:$0xff]  ;;  %v4325_v18 = vld [vmem:[#allocation5 + $0x1a40] sm:$0xff] }
 0x998   :  { %4789 = vmatmul.mubr.bf16.vlgmr.msra.gmra.mrb[28].mxu0 %v7658_v43  ;;  %5117 = vmatmul.mubr.bf16.vlgmr.msra.gmra.mrb[28].mxu1 %v7658_v43 }
 0x999   :  { %4798 = vmatpush1.bf16.msra.mxu0 %v4253_v27  ;;  %5126 = vmatpush1.bf16.msra.mxu1 %v4255_v28  ;;  %v4327_v27 = vld [vmem:[#allocation5 + $0x1a50] sm:$0xff]  ;;  %v4334_v28 = vld [vmem:[#allocation5 + $0x1a88] sm:$0xff] }
 0x99a   :  { %4799 = vmatprep.subr.bf16.mxu0 %v4262_v29  ;;  %5127 = vmatprep.subr.bf16.mxu1 %v4264_v45  ;;  %v4336_v29 = vld [vmem:[#allocation5 + $0x1a98] sm:$0xff]  ;;  %v4333_v45 = vld [vmem:[#allocation5 + $0x1a80] sm:$0xff] }
 0x99b   :  { %4829 = vmatprep.mubr.bf16.mxu0 %v7663_v19  ;;  %5157 = vmatprep.mubr.bf16.mxu1 %v7663_v19 }
 0x99d   :  { %4800 = vmatpush1.bf16.msra.mxu0 %v4261_v22  ;;  %5128 = vmatpush1.bf16.msra.mxu1 %v4263_v20  ;;  %v4335_v22 = vld [vmem:[#allocation5 + $0x1a90] sm:$0xff]  ;;  %v4342_v20 = vld [vmem:[#allocation5 + $0x1ac8] sm:$0xff] }
 0x99e   :  { %4801 = vmatprep.subr.bf16.mxu0 %v4270_v31  ;;  %5129 = vmatprep.subr.bf16.mxu1 %v4272_v46  ;;  %v4344_v31 = vld [vmem:[#allocation5 + $0x1ad8] sm:$0xff]  ;;  %v4341_v46 = vld [vmem:[#allocation5 + $0x1ac0] sm:$0xff] }
 0x9a1   :  { %4802 = vmatpush1.bf16.msra.mxu0 %v4269_v14  ;;  %5130 = vmatpush1.bf16.msra.mxu1 %v4271_v24  ;;  %v4343_v14 = vld [vmem:[#allocation5 + $0x1ad0] sm:$0xff]  ;;  %v4350_v24 = vld [vmem:[#allocation5 + $0x1b08] sm:$0xff] }
 0x9a2   :  { %4803 = vmatprep.subr.bf16.mxu0 %v4278_v11  ;;  %5131 = vmatprep.subr.bf16.mxu1 %v4280_v35  ;;  %v4352_v11 = vld [vmem:[#allocation5 + $0x1b18] sm:$0xff]  ;;  %v4349_v35 = vld [vmem:[#allocation5 + $0x1b00] sm:$0xff] }
 0x9a5   :  { %4804 = vmatpush1.bf16.msra.mxu0 %v4277_v47  ;;  %5132 = vmatpush1.bf16.msra.mxu1 %v4279_v51  ;;  %v4351_v47 = vld [vmem:[#allocation5 + $0x1b10] sm:$0xff]  ;;  %v4358_v51 = vld [vmem:[#allocation5 + $0x1b48] sm:$0xff] }
 0x9a6   :  { %4805 = vmatprep.subr.bf16.mxu0 %v4286_v56  ;;  %5133 = vmatprep.subr.bf16.mxu1 %v4288_v62  ;;  %v4360_v56 = vld [vmem:[#allocation5 + $0x1b58] sm:$0xff]  ;;  %v4357_v62 = vld [vmem:[#allocation5 + $0x1b40] sm:$0xff] }
 0x9a9   :  { %4806 = vmatpush1.bf16.msra.mxu0 %v4285_v2  ;;  %5134 = vmatpush1.bf16.msra.mxu1 %v4287_v34  ;;  %v4359_v2 = vld [vmem:[#allocation5 + $0x1b50] sm:$0xff]  ;;  %v4366_v34 = vld [vmem:[#allocation5 + $0x1b88] sm:$0xff] }
 0x9aa   :  { %4807 = vmatprep.subr.bf16.mxu0 %v4294_v32  ;;  %5135 = vmatprep.subr.bf16.mxu1 %v4296_v1  ;;  %v4368_v32 = vld [vmem:[#allocation5 + $0x1b98] sm:$0xff]  ;;  %v4365_v1 = vld [vmem:[#allocation5 + $0x1b80] sm:$0xff] }
 0x9ad   :  { %4808 = vmatpush1.bf16.msra.mxu0 %v4293_v49  ;;  %5136 = vmatpush1.bf16.msra.mxu1 %v4295_v33  ;;  %v4367_v49 = vld [vmem:[#allocation5 + $0x1b90] sm:$0xff]  ;;  %v4374_v33 = vld [vmem:[#allocation5 + $0x1bc8] sm:$0xff] }
 0x9ae   :  { %4809 = vmatprep.subr.bf16.mxu0 %v4302_v54  ;;  %5137 = vmatprep.subr.bf16.mxu1 %v4304_v13  ;;  %v4376_v54 = vld [vmem:[#allocation5 + $0x1bd8] sm:$0xff]  ;;  %v4373_v13 = vld [vmem:[#allocation5 + $0x1bc0] sm:$0xff] }
 0x9b1   :  { %4810 = vmatpush1.bf16.msra.mxu0 %v4301_v50  ;;  %5138 = vmatpush1.bf16.msra.mxu1 %v4303_v3  ;;  %v4375_v50 = vld [vmem:[#allocation5 + $0x1bd0] sm:$0xff]  ;;  %v4382_v3 = vld [vmem:[#allocation5 + $0x1c08] sm:$0xff] }
 0x9b2   :  { %4811 = vmatprep.subr.bf16.mxu0 %v4310_v52  ;;  %5139 = vmatprep.subr.bf16.mxu1 %v4312_v9  ;;  %v4384_v52 = vld [vmem:[#allocation5 + $0x1c18] sm:$0xff]  ;;  %v7672_v9 = vpack.c.bf16 %v3461_v57, %v3461_v57  ;;  %v4391_v57 = vld [vmem:[#allocation5 + $0x1c50] sm:$0xff] }
 0x9b5   :  { %4812 = vmatpush1.bf16.msra.mxu0 %v4309_v10  ;;  %5140 = vmatpush1.bf16.msra.mxu1 %v4311_v23  ;;  %v4381_v10 = vld [vmem:[#allocation5 + $0x1c00] sm:$0xff]  ;;  %v4383_v23 = vld [vmem:[#allocation5 + $0x1c10] sm:$0xff] }
 0x9b6   :  { %4813 = vmatprep.subr.bf16.mxu0 %v4318_v5  ;;  %5141 = vmatprep.subr.bf16.mxu1 %v4320_v44  ;;  %v4390_v5 = vld [vmem:[#allocation5 + $0x1c48] sm:$0xff]  ;;  %v4392_v44 = vld [vmem:[#allocation5 + $0x1c58] sm:$0xff] }
 0x9b9   :  { %4814 = vmatpush1.bf16.msra.mxu0 %v4317_v36  ;;  %5142 = vmatpush1.bf16.msra.mxu1 %v4319_v48  ;;  %v7677_v36 = vpack.c.bf16 %v3464_v25, %v3464_v25  ;;  %v4398_v48 = vld [vmem:[#allocation5 + $0x1c88] sm:$0xff]  ;;  %v4399_v25 = vld [vmem:[#allocation5 + $0x1c90] sm:$0xff] }
 0x9ba   :  { %4815 = vmatprep.subr.bf16.mxu0 %v4326_v61  ;;  %5143 = vmatprep.subr.bf16.mxu1 %v4328_v15  ;;  %v4400_v61 = vld [vmem:[#allocation5 + $0x1c98] sm:$0xff]  ;;  %v4406_v15 = vld [vmem:[#allocation5 + $0x1cc8] sm:$0xff] }
 0x9bd   :  { %4816 = vmatpush1.bf16.msra.mxu0 %v4325_v18  ;;  %5144 = vmatpush1.bf16.msra.mxu1 %v4327_v27  ;;  %v4408_v18 = vld [vmem:[#allocation5 + $0x1cd8] sm:$0xff]  ;;  %v4405_v27 = vld [vmem:[#allocation5 + $0x1cc0] sm:$0xff] }
 0x9be   :  { %4817 = vmatprep.subr.bf16.mxu0 %v4334_v28  ;;  %5145 = vmatprep.subr.bf16.mxu1 %v4336_v29  ;;  %v4407_v28 = vld [vmem:[#allocation5 + $0x1cd0] sm:$0xff]  ;;  %v4414_v29 = vld [vmem:[#allocation5 + $0x1d08] sm:$0xff] }
 0x9c1   :  { %4818 = vmatpush1.bf16.msra.mxu0 %v4333_v45  ;;  %5146 = vmatpush1.bf16.msra.mxu1 %v4335_v22  ;;  %v4416_v45 = vld [vmem:[#allocation5 + $0x1d18] sm:$0xff]  ;;  %v4413_v22 = vld [vmem:[#allocation5 + $0x1d00] sm:$0xff] }
 0x9c2   :  { %4819 = vmatprep.subr.bf16.mxu0 %v4342_v20  ;;  %5147 = vmatprep.subr.bf16.mxu1 %v4344_v31  ;;  %v4415_v20 = vld [vmem:[#allocation5 + $0x1d10] sm:$0xff]  ;;  %v4422_v31 = vld [vmem:[#allocation5 + $0x1d48] sm:$0xff] }
 0x9c5   :  { %4820 = vmatpush1.bf16.msra.mxu0 %v4341_v46  ;;  %5148 = vmatpush1.bf16.msra.mxu1 %v4343_v14  ;;  %v4424_v46 = vld [vmem:[#allocation5 + $0x1d58] sm:$0xff]  ;;  %v4421_v14 = vld [vmem:[#allocation5 + $0x1d40] sm:$0xff] }
 0x9c6   :  { %4821 = vmatprep.subr.bf16.mxu0 %v4350_v24  ;;  %5149 = vmatprep.subr.bf16.mxu1 %v4352_v11  ;;  %v4423_v24 = vld [vmem:[#allocation5 + $0x1d50] sm:$0xff]  ;;  %v4430_v11 = vld [vmem:[#allocation5 + $0x1d88] sm:$0xff] }
 0x9c9   :  { %4822 = vmatpush1.bf16.msra.mxu0 %v4349_v35  ;;  %5150 = vmatpush1.bf16.msra.mxu1 %v4351_v47  ;;  %v4432_v35 = vld [vmem:[#allocation5 + $0x1d98] sm:$0xff]  ;;  %v4429_v47 = vld [vmem:[#allocation5 + $0x1d80] sm:$0xff] }
 0x9ca   :  { %4823 = vmatprep.subr.bf16.mxu0 %v4358_v51  ;;  %5151 = vmatprep.subr.bf16.mxu1 %v4360_v56  ;;  %v4431_v51 = vld [vmem:[#allocation5 + $0x1d90] sm:$0xff]  ;;  %v4438_v56 = vld [vmem:[#allocation5 + $0x1dc8] sm:$0xff] }
 0x9cd   :  { %4824 = vmatpush1.bf16.msra.mxu0 %v4357_v62  ;;  %5152 = vmatpush1.bf16.msra.mxu1 %v4359_v2  ;;  %v4440_v62 = vld [vmem:[#allocation5 + $0x1dd8] sm:$0xff]  ;;  %v4437_v2 = vld [vmem:[#allocation5 + $0x1dc0] sm:$0xff] }
 0x9ce   :  { %4825 = vmatprep.subr.bf16.mxu0 %v4366_v34  ;;  %5153 = vmatprep.subr.bf16.mxu1 %v4368_v32  ;;  %v4439_v34 = vld [vmem:[#allocation5 + $0x1dd0] sm:$0xff]  ;;  %v4446_v32 = vld [vmem:[#allocation5 + $0x1e08] sm:$0xff] }
 0x9d1   :  { %4826 = vmatpush1.bf16.msra.mxu0 %v4365_v1  ;;  %5154 = vmatpush1.bf16.msra.mxu1 %v4367_v49  ;;  %v4448_v1 = vld [vmem:[#allocation5 + $0x1e18] sm:$0xff]  ;;  %v4445_v49 = vld [vmem:[#allocation5 + $0x1e00] sm:$0xff] }
 0x9d2   :  { %4827 = vmatprep.subr.bf16.mxu0 %v4374_v33  ;;  %5155 = vmatprep.subr.bf16.mxu1 %v4376_v54  ;;  %v4447_v33 = vld [vmem:[#allocation5 + $0x1e10] sm:$0xff]  ;;  %v4454_v54 = vld [vmem:[#allocation5 + $0x1e48] sm:$0xff] }
 0x9d5   :  { %4828 = vmatpush1.bf16.msra.mxu0 %v4373_v13  ;;  %5156 = vmatpush1.bf16.msra.mxu1 %v4375_v50  ;;  %v4456_v13 = vld [vmem:[#allocation5 + $0x1e58] sm:$0xff]  ;;  %v4453_v50 = vld [vmem:[#allocation5 + $0x1e40] sm:$0xff] }
 0x9d6   :  { %4838 = vmatprep.subr.bf16.mxu0 %v4382_v3  ;;  %5166 = vmatprep.subr.bf16.mxu1 %v4384_v52  ;;  %v4455_v3 = vld [vmem:[#allocation5 + $0x1e50] sm:$0xff]  ;;  %v4462_v52 = vld [vmem:[#allocation5 + $0x1e88] sm:$0xff] }
 0x9d8   :  { %4830 = vmatmul.mubr.bf16.vlgmr.msra.gmra.mrb[28].mxu0 %v7672_v9  ;;  %5158 = vmatmul.mubr.bf16.vlgmr.msra.gmra.mrb[28].mxu1 %v7672_v9 }
 0x9d9   :  { %4839 = vmatpush1.bf16.msra.mxu0 %v4381_v10  ;;  %5167 = vmatpush1.bf16.msra.mxu1 %v4383_v23  ;;  %v4464_v10 = vld [vmem:[#allocation5 + $0x1e98] sm:$0xff]  ;;  %v4461_v23 = vld [vmem:[#allocation5 + $0x1e80] sm:$0xff] }
 0x9da   :  { %4840 = vmatprep.subr.bf16.mxu0 %v4390_v5  ;;  %5168 = vmatprep.subr.bf16.mxu1 %v4392_v44  ;;  %v4463_v5 = vld [vmem:[#allocation5 + $0x1e90] sm:$0xff]  ;;  %v4470_v44 = vld [vmem:[#allocation5 + $0x1ec8] sm:$0xff] }
 0x9db   :  { %4870 = vmatprep.mubr.bf16.mxu0 %v7677_v36  ;;  %5198 = vmatprep.mubr.bf16.mxu1 %v7677_v36 }
 0x9dd   :  { %4841 = vmatpush1.bf16.msra.mxu0 %v4389_v12  ;;  %5169 = vmatpush1.bf16.msra.mxu1 %v4391_v57  ;;  %v4472_v12 = vld [vmem:[#allocation5 + $0x1ed8] sm:$0xff]  ;;  %v4469_v57 = vld [vmem:[#allocation5 + $0x1ec0] sm:$0xff] }
 0x9de   :  { %4842 = vmatprep.subr.bf16.mxu0 %v4398_v48  ;;  %5170 = vmatprep.subr.bf16.mxu1 %v4400_v61  ;;  %v4471_v48 = vld [vmem:[#allocation5 + $0x1ed0] sm:$0xff]  ;;  %v4478_v61 = vld [vmem:[#allocation5 + $0x1f08] sm:$0xff] }
 0x9e1   :  { %4843 = vmatpush1.bf16.msra.mxu0 %v4397_v16  ;;  %5171 = vmatpush1.bf16.msra.mxu1 %v4399_v25  ;;  %v4480_v16 = vld [vmem:[#allocation5 + $0x1f18] sm:$0xff]  ;;  %v4477_v25 = vld [vmem:[#allocation5 + $0x1f00] sm:$0xff] }
 0x9e2   :  { %4844 = vmatprep.subr.bf16.mxu0 %v4406_v15  ;;  %5172 = vmatprep.subr.bf16.mxu1 %v4408_v18  ;;  %v4479_v15 = vld [vmem:[#allocation5 + $0x1f10] sm:$0xff]  ;;  %v4486_v18 = vld [vmem:[#allocation5 + $0x1f48] sm:$0xff] }
 0x9e5   :  { %4845 = vmatpush1.bf16.msra.mxu0 %v4405_v27  ;;  %5173 = vmatpush1.bf16.msra.mxu1 %v4407_v28  ;;  %v4488_v27 = vld [vmem:[#allocation5 + $0x1f58] sm:$0xff]  ;;  %v4485_v28 = vld [vmem:[#allocation5 + $0x1f40] sm:$0xff] }
 0x9e6   :  { %4846 = vmatprep.subr.bf16.mxu0 %v4414_v29  ;;  %5174 = vmatprep.subr.bf16.mxu1 %v4416_v45  ;;  %v4487_v29 = vld [vmem:[#allocation5 + $0x1f50] sm:$0xff]  ;;  %v4494_v45 = vld [vmem:[#allocation5 + $0x1f88] sm:$0xff] }
 0x9e9   :  { %4847 = vmatpush1.bf16.msra.mxu0 %v4413_v22  ;;  %5175 = vmatpush1.bf16.msra.mxu1 %v4415_v20  ;;  %v4496_v22 = vld [vmem:[#allocation5 + $0x1f98] sm:$0xff]  ;;  %v4493_v20 = vld [vmem:[#allocation5 + $0x1f80] sm:$0xff] }
 0x9ea   :  { %4848 = vmatprep.subr.bf16.mxu0 %v4422_v31  ;;  %5176 = vmatprep.subr.bf16.mxu1 %v4424_v46  ;;  %v4495_v31 = vld [vmem:[#allocation5 + $0x1f90] sm:$0xff]  ;;  %v4502_v46 = vld [vmem:[#allocation5 + $0x1fc8] sm:$0xff] }
 0x9ed   :  { %4849 = vmatpush1.bf16.msra.mxu0 %v4421_v14  ;;  %5177 = vmatpush1.bf16.msra.mxu1 %v4423_v24  ;;  %v4504_v14 = vld [vmem:[#allocation5 + $0x1fd8] sm:$0xff]  ;;  %v4501_v24 = vld [vmem:[#allocation5 + $0x1fc0] sm:$0xff] }
 0x9ee   :  { %4850 = vmatprep.subr.bf16.mxu0 %v4430_v11  ;;  %5178 = vmatprep.subr.bf16.mxu1 %v4432_v35  ;;  %v4503_v11 = vld [vmem:[#allocation5 + $0x1fd0] sm:$0xff]  ;;  %v3490_v35 = vld [vmem:[#allocation5 + $0x28] sm:$0xff] }
 0x9f1   :  { %4851 = vmatpush1.bf16.msra.mxu0 %v4429_v47  ;;  %5179 = vmatpush1.bf16.msra.mxu1 %v4431_v51  ;;  %v3492_v47 = vld [vmem:[#allocation5 + $0x38] sm:$0xff]  ;;  %v7686_v51 = vpack.c.bf16 %v3463_v53, %v3463_v53  ;;  %v3506_v53 = vld [vmem:[#allocation5 + $0xa8] sm:$0xff] }
 0x9f2   :  { %4852 = vmatprep.subr.bf16.mxu0 %v4438_v56  ;;  %5180 = vmatprep.subr.bf16.mxu1 %v4440_v62  ;;  %v3489_v56 = vld [vmem:[#allocation5 + $0x20] sm:$0xff]  ;;  %v3491_v62 = vld [vmem:[#allocation5 + $0x30] sm:$0xff] }
 0x9f5   :  { %4853 = vmatpush1.bf16.msra.mxu0 %v4437_v2  ;;  %5181 = vmatpush1.bf16.msra.mxu1 %v4439_v34  ;;  %v3498_v2 = vld [vmem:[#allocation5 + $0x68] sm:$0xff]  ;;  %v3500_v34 = vld [vmem:[#allocation5 + $0x78] sm:$0xff] }
 0x9f6   :  { %4854 = vmatprep.subr.bf16.mxu0 %v4446_v32  ;;  %5182 = vmatprep.subr.bf16.mxu1 %v4448_v1  ;;  %v3499_v32 = vld [vmem:[#allocation5 + $0x70] sm:$0xff]  ;;  %v3508_v1 = vld [vmem:[#allocation5 + $0xb8] sm:$0xff] }
 0x9f9   :  { %4855 = vmatpush1.bf16.msra.mxu0 %v4445_v49  ;;  %5183 = vmatpush1.bf16.msra.mxu1 %v4447_v33  ;;  %v3505_v49 = vld [vmem:[#allocation5 + $0xa0] sm:$0xff]  ;;  %v3507_v33 = vld [vmem:[#allocation5 + $0xb0] sm:$0xff] }
 0x9fa   :  { %4856 = vmatprep.subr.bf16.mxu0 %v4454_v54  ;;  %5184 = vmatprep.subr.bf16.mxu1 %v4456_v13  ;;  %v3514_v54 = vld [vmem:[#allocation5 + $0xe8] sm:$0xff]  ;;  %v3516_v13 = vld [vmem:[#allocation5 + $0xf8] sm:$0xff] }
 0x9fd   :  { %4857 = vmatpush1.bf16.msra.mxu0 %v4453_v50  ;;  %5185 = vmatpush1.bf16.msra.mxu1 %v4455_v3  ;;  %v3513_v50 = vld [vmem:[#allocation5 + $0xe0] sm:$0xff]  ;;  %v3515_v3 = vld [vmem:[#allocation5 + $0xf0] sm:$0xff] }
 0x9fe   :  { %4858 = vmatprep.subr.bf16.mxu0 %v4462_v52  ;;  %5186 = vmatprep.subr.bf16.mxu1 %v4464_v10  ;;  %v3522_v52 = vld [vmem:[#allocation5 + $0x128] sm:$0xff]  ;;  %v3524_v10 = vld [vmem:[#allocation5 + $0x138] sm:$0xff] }
 0xa01   :  { %4859 = vmatpush1.bf16.msra.mxu0 %v4461_v23  ;;  %5187 = vmatpush1.bf16.msra.mxu1 %v4463_v5  ;;  %v3523_v23 = vld [vmem:[#allocation5 + $0x130] sm:$0xff]  ;;  %v3530_v5 = vld [vmem:[#allocation5 + $0x168] sm:$0xff] }
 0xa02   :  { %4860 = vmatprep.subr.bf16.mxu0 %v4470_v44  ;;  %5188 = vmatprep.subr.bf16.mxu1 %v4472_v12  ;;  %v3532_v44 = vld [vmem:[#allocation5 + $0x178] sm:$0xff]  ;;  %v3529_v12 = vld [vmem:[#allocation5 + $0x160] sm:$0xff] }
 0xa05   :  { %4861 = vmatpush1.bf16.msra.mxu0 %v4469_v57  ;;  %5189 = vmatpush1.bf16.msra.mxu1 %v4471_v48  ;;  %v3531_v57 = vld [vmem:[#allocation5 + $0x170] sm:$0xff]  ;;  %v3538_v48 = vld [vmem:[#allocation5 + $0x1a8] sm:$0xff] }
 0xa06   :  { %4862 = vmatprep.subr.bf16.mxu0 %v4478_v61  ;;  %5190 = vmatprep.subr.bf16.mxu1 %v4480_v16  ;;  %v3540_v61 = vld [vmem:[#allocation5 + $0x1b8] sm:$0xff]  ;;  %v3537_v16 = vld [vmem:[#allocation5 + $0x1a0] sm:$0xff] }
 0xa09   :  { %4863 = vmatpush1.bf16.msra.mxu0 %v4477_v25  ;;  %5191 = vmatpush1.bf16.msra.mxu1 %v4479_v15  ;;  %v3539_v25 = vld [vmem:[#allocation5 + $0x1b0] sm:$0xff]  ;;  %v3546_v15 = vld [vmem:[#allocation5 + $0x1e8] sm:$0xff] }
 0xa0a   :  { %4864 = vmatprep.subr.bf16.mxu0 %v4486_v18  ;;  %5192 = vmatprep.subr.bf16.mxu1 %v4488_v27  ;;  %v3548_v18 = vld [vmem:[#allocation5 + $0x1f8] sm:$0xff]  ;;  %v3545_v27 = vld [vmem:[#allocation5 + $0x1e0] sm:$0xff] }
 0xa0d   :  { %4865 = vmatpush1.bf16.msra.mxu0 %v4485_v28  ;;  %5193 = vmatpush1.bf16.msra.mxu1 %v4487_v29  ;;  %v3547_v28 = vld [vmem:[#allocation5 + $0x1f0] sm:$0xff]  ;;  %v3554_v29 = vld [vmem:[#allocation5 + $0x228] sm:$0xff] }
 0xa0e   :  { %4866 = vmatprep.subr.bf16.mxu0 %v4494_v45  ;;  %5194 = vmatprep.subr.bf16.mxu1 %v4496_v22  ;;  %v3556_v45 = vld [vmem:[#allocation5 + $0x238] sm:$0xff]  ;;  %v3553_v22 = vld [vmem:[#allocation5 + $0x220] sm:$0xff] }
 0xa11   :  { %4867 = vmatpush1.bf16.msra.mxu0 %v4493_v20  ;;  %5195 = vmatpush1.bf16.msra.mxu1 %v4495_v31  ;;  %v3555_v20 = vld [vmem:[#allocation5 + $0x230] sm:$0xff]  ;;  %v3562_v31 = vld [vmem:[#allocation5 + $0x268] sm:$0xff] }
 0xa12   :  { %4868 = vmatprep.subr.bf16.mxu0 %v4502_v46  ;;  %5196 = vmatprep.subr.bf16.mxu1 %v4504_v14  ;;  %v3564_v46 = vld [vmem:[#allocation5 + $0x278] sm:$0xff]  ;;  %v3561_v14 = vld [vmem:[#allocation5 + $0x260] sm:$0xff] }
 0xa15   :  { %4869 = vmatpush1.bf16.msra.mxu0 %v4501_v24  ;;  %5197 = vmatpush1.bf16.msra.mxu1 %v4503_v11  ;;  %v3563_v24 = vld [vmem:[#allocation5 + $0x270] sm:$0xff]  ;;  %v3570_v11 = vld [vmem:[#allocation5 + $0x2a8] sm:$0xff] }
 0xa16   :  { %5207 = vmatprep.subr.bf16.mxu0 %v3490_v35  ;;  %5535 = vmatprep.subr.bf16.mxu1 %v3492_v47  ;;  %v3572_v35 = vld [vmem:[#allocation5 + $0x2b8] sm:$0xff]  ;;  %v3569_v47 = vld [vmem:[#allocation5 + $0x2a0] sm:$0xff] }
 0xa18   :  { %4871 = vmatmul.mubr.bf16.vlgmr.msra.gmra.mrb[28].mxu0 %v7686_v51  ;;  %5199 = vmatmul.mubr.bf16.vlgmr.msra.gmra.mrb[28].mxu1 %v7686_v51 }
 0xa19   :  { %5208 = vmatpush1.bf16.msra.mxu0 %v3489_v56  ;;  %5536 = vmatpush1.bf16.msra.mxu1 %v3491_v62  ;;  %v3571_v56 = vld [vmem:[#allocation5 + $0x2b0] sm:$0xff]  ;;  %v3578_v62 = vld [vmem:[#allocation5 + $0x2e8] sm:$0xff] }
 0xa1a   :  { %5209 = vmatprep.subr.bf16.mxu0 %v3498_v2  ;;  %5537 = vmatprep.subr.bf16.mxu1 %v3500_v34  ;;  %v3580_v2 = vld [vmem:[#allocation5 + $0x2f8] sm:$0xff]  ;;  %v3577_v34 = vld [vmem:[#allocation5 + $0x2e0] sm:$0xff] }
 0xa1b   :  { %5239 = vmatprep.mubr.bf16.mxu0 %v7581_v26  ;;  %5567 = vmatprep.mubr.bf16.mxu1 %v7581_v26  ;;  %v3521_v26 = vld [vmem:[#allocation5 + $0x120] sm:$0xff] }
 0xa1d   :  { %5210 = vmatpush1.bf16.msra.mxu0 %v3497_v8  ;;  %5538 = vmatpush1.bf16.msra.mxu1 %v3499_v32  ;;  %v3579_v8 = vld [vmem:[#allocation5 + $0x2f0] sm:$0xff]  ;;  %v3586_v32 = vld [vmem:[#allocation5 + $0x328] sm:$0xff] }
 0xa1e   :  { %5211 = vmatprep.subr.bf16.mxu0 %v3506_v53  ;;  %5539 = vmatprep.subr.bf16.mxu1 %v3508_v1  ;;  %v3588_v53 = vld [vmem:[#allocation5 + $0x338] sm:$0xff]  ;;  %v3585_v1 = vld [vmem:[#allocation5 + $0x320] sm:$0xff] }
 0xa21   :  { %5212 = vmatpush1.bf16.msra.mxu0 %v3505_v49  ;;  %5540 = vmatpush1.bf16.msra.mxu1 %v3507_v33  ;;  %v3587_v49 = vld [vmem:[#allocation5 + $0x330] sm:$0xff]  ;;  %v3594_v33 = vld [vmem:[#allocation5 + $0x368] sm:$0xff] }
 0xa22   :  { %5213 = vmatprep.subr.bf16.mxu0 %v3514_v54  ;;  %5541 = vmatprep.subr.bf16.mxu1 %v3516_v13  ;;  %v3596_v54 = vld [vmem:[#allocation5 + $0x378] sm:$0xff]  ;;  %v3593_v13 = vld [vmem:[#allocation5 + $0x360] sm:$0xff] }
 0xa25   :  { %5214 = vmatpush1.bf16.msra.mxu0 %v3513_v50  ;;  %5542 = vmatpush1.bf16.msra.mxu1 %v3515_v3  ;;  %v3595_v50 = vld [vmem:[#allocation5 + $0x370] sm:$0xff]  ;;  %v3602_v3 = vld [vmem:[#allocation5 + $0x3a8] sm:$0xff] }
 0xa26   :  { %5215 = vmatprep.subr.bf16.mxu0 %v3522_v52  ;;  %5543 = vmatprep.subr.bf16.mxu1 %v3524_v10  ;;  %v3604_v52 = vld [vmem:[#allocation5 + $0x3b8] sm:$0xff]  ;;  %v3601_v10 = vld [vmem:[#allocation5 + $0x3a0] sm:$0xff] }
 0xa29   :  { %5216 = vmatpush1.bf16.msra.mxu0 %v3521_v26  ;;  %5544 = vmatpush1.bf16.msra.mxu1 %v3523_v23  ;;  %v3603_v26 = vld [vmem:[#allocation5 + $0x3b0] sm:$0xff]  ;;  %v3610_v23 = vld [vmem:[#allocation5 + $0x3e8] sm:$0xff] }
 0xa2a   :  { %5217 = vmatprep.subr.bf16.mxu0 %v3530_v5  ;;  %5545 = vmatprep.subr.bf16.mxu1 %v3532_v44  ;;  %v3612_v5 = vld [vmem:[#allocation5 + $0x3f8] sm:$0xff]  ;;  %v3609_v44 = vld [vmem:[#allocation5 + $0x3e0] sm:$0xff] }
 0xa2d   :  { %5218 = vmatpush1.bf16.msra.mxu0 %v3529_v12  ;;  %5546 = vmatpush1.bf16.msra.mxu1 %v3531_v57  ;;  %v3611_v12 = vld [vmem:[#allocation5 + $0x3f0] sm:$0xff]  ;;  %v3618_v57 = vld [vmem:[#allocation5 + $0x428] sm:$0xff] }
 0xa2e   :  { %5219 = vmatprep.subr.bf16.mxu0 %v3538_v48  ;;  %5547 = vmatprep.subr.bf16.mxu1 %v3540_v61  ;;  %v3620_v48 = vld [vmem:[#allocation5 + $0x438] sm:$0xff]  ;;  %v3617_v61 = vld [vmem:[#allocation5 + $0x420] sm:$0xff] }
 0xa31   :  { %5220 = vmatpush1.bf16.msra.mxu0 %v3537_v16  ;;  %5548 = vmatpush1.bf16.msra.mxu1 %v3539_v25  ;;  %v3619_v16 = vld [vmem:[#allocation5 + $0x430] sm:$0xff]  ;;  %v3626_v25 = vld [vmem:[#allocation5 + $0x468] sm:$0xff] }
 0xa32   :  { %5221 = vmatprep.subr.bf16.mxu0 %v3546_v15  ;;  %5549 = vmatprep.subr.bf16.mxu1 %v3548_v18  ;;  %v3628_v15 = vld [vmem:[#allocation5 + $0x478] sm:$0xff]  ;;  %v3625_v18 = vld [vmem:[#allocation5 + $0x460] sm:$0xff] }
 0xa35   :  { %5222 = vmatpush1.bf16.msra.mxu0 %v3545_v27  ;;  %5550 = vmatpush1.bf16.msra.mxu1 %v3547_v28  ;;  %v3627_v27 = vld [vmem:[#allocation5 + $0x470] sm:$0xff]  ;;  %v3634_v28 = vld [vmem:[#allocation5 + $0x4a8] sm:$0xff] }
 0xa36   :  { %5223 = vmatprep.subr.bf16.mxu0 %v3554_v29  ;;  %5551 = vmatprep.subr.bf16.mxu1 %v3556_v45  ;;  %v3636_v29 = vld [vmem:[#allocation5 + $0x4b8] sm:$0xff]  ;;  %v3633_v45 = vld [vmem:[#allocation5 + $0x4a0] sm:$0xff] }
 0xa39   :  { %5224 = vmatpush1.bf16.msra.mxu0 %v3553_v22  ;;  %5552 = vmatpush1.bf16.msra.mxu1 %v3555_v20  ;;  %v3635_v22 = vld [vmem:[#allocation5 + $0x4b0] sm:$0xff]  ;;  %v3642_v20 = vld [vmem:[#allocation5 + $0x4e8] sm:$0xff] }
 0xa3a   :  { %5225 = vmatprep.subr.bf16.mxu0 %v3562_v31  ;;  %5553 = vmatprep.subr.bf16.mxu1 %v3564_v46  ;;  %v3641_v31 = vld [vmem:[#allocation5 + $0x4e0] sm:$0xff]  ;;  %v3643_v46 = vld [vmem:[#allocation5 + $0x4f0] sm:$0xff] }
 0xa3d   :  { %5226 = vmatpush1.bf16.msra.mxu0 %v3561_v14  ;;  %5554 = vmatpush1.bf16.msra.mxu1 %v3563_v24  ;;  %v3650_v14 = vld [vmem:[#allocation5 + $0x528] sm:$0xff]  ;;  %v3652_v24 = vld [vmem:[#allocation5 + $0x538] sm:$0xff] }
 0xa3e   :  { %5227 = vmatprep.subr.bf16.mxu0 %v3570_v11  ;;  %5555 = vmatprep.subr.bf16.mxu1 %v3572_v35  ;;  %v3651_v11 = vld [vmem:[#allocation5 + $0x530] sm:$0xff]  ;;  %v3658_v35 = vld [vmem:[#allocation5 + $0x568] sm:$0xff] }
 0xa41   :  { %5228 = vmatpush1.bf16.msra.mxu0 %v3569_v47  ;;  %5556 = vmatpush1.bf16.msra.mxu1 %v3571_v56  ;;  %v3660_v47 = vld [vmem:[#allocation5 + $0x578] sm:$0xff]  ;;  %v3657_v56 = vld [vmem:[#allocation5 + $0x560] sm:$0xff] }
 0xa42   :  { %5229 = vmatprep.subr.bf16.mxu0 %v3578_v62  ;;  %5557 = vmatprep.subr.bf16.mxu1 %v3580_v2  ;;  %v3659_v62 = vld [vmem:[#allocation5 + $0x570] sm:$0xff]  ;;  %v3666_v2 = vld [vmem:[#allocation5 + $0x5a8] sm:$0xff] }
 0xa45   :  { %5230 = vmatpush1.bf16.msra.mxu0 %v3577_v34  ;;  %5558 = vmatpush1.bf16.msra.mxu1 %v3579_v8  ;;  %v3668_v34 = vld [vmem:[#allocation5 + $0x5b8] sm:$0xff]  ;;  %v3665_v8 = vld [vmem:[#allocation5 + $0x5a0] sm:$0xff] }
 0xa46   :  { %5231 = vmatprep.subr.bf16.mxu0 %v3586_v32  ;;  %5559 = vmatprep.subr.bf16.mxu1 %v3588_v53  ;;  %v3667_v32 = vld [vmem:[#allocation5 + $0x5b0] sm:$0xff]  ;;  %v3674_v53 = vld [vmem:[#allocation5 + $0x5e8] sm:$0xff] }
 0xa49   :  { %5232 = vmatpush1.bf16.msra.mxu0 %v3585_v1  ;;  %5560 = vmatpush1.bf16.msra.mxu1 %v3587_v49  ;;  %v3676_v1 = vld [vmem:[#allocation5 + $0x5f8] sm:$0xff]  ;;  %v3673_v49 = vld [vmem:[#allocation5 + $0x5e0] sm:$0xff] }
 0xa4a   :  { %5233 = vmatprep.subr.bf16.mxu0 %v3594_v33  ;;  %5561 = vmatprep.subr.bf16.mxu1 %v3596_v54  ;;  %v3675_v33 = vld [vmem:[#allocation5 + $0x5f0] sm:$0xff]  ;;  %v3682_v54 = vld [vmem:[#allocation5 + $0x628] sm:$0xff] }
 0xa4d   :  { %5234 = vmatpush1.bf16.msra.mxu0 %v3593_v13  ;;  %5562 = vmatpush1.bf16.msra.mxu1 %v3595_v50  ;;  %v3684_v13 = vld [vmem:[#allocation5 + $0x638] sm:$0xff]  ;;  %v3681_v50 = vld [vmem:[#allocation5 + $0x620] sm:$0xff] }
 0xa4e   :  { %5235 = vmatprep.subr.bf16.mxu0 %v3602_v3  ;;  %5563 = vmatprep.subr.bf16.mxu1 %v3604_v52  ;;  %v3683_v3 = vld [vmem:[#allocation5 + $0x630] sm:$0xff]  ;;  %v3690_v52 = vld [vmem:[#allocation5 + $0x668] sm:$0xff] }
 0xa51   :  { %5236 = vmatpush1.bf16.msra.mxu0 %v3601_v10  ;;  %5564 = vmatpush1.bf16.msra.mxu1 %v3603_v26  ;;  %v3692_v10 = vld [vmem:[#allocation5 + $0x678] sm:$0xff]  ;;  %v3689_v26 = vld [vmem:[#allocation5 + $0x660] sm:$0xff] }
 0xa52   :  { %5237 = vmatprep.subr.bf16.mxu0 %v3610_v23  ;;  %5565 = vmatprep.subr.bf16.mxu1 %v3612_v5  ;;  %v3691_v23 = vld [vmem:[#allocation5 + $0x670] sm:$0xff]  ;;  %v3698_v5 = vld [vmem:[#allocation5 + $0x6a8] sm:$0xff] }
 0xa55   :  { %5238 = vmatpush1.bf16.msra.mxu0 %v3609_v44  ;;  %5566 = vmatpush1.bf16.msra.mxu1 %v3611_v12  ;;  %v3700_v44 = vld [vmem:[#allocation5 + $0x6b8] sm:$0xff]  ;;  %v3697_v12 = vld [vmem:[#allocation5 + $0x6a0] sm:$0xff] }
 0xa56   :  { %5248 = vmatprep.subr.bf16.mxu0 %v3618_v57  ;;  %5576 = vmatprep.subr.bf16.mxu1 %v3620_v48  ;;  %v3699_v57 = vld [vmem:[#allocation5 + $0x6b0] sm:$0xff]  ;;  %v3706_v48 = vld [vmem:[#allocation5 + $0x6e8] sm:$0xff] }
 0xa58   :  { %5240 = vmatmul.mubr.bf16.vlgmr.msra.gmra.mrb[32].mxu0 %v7588_v6  ;;  %5568 = vmatmul.mubr.bf16.vlgmr.msra.gmra.mrb[32].mxu1 %v7588_v6  ;;  %v3644_v6 = vld [vmem:[#allocation5 + $0x4f8] sm:$0xff] }
 0xa59   :  { %5249 = vmatpush1.bf16.msra.mxu0 %v3617_v61  ;;  %5577 = vmatpush1.bf16.msra.mxu1 %v3619_v16  ;;  %v3708_v61 = vld [vmem:[#allocation5 + $0x6f8] sm:$0xff]  ;;  %v3705_v16 = vld [vmem:[#allocation5 + $0x6e0] sm:$0xff] }
 0xa5a   :  { %5250 = vmatprep.subr.bf16.mxu0 %v3626_v25  ;;  %5578 = vmatprep.subr.bf16.mxu1 %v3628_v15  ;;  %v3707_v25 = vld [vmem:[#allocation5 + $0x6f0] sm:$0xff]  ;;  %v3714_v15 = vld [vmem:[#allocation5 + $0x728] sm:$0xff] }
 0xa5b   :  { %5280 = vmatprep.mubr.bf16.mxu0 %v7593_v17  ;;  %5608 = vmatprep.mubr.bf16.mxu1 %v7593_v17  ;;  %v3649_v17 = vld [vmem:[#allocation5 + $0x520] sm:$0xff] }
 0xa5d   :  { %5251 = vmatpush1.bf16.msra.mxu0 %v3625_v18  ;;  %5579 = vmatpush1.bf16.msra.mxu1 %v3627_v27  ;;  %v3716_v18 = vld [vmem:[#allocation5 + $0x738] sm:$0xff]  ;;  %v3713_v27 = vld [vmem:[#allocation5 + $0x720] sm:$0xff] }
 0xa5e   :  { %5252 = vmatprep.subr.bf16.mxu0 %v3634_v28  ;;  %5580 = vmatprep.subr.bf16.mxu1 %v3636_v29  ;;  %v3715_v28 = vld [vmem:[#allocation5 + $0x730] sm:$0xff]  ;;  %v3722_v29 = vld [vmem:[#allocation5 + $0x768] sm:$0xff] }
 0xa61   :  { %5253 = vmatpush1.bf16.msra.mxu0 %v3633_v45  ;;  %5581 = vmatpush1.bf16.msra.mxu1 %v3635_v22  ;;  %v3724_v45 = vld [vmem:[#allocation5 + $0x778] sm:$0xff]  ;;  %v3721_v22 = vld [vmem:[#allocation5 + $0x760] sm:$0xff] }
 0xa62   :  { %5254 = vmatprep.subr.bf16.mxu0 %v3642_v20  ;;  %5582 = vmatprep.subr.bf16.mxu1 %v3644_v6  ;;  %v3723_v20 = vld [vmem:[#allocation5 + $0x770] sm:$0xff]  ;;  %v3730_v6 = vld [vmem:[#allocation5 + $0x7a8] sm:$0xff] }
 0xa65   :  { %5255 = vmatpush1.bf16.msra.mxu0 %v3641_v31  ;;  %5583 = vmatpush1.bf16.msra.mxu1 %v3643_v46  ;;  %v3732_v31 = vld [vmem:[#allocation5 + $0x7b8] sm:$0xff]  ;;  %v3729_v46 = vld [vmem:[#allocation5 + $0x7a0] sm:$0xff] }
 0xa66   :  { %5256 = vmatprep.subr.bf16.mxu0 %v3650_v14  ;;  %5584 = vmatprep.subr.bf16.mxu1 %v3652_v24  ;;  %v3731_v14 = vld [vmem:[#allocation5 + $0x7b0] sm:$0xff]  ;;  %v3738_v24 = vld [vmem:[#allocation5 + $0x7e8] sm:$0xff] }
 0xa69   :  { %5257 = vmatpush1.bf16.msra.mxu0 %v3649_v17  ;;  %5585 = vmatpush1.bf16.msra.mxu1 %v3651_v11  ;;  %v3740_v17 = vld [vmem:[#allocation5 + $0x7f8] sm:$0xff]  ;;  %v3737_v11 = vld [vmem:[#allocation5 + $0x7e0] sm:$0xff] }
 0xa6a   :  { %5258 = vmatprep.subr.bf16.mxu0 %v3658_v35  ;;  %5586 = vmatprep.subr.bf16.mxu1 %v3660_v47  ;;  %v3739_v35 = vld [vmem:[#allocation5 + $0x7f0] sm:$0xff]  ;;  %v3746_v47 = vld [vmem:[#allocation5 + $0x828] sm:$0xff] }
 0xa6d   :  { %5259 = vmatpush1.bf16.msra.mxu0 %v3657_v56  ;;  %5587 = vmatpush1.bf16.msra.mxu1 %v3659_v62  ;;  %v3748_v56 = vld [vmem:[#allocation5 + $0x838] sm:$0xff]  ;;  %v3745_v62 = vld [vmem:[#allocation5 + $0x820] sm:$0xff] }
 0xa6e   :  { %5260 = vmatprep.subr.bf16.mxu0 %v3666_v2  ;;  %5588 = vmatprep.subr.bf16.mxu1 %v3668_v34  ;;  %v3747_v2 = vld [vmem:[#allocation5 + $0x830] sm:$0xff]  ;;  %v3754_v34 = vld [vmem:[#allocation5 + $0x868] sm:$0xff] }
 0xa71   :  { %5261 = vmatpush1.bf16.msra.mxu0 %v3665_v8  ;;  %5589 = vmatpush1.bf16.msra.mxu1 %v3667_v32  ;;  %v3756_v8 = vld [vmem:[#allocation5 + $0x878] sm:$0xff]  ;;  %v3753_v32 = vld [vmem:[#allocation5 + $0x860] sm:$0xff] }
 0xa72   :  { %5262 = vmatprep.subr.bf16.mxu0 %v3674_v53  ;;  %5590 = vmatprep.subr.bf16.mxu1 %v3676_v1  ;;  %v3755_v53 = vld [vmem:[#allocation5 + $0x870] sm:$0xff]  ;;  %v3762_v1 = vld [vmem:[#allocation5 + $0x8a8] sm:$0xff] }
 0xa75   :  { %5263 = vmatpush1.bf16.msra.mxu0 %v3673_v49  ;;  %5591 = vmatpush1.bf16.msra.mxu1 %v3675_v33  ;;  %v3764_v49 = vld [vmem:[#allocation5 + $0x8b8] sm:$0xff]  ;;  %v3761_v33 = vld [vmem:[#allocation5 + $0x8a0] sm:$0xff] }
 0xa76   :  { %5264 = vmatprep.subr.bf16.mxu0 %v3682_v54  ;;  %5592 = vmatprep.subr.bf16.mxu1 %v3684_v13  ;;  %v3763_v54 = vld [vmem:[#allocation5 + $0x8b0] sm:$0xff]  ;;  %v3770_v13 = vld [vmem:[#allocation5 + $0x8e8] sm:$0xff] }
 0xa79   :  { %5265 = vmatpush1.bf16.msra.mxu0 %v3681_v50  ;;  %5593 = vmatpush1.bf16.msra.mxu1 %v3683_v3  ;;  %v3769_v50 = vld [vmem:[#allocation5 + $0x8e0] sm:$0xff]  ;;  %v3771_v3 = vld [vmem:[#allocation5 + $0x8f0] sm:$0xff] }
 0xa7a   :  { %5266 = vmatprep.subr.bf16.mxu0 %v3690_v52  ;;  %5594 = vmatprep.subr.bf16.mxu1 %v3692_v10  ;;  %v3778_v52 = vld [vmem:[#allocation5 + $0x928] sm:$0xff]  ;;  %v3780_v10 = vld [vmem:[#allocation5 + $0x938] sm:$0xff] }
 0xa7d   :  { %5267 = vmatpush1.bf16.msra.mxu0 %v3689_v26  ;;  %5595 = vmatpush1.bf16.msra.mxu1 %v3691_v23  ;;  %v3779_v26 = vld [vmem:[#allocation5 + $0x930] sm:$0xff]  ;;  %v3786_v23 = vld [vmem:[#allocation5 + $0x968] sm:$0xff] }
 0xa7e   :  { %5268 = vmatprep.subr.bf16.mxu0 %v3698_v5  ;;  %5596 = vmatprep.subr.bf16.mxu1 %v3700_v44  ;;  %v3788_v5 = vld [vmem:[#allocation5 + $0x978] sm:$0xff]  ;;  %v3785_v44 = vld [vmem:[#allocation5 + $0x960] sm:$0xff] }
 0xa81   :  { %5269 = vmatpush1.bf16.msra.mxu0 %v3697_v12  ;;  %5597 = vmatpush1.bf16.msra.mxu1 %v3699_v57  ;;  %v3787_v12 = vld [vmem:[#allocation5 + $0x970] sm:$0xff]  ;;  %v3794_v57 = vld [vmem:[#allocation5 + $0x9a8] sm:$0xff] }
 0xa82   :  { %5270 = vmatprep.subr.bf16.mxu0 %v3706_v48  ;;  %5598 = vmatprep.subr.bf16.mxu1 %v3708_v61  ;;  %v3796_v48 = vld [vmem:[#allocation5 + $0x9b8] sm:$0xff]  ;;  %v3793_v61 = vld [vmem:[#allocation5 + $0x9a0] sm:$0xff] }
 0xa85   :  { %5271 = vmatpush1.bf16.msra.mxu0 %v3705_v16  ;;  %5599 = vmatpush1.bf16.msra.mxu1 %v3707_v25  ;;  %v3795_v16 = vld [vmem:[#allocation5 + $0x9b0] sm:$0xff]  ;;  %v3802_v25 = vld [vmem:[#allocation5 + $0x9e8] sm:$0xff] }
 0xa86   :  { %5272 = vmatprep.subr.bf16.mxu0 %v3714_v15  ;;  %5600 = vmatprep.subr.bf16.mxu1 %v3716_v18  ;;  %v3804_v15 = vld [vmem:[#allocation5 + $0x9f8] sm:$0xff]  ;;  %v3801_v18 = vld [vmem:[#allocation5 + $0x9e0] sm:$0xff] }
 0xa89   :  { %5273 = vmatpush1.bf16.msra.mxu0 %v3713_v27  ;;  %5601 = vmatpush1.bf16.msra.mxu1 %v3715_v28  ;;  %v3803_v27 = vld [vmem:[#allocation5 + $0x9f0] sm:$0xff]  ;;  %v3810_v28 = vld [vmem:[#allocation5 + $0xa28] sm:$0xff] }
 0xa8a   :  { %5274 = vmatprep.subr.bf16.mxu0 %v3722_v29  ;;  %5602 = vmatprep.subr.bf16.mxu1 %v3724_v45  ;;  %v3812_v29 = vld [vmem:[#allocation5 + $0xa38] sm:$0xff]  ;;  %v3809_v45 = vld [vmem:[#allocation5 + $0xa20] sm:$0xff] }
 0xa8d   :  { %5275 = vmatpush1.bf16.msra.mxu0 %v3721_v22  ;;  %5603 = vmatpush1.bf16.msra.mxu1 %v3723_v20  ;;  %v3811_v22 = vld [vmem:[#allocation5 + $0xa30] sm:$0xff]  ;;  %v3818_v20 = vld [vmem:[#allocation5 + $0xa68] sm:$0xff] }
 0xa8e   :  { %5276 = vmatprep.subr.bf16.mxu0 %v3730_v6  ;;  %5604 = vmatprep.subr.bf16.mxu1 %v3732_v31  ;;  %v3820_v6 = vld [vmem:[#allocation5 + $0xa78] sm:$0xff]  ;;  %v3817_v31 = vld [vmem:[#allocation5 + $0xa60] sm:$0xff] }
 0xa91   :  { %5277 = vmatpush1.bf16.msra.mxu0 %v3729_v46  ;;  %5605 = vmatpush1.bf16.msra.mxu1 %v3731_v14  ;;  %v3819_v46 = vld [vmem:[#allocation5 + $0xa70] sm:$0xff]  ;;  %v3826_v14 = vld [vmem:[#allocation5 + $0xaa8] sm:$0xff] }
 0xa92   :  { %5278 = vmatprep.subr.bf16.mxu0 %v3738_v24  ;;  %5606 = vmatprep.subr.bf16.mxu1 %v3740_v17  ;;  %v3828_v24 = vld [vmem:[#allocation5 + $0xab8] sm:$0xff]  ;;  %v3825_v17 = vld [vmem:[#allocation5 + $0xaa0] sm:$0xff] }
 0xa95   :  { %5279 = vmatpush1.bf16.msra.mxu0 %v3737_v11  ;;  %5607 = vmatpush1.bf16.msra.mxu1 %v3739_v35  ;;  %v3827_v11 = vld [vmem:[#allocation5 + $0xab0] sm:$0xff]  ;;  %v3834_v35 = vld [vmem:[#allocation5 + $0xae8] sm:$0xff] }
 0xa96   :  { %5289 = vmatprep.subr.bf16.mxu0 %v3746_v47  ;;  %5617 = vmatprep.subr.bf16.mxu1 %v3748_v56  ;;  %v3836_v47 = vld [vmem:[#allocation5 + $0xaf8] sm:$0xff]  ;;  %v3833_v56 = vld [vmem:[#allocation5 + $0xae0] sm:$0xff] }
 0xa98   :  { %5281 = vmatmul.mubr.bf16.vlgmr.msra.gmra.mrb[32].mxu0 %v7602_v58  ;;  %5609 = vmatmul.mubr.bf16.vlgmr.msra.gmra.mrb[32].mxu1 %v7602_v58  ;;  %v3772_v58 = vld [vmem:[#allocation5 + $0x8f8] sm:$0xff] }
 0xa99   :  { %5290 = vmatpush1.bf16.msra.mxu0 %v3745_v62  ;;  %5618 = vmatpush1.bf16.msra.mxu1 %v3747_v2  ;;  %v3835_v62 = vld [vmem:[#allocation5 + $0xaf0] sm:$0xff]  ;;  %v3842_v2 = vld [vmem:[#allocation5 + $0xb28] sm:$0xff] }
 0xa9a   :  { %5291 = vmatprep.subr.bf16.mxu0 %v3754_v34  ;;  %5619 = vmatprep.subr.bf16.mxu1 %v3756_v8  ;;  %v3844_v34 = vld [vmem:[#allocation5 + $0xb38] sm:$0xff]  ;;  %v3841_v8 = vld [vmem:[#allocation5 + $0xb20] sm:$0xff] }
 0xa9b   :  { %5321 = vmatprep.mubr.bf16.mxu0 %v7607_v30  ;;  %5649 = vmatprep.mubr.bf16.mxu1 %v7607_v30  ;;  %v3777_v30 = vld [vmem:[#allocation5 + $0x920] sm:$0xff] }
 0xa9d   :  { %5292 = vmatpush1.bf16.msra.mxu0 %v3753_v32  ;;  %5620 = vmatpush1.bf16.msra.mxu1 %v3755_v53  ;;  %v3843_v32 = vld [vmem:[#allocation5 + $0xb30] sm:$0xff]  ;;  %v3850_v53 = vld [vmem:[#allocation5 + $0xb68] sm:$0xff] }
 0xa9e   :  { %5293 = vmatprep.subr.bf16.mxu0 %v3762_v1  ;;  %5621 = vmatprep.subr.bf16.mxu1 %v3764_v49  ;;  %v3852_v1 = vld [vmem:[#allocation5 + $0xb78] sm:$0xff]  ;;  %v3849_v49 = vld [vmem:[#allocation5 + $0xb60] sm:$0xff] }
 0xaa1   :  { %5294 = vmatpush1.bf16.msra.mxu0 %v3761_v33  ;;  %5622 = vmatpush1.bf16.msra.mxu1 %v3763_v54  ;;  %v3851_v33 = vld [vmem:[#allocation5 + $0xb70] sm:$0xff]  ;;  %v3858_v54 = vld [vmem:[#allocation5 + $0xba8] sm:$0xff] }
 0xaa2   :  { %5295 = vmatprep.subr.bf16.mxu0 %v3770_v13  ;;  %5623 = vmatprep.subr.bf16.mxu1 %v3772_v58  ;;  %v3860_v13 = vld [vmem:[#allocation5 + $0xbb8] sm:$0xff]  ;;  %v3857_v58 = vld [vmem:[#allocation5 + $0xba0] sm:$0xff] }
 0xaa5   :  { %5296 = vmatpush1.bf16.msra.mxu0 %v3769_v50  ;;  %5624 = vmatpush1.bf16.msra.mxu1 %v3771_v3  ;;  %v3859_v50 = vld [vmem:[#allocation5 + $0xbb0] sm:$0xff]  ;;  %v3866_v3 = vld [vmem:[#allocation5 + $0xbe8] sm:$0xff] }
 0xaa6   :  { %5297 = vmatprep.subr.bf16.mxu0 %v3778_v52  ;;  %5625 = vmatprep.subr.bf16.mxu1 %v3780_v10  ;;  %v3868_v52 = vld [vmem:[#allocation5 + $0xbf8] sm:$0xff]  ;;  %v3865_v10 = vld [vmem:[#allocation5 + $0xbe0] sm:$0xff] }
 0xaa9   :  { %5298 = vmatpush1.bf16.msra.mxu0 %v3777_v30  ;;  %5626 = vmatpush1.bf16.msra.mxu1 %v3779_v26  ;;  %v3867_v30 = vld [vmem:[#allocation5 + $0xbf0] sm:$0xff]  ;;  %v3874_v26 = vld [vmem:[#allocation5 + $0xc28] sm:$0xff] }
 0xaaa   :  { %5299 = vmatprep.subr.bf16.mxu0 %v3786_v23  ;;  %5627 = vmatprep.subr.bf16.mxu1 %v3788_v5  ;;  %v3876_v23 = vld [vmem:[#allocation5 + $0xc38] sm:$0xff]  ;;  %v3873_v5 = vld [vmem:[#allocation5 + $0xc20] sm:$0xff] }
 0xaad   :  { %5300 = vmatpush1.bf16.msra.mxu0 %v3785_v44  ;;  %5628 = vmatpush1.bf16.msra.mxu1 %v3787_v12  ;;  %v3875_v44 = vld [vmem:[#allocation5 + $0xc30] sm:$0xff]  ;;  %v3882_v12 = vld [vmem:[#allocation5 + $0xc68] sm:$0xff] }
 0xaae   :  { %5301 = vmatprep.subr.bf16.mxu0 %v3794_v57  ;;  %5629 = vmatprep.subr.bf16.mxu1 %v3796_v48  ;;  %v3884_v57 = vld [vmem:[#allocation5 + $0xc78] sm:$0xff]  ;;  %v3881_v48 = vld [vmem:[#allocation5 + $0xc60] sm:$0xff] }
 0xab1   :  { %5302 = vmatpush1.bf16.msra.mxu0 %v3793_v61  ;;  %5630 = vmatpush1.bf16.msra.mxu1 %v3795_v16  ;;  %v3883_v61 = vld [vmem:[#allocation5 + $0xc70] sm:$0xff]  ;;  %v3890_v16 = vld [vmem:[#allocation5 + $0xca8] sm:$0xff] }
 0xab2   :  { %5303 = vmatprep.subr.bf16.mxu0 %v3802_v25  ;;  %5631 = vmatprep.subr.bf16.mxu1 %v3804_v15  ;;  %v3892_v25 = vld [vmem:[#allocation5 + $0xcb8] sm:$0xff]  ;;  %v3889_v15 = vld [vmem:[#allocation5 + $0xca0] sm:$0xff] }
 0xab5   :  { %5304 = vmatpush1.bf16.msra.mxu0 %v3801_v18  ;;  %5632 = vmatpush1.bf16.msra.mxu1 %v3803_v27  ;;  %v3891_v18 = vld [vmem:[#allocation5 + $0xcb0] sm:$0xff]  ;;  %v3898_v27 = vld [vmem:[#allocation5 + $0xce8] sm:$0xff] }
 0xab6   :  { %5305 = vmatprep.subr.bf16.mxu0 %v3810_v28  ;;  %5633 = vmatprep.subr.bf16.mxu1 %v3812_v29  ;;  %v3897_v28 = vld [vmem:[#allocation5 + $0xce0] sm:$0xff]  ;;  %v3899_v29 = vld [vmem:[#allocation5 + $0xcf0] sm:$0xff] }
 0xab9   :  { %5306 = vmatpush1.bf16.msra.mxu0 %v3809_v45  ;;  %5634 = vmatpush1.bf16.msra.mxu1 %v3811_v22  ;;  %v3906_v45 = vld [vmem:[#allocation5 + $0xd28] sm:$0xff]  ;;  %v3908_v22 = vld [vmem:[#allocation5 + $0xd38] sm:$0xff] }
 0xaba   :  { %5307 = vmatprep.subr.bf16.mxu0 %v3818_v20  ;;  %5635 = vmatprep.subr.bf16.mxu1 %v3820_v6  ;;  %v4509_v20 = vld [vmem:[#allocation11 + $0x1c] sm:$0xff]  ;;  %v3907_v6 = vld [vmem:[#allocation5 + $0xd30] sm:$0xff] }
 0xabd   :  { %5308 = vmatpush1.bf16.msra.mxu0 %v3817_v31  ;;  %5636 = vmatpush1.bf16.msra.mxu1 %v3819_v46  ;;  %v3914_v31 = vld [vmem:[#allocation5 + $0xd68] sm:$0xff]  ;;  %v3916_v46 = vld [vmem:[#allocation5 + $0xd78] sm:$0xff] }
 0xabe   :  { %5309 = vmatprep.subr.bf16.mxu0 %v3826_v14  ;;  %5637 = vmatprep.subr.bf16.mxu1 %v3828_v24  ;;  %v4514_v14 = vrot.slane %v4509_v20, %v7305_v37  ;;  %v4522_v24 = vrot.slane %v4509_v20, %v7308_v38 }
 0xac1   :  { %5310 = vmatpush1.bf16.msra.mxu0 %v3825_v17  ;;  %5638 = vmatpush1.bf16.msra.mxu1 %v3827_v11  ;;  %v4518_v17 = vrot.slane %v4509_v20, %v7311_v40  ;;  %v4526_v11 = vrot.slane %v4509_v20, %v7314_v41  ;;  %v3962_v20 = vld [vmem:[#allocation5 + $0xee8] sm:$0xff] }
 0xac2   :  { %5311 = vmatprep.subr.bf16.mxu0 %v3834_v35  ;;  %5639 = vmatprep.subr.bf16.mxu1 %v3836_v47  ;;  %v3913_v35 = vld [vmem:[#allocation5 + $0xd60] sm:$0xff]  ;;  %v3915_v47 = vld [vmem:[#allocation5 + $0xd70] sm:$0xff] }
 0xac5   :  { %5312 = vmatpush1.bf16.msra.mxu0 %v3833_v56  ;;  %5640 = vmatpush1.bf16.msra.mxu1 %v3835_v62 }
 0xac6   :  { %5313 = vmatprep.subr.bf16.mxu0 %v3842_v2  ;;  %5641 = vmatprep.subr.bf16.mxu1 %v3844_v34  ;;  %v3922_v2 = vld [vmem:[#allocation5 + $0xda8] sm:$0xff]  ;;  %v3924_v34 = vld [vmem:[#allocation5 + $0xdb8] sm:$0xff] }
 0xac9   :  { %5314 = vmatpush1.bf16.msra.mxu0 %v3841_v8  ;;  %5642 = vmatpush1.bf16.msra.mxu1 %v3843_v32 }
 0xaca   :  { %5315 = vmatprep.subr.bf16.mxu0 %v3850_v53  ;;  %5643 = vmatprep.subr.bf16.mxu1 %v3852_v1 }
 0xacd   :  { %5316 = vmatpush1.bf16.msra.mxu0 %v3849_v49  ;;  %5644 = vmatpush1.bf16.msra.mxu1 %v3851_v33 }
 0xace   :  { %5317 = vmatprep.subr.bf16.mxu0 %v3858_v54  ;;  %5645 = vmatprep.subr.bf16.mxu1 %v3860_v13 }
 0xad1   :  { %5318 = vmatpush1.bf16.msra.mxu0 %v3857_v58  ;;  %5646 = vmatpush1.bf16.msra.mxu1 %v3859_v50 }
 0xad2   :  { %5319 = vmatprep.subr.bf16.mxu0 %v3866_v3  ;;  %5647 = vmatprep.subr.bf16.mxu1 %v3868_v52 }
 0xad5   :  { %5320 = vmatpush1.bf16.msra.mxu0 %v3865_v10  ;;  %5648 = vmatpush1.bf16.msra.mxu1 %v3867_v30  ;;  %v3921_v10 = vld [vmem:[#allocation5 + $0xda0] sm:$0xff]  ;;  %v3923_v30 = vld [vmem:[#allocation5 + $0xdb0] sm:$0xff] }
 0xad6   :  { %5330 = vmatprep.subr.bf16.mxu0 %v3874_v26  ;;  %5658 = vmatprep.subr.bf16.mxu1 %v3876_v23 }
 0xad8   :  { %5322 = vmatmul.mubr.bf16.vlgmr.msra.gmra.mrb[32].mxu0 %v7616_v39  ;;  %5650 = vmatmul.mubr.bf16.vlgmr.msra.gmra.mrb[32].mxu1 %v7616_v39  ;;  %v3900_v39 = vld [vmem:[#allocation5 + $0xcf8] sm:$0xff] }
 0xad9   :  { %5331 = vmatpush1.bf16.msra.mxu0 %v3873_v5  ;;  %5659 = vmatpush1.bf16.msra.mxu1 %v3875_v44  ;;  %v3930_v5 = vld [vmem:[#allocation5 + $0xde8] sm:$0xff]  ;;  %v3932_v44 = vld [vmem:[#allocation5 + $0xdf8] sm:$0xff] }
 0xada   :  { %5332 = vmatprep.subr.bf16.mxu0 %v3882_v12  ;;  %5660 = vmatprep.subr.bf16.mxu1 %v3884_v57  ;;  %v3929_v12 = vld [vmem:[#allocation5 + $0xde0] sm:$0xff]  ;;  %v3931_v57 = vld [vmem:[#allocation5 + $0xdf0] sm:$0xff] }
 0xadb   :  { %5362 = vmatprep.mubr.bf16.mxu0 %v7621_v4  ;;  %5690 = vmatprep.mubr.bf16.mxu1 %v7621_v4  ;;  %v3905_v4 = vld [vmem:[#allocation5 + $0xd20] sm:$0xff] }
 0xadd   :  { %5333 = vmatpush1.bf16.msra.mxu0 %v3881_v48  ;;  %5661 = vmatpush1.bf16.msra.mxu1 %v3883_v61  ;;  %v3938_v48 = vld [vmem:[#allocation5 + $0xe28] sm:$0xff]  ;;  %v3940_v61 = vld [vmem:[#allocation5 + $0xe38] sm:$0xff] }
 0xade   :  { %5334 = vmatprep.subr.bf16.mxu0 %v3890_v16  ;;  %5662 = vmatprep.subr.bf16.mxu1 %v3892_v25  ;;  %v3937_v16 = vld [vmem:[#allocation5 + $0xe20] sm:$0xff]  ;;  %v3939_v25 = vld [vmem:[#allocation5 + $0xe30] sm:$0xff] }
 0xae1   :  { %5335 = vmatpush1.bf16.msra.mxu0 %v3889_v15  ;;  %5663 = vmatpush1.bf16.msra.mxu1 %v3891_v18  ;;  %v3946_v15 = vld [vmem:[#allocation5 + $0xe68] sm:$0xff]  ;;  %v3948_v18 = vld [vmem:[#allocation5 + $0xe78] sm:$0xff] }
 0xae2   :  { %5336 = vmatprep.subr.bf16.mxu0 %v3898_v27  ;;  %5664 = vmatprep.subr.bf16.mxu1 %v3900_v39  ;;  %v3945_v27 = vld [vmem:[#allocation5 + $0xe60] sm:$0xff]  ;;  %v3947_v39 = vld [vmem:[#allocation5 + $0xe70] sm:$0xff] }
 0xae5   :  { %5337 = vmatpush1.bf16.msra.mxu0 %v3897_v28  ;;  %5665 = vmatpush1.bf16.msra.mxu1 %v3899_v29  ;;  %v3954_v28 = vld [vmem:[#allocation5 + $0xea8] sm:$0xff]  ;;  %v3956_v29 = vld [vmem:[#allocation5 + $0xeb8] sm:$0xff] }
 0xae6   :  { %5338 = vmatprep.subr.bf16.mxu0 %v3906_v45  ;;  %5666 = vmatprep.subr.bf16.mxu1 %v3908_v22  ;;  %v3953_v45 = vld [vmem:[#allocation5 + $0xea0] sm:$0xff]  ;;  %v3955_v22 = vld [vmem:[#allocation5 + $0xeb0] sm:$0xff] }
 0xae9   :  { %5339 = vmatpush1.bf16.msra.mxu0 %v3905_v4  ;;  %5667 = vmatpush1.bf16.msra.mxu1 %v3907_v6  ;;  %v3964_v4 = vld [vmem:[#allocation5 + $0xef8] sm:$0xff]  ;;  %v3961_v6 = vld [vmem:[#allocation5 + $0xee0] sm:$0xff] }
 0xaea   :  { %5340 = vmatprep.subr.bf16.mxu0 %v3914_v31  ;;  %5668 = vmatprep.subr.bf16.mxu1 %v3916_v46  ;;  %v3963_v31 = vld [vmem:[#allocation5 + $0xef0] sm:$0xff]  ;;  %v3970_v46 = vld [vmem:[#allocation5 + $0xf28] sm:$0xff] }
 0xaeb   :  { %v4872_v56 = vpop.f32.mrb[28].mxu0  ;;  %v5200_v62 = vpop.f32.mrb[28].mxu1 }
 0xaec   :  { %v7708_v8 = vadd.f32 %v4872_v56, %v4514_v14  ;;  %v7710_v32 = vadd.f32 %v5200_v62, %v4522_v24  ;;  %v4874_v53 = vpop.f32.mrb[29].mxu0  ;;  %v5202_v1 = vpop.f32.mrb[29].mxu1  ;;  %v3972_v14 = vld [vmem:[#allocation5 + $0xf38] sm:$0xff]  ;;  %v3969_v24 = vld [vmem:[#allocation5 + $0xf20] sm:$0xff]  ;;  %v3979_v56 = vld [vmem:[#allocation5 + $0xf70] sm:$0xff] }
 0xaed   :  { %v7712_v49 = vadd.f32 %v4874_v53, %v4518_v17  ;;  %v7714_v33 = vadd.f32 %v5202_v1, %v4526_v11  ;;  %v4876_v54 = vpop.f32.mrb[30].mxu0  ;;  %v5204_v13 = vpop.f32.mrb[30].mxu1  ;;  %5341 = vmatpush1.bf16.msra.mxu0 %v3913_v35  ;;  %5669 = vmatpush1.bf16.msra.mxu1 %v3915_v47  ;;  %v3971_v17 = vld [vmem:[#allocation5 + $0xf30] sm:$0xff]  ;;  %v3978_v11 = vld [vmem:[#allocation5 + $0xf68] sm:$0xff]  ;;  %v3980_v35 = vld [vmem:[#allocation5 + $0xf78] sm:$0xff] }
 0xaee   :  { %v5863_v58 = vmax.f32 %v7708_v8, 0.0  ;;  %v5865_v50 = vmax.f32 %v7710_v32, 0.0  ;;  %v4877_v3 = vpop.f32.mrb[31].mxu0  ;;  %v5205_v52 = vpop.f32.mrb[31].mxu1  ;;  %5342 = vmatprep.subr.bf16.mxu0 %v3922_v2  ;;  %5670 = vmatprep.subr.bf16.mxu1 %v3924_v34  ;;  %v3977_v47 = vld [vmem:[#allocation5 + $0xf60] sm:$0xff]  ;;  %v3986_v62 = vld [vmem:[#allocation5 + $0xfa8] sm:$0xff] }
 0xaef   :  { %v5864_v26 = vmax.f32 %v7712_v49, 0.0  ;;  %v5866_v23 = vmax.f32 %v7714_v33, 0.0  ;;  %v3988_v2 = vld [vmem:[#allocation5 + $0xfb8] sm:$0xff]  ;;  %v3985_v34 = vld [vmem:[#allocation5 + $0xfa0] sm:$0xff]  ;;  %v3987_v53 = vld [vmem:[#allocation5 + $0xfb0] sm:$0xff] }
 0xaf0   :  { %v3994_v1 = vld [vmem:[#allocation5 + $0xfe8] sm:$0xff]  ;;  %v3996_v54 = vld [vmem:[#allocation5 + $0xff8] sm:$0xff]  ;;  %v3993_v13 = vld [vmem:[#allocation5 + $0xfe0] sm:$0xff] }
 0xaf1   :  { %5343 = vmatpush1.bf16.msra.mxu0 %v3921_v10  ;;  %5671 = vmatpush1.bf16.msra.mxu1 %v3923_v30  ;;  %v3995_v3 = vld [vmem:[#allocation5 + $0xff0] sm:$0xff]  ;;  %v4002_v52 = vld [vmem:[#allocation5 + $0x1028] sm:$0xff]  ;;  %v4004_v10 = vld [vmem:[#allocation5 + $0x1038] sm:$0xff] }
 0xaf2   :  { %5344 = vmatprep.subr.bf16.mxu0 %v3930_v5  ;;  %5672 = vmatprep.subr.bf16.mxu1 %v3932_v44  ;;  %v4001_v30 = vld [vmem:[#allocation5 + $0x1020] sm:$0xff]  ;;  %v4003_v5 = vld [vmem:[#allocation5 + $0x1030] sm:$0xff]  ;;  %v4010_v44 = vld [vmem:[#allocation5 + $0x1068] sm:$0xff] }
 0xaf5   :  { %5345 = vmatpush1.bf16.msra.mxu0 %v3929_v12  ;;  %5673 = vmatpush1.bf16.msra.mxu1 %v3931_v57  ;;  %v4012_v12 = vld [vmem:[#allocation5 + $0x1078] sm:$0xff]  ;;  %v4009_v57 = vld [vmem:[#allocation5 + $0x1060] sm:$0xff] }
 0xaf6   :  { %5346 = vmatprep.subr.bf16.mxu0 %v3938_v48  ;;  %5674 = vmatprep.subr.bf16.mxu1 %v3940_v61  ;;  %v4011_v48 = vld [vmem:[#allocation5 + $0x1070] sm:$0xff]  ;;  %v4018_v61 = vld [vmem:[#allocation5 + $0x10a8] sm:$0xff] }
 0xaf9   :  { %5347 = vmatpush1.bf16.msra.mxu0 %v3937_v16  ;;  %5675 = vmatpush1.bf16.msra.mxu1 %v3939_v25  ;;  %v4020_v16 = vld [vmem:[#allocation5 + $0x10b8] sm:$0xff]  ;;  %v4017_v25 = vld [vmem:[#allocation5 + $0x10a0] sm:$0xff] }
 0xafa   :  { %5348 = vmatprep.subr.bf16.mxu0 %v3946_v15  ;;  %5676 = vmatprep.subr.bf16.mxu1 %v3948_v18  ;;  %v4019_v15 = vld [vmem:[#allocation5 + $0x10b0] sm:$0xff]  ;;  %v4026_v18 = vld [vmem:[#allocation5 + $0x10e8] sm:$0xff] }
 0xafd   :  { %5349 = vmatpush1.bf16.msra.mxu0 %v3945_v27  ;;  %5677 = vmatpush1.bf16.msra.mxu1 %v3947_v39  ;;  %v4025_v27 = vld [vmem:[#allocation5 + $0x10e0] sm:$0xff]  ;;  %v4027_v39 = vld [vmem:[#allocation5 + $0x10f0] sm:$0xff] }
 0xafe   :  { %5350 = vmatprep.subr.bf16.mxu0 %v3954_v28  ;;  %5678 = vmatprep.subr.bf16.mxu1 %v3956_v29  ;;  %v4034_v28 = vld [vmem:[#allocation5 + $0x1128] sm:$0xff]  ;;  %v4036_v29 = vld [vmem:[#allocation5 + $0x1138] sm:$0xff] }
 0xb01   :  { %5351 = vmatpush1.bf16.msra.mxu0 %v3953_v45  ;;  %5679 = vmatpush1.bf16.msra.mxu1 %v3955_v22  ;;  %v4035_v45 = vld [vmem:[#allocation5 + $0x1130] sm:$0xff]  ;;  %v4042_v22 = vld [vmem:[#allocation5 + $0x1168] sm:$0xff] }
 0xb02   :  { %5352 = vmatprep.subr.bf16.mxu0 %v3962_v20  ;;  %5680 = vmatprep.subr.bf16.mxu1 %v3964_v4  ;;  %v4044_v20 = vld [vmem:[#allocation5 + $0x1178] sm:$0xff]  ;;  %v4041_v4 = vld [vmem:[#allocation5 + $0x1160] sm:$0xff] }
 0xb05   :  { %5353 = vmatpush1.bf16.msra.mxu0 %v3961_v6  ;;  %5681 = vmatpush1.bf16.msra.mxu1 %v3963_v31  ;;  %v4043_v6 = vld [vmem:[#allocation5 + $0x1170] sm:$0xff]  ;;  %v4050_v31 = vld [vmem:[#allocation5 + $0x11a8] sm:$0xff] }
 0xb06   :  { %5354 = vmatprep.subr.bf16.mxu0 %v3970_v46  ;;  %5682 = vmatprep.subr.bf16.mxu1 %v3972_v14  ;;  %v4052_v46 = vld [vmem:[#allocation5 + $0x11b8] sm:$0xff]  ;;  %v4049_v14 = vld [vmem:[#allocation5 + $0x11a0] sm:$0xff] }
 0xb09   :  { %5355 = vmatpush1.bf16.msra.mxu0 %v3969_v24  ;;  %5683 = vmatpush1.bf16.msra.mxu1 %v3971_v17  ;;  %v4051_v24 = vld [vmem:[#allocation5 + $0x11b0] sm:$0xff]  ;;  %v4058_v17 = vld [vmem:[#allocation5 + $0x11e8] sm:$0xff] }
 0xb0a   :  { %5356 = vmatprep.subr.bf16.mxu0 %v3978_v11  ;;  %5684 = vmatprep.subr.bf16.mxu1 %v3980_v35  ;;  %v4060_v11 = vld [vmem:[#allocation5 + $0x11f8] sm:$0xff]  ;;  %v4057_v35 = vld [vmem:[#allocation5 + $0x11e0] sm:$0xff] }
 0xb0d   :  { %5357 = vmatpush1.bf16.msra.mxu0 %v3977_v47  ;;  %5685 = vmatpush1.bf16.msra.mxu1 %v3979_v56  ;;  %v4059_v47 = vld [vmem:[#allocation5 + $0x11f0] sm:$0xff]  ;;  %v4066_v56 = vld [vmem:[#allocation5 + $0x1228] sm:$0xff] }
 0xb0e   :  { %5358 = vmatprep.subr.bf16.mxu0 %v3986_v62  ;;  %5686 = vmatprep.subr.bf16.mxu1 %v3988_v2  ;;  %v4068_v62 = vld [vmem:[#allocation5 + $0x1238] sm:$0xff]  ;;  %v4065_v2 = vld [vmem:[#allocation5 + $0x1220] sm:$0xff] }
 0xb11   :  { %5359 = vmatpush1.bf16.msra.mxu0 %v3985_v34  ;;  %5687 = vmatpush1.bf16.msra.mxu1 %v3987_v53  ;;  %v4067_v34 = vld [vmem:[#allocation5 + $0x1230] sm:$0xff]  ;;  %v4074_v53 = vld [vmem:[#allocation5 + $0x1268] sm:$0xff] }
 0xb12   :  { %5360 = vmatprep.subr.bf16.mxu0 %v3994_v1  ;;  %5688 = vmatprep.subr.bf16.mxu1 %v3996_v54  ;;  %v4076_v1 = vld [vmem:[#allocation5 + $0x1278] sm:$0xff]  ;;  %v4073_v54 = vld [vmem:[#allocation5 + $0x1260] sm:$0xff] }
 0xb15   :  { %5361 = vmatpush1.bf16.msra.mxu0 %v3993_v13  ;;  %5689 = vmatpush1.bf16.msra.mxu1 %v3995_v3  ;;  %v4075_v13 = vld [vmem:[#allocation5 + $0x1270] sm:$0xff]  ;;  %v4082_v3 = vld [vmem:[#allocation5 + $0x12a8] sm:$0xff] }
 0xb16   :  { %5371 = vmatprep.subr.bf16.mxu0 %v4002_v52  ;;  %5699 = vmatprep.subr.bf16.mxu1 %v4004_v10  ;;  %v4084_v52 = vld [vmem:[#allocation5 + $0x12b8] sm:$0xff]  ;;  %v4081_v10 = vld [vmem:[#allocation5 + $0x12a0] sm:$0xff] }
 0xb18   :  { %5363 = vmatmul.mubr.bf16.vlgmr.msra.gmra.mrb[32].mxu0 %v7630_v55  ;;  %5691 = vmatmul.mubr.bf16.vlgmr.msra.gmra.mrb[32].mxu1 %v7630_v55  ;;  %v4028_v55 = vld [vmem:[#allocation5 + $0x10f8] sm:$0xff] }
 0xb19   :  { %5372 = vmatpush1.bf16.msra.mxu0 %v4001_v30  ;;  %5700 = vmatpush1.bf16.msra.mxu1 %v4003_v5  ;;  %v4083_v30 = vld [vmem:[#allocation5 + $0x12b0] sm:$0xff]  ;;  %v4090_v5 = vld [vmem:[#allocation5 + $0x12e8] sm:$0xff] }
 0xb1a   :  { %5373 = vmatprep.subr.bf16.mxu0 %v4010_v44  ;;  %5701 = vmatprep.subr.bf16.mxu1 %v4012_v12  ;;  %v4092_v44 = vld [vmem:[#allocation5 + $0x12f8] sm:$0xff]  ;;  %v4089_v12 = vld [vmem:[#allocation5 + $0x12e0] sm:$0xff] }
 0xb1b   :  { %5403 = vmatprep.mubr.bf16.mxu0 %v7635_v42  ;;  %5731 = vmatprep.mubr.bf16.mxu1 %v7635_v42  ;;  %v4033_v42 = vld [vmem:[#allocation5 + $0x1120] sm:$0xff] }
 0xb1d   :  { %5374 = vmatpush1.bf16.msra.mxu0 %v4009_v57  ;;  %5702 = vmatpush1.bf16.msra.mxu1 %v4011_v48  ;;  %v4091_v57 = vld [vmem:[#allocation5 + $0x12f0] sm:$0xff]  ;;  %v4098_v48 = vld [vmem:[#allocation5 + $0x1328] sm:$0xff] }
 0xb1e   :  { %5375 = vmatprep.subr.bf16.mxu0 %v4018_v61  ;;  %5703 = vmatprep.subr.bf16.mxu1 %v4020_v16  ;;  %v4100_v61 = vld [vmem:[#allocation5 + $0x1338] sm:$0xff]  ;;  %v4097_v16 = vld [vmem:[#allocation5 + $0x1320] sm:$0xff] }
 0xb21   :  { %5376 = vmatpush1.bf16.msra.mxu0 %v4017_v25  ;;  %5704 = vmatpush1.bf16.msra.mxu1 %v4019_v15  ;;  %v4099_v25 = vld [vmem:[#allocation5 + $0x1330] sm:$0xff]  ;;  %v4106_v15 = vld [vmem:[#allocation5 + $0x1368] sm:$0xff] }
 0xb22   :  { %5377 = vmatprep.subr.bf16.mxu0 %v4026_v18  ;;  %5705 = vmatprep.subr.bf16.mxu1 %v4028_v55  ;;  %v4108_v18 = vld [vmem:[#allocation5 + $0x1378] sm:$0xff]  ;;  %v4105_v55 = vld [vmem:[#allocation5 + $0x1360] sm:$0xff] }
 0xb25   :  { %5378 = vmatpush1.bf16.msra.mxu0 %v4025_v27  ;;  %5706 = vmatpush1.bf16.msra.mxu1 %v4027_v39  ;;  %v4107_v27 = vld [vmem:[#allocation5 + $0x1370] sm:$0xff]  ;;  %v4114_v39 = vld [vmem:[#allocation5 + $0x13a8] sm:$0xff] }
 0xb26   :  { %5379 = vmatprep.subr.bf16.mxu0 %v4034_v28  ;;  %5707 = vmatprep.subr.bf16.mxu1 %v4036_v29  ;;  %v4116_v28 = vld [vmem:[#allocation5 + $0x13b8] sm:$0xff]  ;;  %v4113_v29 = vld [vmem:[#allocation5 + $0x13a0] sm:$0xff] }
 0xb29   :  { %5380 = vmatpush1.bf16.msra.mxu0 %v4033_v42  ;;  %5708 = vmatpush1.bf16.msra.mxu1 %v4035_v45  ;;  %v4115_v42 = vld [vmem:[#allocation5 + $0x13b0] sm:$0xff]  ;;  %v4122_v45 = vld [vmem:[#allocation5 + $0x13e8] sm:$0xff] }
 0xb2a   :  { %5381 = vmatprep.subr.bf16.mxu0 %v4042_v22  ;;  %5709 = vmatprep.subr.bf16.mxu1 %v4044_v20  ;;  %v4124_v22 = vld [vmem:[#allocation5 + $0x13f8] sm:$0xff]  ;;  %v4121_v20 = vld [vmem:[#allocation5 + $0x13e0] sm:$0xff] }
 0xb2d   :  { %5382 = vmatpush1.bf16.msra.mxu0 %v4041_v4  ;;  %5710 = vmatpush1.bf16.msra.mxu1 %v4043_v6  ;;  %v4123_v4 = vld [vmem:[#allocation5 + $0x13f0] sm:$0xff]  ;;  %v4130_v6 = vld [vmem:[#allocation5 + $0x1428] sm:$0xff] }
 0xb2e   :  { %5383 = vmatprep.subr.bf16.mxu0 %v4050_v31  ;;  %5711 = vmatprep.subr.bf16.mxu1 %v4052_v46  ;;  %v4132_v31 = vld [vmem:[#allocation5 + $0x1438] sm:$0xff]  ;;  %v4129_v46 = vld [vmem:[#allocation5 + $0x1420] sm:$0xff] }
 0xb31   :  { %5384 = vmatpush1.bf16.msra.mxu0 %v4049_v14  ;;  %5712 = vmatpush1.bf16.msra.mxu1 %v4051_v24  ;;  %v4131_v14 = vld [vmem:[#allocation5 + $0x1430] sm:$0xff]  ;;  %v4138_v24 = vld [vmem:[#allocation5 + $0x1468] sm:$0xff] }
 0xb32   :  { %5385 = vmatprep.subr.bf16.mxu0 %v4058_v17  ;;  %5713 = vmatprep.subr.bf16.mxu1 %v4060_v11  ;;  %v4140_v17 = vld [vmem:[#allocation5 + $0x1478] sm:$0xff]  ;;  %v4137_v11 = vld [vmem:[#allocation5 + $0x1460] sm:$0xff] }
 0xb35   :  { %5386 = vmatpush1.bf16.msra.mxu0 %v4057_v35  ;;  %5714 = vmatpush1.bf16.msra.mxu1 %v4059_v47  ;;  %v4139_v35 = vld [vmem:[#allocation5 + $0x1470] sm:$0xff]  ;;  %v4146_v47 = vld [vmem:[#allocation5 + $0x14a8] sm:$0xff] }
 0xb36   :  { %5387 = vmatprep.subr.bf16.mxu0 %v4066_v56  ;;  %5715 = vmatprep.subr.bf16.mxu1 %v4068_v62  ;;  %v4148_v56 = vld [vmem:[#allocation5 + $0x14b8] sm:$0xff]  ;;  %v4145_v62 = vld [vmem:[#allocation5 + $0x14a0] sm:$0xff] }
 0xb39   :  { %5388 = vmatpush1.bf16.msra.mxu0 %v4065_v2  ;;  %5716 = vmatpush1.bf16.msra.mxu1 %v4067_v34  ;;  %v4147_v2 = vld [vmem:[#allocation5 + $0x14b0] sm:$0xff]  ;;  %v4154_v34 = vld [vmem:[#allocation5 + $0x14e8] sm:$0xff] }
 0xb3a   :  { %5389 = vmatprep.subr.bf16.mxu0 %v4074_v53  ;;  %5717 = vmatprep.subr.bf16.mxu1 %v4076_v1  ;;  %v4153_v53 = vld [vmem:[#allocation5 + $0x14e0] sm:$0xff]  ;;  %v4155_v1 = vld [vmem:[#allocation5 + $0x14f0] sm:$0xff] }
 0xb3d   :  { %5390 = vmatpush1.bf16.msra.mxu0 %v4073_v54  ;;  %5718 = vmatpush1.bf16.msra.mxu1 %v4075_v13  ;;  %v4162_v54 = vld [vmem:[#allocation5 + $0x1528] sm:$0xff]  ;;  %v4164_v13 = vld [vmem:[#allocation5 + $0x1538] sm:$0xff] }
 0xb3e   :  { %5391 = vmatprep.subr.bf16.mxu0 %v4082_v3  ;;  %5719 = vmatprep.subr.bf16.mxu1 %v4084_v52  ;;  %v4163_v3 = vld [vmem:[#allocation5 + $0x1530] sm:$0xff]  ;;  %v4170_v52 = vld [vmem:[#allocation5 + $0x1568] sm:$0xff] }
 0xb41   :  { %5392 = vmatpush1.bf16.msra.mxu0 %v4081_v10  ;;  %5720 = vmatpush1.bf16.msra.mxu1 %v4083_v30  ;;  %v4172_v10 = vld [vmem:[#allocation5 + $0x1578] sm:$0xff]  ;;  %v4169_v30 = vld [vmem:[#allocation5 + $0x1560] sm:$0xff] }
 0xb42   :  { %5393 = vmatprep.subr.bf16.mxu0 %v4090_v5  ;;  %5721 = vmatprep.subr.bf16.mxu1 %v4092_v44  ;;  %v4171_v5 = vld [vmem:[#allocation5 + $0x1570] sm:$0xff]  ;;  %v4178_v44 = vld [vmem:[#allocation5 + $0x15a8] sm:$0xff] }
 0xb45   :  { %5394 = vmatpush1.bf16.msra.mxu0 %v4089_v12  ;;  %5722 = vmatpush1.bf16.msra.mxu1 %v4091_v57  ;;  %v4180_v12 = vld [vmem:[#allocation5 + $0x15b8] sm:$0xff]  ;;  %v4177_v57 = vld [vmem:[#allocation5 + $0x15a0] sm:$0xff] }
 0xb46   :  { %5395 = vmatprep.subr.bf16.mxu0 %v4098_v48  ;;  %5723 = vmatprep.subr.bf16.mxu1 %v4100_v61  ;;  %v4179_v48 = vld [vmem:[#allocation5 + $0x15b0] sm:$0xff]  ;;  %v4186_v61 = vld [vmem:[#allocation5 + $0x15e8] sm:$0xff] }
 0xb49   :  { %5396 = vmatpush1.bf16.msra.mxu0 %v4097_v16  ;;  %5724 = vmatpush1.bf16.msra.mxu1 %v4099_v25  ;;  %v4188_v16 = vld [vmem:[#allocation5 + $0x15f8] sm:$0xff]  ;;  %v4185_v25 = vld [vmem:[#allocation5 + $0x15e0] sm:$0xff] }
 0xb4a   :  { %5397 = vmatprep.subr.bf16.mxu0 %v4106_v15  ;;  %5725 = vmatprep.subr.bf16.mxu1 %v4108_v18  ;;  %v4187_v15 = vld [vmem:[#allocation5 + $0x15f0] sm:$0xff]  ;;  %v4194_v18 = vld [vmem:[#allocation5 + $0x1628] sm:$0xff] }
 0xb4d   :  { %5398 = vmatpush1.bf16.msra.mxu0 %v4105_v55  ;;  %5726 = vmatpush1.bf16.msra.mxu1 %v4107_v27  ;;  %v4196_v55 = vld [vmem:[#allocation5 + $0x1638] sm:$0xff]  ;;  %v4193_v27 = vld [vmem:[#allocation5 + $0x1620] sm:$0xff] }
 0xb4e   :  { %5399 = vmatprep.subr.bf16.mxu0 %v4114_v39  ;;  %5727 = vmatprep.subr.bf16.mxu1 %v4116_v28  ;;  %v4195_v39 = vld [vmem:[#allocation5 + $0x1630] sm:$0xff]  ;;  %v4202_v28 = vld [vmem:[#allocation5 + $0x1668] sm:$0xff] }
 0xb51   :  { %5400 = vmatpush1.bf16.msra.mxu0 %v4113_v29  ;;  %5728 = vmatpush1.bf16.msra.mxu1 %v4115_v42  ;;  %v4204_v29 = vld [vmem:[#allocation5 + $0x1678] sm:$0xff]  ;;  %v4201_v42 = vld [vmem:[#allocation5 + $0x1660] sm:$0xff] }
 0xb52   :  { %5401 = vmatprep.subr.bf16.mxu0 %v4122_v45  ;;  %5729 = vmatprep.subr.bf16.mxu1 %v4124_v22  ;;  %v4203_v45 = vld [vmem:[#allocation5 + $0x1670] sm:$0xff]  ;;  %v4210_v22 = vld [vmem:[#allocation5 + $0x16a8] sm:$0xff] }
 0xb55   :  { %5402 = vmatpush1.bf16.msra.mxu0 %v4121_v20  ;;  %5730 = vmatpush1.bf16.msra.mxu1 %v4123_v4  ;;  %v4212_v20 = vld [vmem:[#allocation5 + $0x16b8] sm:$0xff]  ;;  %v4209_v4 = vld [vmem:[#allocation5 + $0x16a0] sm:$0xff] }
 0xb56   :  { %5412 = vmatprep.subr.bf16.mxu0 %v4130_v6  ;;  %5740 = vmatprep.subr.bf16.mxu1 %v4132_v31  ;;  %v4211_v6 = vld [vmem:[#allocation5 + $0x16b0] sm:$0xff]  ;;  %v4218_v31 = vld [vmem:[#allocation5 + $0x16e8] sm:$0xff] }
 0xb58   :  { %5404 = vmatmul.mubr.bf16.vlgmr.msra.gmra.mrb[32].mxu0 %v7644_v7  ;;  %5732 = vmatmul.mubr.bf16.vlgmr.msra.gmra.mrb[32].mxu1 %v7644_v7  ;;  %v4156_v7 = vld [vmem:[#allocation5 + $0x14f8] sm:$0xff] }
 0xb59   :  { %5413 = vmatpush1.bf16.msra.mxu0 %v4129_v46  ;;  %5741 = vmatpush1.bf16.msra.mxu1 %v4131_v14  ;;  %v4220_v46 = vld [vmem:[#allocation5 + $0x16f8] sm:$0xff]  ;;  %v4217_v14 = vld [vmem:[#allocation5 + $0x16e0] sm:$0xff] }
 0xb5a   :  { %5414 = vmatprep.subr.bf16.mxu0 %v4138_v24  ;;  %5742 = vmatprep.subr.bf16.mxu1 %v4140_v17  ;;  %v4219_v24 = vld [vmem:[#allocation5 + $0x16f0] sm:$0xff]  ;;  %v4226_v17 = vld [vmem:[#allocation5 + $0x1728] sm:$0xff] }
 0xb5b   :  { %5444 = vmatprep.mubr.bf16.mxu0 %v7649_v21  ;;  %5772 = vmatprep.mubr.bf16.mxu1 %v7649_v21  ;;  %v4161_v21 = vld [vmem:[#allocation5 + $0x1520] sm:$0xff] }
 0xb5d   :  { %5415 = vmatpush1.bf16.msra.mxu0 %v4137_v11  ;;  %5743 = vmatpush1.bf16.msra.mxu1 %v4139_v35  ;;  %v4228_v11 = vld [vmem:[#allocation5 + $0x1738] sm:$0xff]  ;;  %v4225_v35 = vld [vmem:[#allocation5 + $0x1720] sm:$0xff] }
 0xb5e   :  { %5416 = vmatprep.subr.bf16.mxu0 %v4146_v47  ;;  %5744 = vmatprep.subr.bf16.mxu1 %v4148_v56  ;;  %v4227_v47 = vld [vmem:[#allocation5 + $0x1730] sm:$0xff]  ;;  %v4234_v56 = vld [vmem:[#allocation5 + $0x1768] sm:$0xff] }
 0xb61   :  { %5417 = vmatpush1.bf16.msra.mxu0 %v4145_v62  ;;  %5745 = vmatpush1.bf16.msra.mxu1 %v4147_v2  ;;  %v4236_v62 = vld [vmem:[#allocation5 + $0x1778] sm:$0xff]  ;;  %v4233_v2 = vld [vmem:[#allocation5 + $0x1760] sm:$0xff] }
 0xb62   :  { %5418 = vmatprep.subr.bf16.mxu0 %v4154_v34  ;;  %5746 = vmatprep.subr.bf16.mxu1 %v4156_v7  ;;  %v4235_v34 = vld [vmem:[#allocation5 + $0x1770] sm:$0xff]  ;;  %v4242_v7 = vld [vmem:[#allocation5 + $0x17a8] sm:$0xff] }
 0xb65   :  { %5419 = vmatpush1.bf16.msra.mxu0 %v4153_v53  ;;  %5747 = vmatpush1.bf16.msra.mxu1 %v4155_v1  ;;  %v4244_v53 = vld [vmem:[#allocation5 + $0x17b8] sm:$0xff]  ;;  %v4241_v1 = vld [vmem:[#allocation5 + $0x17a0] sm:$0xff] }
 0xb66   :  { %5420 = vmatprep.subr.bf16.mxu0 %v4162_v54  ;;  %5748 = vmatprep.subr.bf16.mxu1 %v4164_v13  ;;  %v4243_v54 = vld [vmem:[#allocation5 + $0x17b0] sm:$0xff]  ;;  %v4250_v13 = vld [vmem:[#allocation5 + $0x17e8] sm:$0xff] }
 0xb69   :  { %5421 = vmatpush1.bf16.msra.mxu0 %v4161_v21  ;;  %5749 = vmatpush1.bf16.msra.mxu1 %v4163_v3  ;;  %v4252_v21 = vld [vmem:[#allocation5 + $0x17f8] sm:$0xff]  ;;  %v4249_v3 = vld [vmem:[#allocation5 + $0x17e0] sm:$0xff] }
 0xb6a   :  { %5422 = vmatprep.subr.bf16.mxu0 %v4170_v52  ;;  %5750 = vmatprep.subr.bf16.mxu1 %v4172_v10  ;;  %v4251_v52 = vld [vmem:[#allocation5 + $0x17f0] sm:$0xff]  ;;  %v4258_v10 = vld [vmem:[#allocation5 + $0x1828] sm:$0xff] }
 0xb6d   :  { %5423 = vmatpush1.bf16.msra.mxu0 %v4169_v30  ;;  %5751 = vmatpush1.bf16.msra.mxu1 %v4171_v5  ;;  %v4260_v30 = vld [vmem:[#allocation5 + $0x1838] sm:$0xff]  ;;  %v4257_v5 = vld [vmem:[#allocation5 + $0x1820] sm:$0xff] }
 0xb6e   :  { %5424 = vmatprep.subr.bf16.mxu0 %v4178_v44  ;;  %5752 = vmatprep.subr.bf16.mxu1 %v4180_v12  ;;  %v4259_v44 = vld [vmem:[#allocation5 + $0x1830] sm:$0xff]  ;;  %v4266_v12 = vld [vmem:[#allocation5 + $0x1868] sm:$0xff] }
 0xb71   :  { %5425 = vmatpush1.bf16.msra.mxu0 %v4177_v57  ;;  %5753 = vmatpush1.bf16.msra.mxu1 %v4179_v48  ;;  %v4268_v57 = vld [vmem:[#allocation5 + $0x1878] sm:$0xff]  ;;  %v4265_v48 = vld [vmem:[#allocation5 + $0x1860] sm:$0xff] }
 0xb72   :  { %5426 = vmatprep.subr.bf16.mxu0 %v4186_v61  ;;  %5754 = vmatprep.subr.bf16.mxu1 %v4188_v16  ;;  %v4267_v61 = vld [vmem:[#allocation5 + $0x1870] sm:$0xff]  ;;  %v4274_v16 = vld [vmem:[#allocation5 + $0x18a8] sm:$0xff] }
 0xb75   :  { %5427 = vmatpush1.bf16.msra.mxu0 %v4185_v25  ;;  %5755 = vmatpush1.bf16.msra.mxu1 %v4187_v15  ;;  %v4276_v25 = vld [vmem:[#allocation5 + $0x18b8] sm:$0xff]  ;;  %v4273_v15 = vld [vmem:[#allocation5 + $0x18a0] sm:$0xff] }
 0xb76   :  { %5428 = vmatprep.subr.bf16.mxu0 %v4194_v18  ;;  %5756 = vmatprep.subr.bf16.mxu1 %v4196_v55  ;;  %v4275_v18 = vld [vmem:[#allocation5 + $0x18b0] sm:$0xff]  ;;  %v4282_v55 = vld [vmem:[#allocation5 + $0x18e8] sm:$0xff] }
 0xb79   :  { %5429 = vmatpush1.bf16.msra.mxu0 %v4193_v27  ;;  %5757 = vmatpush1.bf16.msra.mxu1 %v4195_v39  ;;  %v4281_v27 = vld [vmem:[#allocation5 + $0x18e0] sm:$0xff]  ;;  %v4283_v39 = vld [vmem:[#allocation5 + $0x18f0] sm:$0xff] }
 0xb7a   :  { %5430 = vmatprep.subr.bf16.mxu0 %v4202_v28  ;;  %5758 = vmatprep.subr.bf16.mxu1 %v4204_v29  ;;  %v4290_v28 = vld [vmem:[#allocation5 + $0x1928] sm:$0xff]  ;;  %v4292_v29 = vld [vmem:[#allocation5 + $0x1938] sm:$0xff] }
 0xb7d   :  { %5431 = vmatpush1.bf16.msra.mxu0 %v4201_v42  ;;  %5759 = vmatpush1.bf16.msra.mxu1 %v4203_v45  ;;  %v4291_v42 = vld [vmem:[#allocation5 + $0x1930] sm:$0xff]  ;;  %v4298_v45 = vld [vmem:[#allocation5 + $0x1968] sm:$0xff] }
 0xb7e   :  { %5432 = vmatprep.subr.bf16.mxu0 %v4210_v22  ;;  %5760 = vmatprep.subr.bf16.mxu1 %v4212_v20  ;;  %v4300_v22 = vld [vmem:[#allocation5 + $0x1978] sm:$0xff]  ;;  %v4297_v20 = vld [vmem:[#allocation5 + $0x1960] sm:$0xff] }
 0xb81   :  { %5433 = vmatpush1.bf16.msra.mxu0 %v4209_v4  ;;  %5761 = vmatpush1.bf16.msra.mxu1 %v4211_v6  ;;  %v4299_v4 = vld [vmem:[#allocation5 + $0x1970] sm:$0xff]  ;;  %v4306_v6 = vld [vmem:[#allocation5 + $0x19a8] sm:$0xff] }
 0xb82   :  { %5434 = vmatprep.subr.bf16.mxu0 %v4218_v31  ;;  %5762 = vmatprep.subr.bf16.mxu1 %v4220_v46  ;;  %v4308_v31 = vld [vmem:[#allocation5 + $0x19b8] sm:$0xff]  ;;  %v4305_v46 = vld [vmem:[#allocation5 + $0x19a0] sm:$0xff] }
 0xb85   :  { %5435 = vmatpush1.bf16.msra.mxu0 %v4217_v14  ;;  %5763 = vmatpush1.bf16.msra.mxu1 %v4219_v24  ;;  %v4307_v14 = vld [vmem:[#allocation5 + $0x19b0] sm:$0xff]  ;;  %v4314_v24 = vld [vmem:[#allocation5 + $0x19e8] sm:$0xff] }
 0xb86   :  { %5436 = vmatprep.subr.bf16.mxu0 %v4226_v17  ;;  %5764 = vmatprep.subr.bf16.mxu1 %v4228_v11  ;;  %v4316_v17 = vld [vmem:[#allocation5 + $0x19f8] sm:$0xff]  ;;  %v4313_v11 = vld [vmem:[#allocation5 + $0x19e0] sm:$0xff] }
 0xb89   :  { %5437 = vmatpush1.bf16.msra.mxu0 %v4225_v35  ;;  %5765 = vmatpush1.bf16.msra.mxu1 %v4227_v47  ;;  %v4315_v35 = vld [vmem:[#allocation5 + $0x19f0] sm:$0xff]  ;;  %v4322_v47 = vld [vmem:[#allocation5 + $0x1a28] sm:$0xff] }
 0xb8a   :  { %5438 = vmatprep.subr.bf16.mxu0 %v4234_v56  ;;  %5766 = vmatprep.subr.bf16.mxu1 %v4236_v62  ;;  %v4324_v56 = vld [vmem:[#allocation5 + $0x1a38] sm:$0xff]  ;;  %v4321_v62 = vld [vmem:[#allocation5 + $0x1a20] sm:$0xff] }
 0xb8d   :  { %5439 = vmatpush1.bf16.msra.mxu0 %v4233_v2  ;;  %5767 = vmatpush1.bf16.msra.mxu1 %v4235_v34  ;;  %v4323_v2 = vld [vmem:[#allocation5 + $0x1a30] sm:$0xff]  ;;  %v4330_v34 = vld [vmem:[#allocation5 + $0x1a68] sm:$0xff] }
 0xb8e   :  { %5440 = vmatprep.subr.bf16.mxu0 %v4242_v7  ;;  %5768 = vmatprep.subr.bf16.mxu1 %v4244_v53  ;;  %v4332_v7 = vld [vmem:[#allocation5 + $0x1a78] sm:$0xff]  ;;  %v4329_v53 = vld [vmem:[#allocation5 + $0x1a60] sm:$0xff] }
 0xb91   :  { %5441 = vmatpush1.bf16.msra.mxu0 %v4241_v1  ;;  %5769 = vmatpush1.bf16.msra.mxu1 %v4243_v54  ;;  %v4331_v1 = vld [vmem:[#allocation5 + $0x1a70] sm:$0xff]  ;;  %v4338_v54 = vld [vmem:[#allocation5 + $0x1aa8] sm:$0xff] }
 0xb92   :  { %5442 = vmatprep.subr.bf16.mxu0 %v4250_v13  ;;  %5770 = vmatprep.subr.bf16.mxu1 %v4252_v21  ;;  %v4340_v13 = vld [vmem:[#allocation5 + $0x1ab8] sm:$0xff]  ;;  %v4337_v21 = vld [vmem:[#allocation5 + $0x1aa0] sm:$0xff] }
 0xb95   :  { %5443 = vmatpush1.bf16.msra.mxu0 %v4249_v3  ;;  %5771 = vmatpush1.bf16.msra.mxu1 %v4251_v52  ;;  %v4339_v3 = vld [vmem:[#allocation5 + $0x1ab0] sm:$0xff]  ;;  %v4346_v52 = vld [vmem:[#allocation5 + $0x1ae8] sm:$0xff] }
 0xb96   :  { %5453 = vmatprep.subr.bf16.mxu0 %v4258_v10  ;;  %5781 = vmatprep.subr.bf16.mxu1 %v4260_v30  ;;  %v4348_v10 = vld [vmem:[#allocation5 + $0x1af8] sm:$0xff]  ;;  %v4345_v30 = vld [vmem:[#allocation5 + $0x1ae0] sm:$0xff] }
 0xb98   :  { %5445 = vmatmul.mubr.bf16.vlgmr.msra.gmra.mrb[32].mxu0 %v7658_v43  ;;  %5773 = vmatmul.mubr.bf16.vlgmr.msra.gmra.mrb[32].mxu1 %v7658_v43  ;;  %v4284_v43 = vld [vmem:[#allocation5 + $0x18f8] sm:$0xff] }
 0xb99   :  { %5454 = vmatpush1.bf16.msra.mxu0 %v4257_v5  ;;  %5782 = vmatpush1.bf16.msra.mxu1 %v4259_v44  ;;  %v4347_v5 = vld [vmem:[#allocation5 + $0x1af0] sm:$0xff]  ;;  %v4354_v44 = vld [vmem:[#allocation5 + $0x1b28] sm:$0xff] }
 0xb9a   :  { %5455 = vmatprep.subr.bf16.mxu0 %v4266_v12  ;;  %5783 = vmatprep.subr.bf16.mxu1 %v4268_v57  ;;  %v4356_v12 = vld [vmem:[#allocation5 + $0x1b38] sm:$0xff]  ;;  %v4353_v57 = vld [vmem:[#allocation5 + $0x1b20] sm:$0xff] }
 0xb9b   :  { %5485 = vmatprep.mubr.bf16.mxu0 %v7663_v19  ;;  %5813 = vmatprep.mubr.bf16.mxu1 %v7663_v19  ;;  %v4289_v19 = vld [vmem:[#allocation5 + $0x1920] sm:$0xff] }
 0xb9d   :  { %5456 = vmatpush1.bf16.msra.mxu0 %v4265_v48  ;;  %5784 = vmatpush1.bf16.msra.mxu1 %v4267_v61  ;;  %v4355_v48 = vld [vmem:[#allocation5 + $0x1b30] sm:$0xff]  ;;  %v4362_v61 = vld [vmem:[#allocation5 + $0x1b68] sm:$0xff] }
 0xb9e   :  { %5457 = vmatprep.subr.bf16.mxu0 %v4274_v16  ;;  %5785 = vmatprep.subr.bf16.mxu1 %v4276_v25  ;;  %v4364_v16 = vld [vmem:[#allocation5 + $0x1b78] sm:$0xff]  ;;  %v4361_v25 = vld [vmem:[#allocation5 + $0x1b60] sm:$0xff] }
 0xba1   :  { %5458 = vmatpush1.bf16.msra.mxu0 %v4273_v15  ;;  %5786 = vmatpush1.bf16.msra.mxu1 %v4275_v18  ;;  %v4363_v15 = vld [vmem:[#allocation5 + $0x1b70] sm:$0xff]  ;;  %v4370_v18 = vld [vmem:[#allocation5 + $0x1ba8] sm:$0xff] }
 0xba2   :  { %5459 = vmatprep.subr.bf16.mxu0 %v4282_v55  ;;  %5787 = vmatprep.subr.bf16.mxu1 %v4284_v43  ;;  %v4372_v55 = vld [vmem:[#allocation5 + $0x1bb8] sm:$0xff]  ;;  %v4369_v43 = vld [vmem:[#allocation5 + $0x1ba0] sm:$0xff] }
 0xba5   :  { %5460 = vmatpush1.bf16.msra.mxu0 %v4281_v27  ;;  %5788 = vmatpush1.bf16.msra.mxu1 %v4283_v39  ;;  %v4371_v27 = vld [vmem:[#allocation5 + $0x1bb0] sm:$0xff]  ;;  %v4378_v39 = vld [vmem:[#allocation5 + $0x1be8] sm:$0xff] }
 0xba6   :  { %5461 = vmatprep.subr.bf16.mxu0 %v4290_v28  ;;  %5789 = vmatprep.subr.bf16.mxu1 %v4292_v29  ;;  %v4380_v28 = vld [vmem:[#allocation5 + $0x1bf8] sm:$0xff]  ;;  %v4377_v29 = vld [vmem:[#allocation5 + $0x1be0] sm:$0xff] }
 0xba9   :  { %5462 = vmatpush1.bf16.msra.mxu0 %v4289_v19  ;;  %5790 = vmatpush1.bf16.msra.mxu1 %v4291_v42  ;;  %v4379_v19 = vld [vmem:[#allocation5 + $0x1bf0] sm:$0xff]  ;;  %v4386_v42 = vld [vmem:[#allocation5 + $0x1c28] sm:$0xff] }
 0xbaa   :  { %5463 = vmatprep.subr.bf16.mxu0 %v4298_v45  ;;  %5791 = vmatprep.subr.bf16.mxu1 %v4300_v22  ;;  %v4388_v45 = vld [vmem:[#allocation5 + $0x1c38] sm:$0xff]  ;;  %v4385_v22 = vld [vmem:[#allocation5 + $0x1c20] sm:$0xff] }
 0xbad   :  { %5464 = vmatpush1.bf16.msra.mxu0 %v4297_v20  ;;  %5792 = vmatpush1.bf16.msra.mxu1 %v4299_v4  ;;  %v4387_v20 = vld [vmem:[#allocation5 + $0x1c30] sm:$0xff]  ;;  %v4394_v4 = vld [vmem:[#allocation5 + $0x1c68] sm:$0xff] }
 0xbae   :  { %5465 = vmatprep.subr.bf16.mxu0 %v4306_v6  ;;  %5793 = vmatprep.subr.bf16.mxu1 %v4308_v31  ;;  %v4396_v6 = vld [vmem:[#allocation5 + $0x1c78] sm:$0xff]  ;;  %v4393_v31 = vld [vmem:[#allocation5 + $0x1c60] sm:$0xff] }
 0xbb1   :  { %5466 = vmatpush1.bf16.msra.mxu0 %v4305_v46  ;;  %5794 = vmatpush1.bf16.msra.mxu1 %v4307_v14  ;;  %v4395_v46 = vld [vmem:[#allocation5 + $0x1c70] sm:$0xff]  ;;  %v4402_v14 = vld [vmem:[#allocation5 + $0x1ca8] sm:$0xff] }
 0xbb2   :  { %5467 = vmatprep.subr.bf16.mxu0 %v4314_v24  ;;  %5795 = vmatprep.subr.bf16.mxu1 %v4316_v17  ;;  %v4404_v24 = vld [vmem:[#allocation5 + $0x1cb8] sm:$0xff]  ;;  %v4401_v17 = vld [vmem:[#allocation5 + $0x1ca0] sm:$0xff] }
 0xbb5   :  { %5468 = vmatpush1.bf16.msra.mxu0 %v4313_v11  ;;  %5796 = vmatpush1.bf16.msra.mxu1 %v4315_v35  ;;  %v4403_v11 = vld [vmem:[#allocation5 + $0x1cb0] sm:$0xff]  ;;  %v4410_v35 = vld [vmem:[#allocation5 + $0x1ce8] sm:$0xff] }
 0xbb6   :  { %5469 = vmatprep.subr.bf16.mxu0 %v4322_v47  ;;  %5797 = vmatprep.subr.bf16.mxu1 %v4324_v56  ;;  %v4409_v47 = vld [vmem:[#allocation5 + $0x1ce0] sm:$0xff]  ;;  %v4411_v56 = vld [vmem:[#allocation5 + $0x1cf0] sm:$0xff] }
 0xbb9   :  { %5470 = vmatpush1.bf16.msra.mxu0 %v4321_v62  ;;  %5798 = vmatpush1.bf16.msra.mxu1 %v4323_v2  ;;  %v4418_v62 = vld [vmem:[#allocation5 + $0x1d28] sm:$0xff]  ;;  %v4420_v2 = vld [vmem:[#allocation5 + $0x1d38] sm:$0xff] }
 0xbba   :  { %5471 = vmatprep.subr.bf16.mxu0 %v4330_v34  ;;  %5799 = vmatprep.subr.bf16.mxu1 %v4332_v7  ;;  %v4419_v34 = vld [vmem:[#allocation5 + $0x1d30] sm:$0xff]  ;;  %v4426_v7 = vld [vmem:[#allocation5 + $0x1d68] sm:$0xff] }
 0xbbd   :  { %5472 = vmatpush1.bf16.msra.mxu0 %v4329_v53  ;;  %5800 = vmatpush1.bf16.msra.mxu1 %v4331_v1  ;;  %v4428_v53 = vld [vmem:[#allocation5 + $0x1d78] sm:$0xff]  ;;  %v4425_v1 = vld [vmem:[#allocation5 + $0x1d60] sm:$0xff] }
 0xbbe   :  { %5473 = vmatprep.subr.bf16.mxu0 %v4338_v54  ;;  %5801 = vmatprep.subr.bf16.mxu1 %v4340_v13  ;;  %v4427_v54 = vld [vmem:[#allocation5 + $0x1d70] sm:$0xff]  ;;  %v4434_v13 = vld [vmem:[#allocation5 + $0x1da8] sm:$0xff] }
 0xbc1   :  { %5474 = vmatpush1.bf16.msra.mxu0 %v4337_v21  ;;  %5802 = vmatpush1.bf16.msra.mxu1 %v4339_v3  ;;  %v4436_v21 = vld [vmem:[#allocation5 + $0x1db8] sm:$0xff]  ;;  %v4433_v3 = vld [vmem:[#allocation5 + $0x1da0] sm:$0xff] }
 0xbc2   :  { %5475 = vmatprep.subr.bf16.mxu0 %v4346_v52  ;;  %5803 = vmatprep.subr.bf16.mxu1 %v4348_v10  ;;  %v4435_v52 = vld [vmem:[#allocation5 + $0x1db0] sm:$0xff]  ;;  %v4442_v10 = vld [vmem:[#allocation5 + $0x1de8] sm:$0xff] }
 0xbc5   :  { %5476 = vmatpush1.bf16.msra.mxu0 %v4345_v30  ;;  %5804 = vmatpush1.bf16.msra.mxu1 %v4347_v5  ;;  %v4444_v30 = vld [vmem:[#allocation5 + $0x1df8] sm:$0xff]  ;;  %v4441_v5 = vld [vmem:[#allocation5 + $0x1de0] sm:$0xff] }
 0xbc6   :  { %5477 = vmatprep.subr.bf16.mxu0 %v4354_v44  ;;  %5805 = vmatprep.subr.bf16.mxu1 %v4356_v12  ;;  %v4443_v44 = vld [vmem:[#allocation5 + $0x1df0] sm:$0xff]  ;;  %v4450_v12 = vld [vmem:[#allocation5 + $0x1e28] sm:$0xff] }
 0xbc9   :  { %5478 = vmatpush1.bf16.msra.mxu0 %v4353_v57  ;;  %5806 = vmatpush1.bf16.msra.mxu1 %v4355_v48  ;;  %v4452_v57 = vld [vmem:[#allocation5 + $0x1e38] sm:$0xff]  ;;  %v4449_v48 = vld [vmem:[#allocation5 + $0x1e20] sm:$0xff] }
 0xbca   :  { %5479 = vmatprep.subr.bf16.mxu0 %v4362_v61  ;;  %5807 = vmatprep.subr.bf16.mxu1 %v4364_v16  ;;  %v4451_v61 = vld [vmem:[#allocation5 + $0x1e30] sm:$0xff]  ;;  %v4458_v16 = vld [vmem:[#allocation5 + $0x1e68] sm:$0xff] }
 0xbcd   :  { %5480 = vmatpush1.bf16.msra.mxu0 %v4361_v25  ;;  %5808 = vmatpush1.bf16.msra.mxu1 %v4363_v15  ;;  %v4460_v25 = vld [vmem:[#allocation5 + $0x1e78] sm:$0xff]  ;;  %v4457_v15 = vld [vmem:[#allocation5 + $0x1e60] sm:$0xff] }
 0xbce   :  { %5481 = vmatprep.subr.bf16.mxu0 %v4370_v18  ;;  %5809 = vmatprep.subr.bf16.mxu1 %v4372_v55  ;;  %v4459_v18 = vld [vmem:[#allocation5 + $0x1e70] sm:$0xff]  ;;  %v4466_v55 = vld [vmem:[#allocation5 + $0x1ea8] sm:$0xff] }
 0xbd1   :  { %5482 = vmatpush1.bf16.msra.mxu0 %v4369_v43  ;;  %5810 = vmatpush1.bf16.msra.mxu1 %v4371_v27  ;;  %v4468_v43 = vld [vmem:[#allocation5 + $0x1eb8] sm:$0xff]  ;;  %v4465_v27 = vld [vmem:[#allocation5 + $0x1ea0] sm:$0xff] }
 0xbd2   :  { %5483 = vmatprep.subr.bf16.mxu0 %v4378_v39  ;;  %5811 = vmatprep.subr.bf16.mxu1 %v4380_v28  ;;  %v4467_v39 = vld [vmem:[#allocation5 + $0x1eb0] sm:$0xff]  ;;  %v4474_v28 = vld [vmem:[#allocation5 + $0x1ee8] sm:$0xff] }
 0xbd5   :  { %5484 = vmatpush1.bf16.msra.mxu0 %v4377_v29  ;;  %5812 = vmatpush1.bf16.msra.mxu1 %v4379_v19  ;;  %v4476_v29 = vld [vmem:[#allocation5 + $0x1ef8] sm:$0xff]  ;;  %v4473_v19 = vld [vmem:[#allocation5 + $0x1ee0] sm:$0xff] }
 0xbd6   :  { %5494 = vmatprep.subr.bf16.mxu0 %v4386_v42  ;;  %5822 = vmatprep.subr.bf16.mxu1 %v4388_v45  ;;  %v4475_v42 = vld [vmem:[#allocation5 + $0x1ef0] sm:$0xff]  ;;  %v4482_v45 = vld [vmem:[#allocation5 + $0x1f28] sm:$0xff] }
 0xbd8   :  { %5486 = vmatmul.mubr.bf16.vlgmr.msra.gmra.mrb[32].mxu0 %v7672_v9  ;;  %5814 = vmatmul.mubr.bf16.vlgmr.msra.gmra.mrb[32].mxu1 %v7672_v9  ;;  %v4412_v9 = vld [vmem:[#allocation5 + $0x1cf8] sm:$0xff] }
 0xbd9   :  { %5495 = vmatpush1.bf16.msra.mxu0 %v4385_v22  ;;  %5823 = vmatpush1.bf16.msra.mxu1 %v4387_v20  ;;  %v4484_v22 = vld [vmem:[#allocation5 + $0x1f38] sm:$0xff]  ;;  %v4481_v20 = vld [vmem:[#allocation5 + $0x1f20] sm:$0xff] }
 0xbda   :  { %5496 = vmatprep.subr.bf16.mxu0 %v4394_v4  ;;  %5824 = vmatprep.subr.bf16.mxu1 %v4396_v6  ;;  %v4483_v4 = vld [vmem:[#allocation5 + $0x1f30] sm:$0xff]  ;;  %v4490_v6 = vld [vmem:[#allocation5 + $0x1f68] sm:$0xff] }
 0xbdb   :  { %5526 = vmatprep.mubr.bf16.mxu0 %v7677_v36  ;;  %5854 = vmatprep.mubr.bf16.mxu1 %v7677_v36  ;;  %v4417_v36 = vld [vmem:[#allocation5 + $0x1d20] sm:$0xff] }
 0xbdd   :  { %5497 = vmatpush1.bf16.msra.mxu0 %v4393_v31  ;;  %5825 = vmatpush1.bf16.msra.mxu1 %v4395_v46  ;;  %v4492_v31 = vld [vmem:[#allocation5 + $0x1f78] sm:$0xff]  ;;  %v4489_v46 = vld [vmem:[#allocation5 + $0x1f60] sm:$0xff] }
 0xbde   :  { %5498 = vmatprep.subr.bf16.mxu0 %v4402_v14  ;;  %5826 = vmatprep.subr.bf16.mxu1 %v4404_v24  ;;  %v4491_v14 = vld [vmem:[#allocation5 + $0x1f70] sm:$0xff]  ;;  %v4498_v24 = vld [vmem:[#allocation5 + $0x1fa8] sm:$0xff] }
 0xbe1   :  { %5499 = vmatpush1.bf16.msra.mxu0 %v4401_v17  ;;  %5827 = vmatpush1.bf16.msra.mxu1 %v4403_v11  ;;  %v4500_v17 = vld [vmem:[#allocation5 + $0x1fb8] sm:$0xff]  ;;  %v4497_v11 = vld [vmem:[#allocation5 + $0x1fa0] sm:$0xff] }
 0xbe2   :  { %5500 = vmatprep.subr.bf16.mxu0 %v4410_v35  ;;  %5828 = vmatprep.subr.bf16.mxu1 %v4412_v9  ;;  %v4499_v35 = vld [vmem:[#allocation5 + $0x1fb0] sm:$0xff]  ;;  %v4506_v9 = vld [vmem:[#allocation5 + $0x1fe8] sm:$0xff] }
 0xbe5   :  { %5501 = vmatpush1.bf16.msra.mxu0 %v4409_v47  ;;  %5829 = vmatpush1.bf16.msra.mxu1 %v4411_v56  ;;  %v4508_v47 = vld [vmem:[#allocation5 + $0x1ff8] sm:$0xff]  ;;  %v4505_v56 = vld [vmem:[#allocation5 + $0x1fe0] sm:$0xff] }
 0xbe6   :  { %5502 = vmatprep.subr.bf16.mxu0 %v4418_v62  ;;  %5830 = vmatprep.subr.bf16.mxu1 %v4420_v2  ;;  %v4507_v62 = vld [vmem:[#allocation5 + $0x1ff0] sm:$0xff]  ;;  %v7041_v2 = vld [vmem:[#allocation11 + $0x1c] sm:$0xff] }
 0xbe9   :  { %5503 = vmatpush1.bf16.msra.mxu0 %v4417_v36  ;;  %5831 = vmatpush1.bf16.msra.mxu1 %v4419_v34  ;;  %v4530_v36 = vrot.slane %v7041_v2, %v7376_v59  ;;  %v4538_v34 = vrot.slane %v7041_v2, %v7379_v60 }
 0xbea   :  { %5504 = vmatprep.subr.bf16.mxu0 %v4426_v7  ;;  %5832 = vmatprep.subr.bf16.mxu1 %v4428_v53  ;;  %v4534_v7 = vrot.slane %v7041_v2, %v7382_v63  ;;  %v4542_v53 = vrot.slane %v7041_v2, %v7385_v0 }
 0xbed   :  { %5505 = vmatpush1.bf16.msra.mxu0 %v4425_v1  ;;  %5833 = vmatpush1.bf16.msra.mxu1 %v4427_v54 }
 0xbee   :  { %5506 = vmatprep.subr.bf16.mxu0 %v4434_v13  ;;  %5834 = vmatprep.subr.bf16.mxu1 %v4436_v21 }
 0xbf1   :  { %5507 = vmatpush1.bf16.msra.mxu0 %v4433_v3  ;;  %5835 = vmatpush1.bf16.msra.mxu1 %v4435_v52 }
 0xbf2   :  { %5508 = vmatprep.subr.bf16.mxu0 %v4442_v10  ;;  %5836 = vmatprep.subr.bf16.mxu1 %v4444_v30 }
 0xbf5   :  { %5509 = vmatpush1.bf16.msra.mxu0 %v4441_v5  ;;  %5837 = vmatpush1.bf16.msra.mxu1 %v4443_v44 }
 0xbf6   :  { %5510 = vmatprep.subr.bf16.mxu0 %v4450_v12  ;;  %5838 = vmatprep.subr.bf16.mxu1 %v4452_v57 }
 0xbf9   :  { %5511 = vmatpush1.bf16.msra.mxu0 %v4449_v48  ;;  %5839 = vmatpush1.bf16.msra.mxu1 %v4451_v61 }
 0xbfa   :  { %5512 = vmatprep.subr.bf16.mxu0 %v4458_v16  ;;  %5840 = vmatprep.subr.bf16.mxu1 %v4460_v25 }
 0xbfd   :  { %5513 = vmatpush1.bf16.msra.mxu0 %v4457_v15  ;;  %5841 = vmatpush1.bf16.msra.mxu1 %v4459_v18 }
 0xbfe   :  { %5514 = vmatprep.subr.bf16.mxu0 %v4466_v55  ;;  %5842 = vmatprep.subr.bf16.mxu1 %v4468_v43 }
 0xc01   :  { %5515 = vmatpush1.bf16.msra.mxu0 %v4465_v27  ;;  %5843 = vmatpush1.bf16.msra.mxu1 %v4467_v39 }
 0xc02   :  { %5516 = vmatprep.subr.bf16.mxu0 %v4474_v28  ;;  %5844 = vmatprep.subr.bf16.mxu1 %v4476_v29 }
 0xc05   :  { %5517 = vmatpush1.bf16.msra.mxu0 %v4473_v19  ;;  %5845 = vmatpush1.bf16.msra.mxu1 %v4475_v42 }
 0xc06   :  { %5518 = vmatprep.subr.bf16.mxu0 %v4482_v45  ;;  %5846 = vmatprep.subr.bf16.mxu1 %v4484_v22 }
 0xc09   :  { %5519 = vmatpush1.bf16.msra.mxu0 %v4481_v20  ;;  %5847 = vmatpush1.bf16.msra.mxu1 %v4483_v4 }
 0xc0a   :  { %5520 = vmatprep.subr.bf16.mxu0 %v4490_v6  ;;  %5848 = vmatprep.subr.bf16.mxu1 %v4492_v31 }
 0xc0d   :  { %5521 = vmatpush1.bf16.msra.mxu0 %v4489_v46  ;;  %5849 = vmatpush1.bf16.msra.mxu1 %v4491_v14 }
 0xc0e   :  { %5522 = vmatprep.subr.bf16.mxu0 %v4498_v24  ;;  %5850 = vmatprep.subr.bf16.mxu1 %v4500_v17 }
 0xc11   :  { %5523 = vmatpush1.bf16.msra.mxu0 %v4497_v11  ;;  %5851 = vmatpush1.bf16.msra.mxu1 %v4499_v35 }
 0xc12   :  { %5524 = vmatprep.subr.bf16.mxu0 %v4506_v9  ;;  %5852 = vmatprep.subr.bf16.mxu1 %v4508_v47 }
 0xc15   :  { %5525 = vmatpush1.bf16.msra.mxu0 %v4505_v56  ;;  %5853 = vmatpush1.bf16.msra.mxu1 %v4507_v62 }
 0xc18   :  { %5527 = vmatmul.mubr.bf16.vlgmr.msra.gmra.mrb[32].mxu0 %v7686_v51  ;;  %5855 = vmatmul.mubr.bf16.vlgmr.msra.gmra.mrb[32].mxu1 %v7686_v51 }
 0xceb   :  { %v5528_v1 = vpop.f32.mrb[32].mxu0  ;;  %v5856_v54 = vpop.f32.mrb[32].mxu1 }
 0xcec   :  { %v7742_v13 = vadd.f32 %v5528_v1, %v4530_v36  ;;  %v7744_v21 = vadd.f32 %v5856_v54, %v4538_v34  ;;  %v5530_v3 = vpop.f32.mrb[33].mxu0  ;;  %v5858_v52 = vpop.f32.mrb[33].mxu1 }
 0xced   :  { %v7746_v10 = vadd.f32 %v5530_v3, %v4534_v7  ;;  %v7748_v51 = vadd.f32 %v5858_v52, %v4542_v53  ;;  %v5532_v30 = vpop.f32.mrb[34].mxu0  ;;  %v5860_v59 = vpop.f32.mrb[34].mxu1 }
 0xcee   :  { %v5867_v60 = vmax.f32 %v7742_v13, 0.0  ;;  %v5869_v63 = vmax.f32 %v7744_v21, 0.0  ;;  %v5533_v5 = vpop.f32.mrb[35].mxu0  ;;  %v5861_v0 = vpop.f32.mrb[35].mxu1 }
 0xcef   :  { %v5868_v44 = vmax.f32 %v7746_v10, 0.0  ;;  %v5870_v12 = vmax.f32 %v7748_v51, 0.0 }
 0xcf0   :  { %7120 = dma.done.wait [#allocation8 + $0x4], 32768 }
 0xcf1   :  { %7121 = vsyncadd [#allocation8 + $0x4], 4294934528  ;;  %v5875_v57 = vpack.c.bf16 %v5864_v26, %v5864_v26  ;;  %v5883_v48 = vld [vmem:[#allocation6 + $0x8] sm:$0xff]  ;;  %v5885_v61 = vld [vmem:[#allocation6 + $0x18] sm:$0xff] }
 0xcf2   :  { %v5882_v16 = vld [vmem:[#allocation6] sm:$0xff]  ;;  %6160 = vmatprep.subr.bf16.mxu0 %v5883_v48  ;;  %6324 = vmatprep.subr.bf16.mxu1 %v5885_v61  ;;  %v5884_v25 = vld [vmem:[#allocation6 + $0x10] sm:$0xff]  ;;  %v5887_v15 = vld [vmem:[#allocation6 + $0x28] sm:$0xff] }
 0xcf3   :  { %6192 = vmatprep.mubr.bf16.mxu0 %v5875_v57  ;;  %6356 = vmatprep.mubr.bf16.mxu1 %v5875_v57  ;;  %v5889_v18 = vld [vmem:[#allocation6 + $0x38] sm:$0xff]  ;;  %v5886_v55 = vld [vmem:[#allocation6 + $0x20] sm:$0xff]  ;;  %v5888_v43 = vld [vmem:[#allocation6 + $0x30] sm:$0xff] }
 0xcf4   :  { %6161 = vmatpush1.bf16.msra.mxu0 %v5882_v16  ;;  %6325 = vmatpush1.bf16.msra.mxu1 %v5884_v25  ;;  %v5891_v27 = vld [vmem:[#allocation6 + $0x48] sm:$0xff]  ;;  %v5893_v49 = vld [vmem:[#allocation6 + $0x58] sm:$0xff]  ;;  %v5890_v26 = vld [vmem:[#allocation6 + $0x40] sm:$0xff] }
 0xcf5   :  { %6162 = vmatprep.subr.bf16.mxu0 %v5887_v15  ;;  %6326 = vmatprep.subr.bf16.mxu1 %v5889_v18  ;;  %v5892_v39 = vld [vmem:[#allocation6 + $0x50] sm:$0xff]  ;;  %v5895_v28 = vld [vmem:[#allocation6 + $0x68] sm:$0xff]  ;;  %v5897_v29 = vld [vmem:[#allocation6 + $0x78] sm:$0xff] }
 0xcf6   :  { %v5894_v19 = vld [vmem:[#allocation6 + $0x60] sm:$0xff]  ;;  %v5896_v42 = vld [vmem:[#allocation6 + $0x70] sm:$0xff]  ;;  %v5899_v45 = vld [vmem:[#allocation6 + $0x88] sm:$0xff] }
 0xcf7   :  { %v5901_v22 = vld [vmem:[#allocation6 + $0x98] sm:$0xff]  ;;  %v5898_v20 = vld [vmem:[#allocation6 + $0x80] sm:$0xff]  ;;  %v5900_v4 = vld [vmem:[#allocation6 + $0x90] sm:$0xff] }
 0xcf8   :  { %6163 = vmatpush1.bf16.msra.mxu0 %v5886_v55  ;;  %6327 = vmatpush1.bf16.msra.mxu1 %v5888_v43  ;;  %v5903_v6 = vld [vmem:[#allocation6 + $0xa8] sm:$0xff]  ;;  %v5905_v31 = vld [vmem:[#allocation6 + $0xb8] sm:$0xff]  ;;  %v5902_v46 = vld [vmem:[#allocation6 + $0xa0] sm:$0xff] }
 0xcf9   :  { %6164 = vmatprep.subr.bf16.mxu0 %v5891_v27  ;;  %6328 = vmatprep.subr.bf16.mxu1 %v5893_v49  ;;  %v5904_v14 = vld [vmem:[#allocation6 + $0xb0] sm:$0xff]  ;;  %v5907_v24 = vld [vmem:[#allocation6 + $0xc8] sm:$0xff]  ;;  %v5909_v17 = vld [vmem:[#allocation6 + $0xd8] sm:$0xff] }
 0xcfa   :  { %v5906_v11 = vld [vmem:[#allocation6 + $0xc0] sm:$0xff]  ;;  %v5908_v35 = vld [vmem:[#allocation6 + $0xd0] sm:$0xff]  ;;  %v5911_v9 = vld [vmem:[#allocation6 + $0xe8] sm:$0xff] }
 0xcfb   :  { %v5913_v47 = vld [vmem:[#allocation6 + $0xf8] sm:$0xff]  ;;  %v5910_v56 = vld [vmem:[#allocation6 + $0xe0] sm:$0xff]  ;;  %v5912_v62 = vld [vmem:[#allocation6 + $0xf0] sm:$0xff] }
 0xcfc   :  { %6165 = vmatpush1.bf16.msra.mxu0 %v5890_v26  ;;  %6329 = vmatpush1.bf16.msra.mxu1 %v5892_v39  ;;  %v5915_v2 = vld [vmem:[#allocation6 + $0x108] sm:$0xff]  ;;  %v5917_v36 = vld [vmem:[#allocation6 + $0x118] sm:$0xff]  ;;  %v5914_v34 = vld [vmem:[#allocation6 + $0x100] sm:$0xff] }
 0xcfd   :  { %6166 = vmatprep.subr.bf16.mxu0 %v5895_v28  ;;  %6330 = vmatprep.subr.bf16.mxu1 %v5897_v29  ;;  %v5916_v7 = vld [vmem:[#allocation6 + $0x110] sm:$0xff]  ;;  %v5919_v53 = vld [vmem:[#allocation6 + $0x128] sm:$0xff]  ;;  %v5921_v1 = vld [vmem:[#allocation6 + $0x138] sm:$0xff] }
 0xcfe   :  { %v5918_v54 = vld [vmem:[#allocation6 + $0x120] sm:$0xff]  ;;  %v5920_v3 = vld [vmem:[#allocation6 + $0x130] sm:$0xff]  ;;  %v5923_v52 = vld [vmem:[#allocation6 + $0x148] sm:$0xff] }
 0xcff   :  { %v5925_v30 = vld [vmem:[#allocation6 + $0x158] sm:$0xff]  ;;  %v5922_v59 = vld [vmem:[#allocation6 + $0x140] sm:$0xff]  ;;  %v5924_v5 = vld [vmem:[#allocation6 + $0x150] sm:$0xff] }
 0xd00   :  { %6167 = vmatpush1.bf16.msra.mxu0 %v5894_v19  ;;  %6331 = vmatpush1.bf16.msra.mxu1 %v5896_v42  ;;  %v5927_v0 = vld [vmem:[#allocation6 + $0x168] sm:$0xff]  ;;  %v5929_v57 = vld [vmem:[#allocation6 + $0x178] sm:$0xff]  ;;  %v5926_v48 = vld [vmem:[#allocation6 + $0x160] sm:$0xff] }
 0xd01   :  { %6168 = vmatprep.subr.bf16.mxu0 %v5899_v45  ;;  %6332 = vmatprep.subr.bf16.mxu1 %v5901_v22  ;;  %v5928_v61 = vld [vmem:[#allocation6 + $0x170] sm:$0xff]  ;;  %v5931_v16 = vld [vmem:[#allocation6 + $0x188] sm:$0xff]  ;;  %v5933_v25 = vld [vmem:[#allocation6 + $0x198] sm:$0xff] }
 0xd02   :  { %v5930_v15 = vld [vmem:[#allocation6 + $0x180] sm:$0xff]  ;;  %v5932_v18 = vld [vmem:[#allocation6 + $0x190] sm:$0xff]  ;;  %v5935_v55 = vld [vmem:[#allocation6 + $0x1a8] sm:$0xff] }
 0xd03   :  { %v5937_v43 = vld [vmem:[#allocation6 + $0x1b8] sm:$0xff]  ;;  %v5934_v27 = vld [vmem:[#allocation6 + $0x1a0] sm:$0xff]  ;;  %v5936_v49 = vld [vmem:[#allocation6 + $0x1b0] sm:$0xff] }
 0xd04   :  { %6169 = vmatpush1.bf16.msra.mxu0 %v5898_v20  ;;  %6333 = vmatpush1.bf16.msra.mxu1 %v5900_v4  ;;  %v5939_v26 = vld [vmem:[#allocation6 + $0x1c8] sm:$0xff]  ;;  %v5941_v39 = vld [vmem:[#allocation6 + $0x1d8] sm:$0xff]  ;;  %v5938_v28 = vld [vmem:[#allocation6 + $0x1c0] sm:$0xff] }
 0xd05   :  { %6170 = vmatprep.subr.bf16.mxu0 %v5903_v6  ;;  %6334 = vmatprep.subr.bf16.mxu1 %v5905_v31  ;;  %v5940_v29 = vld [vmem:[#allocation6 + $0x1d0] sm:$0xff]  ;;  %v5943_v19 = vld [vmem:[#allocation6 + $0x1e8] sm:$0xff]  ;;  %v5945_v42 = vld [vmem:[#allocation6 + $0x1f8] sm:$0xff]  ;;  %v5874_v6 = vpack.c.bf16 %v5863_v58, %v5863_v58 }
 0xd06   :  { %v5942_v45 = vld [vmem:[#allocation6 + $0x1e0] sm:$0xff]  ;;  %v5944_v22 = vld [vmem:[#allocation6 + $0x1f0] sm:$0xff]  ;;  %v5947_v20 = vld [vmem:[#allocation6 + $0x208] sm:$0xff] }
 0xd07   :  { %v5949_v4 = vld [vmem:[#allocation6 + $0x218] sm:$0xff]  ;;  %v5946_v31 = vld [vmem:[#allocation6 + $0x200] sm:$0xff]  ;;  %v5952_v58 = vld [vmem:[#allocation6 + $0x230] sm:$0xff] }
 0xd08   :  { %6171 = vmatpush1.bf16.msra.mxu0 %v5902_v46  ;;  %6335 = vmatpush1.bf16.msra.mxu1 %v5904_v14  ;;  %v5948_v46 = vld [vmem:[#allocation6 + $0x210] sm:$0xff]  ;;  %v5951_v14 = vld [vmem:[#allocation6 + $0x228] sm:$0xff]  ;;  %v5950_v8 = vld [vmem:[#allocation6 + $0x220] sm:$0xff] }
 0xd09   :  { %6172 = vmatprep.subr.bf16.mxu0 %v5907_v24  ;;  %6336 = vmatprep.subr.bf16.mxu1 %v5909_v17  ;;  %v5953_v24 = vld [vmem:[#allocation6 + $0x238] sm:$0xff]  ;;  %v5877_v17 = vpack.c.bf16 %v5866_v23, %v5866_v23  ;;  %v5956_v33 = vld [vmem:[#allocation6 + $0x250] sm:$0xff]  ;;  %v6014_v32 = vld [vmem:[#allocation6 + $0x420] sm:$0xff] }
 0xd0a   :  { %v5961_v23 = vld [vmem:[#allocation6 + $0x278] sm:$0xff]  ;;  %v6020_v10 = vld [vmem:[#allocation6 + $0x450] sm:$0xff]  ;;  %v6078_v13 = vld [vmem:[#allocation6 + $0x620] sm:$0xff] }
 0xd0b   :  { %v6084_v51 = vld [vmem:[#allocation6 + $0x650] sm:$0xff] }
 0xd0c   :  { %6173 = vmatpush1.bf16.msra.mxu0 %v5906_v11  ;;  %6337 = vmatpush1.bf16.msra.mxu1 %v5908_v35  ;;  %v5955_v11 = vld [vmem:[#allocation6 + $0x248] sm:$0xff]  ;;  %v5957_v35 = vld [vmem:[#allocation6 + $0x258] sm:$0xff] }
 0xd0d   :  { %6174 = vmatprep.subr.bf16.mxu0 %v5911_v9  ;;  %6338 = vmatprep.subr.bf16.mxu1 %v5913_v47  ;;  %v5954_v9 = vld [vmem:[#allocation6 + $0x240] sm:$0xff]  ;;  %v5959_v47 = vld [vmem:[#allocation6 + $0x268] sm:$0xff] }
 0xd10   :  { %6175 = vmatpush1.bf16.msra.mxu0 %v5910_v56  ;;  %6339 = vmatpush1.bf16.msra.mxu1 %v5912_v62  ;;  %v5958_v56 = vld [vmem:[#allocation6 + $0x260] sm:$0xff]  ;;  %v5960_v62 = vld [vmem:[#allocation6 + $0x270] sm:$0xff] }
 0xd11   :  { %6176 = vmatprep.subr.bf16.mxu0 %v5915_v2  ;;  %6340 = vmatprep.subr.bf16.mxu1 %v5917_v36  ;;  %v5963_v2 = vld [vmem:[#allocation6 + $0x288] sm:$0xff]  ;;  %v5965_v36 = vld [vmem:[#allocation6 + $0x298] sm:$0xff] }
 0xd14   :  { %6177 = vmatpush1.bf16.msra.mxu0 %v5914_v34  ;;  %6341 = vmatpush1.bf16.msra.mxu1 %v5916_v7  ;;  %v5962_v34 = vld [vmem:[#allocation6 + $0x280] sm:$0xff]  ;;  %v5964_v7 = vld [vmem:[#allocation6 + $0x290] sm:$0xff] }
 0xd15   :  { %6178 = vmatprep.subr.bf16.mxu0 %v5919_v53  ;;  %6342 = vmatprep.subr.bf16.mxu1 %v5921_v1  ;;  %v5967_v53 = vld [vmem:[#allocation6 + $0x2a8] sm:$0xff]  ;;  %v5969_v1 = vld [vmem:[#allocation6 + $0x2b8] sm:$0xff] }
 0xd18   :  { %6179 = vmatpush1.bf16.msra.mxu0 %v5918_v54  ;;  %6343 = vmatpush1.bf16.msra.mxu1 %v5920_v3  ;;  %v5966_v54 = vld [vmem:[#allocation6 + $0x2a0] sm:$0xff]  ;;  %v5968_v3 = vld [vmem:[#allocation6 + $0x2b0] sm:$0xff] }
 0xd19   :  { %6180 = vmatprep.subr.bf16.mxu0 %v5923_v52  ;;  %6344 = vmatprep.subr.bf16.mxu1 %v5925_v30  ;;  %v5971_v52 = vld [vmem:[#allocation6 + $0x2c8] sm:$0xff]  ;;  %v5973_v30 = vld [vmem:[#allocation6 + $0x2d8] sm:$0xff] }
 0xd1c   :  { %6181 = vmatpush1.bf16.msra.mxu0 %v5922_v59  ;;  %6345 = vmatpush1.bf16.msra.mxu1 %v5924_v5  ;;  %v5970_v59 = vld [vmem:[#allocation6 + $0x2c0] sm:$0xff]  ;;  %v5972_v5 = vld [vmem:[#allocation6 + $0x2d0] sm:$0xff] }
 0xd1d   :  { %6182 = vmatprep.subr.bf16.mxu0 %v5927_v0  ;;  %6346 = vmatprep.subr.bf16.mxu1 %v5929_v57  ;;  %v5975_v0 = vld [vmem:[#allocation6 + $0x2e8] sm:$0xff]  ;;  %v5977_v57 = vld [vmem:[#allocation6 + $0x2f8] sm:$0xff] }
 0xd20   :  { %6183 = vmatpush1.bf16.msra.mxu0 %v5926_v48  ;;  %6347 = vmatpush1.bf16.msra.mxu1 %v5928_v61  ;;  %v5974_v48 = vld [vmem:[#allocation6 + $0x2e0] sm:$0xff]  ;;  %v5976_v61 = vld [vmem:[#allocation6 + $0x2f0] sm:$0xff] }
 0xd21   :  { %6184 = vmatprep.subr.bf16.mxu0 %v5931_v16  ;;  %6348 = vmatprep.subr.bf16.mxu1 %v5933_v25  ;;  %v5979_v16 = vld [vmem:[#allocation6 + $0x308] sm:$0xff]  ;;  %v5981_v25 = vld [vmem:[#allocation6 + $0x318] sm:$0xff] }
 0xd24   :  { %6185 = vmatpush1.bf16.msra.mxu0 %v5930_v15  ;;  %6349 = vmatpush1.bf16.msra.mxu1 %v5932_v18  ;;  %v5978_v15 = vld [vmem:[#allocation6 + $0x300] sm:$0xff]  ;;  %v5980_v18 = vld [vmem:[#allocation6 + $0x310] sm:$0xff] }
 0xd25   :  { %6186 = vmatprep.subr.bf16.mxu0 %v5935_v55  ;;  %6350 = vmatprep.subr.bf16.mxu1 %v5937_v43  ;;  %v5983_v55 = vld [vmem:[#allocation6 + $0x328] sm:$0xff]  ;;  %v5985_v43 = vld [vmem:[#allocation6 + $0x338] sm:$0xff] }
 0xd28   :  { %6187 = vmatpush1.bf16.msra.mxu0 %v5934_v27  ;;  %6351 = vmatpush1.bf16.msra.mxu1 %v5936_v49  ;;  %v5982_v27 = vld [vmem:[#allocation6 + $0x320] sm:$0xff]  ;;  %v5984_v49 = vld [vmem:[#allocation6 + $0x330] sm:$0xff] }
 0xd29   :  { %6188 = vmatprep.subr.bf16.mxu0 %v5939_v26  ;;  %6352 = vmatprep.subr.bf16.mxu1 %v5941_v39  ;;  %v5987_v26 = vld [vmem:[#allocation6 + $0x348] sm:$0xff]  ;;  %v5989_v39 = vld [vmem:[#allocation6 + $0x358] sm:$0xff] }
 0xd2c   :  { %6189 = vmatpush1.bf16.msra.mxu0 %v5938_v28  ;;  %6353 = vmatpush1.bf16.msra.mxu1 %v5940_v29  ;;  %v5986_v28 = vld [vmem:[#allocation6 + $0x340] sm:$0xff]  ;;  %v5988_v29 = vld [vmem:[#allocation6 + $0x350] sm:$0xff] }
 0xd2d   :  { %6190 = vmatprep.subr.bf16.mxu0 %v5943_v19  ;;  %6354 = vmatprep.subr.bf16.mxu1 %v5945_v42  ;;  %v5991_v19 = vld [vmem:[#allocation6 + $0x368] sm:$0xff]  ;;  %v5993_v42 = vld [vmem:[#allocation6 + $0x378] sm:$0xff] }
 0xd30   :  { %6191 = vmatpush1.bf16.msra.mxu0 %v5942_v45  ;;  %6355 = vmatpush1.bf16.msra.mxu1 %v5944_v22  ;;  %v5990_v45 = vld [vmem:[#allocation6 + $0x360] sm:$0xff]  ;;  %v5992_v22 = vld [vmem:[#allocation6 + $0x370] sm:$0xff] }
 0xd31   :  { %6201 = vmatprep.subr.bf16.mxu0 %v5947_v20  ;;  %6365 = vmatprep.subr.bf16.mxu1 %v5949_v4  ;;  %v5995_v20 = vld [vmem:[#allocation6 + $0x388] sm:$0xff]  ;;  %v5997_v4 = vld [vmem:[#allocation6 + $0x398] sm:$0xff] }
 0xd33   :  { %6193 = vmatmul.mubr.bf16.vlgmr.msra.gmra.mrb[36].mxu0 %v5874_v6  ;;  %6357 = vmatmul.mubr.bf16.vlgmr.msra.gmra.mrb[36].mxu1 %v5874_v6  ;;  %v5994_v6 = vld [vmem:[#allocation6 + $0x380] sm:$0xff] }
 0xd34   :  { %6202 = vmatpush1.bf16.msra.mxu0 %v5946_v31  ;;  %6366 = vmatpush1.bf16.msra.mxu1 %v5948_v46  ;;  %v5996_v31 = vld [vmem:[#allocation6 + $0x390] sm:$0xff]  ;;  %v5999_v46 = vld [vmem:[#allocation6 + $0x3a8] sm:$0xff] }
 0xd35   :  { %6203 = vmatprep.subr.bf16.mxu0 %v5951_v14  ;;  %6367 = vmatprep.subr.bf16.mxu1 %v5953_v24  ;;  %v6001_v14 = vld [vmem:[#allocation6 + $0x3b8] sm:$0xff]  ;;  %v5998_v24 = vld [vmem:[#allocation6 + $0x3a0] sm:$0xff] }
 0xd36   :  { %6233 = vmatprep.mubr.bf16.mxu0 %v5877_v17  ;;  %6397 = vmatprep.mubr.bf16.mxu1 %v5877_v17  ;;  %v6000_v17 = vld [vmem:[#allocation6 + $0x3b0] sm:$0xff] }
 0xd38   :  { %6204 = vmatpush1.bf16.msra.mxu0 %v5950_v8  ;;  %6368 = vmatpush1.bf16.msra.mxu1 %v5952_v58  ;;  %v6003_v8 = vld [vmem:[#allocation6 + $0x3c8] sm:$0xff]  ;;  %v6005_v58 = vld [vmem:[#allocation6 + $0x3d8] sm:$0xff] }
 0xd39   :  { %6205 = vmatprep.subr.bf16.mxu0 %v5955_v11  ;;  %6369 = vmatprep.subr.bf16.mxu1 %v5957_v35  ;;  %v6002_v11 = vld [vmem:[#allocation6 + $0x3c0] sm:$0xff]  ;;  %v6004_v35 = vld [vmem:[#allocation6 + $0x3d0] sm:$0xff] }
 0xd3c   :  { %6206 = vmatpush1.bf16.msra.mxu0 %v5954_v9  ;;  %6370 = vmatpush1.bf16.msra.mxu1 %v5956_v33  ;;  %v6007_v9 = vld [vmem:[#allocation6 + $0x3e8] sm:$0xff]  ;;  %v6009_v33 = vld [vmem:[#allocation6 + $0x3f8] sm:$0xff] }
 0xd3d   :  { %6207 = vmatprep.subr.bf16.mxu0 %v5959_v47  ;;  %6371 = vmatprep.subr.bf16.mxu1 %v5961_v23  ;;  %v6006_v47 = vld [vmem:[#allocation6 + $0x3e0] sm:$0xff]  ;;  %v6008_v23 = vld [vmem:[#allocation6 + $0x3f0] sm:$0xff] }
 0xd40   :  { %6208 = vmatpush1.bf16.msra.mxu0 %v5958_v56  ;;  %6372 = vmatpush1.bf16.msra.mxu1 %v5960_v62  ;;  %v6011_v56 = vld [vmem:[#allocation6 + $0x408] sm:$0xff]  ;;  %v6013_v62 = vld [vmem:[#allocation6 + $0x418] sm:$0xff] }
 0xd41   :  { %6209 = vmatprep.subr.bf16.mxu0 %v5963_v2  ;;  %6373 = vmatprep.subr.bf16.mxu1 %v5965_v36  ;;  %v5876_v2 = vpack.c.bf16 %v5865_v50, %v5865_v50  ;;  %v6010_v36 = vld [vmem:[#allocation6 + $0x400] sm:$0xff]  ;;  %v6016_v50 = vld [vmem:[#allocation6 + $0x430] sm:$0xff] }
 0xd44   :  { %6210 = vmatpush1.bf16.msra.mxu0 %v5962_v34  ;;  %6374 = vmatpush1.bf16.msra.mxu1 %v5964_v7  ;;  %v6012_v34 = vld [vmem:[#allocation6 + $0x410] sm:$0xff]  ;;  %v6015_v7 = vld [vmem:[#allocation6 + $0x428] sm:$0xff] }
 0xd45   :  { %6211 = vmatprep.subr.bf16.mxu0 %v5967_v53  ;;  %6375 = vmatprep.subr.bf16.mxu1 %v5969_v1  ;;  %v6017_v53 = vld [vmem:[#allocation6 + $0x438] sm:$0xff]  ;;  %v5879_v1 = vpack.c.bf16 %v5868_v44, %v5868_v44 }
 0xd46   :  { %v6025_v44 = vld [vmem:[#allocation6 + $0x478] sm:$0xff] }
 0xd48   :  { %6212 = vmatpush1.bf16.msra.mxu0 %v5966_v54  ;;  %6376 = vmatpush1.bf16.msra.mxu1 %v5968_v3  ;;  %v6019_v54 = vld [vmem:[#allocation6 + $0x448] sm:$0xff]  ;;  %v6021_v3 = vld [vmem:[#allocation6 + $0x458] sm:$0xff] }
 0xd49   :  { %6213 = vmatprep.subr.bf16.mxu0 %v5971_v52  ;;  %6377 = vmatprep.subr.bf16.mxu1 %v5973_v30  ;;  %v6018_v52 = vld [vmem:[#allocation6 + $0x440] sm:$0xff]  ;;  %v6023_v30 = vld [vmem:[#allocation6 + $0x468] sm:$0xff] }
 0xd4c   :  { %6214 = vmatpush1.bf16.msra.mxu0 %v5970_v59  ;;  %6378 = vmatpush1.bf16.msra.mxu1 %v5972_v5  ;;  %v6022_v59 = vld [vmem:[#allocation6 + $0x460] sm:$0xff]  ;;  %v6024_v5 = vld [vmem:[#allocation6 + $0x470] sm:$0xff] }
 0xd4d   :  { %6215 = vmatprep.subr.bf16.mxu0 %v5975_v0  ;;  %6379 = vmatprep.subr.bf16.mxu1 %v5977_v57  ;;  %v6027_v0 = vld [vmem:[#allocation6 + $0x488] sm:$0xff]  ;;  %v6029_v57 = vld [vmem:[#allocation6 + $0x498] sm:$0xff] }
 0xd50   :  { %6216 = vmatpush1.bf16.msra.mxu0 %v5974_v48  ;;  %6380 = vmatpush1.bf16.msra.mxu1 %v5976_v61  ;;  %v6026_v48 = vld [vmem:[#allocation6 + $0x480] sm:$0xff]  ;;  %v6028_v61 = vld [vmem:[#allocation6 + $0x490] sm:$0xff] }
 0xd51   :  { %6217 = vmatprep.subr.bf16.mxu0 %v5979_v16  ;;  %6381 = vmatprep.subr.bf16.mxu1 %v5981_v25  ;;  %v6031_v16 = vld [vmem:[#allocation6 + $0x4a8] sm:$0xff]  ;;  %v6033_v25 = vld [vmem:[#allocation6 + $0x4b8] sm:$0xff] }
 0xd54   :  { %6218 = vmatpush1.bf16.msra.mxu0 %v5978_v15  ;;  %6382 = vmatpush1.bf16.msra.mxu1 %v5980_v18  ;;  %v6030_v15 = vld [vmem:[#allocation6 + $0x4a0] sm:$0xff]  ;;  %v6032_v18 = vld [vmem:[#allocation6 + $0x4b0] sm:$0xff] }
 0xd55   :  { %6219 = vmatprep.subr.bf16.mxu0 %v5983_v55  ;;  %6383 = vmatprep.subr.bf16.mxu1 %v5985_v43  ;;  %v6035_v55 = vld [vmem:[#allocation6 + $0x4c8] sm:$0xff]  ;;  %v6037_v43 = vld [vmem:[#allocation6 + $0x4d8] sm:$0xff] }
 0xd58   :  { %6220 = vmatpush1.bf16.msra.mxu0 %v5982_v27  ;;  %6384 = vmatpush1.bf16.msra.mxu1 %v5984_v49  ;;  %v6034_v27 = vld [vmem:[#allocation6 + $0x4c0] sm:$0xff]  ;;  %v6036_v49 = vld [vmem:[#allocation6 + $0x4d0] sm:$0xff] }
 0xd59   :  { %6221 = vmatprep.subr.bf16.mxu0 %v5987_v26  ;;  %6385 = vmatprep.subr.bf16.mxu1 %v5989_v39  ;;  %v6039_v26 = vld [vmem:[#allocation6 + $0x4e8] sm:$0xff]  ;;  %v6041_v39 = vld [vmem:[#allocation6 + $0x4f8] sm:$0xff] }
 0xd5c   :  { %6222 = vmatpush1.bf16.msra.mxu0 %v5986_v28  ;;  %6386 = vmatpush1.bf16.msra.mxu1 %v5988_v29  ;;  %v6038_v28 = vld [vmem:[#allocation6 + $0x4e0] sm:$0xff]  ;;  %v6040_v29 = vld [vmem:[#allocation6 + $0x4f0] sm:$0xff] }
 0xd5d   :  { %6223 = vmatprep.subr.bf16.mxu0 %v5991_v19  ;;  %6387 = vmatprep.subr.bf16.mxu1 %v5993_v42  ;;  %v6043_v19 = vld [vmem:[#allocation6 + $0x508] sm:$0xff]  ;;  %v6045_v42 = vld [vmem:[#allocation6 + $0x518] sm:$0xff] }
 0xd60   :  { %6224 = vmatpush1.bf16.msra.mxu0 %v5990_v45  ;;  %6388 = vmatpush1.bf16.msra.mxu1 %v5992_v22  ;;  %v6042_v45 = vld [vmem:[#allocation6 + $0x500] sm:$0xff]  ;;  %v6044_v22 = vld [vmem:[#allocation6 + $0x510] sm:$0xff] }
 0xd61   :  { %6225 = vmatprep.subr.bf16.mxu0 %v5995_v20  ;;  %6389 = vmatprep.subr.bf16.mxu1 %v5997_v4  ;;  %v6047_v20 = vld [vmem:[#allocation6 + $0x528] sm:$0xff]  ;;  %v6049_v4 = vld [vmem:[#allocation6 + $0x538] sm:$0xff] }
 0xd64   :  { %6226 = vmatpush1.bf16.msra.mxu0 %v5994_v6  ;;  %6390 = vmatpush1.bf16.msra.mxu1 %v5996_v31  ;;  %v6046_v6 = vld [vmem:[#allocation6 + $0x520] sm:$0xff]  ;;  %v6048_v31 = vld [vmem:[#allocation6 + $0x530] sm:$0xff] }
 0xd65   :  { %6227 = vmatprep.subr.bf16.mxu0 %v5999_v46  ;;  %6391 = vmatprep.subr.bf16.mxu1 %v6001_v14  ;;  %v6051_v46 = vld [vmem:[#allocation6 + $0x548] sm:$0xff]  ;;  %v6053_v14 = vld [vmem:[#allocation6 + $0x558] sm:$0xff] }
 0xd68   :  { %6228 = vmatpush1.bf16.msra.mxu0 %v5998_v24  ;;  %6392 = vmatpush1.bf16.msra.mxu1 %v6000_v17  ;;  %v6050_v24 = vld [vmem:[#allocation6 + $0x540] sm:$0xff]  ;;  %v6052_v17 = vld [vmem:[#allocation6 + $0x550] sm:$0xff] }
 0xd69   :  { %6229 = vmatprep.subr.bf16.mxu0 %v6003_v8  ;;  %6393 = vmatprep.subr.bf16.mxu1 %v6005_v58  ;;  %v6055_v8 = vld [vmem:[#allocation6 + $0x568] sm:$0xff]  ;;  %v6057_v58 = vld [vmem:[#allocation6 + $0x578] sm:$0xff] }
 0xd6c   :  { %6230 = vmatpush1.bf16.msra.mxu0 %v6002_v11  ;;  %6394 = vmatpush1.bf16.msra.mxu1 %v6004_v35  ;;  %v6054_v11 = vld [vmem:[#allocation6 + $0x560] sm:$0xff]  ;;  %v6056_v35 = vld [vmem:[#allocation6 + $0x570] sm:$0xff] }
 0xd6d   :  { %6231 = vmatprep.subr.bf16.mxu0 %v6007_v9  ;;  %6395 = vmatprep.subr.bf16.mxu1 %v6009_v33  ;;  %v6059_v9 = vld [vmem:[#allocation6 + $0x588] sm:$0xff]  ;;  %v6061_v33 = vld [vmem:[#allocation6 + $0x598] sm:$0xff] }
 0xd70   :  { %6232 = vmatpush1.bf16.msra.mxu0 %v6006_v47  ;;  %6396 = vmatpush1.bf16.msra.mxu1 %v6008_v23  ;;  %v6058_v47 = vld [vmem:[#allocation6 + $0x580] sm:$0xff]  ;;  %v6060_v23 = vld [vmem:[#allocation6 + $0x590] sm:$0xff] }
 0xd71   :  { %6242 = vmatprep.subr.bf16.mxu0 %v6011_v56  ;;  %6406 = vmatprep.subr.bf16.mxu1 %v6013_v62  ;;  %v6063_v56 = vld [vmem:[#allocation6 + $0x5a8] sm:$0xff]  ;;  %v6065_v62 = vld [vmem:[#allocation6 + $0x5b8] sm:$0xff] }
 0xd73   :  { %6234 = vmatmul.mubr.bf16.vlgmr.msra.gmra.mrb[36].mxu0 %v5876_v2  ;;  %6398 = vmatmul.mubr.bf16.vlgmr.msra.gmra.mrb[36].mxu1 %v5876_v2  ;;  %v6062_v2 = vld [vmem:[#allocation6 + $0x5a0] sm:$0xff] }
 0xd74   :  { %6243 = vmatpush1.bf16.msra.mxu0 %v6010_v36  ;;  %6407 = vmatpush1.bf16.msra.mxu1 %v6012_v34  ;;  %v6064_v36 = vld [vmem:[#allocation6 + $0x5b0] sm:$0xff]  ;;  %v6067_v34 = vld [vmem:[#allocation6 + $0x5c8] sm:$0xff] }
 0xd75   :  { %6244 = vmatprep.subr.bf16.mxu0 %v6015_v7  ;;  %6408 = vmatprep.subr.bf16.mxu1 %v6017_v53  ;;  %v6069_v7 = vld [vmem:[#allocation6 + $0x5d8] sm:$0xff]  ;;  %v6066_v53 = vld [vmem:[#allocation6 + $0x5c0] sm:$0xff] }
 0xd76   :  { %6274 = vmatprep.mubr.bf16.mxu0 %v5879_v1  ;;  %6438 = vmatprep.mubr.bf16.mxu1 %v5879_v1  ;;  %v6068_v1 = vld [vmem:[#allocation6 + $0x5d0] sm:$0xff] }
 0xd78   :  { %6245 = vmatpush1.bf16.msra.mxu0 %v6014_v32  ;;  %6409 = vmatpush1.bf16.msra.mxu1 %v6016_v50  ;;  %v6071_v32 = vld [vmem:[#allocation6 + $0x5e8] sm:$0xff]  ;;  %v6073_v50 = vld [vmem:[#allocation6 + $0x5f8] sm:$0xff] }
 0xd79   :  { %6246 = vmatprep.subr.bf16.mxu0 %v6019_v54  ;;  %6410 = vmatprep.subr.bf16.mxu1 %v6021_v3  ;;  %v6070_v54 = vld [vmem:[#allocation6 + $0x5e0] sm:$0xff]  ;;  %v6072_v3 = vld [vmem:[#allocation6 + $0x5f0] sm:$0xff] }
 0xd7c   :  { %6247 = vmatpush1.bf16.msra.mxu0 %v6018_v52  ;;  %6411 = vmatpush1.bf16.msra.mxu1 %v6020_v10  ;;  %v6075_v52 = vld [vmem:[#allocation6 + $0x608] sm:$0xff]  ;;  %v6077_v10 = vld [vmem:[#allocation6 + $0x618] sm:$0xff] }
 0xd7d   :  { %6248 = vmatprep.subr.bf16.mxu0 %v6023_v30  ;;  %6412 = vmatprep.subr.bf16.mxu1 %v6025_v44  ;;  %v5878_v30 = vpack.c.bf16 %v5867_v60, %v5867_v60  ;;  %v6074_v44 = vld [vmem:[#allocation6 + $0x600] sm:$0xff]  ;;  %v6080_v60 = vld [vmem:[#allocation6 + $0x630] sm:$0xff] }
 0xd80   :  { %6249 = vmatpush1.bf16.msra.mxu0 %v6022_v59  ;;  %6413 = vmatpush1.bf16.msra.mxu1 %v6024_v5  ;;  %v6076_v59 = vld [vmem:[#allocation6 + $0x610] sm:$0xff]  ;;  %v6079_v5 = vld [vmem:[#allocation6 + $0x628] sm:$0xff] }
 0xd81   :  { %6250 = vmatprep.subr.bf16.mxu0 %v6027_v0  ;;  %6414 = vmatprep.subr.bf16.mxu1 %v6029_v57  ;;  %v6081_v0 = vld [vmem:[#allocation6 + $0x638] sm:$0xff]  ;;  %v5881_v57 = vpack.c.bf16 %v5870_v12, %v5870_v12 }
 0xd82   :  { %v6089_v12 = vld [vmem:[#allocation6 + $0x678] sm:$0xff] }
 0xd84   :  { %6251 = vmatpush1.bf16.msra.mxu0 %v6026_v48  ;;  %6415 = vmatpush1.bf16.msra.mxu1 %v6028_v61  ;;  %v6083_v48 = vld [vmem:[#allocation6 + $0x648] sm:$0xff]  ;;  %v6085_v61 = vld [vmem:[#allocation6 + $0x658] sm:$0xff] }
 0xd85   :  { %6252 = vmatprep.subr.bf16.mxu0 %v6031_v16  ;;  %6416 = vmatprep.subr.bf16.mxu1 %v6033_v25  ;;  %v6082_v16 = vld [vmem:[#allocation6 + $0x640] sm:$0xff]  ;;  %v6087_v25 = vld [vmem:[#allocation6 + $0x668] sm:$0xff] }
 0xd88   :  { %6253 = vmatpush1.bf16.msra.mxu0 %v6030_v15  ;;  %6417 = vmatpush1.bf16.msra.mxu1 %v6032_v18  ;;  %v6086_v15 = vld [vmem:[#allocation6 + $0x660] sm:$0xff]  ;;  %v6088_v18 = vld [vmem:[#allocation6 + $0x670] sm:$0xff] }
 0xd89   :  { %6254 = vmatprep.subr.bf16.mxu0 %v6035_v55  ;;  %6418 = vmatprep.subr.bf16.mxu1 %v6037_v43  ;;  %v6091_v55 = vld [vmem:[#allocation6 + $0x688] sm:$0xff]  ;;  %v6093_v43 = vld [vmem:[#allocation6 + $0x698] sm:$0xff] }
 0xd8c   :  { %6255 = vmatpush1.bf16.msra.mxu0 %v6034_v27  ;;  %6419 = vmatpush1.bf16.msra.mxu1 %v6036_v49  ;;  %v6090_v27 = vld [vmem:[#allocation6 + $0x680] sm:$0xff]  ;;  %v6092_v49 = vld [vmem:[#allocation6 + $0x690] sm:$0xff] }
 0xd8d   :  { %6256 = vmatprep.subr.bf16.mxu0 %v6039_v26  ;;  %6420 = vmatprep.subr.bf16.mxu1 %v6041_v39  ;;  %v6095_v26 = vld [vmem:[#allocation6 + $0x6a8] sm:$0xff]  ;;  %v6097_v39 = vld [vmem:[#allocation6 + $0x6b8] sm:$0xff] }
 0xd90   :  { %6257 = vmatpush1.bf16.msra.mxu0 %v6038_v28  ;;  %6421 = vmatpush1.bf16.msra.mxu1 %v6040_v29  ;;  %v6094_v28 = vld [vmem:[#allocation6 + $0x6a0] sm:$0xff]  ;;  %v6096_v29 = vld [vmem:[#allocation6 + $0x6b0] sm:$0xff] }
 0xd91   :  { %6258 = vmatprep.subr.bf16.mxu0 %v6043_v19  ;;  %6422 = vmatprep.subr.bf16.mxu1 %v6045_v42  ;;  %v6099_v19 = vld [vmem:[#allocation6 + $0x6c8] sm:$0xff]  ;;  %v6101_v42 = vld [vmem:[#allocation6 + $0x6d8] sm:$0xff] }
 0xd94   :  { %6259 = vmatpush1.bf16.msra.mxu0 %v6042_v45  ;;  %6423 = vmatpush1.bf16.msra.mxu1 %v6044_v22  ;;  %v6098_v45 = vld [vmem:[#allocation6 + $0x6c0] sm:$0xff]  ;;  %v6100_v22 = vld [vmem:[#allocation6 + $0x6d0] sm:$0xff] }
 0xd95   :  { %6260 = vmatprep.subr.bf16.mxu0 %v6047_v20  ;;  %6424 = vmatprep.subr.bf16.mxu1 %v6049_v4  ;;  %v6103_v20 = vld [vmem:[#allocation6 + $0x6e8] sm:$0xff]  ;;  %v6105_v4 = vld [vmem:[#allocation6 + $0x6f8] sm:$0xff] }
 0xd98   :  { %6261 = vmatpush1.bf16.msra.mxu0 %v6046_v6  ;;  %6425 = vmatpush1.bf16.msra.mxu1 %v6048_v31  ;;  %v6102_v6 = vld [vmem:[#allocation6 + $0x6e0] sm:$0xff]  ;;  %v6104_v31 = vld [vmem:[#allocation6 + $0x6f0] sm:$0xff] }
 0xd99   :  { %6262 = vmatprep.subr.bf16.mxu0 %v6051_v46  ;;  %6426 = vmatprep.subr.bf16.mxu1 %v6053_v14  ;;  %v6107_v46 = vld [vmem:[#allocation6 + $0x708] sm:$0xff]  ;;  %v6109_v14 = vld [vmem:[#allocation6 + $0x718] sm:$0xff] }
 0xd9c   :  { %6263 = vmatpush1.bf16.msra.mxu0 %v6050_v24  ;;  %6427 = vmatpush1.bf16.msra.mxu1 %v6052_v17  ;;  %v6106_v24 = vld [vmem:[#allocation6 + $0x700] sm:$0xff]  ;;  %v6108_v17 = vld [vmem:[#allocation6 + $0x710] sm:$0xff] }
 0xd9d   :  { %6264 = vmatprep.subr.bf16.mxu0 %v6055_v8  ;;  %6428 = vmatprep.subr.bf16.mxu1 %v6057_v58  ;;  %v6111_v8 = vld [vmem:[#allocation6 + $0x728] sm:$0xff]  ;;  %v6113_v58 = vld [vmem:[#allocation6 + $0x738] sm:$0xff] }
 0xda0   :  { %6265 = vmatpush1.bf16.msra.mxu0 %v6054_v11  ;;  %6429 = vmatpush1.bf16.msra.mxu1 %v6056_v35  ;;  %v6110_v11 = vld [vmem:[#allocation6 + $0x720] sm:$0xff]  ;;  %v6112_v35 = vld [vmem:[#allocation6 + $0x730] sm:$0xff] }
 0xda1   :  { %6266 = vmatprep.subr.bf16.mxu0 %v6059_v9  ;;  %6430 = vmatprep.subr.bf16.mxu1 %v6061_v33  ;;  %v6115_v9 = vld [vmem:[#allocation6 + $0x748] sm:$0xff]  ;;  %v6117_v33 = vld [vmem:[#allocation6 + $0x758] sm:$0xff] }
 0xda4   :  { %6267 = vmatpush1.bf16.msra.mxu0 %v6058_v47  ;;  %6431 = vmatpush1.bf16.msra.mxu1 %v6060_v23  ;;  %v6114_v47 = vld [vmem:[#allocation6 + $0x740] sm:$0xff]  ;;  %v6116_v23 = vld [vmem:[#allocation6 + $0x750] sm:$0xff] }
 0xda5   :  { %6268 = vmatprep.subr.bf16.mxu0 %v6063_v56  ;;  %6432 = vmatprep.subr.bf16.mxu1 %v6065_v62  ;;  %v6119_v56 = vld [vmem:[#allocation6 + $0x768] sm:$0xff]  ;;  %v6121_v62 = vld [vmem:[#allocation6 + $0x778] sm:$0xff] }
 0xda8   :  { %6269 = vmatpush1.bf16.msra.mxu0 %v6062_v2  ;;  %6433 = vmatpush1.bf16.msra.mxu1 %v6064_v36  ;;  %v6118_v2 = vld [vmem:[#allocation6 + $0x760] sm:$0xff]  ;;  %v6120_v36 = vld [vmem:[#allocation6 + $0x770] sm:$0xff] }
 0xda9   :  { %6270 = vmatprep.subr.bf16.mxu0 %v6067_v34  ;;  %6434 = vmatprep.subr.bf16.mxu1 %v6069_v7  ;;  %v6123_v34 = vld [vmem:[#allocation6 + $0x788] sm:$0xff]  ;;  %v6125_v7 = vld [vmem:[#allocation6 + $0x798] sm:$0xff] }
 0xdac   :  { %6271 = vmatpush1.bf16.msra.mxu0 %v6066_v53  ;;  %6435 = vmatpush1.bf16.msra.mxu1 %v6068_v1  ;;  %v6122_v53 = vld [vmem:[#allocation6 + $0x780] sm:$0xff]  ;;  %v6124_v1 = vld [vmem:[#allocation6 + $0x790] sm:$0xff] }
 0xdad   :  { %6272 = vmatprep.subr.bf16.mxu0 %v6071_v32  ;;  %6436 = vmatprep.subr.bf16.mxu1 %v6073_v50  ;;  %v6127_v32 = vld [vmem:[#allocation6 + $0x7a8] sm:$0xff]  ;;  %v6129_v50 = vld [vmem:[#allocation6 + $0x7b8] sm:$0xff] }
 0xdb0   :  { %6273 = vmatpush1.bf16.msra.mxu0 %v6070_v54  ;;  %6437 = vmatpush1.bf16.msra.mxu1 %v6072_v3  ;;  %v6126_v54 = vld [vmem:[#allocation6 + $0x7a0] sm:$0xff]  ;;  %v6128_v3 = vld [vmem:[#allocation6 + $0x7b0] sm:$0xff] }
 0xdb1   :  { %6283 = vmatprep.subr.bf16.mxu0 %v6075_v52  ;;  %6447 = vmatprep.subr.bf16.mxu1 %v6077_v10  ;;  %v6131_v52 = vld [vmem:[#allocation6 + $0x7c8] sm:$0xff]  ;;  %v6133_v10 = vld [vmem:[#allocation6 + $0x7d8] sm:$0xff] }
 0xdb3   :  { %6275 = vmatmul.mubr.bf16.vlgmr.msra.gmra.mrb[36].mxu0 %v5878_v30  ;;  %6439 = vmatmul.mubr.bf16.vlgmr.msra.gmra.mrb[36].mxu1 %v5878_v30  ;;  %v6130_v30 = vld [vmem:[#allocation6 + $0x7c0] sm:$0xff] }
 0xdb4   :  { %6284 = vmatpush1.bf16.msra.mxu0 %v6074_v44  ;;  %6448 = vmatpush1.bf16.msra.mxu1 %v6076_v59  ;;  %v6132_v44 = vld [vmem:[#allocation6 + $0x7d0] sm:$0xff]  ;;  %v6135_v59 = vld [vmem:[#allocation6 + $0x7e8] sm:$0xff] }
 0xdb5   :  { %6285 = vmatprep.subr.bf16.mxu0 %v6079_v5  ;;  %6449 = vmatprep.subr.bf16.mxu1 %v6081_v0  ;;  %v6137_v5 = vld [vmem:[#allocation6 + $0x7f8] sm:$0xff]  ;;  %v6134_v0 = vld [vmem:[#allocation6 + $0x7e0] sm:$0xff] }
 0xdb6   :  { %6315 = vmatprep.mubr.bf16.mxu0 %v5881_v57  ;;  %6479 = vmatprep.mubr.bf16.mxu1 %v5881_v57  ;;  %v6136_v57 = vld [vmem:[#allocation6 + $0x7f0] sm:$0xff] }
 0xdb8   :  { %6286 = vmatpush1.bf16.msra.mxu0 %v6078_v13  ;;  %6450 = vmatpush1.bf16.msra.mxu1 %v6080_v60  ;;  %v5880_v13 = vpack.c.bf16 %v5869_v63, %v5869_v63  ;;  %v6138_v60 = vld [vmem:[#allocation11 + $0x24] sm:$0xf] }
 0xdb9   :  { %6287 = vmatprep.subr.bf16.mxu0 %v6083_v48  ;;  %6451 = vmatprep.subr.bf16.mxu1 %v6085_v61  ;;  %v6143_v48 = vrot.slane %v6138_v60, %v7305_v37  ;;  %v6151_v61 = vrot.slane %v6138_v60, %v7308_v38 }
 0xdbc   :  { %6288 = vmatpush1.bf16.msra.mxu0 %v6082_v16  ;;  %6452 = vmatpush1.bf16.msra.mxu1 %v6084_v51  ;;  %v6147_v16 = vrot.slane %v6138_v60, %v7311_v40  ;;  %v6155_v51 = vrot.slane %v6138_v60, %v7314_v41 }
 0xdbd   :  { %6289 = vmatprep.subr.bf16.mxu0 %v6087_v25  ;;  %6453 = vmatprep.subr.bf16.mxu1 %v6089_v12 }
 0xdc0   :  { %6290 = vmatpush1.bf16.msra.mxu0 %v6086_v15  ;;  %6454 = vmatpush1.bf16.msra.mxu1 %v6088_v18 }
 0xdc1   :  { %6291 = vmatprep.subr.bf16.mxu0 %v6091_v55  ;;  %6455 = vmatprep.subr.bf16.mxu1 %v6093_v43 }
 0xdc4   :  { %6292 = vmatpush1.bf16.msra.mxu0 %v6090_v27  ;;  %6456 = vmatpush1.bf16.msra.mxu1 %v6092_v49 }
 0xdc5   :  { %6293 = vmatprep.subr.bf16.mxu0 %v6095_v26  ;;  %6457 = vmatprep.subr.bf16.mxu1 %v6097_v39 }
 0xdc8   :  { %6294 = vmatpush1.bf16.msra.mxu0 %v6094_v28  ;;  %6458 = vmatpush1.bf16.msra.mxu1 %v6096_v29 }
 0xdc9   :  { %6295 = vmatprep.subr.bf16.mxu0 %v6099_v19  ;;  %6459 = vmatprep.subr.bf16.mxu1 %v6101_v42 }
 0xdcc   :  { %6296 = vmatpush1.bf16.msra.mxu0 %v6098_v45  ;;  %6460 = vmatpush1.bf16.msra.mxu1 %v6100_v22 }
 0xdcd   :  { %6297 = vmatprep.subr.bf16.mxu0 %v6103_v20  ;;  %6461 = vmatprep.subr.bf16.mxu1 %v6105_v4 }
 0xdd0   :  { %6298 = vmatpush1.bf16.msra.mxu0 %v6102_v6  ;;  %6462 = vmatpush1.bf16.msra.mxu1 %v6104_v31 }
 0xdd1   :  { %6299 = vmatprep.subr.bf16.mxu0 %v6107_v46  ;;  %6463 = vmatprep.subr.bf16.mxu1 %v6109_v14 }
 0xdd4   :  { %6300 = vmatpush1.bf16.msra.mxu0 %v6106_v24  ;;  %6464 = vmatpush1.bf16.msra.mxu1 %v6108_v17 }
 0xdd5   :  { %6301 = vmatprep.subr.bf16.mxu0 %v6111_v8  ;;  %6465 = vmatprep.subr.bf16.mxu1 %v6113_v58 }
 0xdd8   :  { %6302 = vmatpush1.bf16.msra.mxu0 %v6110_v11  ;;  %6466 = vmatpush1.bf16.msra.mxu1 %v6112_v35 }
 0xdd9   :  { %6303 = vmatprep.subr.bf16.mxu0 %v6115_v9  ;;  %6467 = vmatprep.subr.bf16.mxu1 %v6117_v33 }
 0xddc   :  { %6304 = vmatpush1.bf16.msra.mxu0 %v6114_v47  ;;  %6468 = vmatpush1.bf16.msra.mxu1 %v6116_v23 }
 0xddd   :  { %6305 = vmatprep.subr.bf16.mxu0 %v6119_v56  ;;  %6469 = vmatprep.subr.bf16.mxu1 %v6121_v62 }
 0xde0   :  { %6306 = vmatpush1.bf16.msra.mxu0 %v6118_v2  ;;  %6470 = vmatpush1.bf16.msra.mxu1 %v6120_v36 }
 0xde1   :  { %6307 = vmatprep.subr.bf16.mxu0 %v6123_v34  ;;  %6471 = vmatprep.subr.bf16.mxu1 %v6125_v7 }
 0xde4   :  { %6308 = vmatpush1.bf16.msra.mxu0 %v6122_v53  ;;  %6472 = vmatpush1.bf16.msra.mxu1 %v6124_v1 }
 0xde5   :  { %6309 = vmatprep.subr.bf16.mxu0 %v6127_v32  ;;  %6473 = vmatprep.subr.bf16.mxu1 %v6129_v50 }
 0xde8   :  { %6310 = vmatpush1.bf16.msra.mxu0 %v6126_v54  ;;  %6474 = vmatpush1.bf16.msra.mxu1 %v6128_v3 }
 0xde9   :  { %6311 = vmatprep.subr.bf16.mxu0 %v6131_v52  ;;  %6475 = vmatprep.subr.bf16.mxu1 %v6133_v10 }
 0xdec   :  { %6312 = vmatpush1.bf16.msra.mxu0 %v6130_v30  ;;  %6476 = vmatpush1.bf16.msra.mxu1 %v6132_v44 }
 0xded   :  { %6313 = vmatprep.subr.bf16.mxu0 %v6135_v59  ;;  %6477 = vmatprep.subr.bf16.mxu1 %v6137_v5 }
 0xdf0   :  { %6314 = vmatpush1.bf16.msra.mxu0 %v6134_v0  ;;  %6478 = vmatpush1.bf16.msra.mxu1 %v6136_v57 }
 0xdf3   :  { %6316 = vmatmul.mubr.bf16.vlgmr.msra.gmra.mrb[36].mxu0 %v5880_v13  ;;  %6480 = vmatmul.mubr.bf16.vlgmr.msra.gmra.mrb[36].mxu1 %v5880_v13 }
 0xec6   :  { %v6317_v25 = vpop.f32.mrb[36].mxu0  ;;  %v6481_v12 = vpop.f32.mrb[36].mxu1 }
 0xec7   :  { %v7782_v15 = vadd.f32 %v6317_v25, %v6143_v48  ;;  %v7784_v21 = vadd.f32 %v6481_v12, %v6151_v61  ;;  %v6319_v63 = vpop.f32.mrb[37].mxu0  ;;  %v6483_v18 = vpop.f32.mrb[37].mxu1 }
 0xec8   :  { %v6760_v55 = vadd.f32 %v6319_v63, %v6147_v16  ;;  %v6762_v43 = vadd.f32 %v6483_v18, %v6155_v51  ;;  %v6321_v27 = vpop.f32.mrb[38].mxu0  ;;  %v6485_v49 = vpop.f32.mrb[38].mxu1 }
 0xec9   :  { %v6488_v37 = vmax.f32 %v7782_v15, 0.0  ;;  %v6490_v38 = vmax.f32 %v7784_v21, 0.0  ;;  %v6322_v26 = vpop.f32.mrb[39].mxu0  ;;  %v6486_v40 = vpop.f32.mrb[39].mxu1 }
 0xeca   :  { %v6489_v39 = vmax.f32 %v6760_v55, 0.0  ;;  %v6491_v41 = vmax.f32 %v6762_v43, 0.0 }
 0xecb   :  { %7122 = dma.done.wait [#allocation8 + $0x5], 4096 }
 0xecc   :  { %7123 = vsyncadd [#allocation8 + $0x5], 4294963200  ;;  %v6496_v28 = vpack.c.bf16 %v6489_v39, %v6489_v39  ;;  %v6498_v29 = vpack.c.bf16 %v6491_v41, %v6491_v41  ;;  %v6507_v19 = vld [vmem:[#allocation7 + $0x40] sm:$0xff]  ;;  %v6508_v20 = vld [vmem:[#allocation7 + $0x48] sm:$0xff]  ;;  %v6495_v52 = vpack.c.bf16 %v6488_v37, %v6488_v37  ;;  %v6497_v10 = vpack.c.bf16 %v6490_v38, %v6490_v38 }
 0xecd   :  { %v6523_v42 = vld [vmem:[#allocation7 + $0xc0] sm:$0xff]  ;;  %6683 = vmatprep.subr.bf16.mxu0 %v6507_v19  ;;  %v6524_v4 = vld [vmem:[#allocation7 + $0xc8] sm:$0xff]  ;;  %v6509_v46 = vld [vmem:[#allocation7 + $0x50] sm:$0xff] }
 0xece   :  { %6570 = vmatprep.mubr.bf16.mxu0 %v6496_v28  ;;  %6610 = vmatprep.mubr.bf16.mxu1 %v6498_v29  ;;  %v6499_v45 = vld [vmem:[#allocation7] sm:$0xff]  ;;  %v6500_v6 = vld [vmem:[#allocation7 + $0x8] sm:$0xff]  ;;  %v6525_v14 = vld [vmem:[#allocation7 + $0xd0] sm:$0xff] }
 0xecf   :  { %6705 = vmatprep.subr.bf16.mxu1 %v6523_v42  ;;  %v6515_v22 = vld [vmem:[#allocation7 + $0x80] sm:$0xff]  ;;  %6684 = vmatpush3.bf16.msra.mxu0 %v6499_v45  ;;  %v6516_v31 = vld [vmem:[#allocation7 + $0x88] sm:$0xff]  ;;  %v6501_v24 = vld [vmem:[#allocation7 + $0x10] sm:$0xff] }
 0xed0   :  { %6706 = vmatpush3.bf16.msra.mxu1 %v6515_v22  ;;  %6685 = vmatprep.subr.bf16.mxu0 %v6508_v20  ;;  %v6517_v17 = vld [vmem:[#allocation7 + $0x90] sm:$0xff]  ;;  %v6510_v8 = vld [vmem:[#allocation7 + $0x58] sm:$0xff]  ;;  %v6511_v9 = vld [vmem:[#allocation7 + $0x60] sm:$0xff] }
 0xed1   :  { %6707 = vmatprep.subr.bf16.mxu1 %v6524_v4  ;;  %v6526_v58 = vld [vmem:[#allocation7 + $0xd8] sm:$0xff]  ;;  %v6527_v33 = vld [vmem:[#allocation7 + $0xe0] sm:$0xff]  ;;  %v6512_v56 = vld [vmem:[#allocation7 + $0x68] sm:$0xff] }
 0xed2   :  { %v6502_v11 = vld [vmem:[#allocation7 + $0x18] sm:$0xff]  ;;  %v6503_v47 = vld [vmem:[#allocation7 + $0x20] sm:$0xff]  ;;  %v6528_v62 = vld [vmem:[#allocation7 + $0xe8] sm:$0xff] }
 0xed3   :  { %6686 = vmatpush3.bf16.msra.mxu0 %v6500_v6  ;;  %v6518_v35 = vld [vmem:[#allocation7 + $0x98] sm:$0xff]  ;;  %v6519_v23 = vld [vmem:[#allocation7 + $0xa0] sm:$0xff]  ;;  %v6504_v2 = vld [vmem:[#allocation7 + $0x28] sm:$0xff] }
 0xed4   :  { %6708 = vmatpush3.bf16.msra.mxu1 %v6516_v31  ;;  %6687 = vmatprep.subr.bf16.mxu0 %v6509_v46  ;;  %v6520_v36 = vld [vmem:[#allocation7 + $0xa8] sm:$0xff]  ;;  %v6513_v34 = vld [vmem:[#allocation7 + $0x70] sm:$0xff]  ;;  %v6514_v32 = vld [vmem:[#allocation7 + $0x78] sm:$0xff] }
 0xed5   :  { %6709 = vmatprep.subr.bf16.mxu1 %v6525_v14  ;;  %v6529_v7 = vld [vmem:[#allocation7 + $0xf0] sm:$0xff]  ;;  %v6530_v50 = vld [vmem:[#allocation7 + $0xf8] sm:$0xff] }
 0xed6   :  { %v6505_v53 = vld [vmem:[#allocation7 + $0x30] sm:$0xff]  ;;  %v6506_v54 = vld [vmem:[#allocation7 + $0x38] sm:$0xff] }
 0xed7   :  { %6688 = vmatpush3.bf16.msra.mxu0 %v6501_v24  ;;  %v6521_v1 = vld [vmem:[#allocation7 + $0xb0] sm:$0xff]  ;;  %v6522_v3 = vld [vmem:[#allocation7 + $0xb8] sm:$0xff] }
 0xed8   :  { %6710 = vmatpush3.bf16.msra.mxu1 %v6517_v17  ;;  %6689 = vmatprep.subr.bf16.mxu0 %v6510_v8  ;;  %v6676_v59 = vld [vmem:[#allocation11 + $0x28] ss:$0 sm:$0xff] }
 0xed9   :  { %6711 = vmatprep.subr.bf16.mxu1 %v6526_v58 }
 0xedb   :  { %6690 = vmatpush3.bf16.msra.mxu0 %v6502_v11 }
 0xedc   :  { %6712 = vmatpush3.bf16.msra.mxu1 %v6518_v35  ;;  %6691 = vmatprep.subr.bf16.mxu0 %v6511_v9 }
 0xedd   :  { %6713 = vmatprep.subr.bf16.mxu1 %v6527_v33 }
 0xedf   :  { %6692 = vmatpush3.bf16.msra.mxu0 %v6503_v47 }
 0xee0   :  { %6714 = vmatpush3.bf16.msra.mxu1 %v6519_v23  ;;  %6693 = vmatprep.subr.bf16.mxu0 %v6512_v56 }
 0xee1   :  { %6715 = vmatprep.subr.bf16.mxu1 %v6528_v62 }
 0xee3   :  { %6694 = vmatpush3.bf16.msra.mxu0 %v6504_v2 }
 0xee4   :  { %6716 = vmatpush3.bf16.msra.mxu1 %v6520_v36  ;;  %6695 = vmatprep.subr.bf16.mxu0 %v6513_v34 }
 0xee5   :  { %6717 = vmatprep.subr.bf16.mxu1 %v6529_v7 }
 0xee7   :  { %6696 = vmatpush3.bf16.msra.mxu0 %v6505_v53 }
 0xee8   :  { %6718 = vmatpush3.bf16.msra.mxu1 %v6521_v1  ;;  %6697 = vmatprep.subr.bf16.mxu0 %v6514_v32 }
 0xee9   :  { %6719 = vmatprep.subr.bf16.mxu1 %v6530_v50 }
 0xeeb   :  { %6698 = vmatpush3.bf16.msra.mxu0 %v6506_v54 }
 0xeec   :  { %6720 = vmatpush3.bf16.msra.mxu1 %v6522_v3 }
 0xeee   :  { %6571 = vmatmul.mubr.bf16.vlgmr.msra.gmra.mrb[40].mxu0 %v6495_v52 }
 0xeef   :  { %6611 = vmatmul.mubr.bf16.vlgmr.msra.gmra.mrb[40].mxu1 %v6497_v10 }
 0xfc1   :  { %v6699_v30 = vpop.f32.mrb[40].mxu0 }
 0xfc2   :  { %v6721_v44 = vpop.f32.mrb[40].mxu1  ;;  %v6700_v5 = vpop.f32.mrb[41].mxu0 }
 0xfc3   :  { %v6722_v0 = vpop.f32.mrb[41].mxu1  ;;  %v6701_v57 = vadd.f32 %v6700_v5, %v6699_v30  ;;  %v6702_v60 = vpop.f32.mrb[42].mxu0 }
 0xfc4   :  { %v6723_v13 = vadd.f32 %v6722_v0, %v6721_v44  ;;  %v6724_v48 = vpop.f32.mrb[42].mxu1  ;;  %v6703_v61 = vpop.f32.mrb[43].mxu0 }
 0xfc5   :  { %v6725_v16 = vpop.f32.mrb[43].mxu1  ;;  %v6573_v51 = vadd.f32 %v6701_v57, %v6676_v59 }
 0xfc7   :  { %v6613_v25 = vadd.f32 %v6723_v13, %v6573_v51 }
 0xfc9   :  { %6618 = vst [vmem:[%s7805_s8] sm:$0xff] %v6613_v25 }
 0xfca   :  { %6623 = vsyncpa [#allocation10], 1 }
 0xfcb   :  { %6624 = vsyncpa [#allocation12], 1 }
 0xfcc   :  { %6625 = vsyncmov [#allocation8] }
 0xfcf   :  { %s6626_s3 = vpop.sfrf %6625 }
 0xfd0   :  { %p6677_p10 = scmp.ne.s32.totalorder %s6626_s3, 0 }
 0xfd2   :  { %6630 = shalt.err (%p6677_p10)  }
 0xfd3   :  { %6632 = vsyncmov [#allocation8 + $0x1] }
 0xfd6   :  { %s6633_s15 = vpop.sfrf %6632 }
 0xfd7   :  { %p6678_p11 = scmp.ne.s32.totalorder %s6633_s15, 0 }
 0xfd9   :  { %6637 = shalt.err (%p6678_p11)  }
 0xfda   :  { %6639 = vsyncmov [#allocation8 + $0x2] }
 0xfdd   :  { %s6640_s16 = vpop.sfrf %6639 }
 0xfde   :  { %p6679_p12 = scmp.ne.s32.totalorder %s6640_s16, 0 }
 0xfe0   :  { %6644 = shalt.err (%p6679_p12)  }
 0xfe1   :  { %6646 = vsyncmov [#allocation8 + $0x3] }
 0xfe4   :  { %s6647_s17 = vpop.sfrf %6646 }
 0xfe5   :  { %p6680_p13 = scmp.ne.s32.totalorder %s6647_s17, 0 }
 0xfe7   :  { %6651 = shalt.err (%p6680_p13)  }
 0xfe8   :  { %6653 = vsyncmov [#allocation8 + $0x4] }
 0xfeb   :  { %s6654_s8 = vpop.sfrf %6653 }
 0xfec   :  { %p6681_p0 = scmp.ne.s32.totalorder %s6654_s8, 0 }
 0xfee   :  { %6658 = shalt.err (%p6681_p0)  }
 0xfef   :  { %6660 = vsyncmov [#allocation8 + $0x5] }
 0xff2   :  { %s6661_s18 = vpop.sfrf %6660 }
 0xff3   :  { %p6682_p1 = scmp.ne.s32.totalorder %s6661_s18, 0 }
 0xff5   :  { %6665 = shalt.err (%p6682_p1)  }

</bundles_post_ra>
